<compile_context>
chip_gen: v7x
topology: tpu7x:2x2x1
jax: 0.10.0
libtpu: 0.0.40
codegen_flags: <defaults>
</compile_context>

<pallas_src>
import functools

import jax
import jax.numpy as jnp
import numpy as np
from jax import lax
from jax.experimental import pallas as pl
from jax.experimental.pallas import tpu as pltpu

_SQRT_HALF = 0.7071067811865476


def _gelu_exact(v):
    """Exact (erf-based) GELU matching PyTorch nn.GELU() default.

    erf via Abramowitz & Stegun 7.1.26 (abs err <= 1.5e-7); exp + approx rcp
    both go to the EUP slot.
    """
    z = v * _SQRT_HALF
    az = jnp.abs(z)
    t = pl.reciprocal(1.0 + 0.3275911 * az, approx=True)
    poly = t * (0.254829592 + t * (-0.284496736 + t * (1.421413741
               + t * (-1.453152027 + t * 1.061405429))))
    erf_abs = 1.0 - poly * jnp.exp(-az * az)
    erf_z = jnp.where(z >= 0.0, erf_abs, -erf_abs)
    return 0.5 * v * (1.0 + erf_z)


def csc_kernel(x_ref, win_ref, bin_ref, wout_ref, bout_ref, wtot_ref,
               hmask_ref, vmask_ref, out_ref, r_ref, *, H, W, C, K, G, SB):
    HW = H * W
    RAD = K // 2
    NB = K + 1

    # Ones pad block: carries the fused depthwise bias through the tap matmul
    # (wtot's last column block has the bias on its diagonal for the direct
    # rows).  Written unconditionally: scratch is per-core and under megacore
    # grid splitting a core may never run program_id==0, so a conditional
    # first-step init would leave uninitialized (possibly NaN) VMEM.
    for g in range(G):
        r_ref[(g * NB + K) * C:(g * NB + K + 1) * C, :] = jnp.ones(
            (C, HW), jnp.bfloat16)

    for g in range(G):
        base = g * NB * C
        x_g = x_ref[g * C:(g + 1) * C, :]                          # (C, HW) f32

        # ---------- in_conv: 1x1 conv (MXU) + exact GELU ----------
        a = jnp.dot(win_ref[...], x_g,
                    preferred_element_type=jnp.float32) + bin_ref[...]
        a = _gelu_exact(a)

        # ---------- 31 horizontally shifted, edge-masked slabs -> bf16 R ----------
        # R[base + dxi*C + c, p] = a[c, p + dx] (zero outside the row), dx = dxi - 15.
        for dxi in range(K):
            dx = dxi - RAD
            if dx == 0:
                slab = a
            else:
                slab = hmask_ref[dxi:dxi + 1, :] * pltpu.roll(a, (-dx) % HW, axis=1)
            r_ref[base + dxi * C: base + (dxi + 1) * C, :] = slab.astype(jnp.bfloat16)

        # ---------- tap matmul (bf16 in, f32 accum) in output-row strips ----------
        # Row block dy (0..30): sum_dx (k33[c,dy,dx] + k31[c,dy]*[dx==0]) * R-slab,
        # row block 31: direct dw_13 + dw_11 (+ fused bias via the ones block).
        # Each strip's vertical roll+mask+accumulate runs right after its matmul,
        # so there is no (NB*C, HW) scratch round trip and MXU/XLU/VALU overlap.
        accs = [jnp.zeros((C, HW), jnp.float32) for _ in range(4)]
        for s in range(NB // SB):
            rs = s * SB * C
            oh = jnp.dot(wtot_ref[rs: rs + SB * C, :],
                         r_ref[base: base + NB * C, :],
                         preferred_element_type=jnp.float32)        # (SB*C, HW) f32
            for j in range(SB):
                blki = s * SB + j
                blk = oh[j * C:(j + 1) * C, :]
                if blki == K:                 # direct rows: no vertical shift
                    term = blk
                else:
                    dy = blki - RAD
                    if dy == 0:
                        term = blk
                    else:
                        term = vmask_ref[blki:blki + 1, :] * pltpu.roll(
                            blk, (-dy * W) % HW, axis=1)
                accs[blki % 4] = accs[blki % 4] + term
        dw = (accs[0] + accs[1]) + (accs[2] + accs[3])

        # ---------- residual + ReLU + out_conv (dw bias already folded in) ----------
        mid = jnp.maximum(x_g + dw, 0.0)
        out_ref[g * C:(g + 1) * C, :] = (
            jnp.dot(wout_ref[...], mid, preferred_element_type=jnp.float32)
            + bout_ref[...])


def _tile_params(B):
    """Images-per-step and matmul strip size, per TPU generation (perf only)."""
    kind = ""
    try:
        kind = jax.devices()[0].device_kind.lower()
    except Exception:
        pass
    if "v7" in kind and B >= 2:
        g = B // 2            # keep >=2 parallel grid steps for the 2 TensorCores
    else:
        g = B                 # single-TC chips: fold batch into one step
    while g > 1 and B % g != 0:
        g -= 1
    g = max(g, 1)
    sb = 8 if "v5" in kind else 16   # 128-row strips on v5e, 256-row on v6e/v7x
    return g, sb


def pack_csc_params(H, W, Win, bin_, Wout, bout,
                    w13, b13, w31, b31, w33, b33, w11, b11):
    """One-time host-side packing of weights + boundary masks (hoisted out of the
    per-call forward path; recompute only on weight update)."""
    C = int(Win.shape[0])
    K = 31
    RAD = K // 2
    NB = K + 1
    HW = H * W

    k13 = np.asarray(w13, np.float32)[:, 0, 0, :]        # (C, 31)
    k31 = np.asarray(w31, np.float32)[:, 0, :, 0]        # (C, 31)
    k33 = np.asarray(w33, np.float32)[:, 0, :, :]        # (C, 31, 31)
    k11 = np.asarray(w11, np.float32)[:, 0, 0, 0]        # (C,)
    ball = (np.asarray(b13, np.float32) + np.asarray(b31, np.float32)
            + np.asarray(b33, np.float32) + np.asarray(b11, np.float32))

    # Fused tap operator: each C x C sub-block is diagonal (depthwise).
    vals = np.zeros((NB, K, C), np.float32)
    vals[:K] = np.transpose(k33, (1, 2, 0))              # [dy, dx, c]
    vals[:K, RAD, :] += np.transpose(k31, (1, 0))        # dw_31 folded @ dx==0
    vals[K] = np.transpose(k13, (1, 0))                  # direct: dw_13
    vals[K, RAD, :] += k11                               # + dw_11
    blk = np.arange(NB)[:, None, None]
    dxi = np.arange(K)[None, :, None]
    ch = np.arange(C)[None, None, :]
    rows = np.broadcast_to(blk * C + ch, (NB, K, C)).reshape(-1)
    cols = np.broadcast_to(dxi * C + ch, (NB, K, C)).reshape(-1)
    wtot = np.zeros((NB * C, NB * C), np.float32)
    wtot[rows, cols] = vals.reshape(-1)
    # Fused depthwise bias rides on the ones pad block of R (direct rows only).
    wtot[K * C + np.arange(C), K * C + np.arange(C)] = ball

    # Boundary masks for the shifted slabs (per-image, independent of batch).
    jj = np.arange(HW) % W
    ii = np.arange(HW) // W
    hmask = np.stack([((jj + d >= 0) & (jj + d < W))
                      for d in range(-RAD, RAD + 1)]).astype(np.float32)
    vmask = np.stack([((ii + d >= 0) & (ii + d < H))
                      for d in range(-RAD, RAD + 1)]).astype(np.float32)

    return dict(
        Win=jnp.asarray(Win, jnp.float32),
        bin=jnp.asarray(bin_, jnp.float32).reshape(C, 1),
        Wout=jnp.asarray(Wout, jnp.float32),
        bout=jnp.asarray(bout, jnp.float32).reshape(C, 1),
        wtot=jnp.asarray(wtot, jnp.bfloat16),            # bf16 MXU operand
        hmask=jnp.asarray(hmask),
        vmask=jnp.asarray(vmask),
        C=C, K=K, H=H, W=W)


def csc_block_forward(x, params):
    """x: (B, C, H, W) f32 (NCHW, like the PyTorch module)."""
    B, C, H, W = x.shape
    assert C == params["C"] and H == params["H"] and W == params["W"]
    K = params["K"]
    NB = K + 1
    HW = H * W
    G, SB = _tile_params(B)

    x_flat = x.reshape(B * C, HW)                        # no transpose: lanes = H*W

    flops = B * (2 * (NB * C) * (NB * C) * HW + 4 * C * C * HW)
    transcendentals = 2 * B * C * HW
    bytes_accessed = (2 * B * C * HW * 4 + (NB * C) * (NB * C) * 2
                      + 2 * K * HW * 4 + (2 * C * C + 2 * C) * 4)

    kernel = functools.partial(csc_kernel, H=H, W=W, C=C, K=K, G=G, SB=SB)
    out_flat = pl.pallas_call(
        kernel,
        out_shape=jax.ShapeDtypeStruct((B * C, HW), jnp.float32),
        grid=(B // G,),
        in_specs=[
            pl.BlockSpec((G * C, HW), lambda b: (b, 0)),          # x slab
            pl.BlockSpec((C, C), lambda b: (0, 0)),               # Win
            pl.BlockSpec((C, 1), lambda b: (0, 0)),               # bin
            pl.BlockSpec((C, C), lambda b: (0, 0)),               # Wout
            pl.BlockSpec((C, 1), lambda b: (0, 0)),               # bout
            pl.BlockSpec((NB * C, NB * C), lambda b: (0, 0)),     # fused dw taps (bf16)
            pl.BlockSpec((K, HW), lambda b: (0, 0)),              # horiz masks
            pl.BlockSpec((K, HW), lambda b: (0, 0)),              # vert masks
        ],
        out_specs=pl.BlockSpec((G * C, HW), lambda b: (b, 0)),
        scratch_shapes=[pltpu.VMEM((G * NB * C, HW), jnp.bfloat16)],  # shifted slabs
        compiler_params=pltpu.CompilerParams(
            dimension_semantics=("parallel",)),
        cost_estimate=pl.CostEstimate(flops=flops,
                                      transcendentals=transcendentals,
                                      bytes_accessed=bytes_accessed),
    )(x_flat, params["Win"], params["bin"], params["Wout"], params["bout"],
      params["wtot"], params["hmask"], params["vmask"])

    return out_flat.reshape(B, C, H, W)


def csc_reference(x, Win, bin_, Wout, bout,
                  w13, b13, w31, b31, w33, b33, w11, b11):
    """Pure-JAX reference mirroring the PyTorch forward (NCHW)."""
    C = x.shape[1]

    def pconv(inp, w, b):
        return (jnp.einsum('oc,bchw->bohw', w, inp,
                           precision=lax.Precision.HIGHEST)
                + b[None, :, None, None])

    def dconv(inp, w, b, ph, pw):
        out = lax.conv_general_dilated(
            inp, w, window_strides=(1, 1), padding=((ph, ph), (pw, pw)),
            dimension_numbers=("NCHW", "OIHW", "NCHW"),
            feature_group_count=C, precision=lax.Precision.HIGHEST)
        return out + b[None, :, None, None]

    a = jax.nn.gelu(pconv(x, Win, bin_), approximate=False)
    mid = (x
           + dconv(a, w13, b13, 0, 15)
           + dconv(a, w31, b31, 15, 0)
           + dconv(a, w33, b33, 15, 15)
           + dconv(a, w11, b11, 0, 0))
    mid = jnp.maximum(mid, 0.0)
    return pconv(mid, Wout, bout)


if __name__ == "__main__":
    B, C, H, W = 2, 16, 16, 16           # dim=16 -> C multiple of 8, HW=256 lanes

    key = jax.random.PRNGKey(0)
    ks = jax.random.split(key, 13)
    # Shapes match nn.Conv2d parameters of CSC_Block(dim=16).
    Win  = jax.random.normal(ks[0], (C, C), jnp.float32) * 0.25        # in_conv
    bin_ = jax.random.normal(ks[1], (C,), jnp.float32) * 0.10
    Wout = jax.random.normal(ks[2], (C, C), jnp.float32) * 0.25        # out_conv
    bout = jax.random.normal(ks[3], (C,), jnp.float32) * 0.10
    w13 = jax.random.normal(ks[4], (C, 1, 1, 31), jnp.float32) * 0.05  # dw_13
    b13 = jax.random.normal(ks[5], (C,), jnp.float32) * 0.05
    w31 = jax.random.normal(ks[6], (C, 1, 31, 1), jnp.float32) * 0.05  # dw_31
    b31 = jax.random.normal(ks[7], (C,), jnp.float32) * 0.05
    w33 = jax.random.normal(ks[8], (C, 1, 31, 31), jnp.float32) * 0.02 # dw_33
    b33 = jax.random.normal(ks[9], (C,), jnp.float32) * 0.05
    w11 = jax.random.normal(ks[10], (C, 1, 1, 1), jnp.float32) * 0.10  # dw_11
    b11 = jax.random.normal(ks[11], (C,), jnp.float32) * 0.05
    x = jax.random.normal(ks[12], (B, C, H, W), jnp.float32)

    # One-time packing (hoisted out of the forward path).
    params = pack_csc_params(H, W, Win, bin_, Wout, bout,
                             w13, b13, w31, b31, w33, b33, w11, b11)

    out = csc_block_forward(x, params)
    out = jax.block_until_ready(out)

    ref = csc_reference(x, Win, bin_, Wout, bout,
                        w13, b13, w31, b31, w33, b33, w11, b11)
    # Tolerance relaxed slightly for the bf16-operand / f32-accumulate MXU path.
    np.testing.assert_allclose(np.asarray(out), np.asarray(ref),
                               rtol=1e-2, atol=5e-3)
    print("KERNEL_OK")
</pallas_src>

<mosaic_0001>
module attributes {stable_mosaic.version = 11 : i64} {
  func.func @csc_kernel(%arg0: i32, %arg1: memref<32x256xf32, #tpu.memory_space<vmem>>, %arg2: memref<16x16xf32, #tpu.memory_space<vmem>>, %arg3: memref<16x1xf32, #tpu.memory_space<vmem>>, %arg4: memref<16x16xf32, #tpu.memory_space<vmem>>, %arg5: memref<16x1xf32, #tpu.memory_space<vmem>>, %arg6: memref<512x512xbf16, #tpu.memory_space<vmem>>, %arg7: memref<31x256xf32, #tpu.memory_space<vmem>>, %arg8: memref<31x256xf32, #tpu.memory_space<vmem>>, %arg9: memref<32x256xf32, #tpu.memory_space<vmem>>, %arg10: memref<1024x256xbf16, #tpu.memory_space<vmem>>) attributes {dimension_semantics = [#tpu.dimension_semantics<parallel>], iteration_bounds = array<i64: 1>, scalar_prefetch = 0 : i64, scratch_operands = 1 : i64, tpu.core_type = #tpu.core_type<tc>, window_params = [{transform_indices = @transform_0, window_bounds = array<i64: 32, 256>}, {pipeline_mode = #tpu.pipeline_mode<synchronous>, transform_indices = @transform_1, window_bounds = array<i64: 16, 16>}, {pipeline_mode = #tpu.pipeline_mode<synchronous>, transform_indices = @transform_2, window_bounds = array<i64: 16, 1>}, {pipeline_mode = #tpu.pipeline_mode<synchronous>, transform_indices = @transform_3, window_bounds = array<i64: 16, 16>}, {pipeline_mode = #tpu.pipeline_mode<synchronous>, transform_indices = @transform_4, window_bounds = array<i64: 16, 1>}, {pipeline_mode = #tpu.pipeline_mode<synchronous>, transform_indices = @transform_5, window_bounds = array<i64: 512, 512>}, {pipeline_mode = #tpu.pipeline_mode<synchronous>, transform_indices = @transform_6, window_bounds = array<i64: 31, 256>}, {pipeline_mode = #tpu.pipeline_mode<synchronous>, transform_indices = @transform_7, window_bounds = array<i64: 31, 256>}, {transform_indices = @transform_8, window_bounds = array<i64: 32, 256>}]} {
    %cst = arith.constant 1.000000e+00 : bf16
    %0 = vector.broadcast %cst : bf16 to vector<16x256xbf16>
    %c496 = arith.constant 496 : index
    %c0 = arith.constant 0 : index
    %1 = vector.load %arg10[%c496, %c0] : memref<1024x256xbf16, #tpu.memory_space<vmem>>, vector<16x256xbf16>
    tpu.vector_store %arg10[%c496, %c0], %0 {strides = array<i32>} : memref<1024x256xbf16, #tpu.memory_space<vmem>>, vector<16x256xbf16>,
    %cst_0 = arith.constant 1.000000e+00 : bf16
    %2 = vector.broadcast %cst_0 : bf16 to vector<16x256xbf16>
    %c1008 = arith.constant 1008 : index
    %c0_1 = arith.constant 0 : index
    %3 = vector.load %arg10[%c1008, %c0_1] : memref<1024x256xbf16, #tpu.memory_space<vmem>>, vector<16x256xbf16>
    tpu.vector_store %arg10[%c1008, %c0_1], %2 {strides = array<i32>} : memref<1024x256xbf16, #tpu.memory_space<vmem>>, vector<16x256xbf16>,
    %c0_2 = arith.constant 0 : index
    %c0_3 = arith.constant 0 : index
    %4 = vector.load %arg1[%c0_2, %c0_3] : memref<32x256xf32, #tpu.memory_space<vmem>>, vector<16x256xf32>
    %c0_4 = arith.constant 0 : index
    %c0_5 = arith.constant 0 : index
    %5 = vector.load %arg2[%c0_4, %c0_5] : memref<16x16xf32, #tpu.memory_space<vmem>>, vector<16x16xf32>
    %cst_6 = arith.constant dense<0.000000e+00> : vector<16x256xf32>
    %6 = tpu.matmul %5, %4, %cst_6 {dimension_numbers = #tpu.dot_dimension_numbers<[1], [0], [0], [1], [0, 0, 1, 1], [], []>} : vector<16x16xf32>, vector<16x256xf32>, vector<16x256xf32> -> vector<16x256xf32>
    %c0_7 = arith.constant 0 : index
    %c0_8 = arith.constant 0 : index
    %7 = vector.load %arg3[%c0_7, %c0_8] : memref<16x1xf32, #tpu.memory_space<vmem>>, vector<16x1xf32>
    %8 = vector.broadcast %7 : vector<16x1xf32> to vector<16x256xf32>
    %9 = arith.addf %6, %8 : vector<16x256xf32>
    %cst_9 = arith.constant 0.707106769 : f32
    %10 = vector.broadcast %cst_9 : f32 to vector<16x256xf32>
    %11 = arith.mulf %9, %10 : vector<16x256xf32>
    %12 = math.absf %11 : vector<16x256xf32>
    %cst_10 = arith.constant 0.327591091 : f32
    %13 = vector.broadcast %cst_10 : f32 to vector<16x256xf32>
    %14 = arith.mulf %13, %12 : vector<16x256xf32>
    %cst_11 = arith.constant 1.000000e+00 : f32
    %15 = vector.broadcast %cst_11 : f32 to vector<16x256xf32>
    %16 = arith.addf %15, %14 : vector<16x256xf32>
    %17 = tpu.reciprocal %16 {approx = true} : vector<16x256xf32> -> vector<16x256xf32>
    %cst_12 = arith.constant 1.06140542 : f32
    %18 = vector.broadcast %cst_12 : f32 to vector<16x256xf32>
    %19 = arith.mulf %17, %18 : vector<16x256xf32>
    %cst_13 = arith.constant -1.45315206 : f32
    %20 = vector.broadcast %cst_13 : f32 to vector<16x256xf32>
    %21 = arith.addf %20, %19 : vector<16x256xf32>
    %22 = arith.mulf %17, %21 : vector<16x256xf32>
    %cst_14 = arith.constant 1.42141378 : f32
    %23 = vector.broadcast %cst_14 : f32 to vector<16x256xf32>
    %24 = arith.addf %23, %22 : vector<16x256xf32>
    %25 = arith.mulf %17, %24 : vector<16x256xf32>
    %cst_15 = arith.constant -0.284496725 : f32
    %26 = vector.broadcast %cst_15 : f32 to vector<16x256xf32>
    %27 = arith.addf %26, %25 : vector<16x256xf32>
    %28 = arith.mulf %17, %27 : vector<16x256xf32>
    %cst_16 = arith.constant 0.254829586 : f32
    %29 = vector.broadcast %cst_16 : f32 to vector<16x256xf32>
    %30 = arith.addf %29, %28 : vector<16x256xf32>
    %31 = arith.mulf %17, %30 : vector<16x256xf32>
    %cst_17 = arith.constant 0.000000e+00 : f32
    %32 = vector.broadcast %cst_17 : f32 to vector<16x256xf32>
    %33 = arith.subf %32, %12 : vector<16x256xf32>
    %34 = arith.mulf %33, %12 : vector<16x256xf32>
    %35 = math.exp %34 : vector<16x256xf32>
    %36 = arith.mulf %31, %35 : vector<16x256xf32>
    %cst_18 = arith.constant 1.000000e+00 : f32
    %37 = vector.broadcast %cst_18 : f32 to vector<16x256xf32>
    %38 = arith.subf %37, %36 : vector<16x256xf32>
    %cst_19 = arith.constant 0.000000e+00 : f32
    %39 = vector.broadcast %cst_19 : f32 to vector<16x256xf32>
    %40 = arith.cmpf oge, %11, %39 : vector<16x256xf32>
    %cst_20 = arith.constant 0.000000e+00 : f32
    %41 = vector.broadcast %cst_20 : f32 to vector<16x256xf32>
    %42 = arith.subf %41, %38 : vector<16x256xf32>
    %43 = arith.select %40, %38, %42 : vector<16x256xi1>, vector<16x256xf32>
    %cst_21 = arith.constant 5.000000e-01 : f32
    %44 = vector.broadcast %cst_21 : f32 to vector<16x256xf32>
    %45 = arith.mulf %44, %9 : vector<16x256xf32>
    %cst_22 = arith.constant 1.000000e+00 : f32
    %46 = vector.broadcast %cst_22 : f32 to vector<16x256xf32>
    %47 = arith.addf %46, %43 : vector<16x256xf32>
    %48 = arith.mulf %45, %47 : vector<16x256xf32>
    %c0_23 = arith.constant 0 : index
    %c0_24 = arith.constant 0 : index
    %49 = vector.load %arg7[%c0_23, %c0_24] : memref<31x256xf32, #tpu.memory_space<vmem>>, vector<1x256xf32>
    %c15_i32 = arith.constant 15 : i32
    %50 = tpu.dynamic_rotate %48 by %c15_i32 dim 1 : vector<16x256xf32>, i32 -> vector<16x256xf32>
    %51 = vector.broadcast %49 : vector<1x256xf32> to vector<16x256xf32>
    %52 = arith.mulf %51, %50 : vector<16x256xf32>
    %53 = arith.truncf %52 : vector<16x256xf32> to vector<16x256xbf16>
    %c0_25 = arith.constant 0 : index
    %c0_26 = arith.constant 0 : index
    %54 = vector.load %arg10[%c0_25, %c0_26] : memref<1024x256xbf16, #tpu.memory_space<vmem>>, vector<16x256xbf16>
    tpu.vector_store %arg10[%c0_25, %c0_26], %53 {strides = array<i32>} : memref<1024x256xbf16, #tpu.memory_space<vmem>>, vector<16x256xbf16>,
    %c1 = arith.constant 1 : index
    %c0_27 = arith.constant 0 : index
    %55 = vector.load %arg7[%c1, %c0_27] : memref<31x256xf32, #tpu.memory_space<vmem>>, vector<1x256xf32>
    %c14_i32 = arith.constant 14 : i32
    %56 = tpu.dynamic_rotate %48 by %c14_i32 dim 1 : vector<16x256xf32>, i32 -> vector<16x256xf32>
    %57 = vector.broadcast %55 : vector<1x256xf32> to vector<16x256xf32>
    %58 = arith.mulf %57, %56 : vector<16x256xf32>
    %59 = arith.truncf %58 : vector<16x256xf32> to vector<16x256xbf16>
    %c16 = arith.constant 16 : index
    %c0_28 = arith.constant 0 : index
    %60 = vector.load %arg10[%c16, %c0_28] : memref<1024x256xbf16, #tpu.memory_space<vmem>>, vector<16x256xbf16>
    tpu.vector_store %arg10[%c16, %c0_28], %59 {strides = array<i32>} : memref<1024x256xbf16, #tpu.memory_space<vmem>>, vector<16x256xbf16>,
    %c2 = arith.constant 2 : index
    %c0_29 = arith.constant 0 : index
    %61 = vector.load %arg7[%c2, %c0_29] : memref<31x256xf32, #tpu.memory_space<vmem>>, vector<1x256xf32>
    %c13_i32 = arith.constant 13 : i32
    %62 = tpu.dynamic_rotate %48 by %c13_i32 dim 1 : vector<16x256xf32>, i32 -> vector<16x256xf32>
    %63 = vector.broadcast %61 : vector<1x256xf32> to vector<16x256xf32>
    %64 = arith.mulf %63, %62 : vector<16x256xf32>
    %65 = arith.truncf %64 : vector<16x256xf32> to vector<16x256xbf16>
    %c32 = arith.constant 32 : index
    %c0_30 = arith.constant 0 : index
    %66 = vector.load %arg10[%c32, %c0_30] : memref<1024x256xbf16, #tpu.memory_space<vmem>>, vector<16x256xbf16>
    tpu.vector_store %arg10[%c32, %c0_30], %65 {strides = array<i32>} : memref<1024x256xbf16, #tpu.memory_space<vmem>>, vector<16x256xbf16>,
    %c3 = arith.constant 3 : index
    %c0_31 = arith.constant 0 : index
    %67 = vector.load %arg7[%c3, %c0_31] : memref<31x256xf32, #tpu.memory_space<vmem>>, vector<1x256xf32>
    %c12_i32 = arith.constant 12 : i32
    %68 = tpu.dynamic_rotate %48 by %c12_i32 dim 1 : vector<16x256xf32>, i32 -> vector<16x256xf32>
    %69 = vector.broadcast %67 : vector<1x256xf32> to vector<16x256xf32>
    %70 = arith.mulf %69, %68 : vector<16x256xf32>
    %71 = arith.truncf %70 : vector<16x256xf32> to vector<16x256xbf16>
    %c48 = arith.constant 48 : index
    %c0_32 = arith.constant 0 : index
    %72 = vector.load %arg10[%c48, %c0_32] : memref<1024x256xbf16, #tpu.memory_space<vmem>>, vector<16x256xbf16>
    tpu.vector_store %arg10[%c48, %c0_32], %71 {strides = array<i32>} : memref<1024x256xbf16, #tpu.memory_space<vmem>>, vector<16x256xbf16>,
    %c4 = arith.constant 4 : index
    %c0_33 = arith.constant 0 : index
    %73 = vector.load %arg7[%c4, %c0_33] : memref<31x256xf32, #tpu.memory_space<vmem>>, vector<1x256xf32>
    %c11_i32 = arith.constant 11 : i32
    %74 = tpu.dynamic_rotate %48 by %c11_i32 dim 1 : vector<16x256xf32>, i32 -> vector<16x256xf32>
    %75 = vector.broadcast %73 : vector<1x256xf32> to vector<16x256xf32>
    %76 = arith.mulf %75, %74 : vector<16x256xf32>
    %77 = arith.truncf %76 : vector<16x256xf32> to vector<16x256xbf16>
    %c64 = arith.constant 64 : index
    %c0_34 = arith.constant 0 : index
    %78 = vector.load %arg10[%c64, %c0_34] : memref<1024x256xbf16, #tpu.memory_space<vmem>>, vector<16x256xbf16>
    tpu.vector_store %arg10[%c64, %c0_34], %77 {strides = array<i32>} : memref<1024x256xbf16, #tpu.memory_space<vmem>>, vector<16x256xbf16>,
    %c5 = arith.constant 5 : index
    %c0_35 = arith.constant 0 : index
    %79 = vector.load %arg7[%c5, %c0_35] : memref<31x256xf32, #tpu.memory_space<vmem>>, vector<1x256xf32>
    %c10_i32 = arith.constant 10 : i32
    %80 = tpu.dynamic_rotate %48 by %c10_i32 dim 1 : vector<16x256xf32>, i32 -> vector<16x256xf32>
    %81 = vector.broadcast %79 : vector<1x256xf32> to vector<16x256xf32>
    %82 = arith.mulf %81, %80 : vector<16x256xf32>
    %83 = arith.truncf %82 : vector<16x256xf32> to vector<16x256xbf16>
    %c80 = arith.constant 80 : index
    %c0_36 = arith.constant 0 : index
    %84 = vector.load %arg10[%c80, %c0_36] : memref<1024x256xbf16, #tpu.memory_space<vmem>>, vector<16x256xbf16>
    tpu.vector_store %arg10[%c80, %c0_36], %83 {strides = array<i32>} : memref<1024x256xbf16, #tpu.memory_space<vmem>>, vector<16x256xbf16>,
    %c6 = arith.constant 6 : index
    %c0_37 = arith.constant 0 : index
    %85 = vector.load %arg7[%c6, %c0_37] : memref<31x256xf32, #tpu.memory_space<vmem>>, vector<1x256xf32>
    %c9_i32 = arith.constant 9 : i32
    %86 = tpu.dynamic_rotate %48 by %c9_i32 dim 1 : vector<16x256xf32>, i32 -> vector<16x256xf32>
    %87 = vector.broadcast %85 : vector<1x256xf32> to vector<16x256xf32>
    %88 = arith.mulf %87, %86 : vector<16x256xf32>
    %89 = arith.truncf %88 : vector<16x256xf32> to vector<16x256xbf16>
    %c96 = arith.constant 96 : index
    %c0_38 = arith.constant 0 : index
    %90 = vector.load %arg10[%c96, %c0_38] : memref<1024x256xbf16, #tpu.memory_space<vmem>>, vector<16x256xbf16>
    tpu.vector_store %arg10[%c96, %c0_38], %89 {strides = array<i32>} : memref<1024x256xbf16, #tpu.memory_space<vmem>>, vector<16x256xbf16>,
    %c7 = arith.constant 7 : index
    %c0_39 = arith.constant 0 : index
    %91 = vector.load %arg7[%c7, %c0_39] : memref<31x256xf32, #tpu.memory_space<vmem>>, vector<1x256xf32>
    %c8_i32 = arith.constant 8 : i32
    %92 = tpu.dynamic_rotate %48 by %c8_i32 dim 1 : vector<16x256xf32>, i32 -> vector<16x256xf32>
    %93 = vector.broadcast %91 : vector<1x256xf32> to vector<16x256xf32>
    %94 = arith.mulf %93, %92 : vector<16x256xf32>
    %95 = arith.truncf %94 : vector<16x256xf32> to vector<16x256xbf16>
    %c112 = arith.constant 112 : index
    %c0_40 = arith.constant 0 : index
    %96 = vector.load %arg10[%c112, %c0_40] : memref<1024x256xbf16, #tpu.memory_space<vmem>>, vector<16x256xbf16>
    tpu.vector_store %arg10[%c112, %c0_40], %95 {strides = array<i32>} : memref<1024x256xbf16, #tpu.memory_space<vmem>>, vector<16x256xbf16>,
    %c8 = arith.constant 8 : index
    %c0_41 = arith.constant 0 : index
    %97 = vector.load %arg7[%c8, %c0_41] : memref<31x256xf32, #tpu.memory_space<vmem>>, vector<1x256xf32>
    %c7_i32 = arith.constant 7 : i32
    %98 = tpu.dynamic_rotate %48 by %c7_i32 dim 1 : vector<16x256xf32>, i32 -> vector<16x256xf32>
    %99 = vector.broadcast %97 : vector<1x256xf32> to vector<16x256xf32>
    %100 = arith.mulf %99, %98 : vector<16x256xf32>
    %101 = arith.truncf %100 : vector<16x256xf32> to vector<16x256xbf16>
    %c128 = arith.constant 128 : index
    %c0_42 = arith.constant 0 : index
    %102 = vector.load %arg10[%c128, %c0_42] : memref<1024x256xbf16, #tpu.memory_space<vmem>>, vector<16x256xbf16>
    tpu.vector_store %arg10[%c128, %c0_42], %101 {strides = array<i32>} : memref<1024x256xbf16, #tpu.memory_space<vmem>>, vector<16x256xbf16>,
    %c9 = arith.constant 9 : index
    %c0_43 = arith.constant 0 : index
    %103 = vector.load %arg7[%c9, %c0_43] : memref<31x256xf32, #tpu.memory_space<vmem>>, vector<1x256xf32>
    %c6_i32 = arith.constant 6 : i32
    %104 = tpu.dynamic_rotate %48 by %c6_i32 dim 1 : vector<16x256xf32>, i32 -> vector<16x256xf32>
    %105 = vector.broadcast %103 : vector<1x256xf32> to vector<16x256xf32>
    %106 = arith.mulf %105, %104 : vector<16x256xf32>
    %107 = arith.truncf %106 : vector<16x256xf32> to vector<16x256xbf16>
    %c144 = arith.constant 144 : index
    %c0_44 = arith.constant 0 : index
    %108 = vector.load %arg10[%c144, %c0_44] : memref<1024x256xbf16, #tpu.memory_space<vmem>>, vector<16x256xbf16>
    tpu.vector_store %arg10[%c144, %c0_44], %107 {strides = array<i32>} : memref<1024x256xbf16, #tpu.memory_space<vmem>>, vector<16x256xbf16>,
    %c10 = arith.constant 10 : index
    %c0_45 = arith.constant 0 : index
    %109 = vector.load %arg7[%c10, %c0_45] : memref<31x256xf32, #tpu.memory_space<vmem>>, vector<1x256xf32>
    %c5_i32 = arith.constant 5 : i32
    %110 = tpu.dynamic_rotate %48 by %c5_i32 dim 1 : vector<16x256xf32>, i32 -> vector<16x256xf32>
    %111 = vector.broadcast %109 : vector<1x256xf32> to vector<16x256xf32>
    %112 = arith.mulf %111, %110 : vector<16x256xf32>
    %113 = arith.truncf %112 : vector<16x256xf32> to vector<16x256xbf16>
    %c160 = arith.constant 160 : index
    %c0_46 = arith.constant 0 : index
    %114 = vector.load %arg10[%c160, %c0_46] : memref<1024x256xbf16, #tpu.memory_space<vmem>>, vector<16x256xbf16>
    tpu.vector_store %arg10[%c160, %c0_46], %113 {strides = array<i32>} : memref<1024x256xbf16, #tpu.memory_space<vmem>>, vector<16x256xbf16>,
    %c11 = arith.constant 11 : index
    %c0_47 = arith.constant 0 : index
    %115 = vector.load %arg7[%c11, %c0_47] : memref<31x256xf32, #tpu.memory_space<vmem>>, vector<1x256xf32>
    %c4_i32 = arith.constant 4 : i32
    %116 = tpu.dynamic_rotate %48 by %c4_i32 dim 1 : vector<16x256xf32>, i32 -> vector<16x256xf32>
    %117 = vector.broadcast %115 : vector<1x256xf32> to vector<16x256xf32>
    %118 = arith.mulf %117, %116 : vector<16x256xf32>
    %119 = arith.truncf %118 : vector<16x256xf32> to vector<16x256xbf16>
    %c176 = arith.constant 176 : index
    %c0_48 = arith.constant 0 : index
    %120 = vector.load %arg10[%c176, %c0_48] : memref<1024x256xbf16, #tpu.memory_space<vmem>>, vector<16x256xbf16>
    tpu.vector_store %arg10[%c176, %c0_48], %119 {strides = array<i32>} : memref<1024x256xbf16, #tpu.memory_space<vmem>>, vector<16x256xbf16>,
    %c12 = arith.constant 12 : index
    %c0_49 = arith.constant 0 : index
    %121 = vector.load %arg7[%c12, %c0_49] : memref<31x256xf32, #tpu.memory_space<vmem>>, vector<1x256xf32>
    %c3_i32 = arith.constant 3 : i32
    %122 = tpu.dynamic_rotate %48 by %c3_i32 dim 1 : vector<16x256xf32>, i32 -> vector<16x256xf32>
    %123 = vector.broadcast %121 : vector<1x256xf32> to vector<16x256xf32>
    %124 = arith.mulf %123, %122 : vector<16x256xf32>
    %125 = arith.truncf %124 : vector<16x256xf32> to vector<16x256xbf16>
    %c192 = arith.constant 192 : index
    %c0_50 = arith.constant 0 : index
    %126 = vector.load %arg10[%c192, %c0_50] : memref<1024x256xbf16, #tpu.memory_space<vmem>>, vector<16x256xbf16>
    tpu.vector_store %arg10[%c192, %c0_50], %125 {strides = array<i32>} : memref<1024x256xbf16, #tpu.memory_space<vmem>>, vector<16x256xbf16>,
    %c13 = arith.constant 13 : index
    %c0_51 = arith.constant 0 : index
    %127 = vector.load %arg7[%c13, %c0_51] : memref<31x256xf32, #tpu.memory_space<vmem>>, vector<1x256xf32>
    %c2_i32 = arith.constant 2 : i32
    %128 = tpu.dynamic_rotate %48 by %c2_i32 dim 1 : vector<16x256xf32>, i32 -> vector<16x256xf32>
    %129 = vector.broadcast %127 : vector<1x256xf32> to vector<16x256xf32>
    %130 = arith.mulf %129, %128 : vector<16x256xf32>
    %131 = arith.truncf %130 : vector<16x256xf32> to vector<16x256xbf16>
    %c208 = arith.constant 208 : index
    %c0_52 = arith.constant 0 : index
    %132 = vector.load %arg10[%c208, %c0_52] : memref<1024x256xbf16, #tpu.memory_space<vmem>>, vector<16x256xbf16>
    tpu.vector_store %arg10[%c208, %c0_52], %131 {strides = array<i32>} : memref<1024x256xbf16, #tpu.memory_space<vmem>>, vector<16x256xbf16>,
    %c14 = arith.constant 14 : index
    %c0_53 = arith.constant 0 : index
    %133 = vector.load %arg7[%c14, %c0_53] : memref<31x256xf32, #tpu.memory_space<vmem>>, vector<1x256xf32>
    %c1_i32 = arith.constant 1 : i32
    %134 = tpu.dynamic_rotate %48 by %c1_i32 dim 1 : vector<16x256xf32>, i32 -> vector<16x256xf32>
    %135 = vector.broadcast %133 : vector<1x256xf32> to vector<16x256xf32>
    %136 = arith.mulf %135, %134 : vector<16x256xf32>
    %137 = arith.truncf %136 : vector<16x256xf32> to vector<16x256xbf16>
    %c224 = arith.constant 224 : index
    %c0_54 = arith.constant 0 : index
    %138 = vector.load %arg10[%c224, %c0_54] : memref<1024x256xbf16, #tpu.memory_space<vmem>>, vector<16x256xbf16>
    tpu.vector_store %arg10[%c224, %c0_54], %137 {strides = array<i32>} : memref<1024x256xbf16, #tpu.memory_space<vmem>>, vector<16x256xbf16>,
    %139 = arith.truncf %48 : vector<16x256xf32> to vector<16x256xbf16>
    %c240 = arith.constant 240 : index
    %c0_55 = arith.constant 0 : index
    %140 = vector.load %arg10[%c240, %c0_55] : memref<1024x256xbf16, #tpu.memory_space<vmem>>, vector<16x256xbf16>
    tpu.vector_store %arg10[%c240, %c0_55], %139 {strides = array<i32>} : memref<1024x256xbf16, #tpu.memory_space<vmem>>, vector<16x256xbf16>,
    %c16_56 = arith.constant 16 : index
    %c0_57 = arith.constant 0 : index
    %141 = vector.load %arg7[%c16_56, %c0_57] : memref<31x256xf32, #tpu.memory_space<vmem>>, vector<1x256xf32>
    %c255_i32 = arith.constant 255 : i32
    %142 = tpu.dynamic_rotate %48 by %c255_i32 dim 1 : vector<16x256xf32>, i32 -> vector<16x256xf32>
    %143 = vector.broadcast %141 : vector<1x256xf32> to vector<16x256xf32>
    %144 = arith.mulf %143, %142 : vector<16x256xf32>
    %145 = arith.truncf %144 : vector<16x256xf32> to vector<16x256xbf16>
    %c256 = arith.constant 256 : index
    %c0_58 = arith.constant 0 : index
    %146 = vector.load %arg10[%c256, %c0_58] : memref<1024x256xbf16, #tpu.memory_space<vmem>>, vector<16x256xbf16>
    tpu.vector_store %arg10[%c256, %c0_58], %145 {strides = array<i32>} : memref<1024x256xbf16, #tpu.memory_space<vmem>>, vector<16x256xbf16>,
    %c17 = arith.constant 17 : index
    %c0_59 = arith.constant 0 : index
    %147 = vector.load %arg7[%c17, %c0_59] : memref<31x256xf32, #tpu.memory_space<vmem>>, vector<1x256xf32>
    %c254_i32 = arith.constant 254 : i32
    %148 = tpu.dynamic_rotate %48 by %c254_i32 dim 1 : vector<16x256xf32>, i32 -> vector<16x256xf32>
    %149 = vector.broadcast %147 : vector<1x256xf32> to vector<16x256xf32>
    %150 = arith.mulf %149, %148 : vector<16x256xf32>
    %151 = arith.truncf %150 : vector<16x256xf32> to vector<16x256xbf16>
    %c272 = arith.constant 272 : index
    %c0_60 = arith.constant 0 : index
    %152 = vector.load %arg10[%c272, %c0_60] : memref<1024x256xbf16, #tpu.memory_space<vmem>>, vector<16x256xbf16>
    tpu.vector_store %arg10[%c272, %c0_60], %151 {strides = array<i32>} : memref<1024x256xbf16, #tpu.memory_space<vmem>>, vector<16x256xbf16>,
    %c18 = arith.constant 18 : index
    %c0_61 = arith.constant 0 : index
    %153 = vector.load %arg7[%c18, %c0_61] : memref<31x256xf32, #tpu.memory_space<vmem>>, vector<1x256xf32>
    %c253_i32 = arith.constant 253 : i32
    %154 = tpu.dynamic_rotate %48 by %c253_i32 dim 1 : vector<16x256xf32>, i32 -> vector<16x256xf32>
    %155 = vector.broadcast %153 : vector<1x256xf32> to vector<16x256xf32>
    %156 = arith.mulf %155, %154 : vector<16x256xf32>
    %157 = arith.truncf %156 : vector<16x256xf32> to vector<16x256xbf16>
    %c288 = arith.constant 288 : index
    %c0_62 = arith.constant 0 : index
    %158 = vector.load %arg10[%c288, %c0_62] : memref<1024x256xbf16, #tpu.memory_space<vmem>>, vector<16x256xbf16>
    tpu.vector_store %arg10[%c288, %c0_62], %157 {strides = array<i32>} : memref<1024x256xbf16, #tpu.memory_space<vmem>>, vector<16x256xbf16>,
    %c19 = arith.constant 19 : index
    %c0_63 = arith.constant 0 : index
    %159 = vector.load %arg7[%c19, %c0_63] : memref<31x256xf32, #tpu.memory_space<vmem>>, vector<1x256xf32>
    %c252_i32 = arith.constant 252 : i32
    %160 = tpu.dynamic_rotate %48 by %c252_i32 dim 1 : vector<16x256xf32>, i32 -> vector<16x256xf32>
    %161 = vector.broadcast %159 : vector<1x256xf32> to vector<16x256xf32>
    %162 = arith.mulf %161, %160 : vector<16x256xf32>
    %163 = arith.truncf %162 : vector<16x256xf32> to vector<16x256xbf16>
    %c304 = arith.constant 304 : index
    %c0_64 = arith.constant 0 : index
    %164 = vector.load %arg10[%c304, %c0_64] : memref<1024x256xbf16, #tpu.memory_space<vmem>>, vector<16x256xbf16>
    tpu.vector_store %arg10[%c304, %c0_64], %163 {strides = array<i32>} : memref<1024x256xbf16, #tpu.memory_space<vmem>>, vector<16x256xbf16>,
    %c20 = arith.constant 20 : index
    %c0_65 = arith.constant 0 : index
    %165 = vector.load %arg7[%c20, %c0_65] : memref<31x256xf32, #tpu.memory_space<vmem>>, vector<1x256xf32>
    %c251_i32 = arith.constant 251 : i32
    %166 = tpu.dynamic_rotate %48 by %c251_i32 dim 1 : vector<16x256xf32>, i32 -> vector<16x256xf32>
    %167 = vector.broadcast %165 : vector<1x256xf32> to vector<16x256xf32>
    %168 = arith.mulf %167, %166 : vector<16x256xf32>
    %169 = arith.truncf %168 : vector<16x256xf32> to vector<16x256xbf16>
    %c320 = arith.constant 320 : index
    %c0_66 = arith.constant 0 : index
    %170 = vector.load %arg10[%c320, %c0_66] : memref<1024x256xbf16, #tpu.memory_space<vmem>>, vector<16x256xbf16>
    tpu.vector_store %arg10[%c320, %c0_66], %169 {strides = array<i32>} : memref<1024x256xbf16, #tpu.memory_space<vmem>>, vector<16x256xbf16>,
    %c21 = arith.constant 21 : index
    %c0_67 = arith.constant 0 : index
    %171 = vector.load %arg7[%c21, %c0_67] : memref<31x256xf32, #tpu.memory_space<vmem>>, vector<1x256xf32>
    %c250_i32 = arith.constant 250 : i32
    %172 = tpu.dynamic_rotate %48 by %c250_i32 dim 1 : vector<16x256xf32>, i32 -> vector<16x256xf32>
    %173 = vector.broadcast %171 : vector<1x256xf32> to vector<16x256xf32>
    %174 = arith.mulf %173, %172 : vector<16x256xf32>
    %175 = arith.truncf %174 : vector<16x256xf32> to vector<16x256xbf16>
    %c336 = arith.constant 336 : index
    %c0_68 = arith.constant 0 : index
    %176 = vector.load %arg10[%c336, %c0_68] : memref<1024x256xbf16, #tpu.memory_space<vmem>>, vector<16x256xbf16>
    tpu.vector_store %arg10[%c336, %c0_68], %175 {strides = array<i32>} : memref<1024x256xbf16, #tpu.memory_space<vmem>>, vector<16x256xbf16>,
    %c22 = arith.constant 22 : index
    %c0_69 = arith.constant 0 : index
    %177 = vector.load %arg7[%c22, %c0_69] : memref<31x256xf32, #tpu.memory_space<vmem>>, vector<1x256xf32>
    %c249_i32 = arith.constant 249 : i32
    %178 = tpu.dynamic_rotate %48 by %c249_i32 dim 1 : vector<16x256xf32>, i32 -> vector<16x256xf32>
    %179 = vector.broadcast %177 : vector<1x256xf32> to vector<16x256xf32>
    %180 = arith.mulf %179, %178 : vector<16x256xf32>
    %181 = arith.truncf %180 : vector<16x256xf32> to vector<16x256xbf16>
    %c352 = arith.constant 352 : index
    %c0_70 = arith.constant 0 : index
    %182 = vector.load %arg10[%c352, %c0_70] : memref<1024x256xbf16, #tpu.memory_space<vmem>>, vector<16x256xbf16>
    tpu.vector_store %arg10[%c352, %c0_70], %181 {strides = array<i32>} : memref<1024x256xbf16, #tpu.memory_space<vmem>>, vector<16x256xbf16>,
    %c23 = arith.constant 23 : index
    %c0_71 = arith.constant 0 : index
    %183 = vector.load %arg7[%c23, %c0_71] : memref<31x256xf32, #tpu.memory_space<vmem>>, vector<1x256xf32>
    %c248_i32 = arith.constant 248 : i32
    %184 = tpu.dynamic_rotate %48 by %c248_i32 dim 1 : vector<16x256xf32>, i32 -> vector<16x256xf32>
    %185 = vector.broadcast %183 : vector<1x256xf32> to vector<16x256xf32>
    %186 = arith.mulf %185, %184 : vector<16x256xf32>
    %187 = arith.truncf %186 : vector<16x256xf32> to vector<16x256xbf16>
    %c368 = arith.constant 368 : index
    %c0_72 = arith.constant 0 : index
    %188 = vector.load %arg10[%c368, %c0_72] : memref<1024x256xbf16, #tpu.memory_space<vmem>>, vector<16x256xbf16>
    tpu.vector_store %arg10[%c368, %c0_72], %187 {strides = array<i32>} : memref<1024x256xbf16, #tpu.memory_space<vmem>>, vector<16x256xbf16>,
    %c24 = arith.constant 24 : index
    %c0_73 = arith.constant 0 : index
    %189 = vector.load %arg7[%c24, %c0_73] : memref<31x256xf32, #tpu.memory_space<vmem>>, vector<1x256xf32>
    %c247_i32 = arith.constant 247 : i32
    %190 = tpu.dynamic_rotate %48 by %c247_i32 dim 1 : vector<16x256xf32>, i32 -> vector<16x256xf32>
    %191 = vector.broadcast %189 : vector<1x256xf32> to vector<16x256xf32>
    %192 = arith.mulf %191, %190 : vector<16x256xf32>
    %193 = arith.truncf %192 : vector<16x256xf32> to vector<16x256xbf16>
    %c384 = arith.constant 384 : index
    %c0_74 = arith.constant 0 : index
    %194 = vector.load %arg10[%c384, %c0_74] : memref<1024x256xbf16, #tpu.memory_space<vmem>>, vector<16x256xbf16>
    tpu.vector_store %arg10[%c384, %c0_74], %193 {strides = array<i32>} : memref<1024x256xbf16, #tpu.memory_space<vmem>>, vector<16x256xbf16>,
    %c25 = arith.constant 25 : index
    %c0_75 = arith.constant 0 : index
    %195 = vector.load %arg7[%c25, %c0_75] : memref<31x256xf32, #tpu.memory_space<vmem>>, vector<1x256xf32>
    %c246_i32 = arith.constant 246 : i32
    %196 = tpu.dynamic_rotate %48 by %c246_i32 dim 1 : vector<16x256xf32>, i32 -> vector<16x256xf32>
    %197 = vector.broadcast %195 : vector<1x256xf32> to vector<16x256xf32>
    %198 = arith.mulf %197, %196 : vector<16x256xf32>
    %199 = arith.truncf %198 : vector<16x256xf32> to vector<16x256xbf16>
    %c400 = arith.constant 400 : index
    %c0_76 = arith.constant 0 : index
    %200 = vector.load %arg10[%c400, %c0_76] : memref<1024x256xbf16, #tpu.memory_space<vmem>>, vector<16x256xbf16>
    tpu.vector_store %arg10[%c400, %c0_76], %199 {strides = array<i32>} : memref<1024x256xbf16, #tpu.memory_space<vmem>>, vector<16x256xbf16>,
    %c26 = arith.constant 26 : index
    %c0_77 = arith.constant 0 : index
    %201 = vector.load %arg7[%c26, %c0_77] : memref<31x256xf32, #tpu.memory_space<vmem>>, vector<1x256xf32>
    %c245_i32 = arith.constant 245 : i32
    %202 = tpu.dynamic_rotate %48 by %c245_i32 dim 1 : vector<16x256xf32>, i32 -> vector<16x256xf32>
    %203 = vector.broadcast %201 : vector<1x256xf32> to vector<16x256xf32>
    %204 = arith.mulf %203, %202 : vector<16x256xf32>
    %205 = arith.truncf %204 : vector<16x256xf32> to vector<16x256xbf16>
    %c416 = arith.constant 416 : index
    %c0_78 = arith.constant 0 : index
    %206 = vector.load %arg10[%c416, %c0_78] : memref<1024x256xbf16, #tpu.memory_space<vmem>>, vector<16x256xbf16>
    tpu.vector_store %arg10[%c416, %c0_78], %205 {strides = array<i32>} : memref<1024x256xbf16, #tpu.memory_space<vmem>>, vector<16x256xbf16>,
    %c27 = arith.constant 27 : index
    %c0_79 = arith.constant 0 : index
    %207 = vector.load %arg7[%c27, %c0_79] : memref<31x256xf32, #tpu.memory_space<vmem>>, vector<1x256xf32>
    %c244_i32 = arith.constant 244 : i32
    %208 = tpu.dynamic_rotate %48 by %c244_i32 dim 1 : vector<16x256xf32>, i32 -> vector<16x256xf32>
    %209 = vector.broadcast %207 : vector<1x256xf32> to vector<16x256xf32>
    %210 = arith.mulf %209, %208 : vector<16x256xf32>
    %211 = arith.truncf %210 : vector<16x256xf32> to vector<16x256xbf16>
    %c432 = arith.constant 432 : index
    %c0_80 = arith.constant 0 : index
    %212 = vector.load %arg10[%c432, %c0_80] : memref<1024x256xbf16, #tpu.memory_space<vmem>>, vector<16x256xbf16>
    tpu.vector_store %arg10[%c432, %c0_80], %211 {strides = array<i32>} : memref<1024x256xbf16, #tpu.memory_space<vmem>>, vector<16x256xbf16>,
    %c28 = arith.constant 28 : index
    %c0_81 = arith.constant 0 : index
    %213 = vector.load %arg7[%c28, %c0_81] : memref<31x256xf32, #tpu.memory_space<vmem>>, vector<1x256xf32>
    %c243_i32 = arith.constant 243 : i32
    %214 = tpu.dynamic_rotate %48 by %c243_i32 dim 1 : vector<16x256xf32>, i32 -> vector<16x256xf32>
    %215 = vector.broadcast %213 : vector<1x256xf32> to vector<16x256xf32>
    %216 = arith.mulf %215, %214 : vector<16x256xf32>
    %217 = arith.truncf %216 : vector<16x256xf32> to vector<16x256xbf16>
    %c448 = arith.constant 448 : index
    %c0_82 = arith.constant 0 : index
    %218 = vector.load %arg10[%c448, %c0_82] : memref<1024x256xbf16, #tpu.memory_space<vmem>>, vector<16x256xbf16>
    tpu.vector_store %arg10[%c448, %c0_82], %217 {strides = array<i32>} : memref<1024x256xbf16, #tpu.memory_space<vmem>>, vector<16x256xbf16>,
    %c29 = arith.constant 29 : index
    %c0_83 = arith.constant 0 : index
    %219 = vector.load %arg7[%c29, %c0_83] : memref<31x256xf32, #tpu.memory_space<vmem>>, vector<1x256xf32>
    %c242_i32 = arith.constant 242 : i32
    %220 = tpu.dynamic_rotate %48 by %c242_i32 dim 1 : vector<16x256xf32>, i32 -> vector<16x256xf32>
    %221 = vector.broadcast %219 : vector<1x256xf32> to vector<16x256xf32>
    %222 = arith.mulf %221, %220 : vector<16x256xf32>
    %223 = arith.truncf %222 : vector<16x256xf32> to vector<16x256xbf16>
    %c464 = arith.constant 464 : index
    %c0_84 = arith.constant 0 : index
    %224 = vector.load %arg10[%c464, %c0_84] : memref<1024x256xbf16, #tpu.memory_space<vmem>>, vector<16x256xbf16>
    tpu.vector_store %arg10[%c464, %c0_84], %223 {strides = array<i32>} : memref<1024x256xbf16, #tpu.memory_space<vmem>>, vector<16x256xbf16>,
    %c30 = arith.constant 30 : index
    %c0_85 = arith.constant 0 : index
    %225 = vector.load %arg7[%c30, %c0_85] : memref<31x256xf32, #tpu.memory_space<vmem>>, vector<1x256xf32>
    %c241_i32 = arith.constant 241 : i32
    %226 = tpu.dynamic_rotate %48 by %c241_i32 dim 1 : vector<16x256xf32>, i32 -> vector<16x256xf32>
    %227 = vector.broadcast %225 : vector<1x256xf32> to vector<16x256xf32>
    %228 = arith.mulf %227, %226 : vector<16x256xf32>
    %229 = arith.truncf %228 : vector<16x256xf32> to vector<16x256xbf16>
    %c480 = arith.constant 480 : index
    %c0_86 = arith.constant 0 : index
    %230 = vector.load %arg10[%c480, %c0_86] : memref<1024x256xbf16, #tpu.memory_space<vmem>>, vector<16x256xbf16>
    tpu.vector_store %arg10[%c480, %c0_86], %229 {strides = array<i32>} : memref<1024x256xbf16, #tpu.memory_space<vmem>>, vector<16x256xbf16>,
    %cst_87 = arith.constant 0.000000e+00 : f32
    %231 = vector.broadcast %cst_87 : f32 to vector<16x256xf32>
    %cst_88 = arith.constant 0.000000e+00 : f32
    %232 = vector.broadcast %cst_88 : f32 to vector<16x256xf32>
    %cst_89 = arith.constant 0.000000e+00 : f32
    %233 = vector.broadcast %cst_89 : f32 to vector<16x256xf32>
    %cst_90 = arith.constant 0.000000e+00 : f32
    %234 = vector.broadcast %cst_90 : f32 to vector<16x256xf32>
    %c0_91 = arith.constant 0 : index
    %c0_92 = arith.constant 0 : index
    %235 = vector.load %arg6[%c0_91, %c0_92] : memref<512x512xbf16, #tpu.memory_space<vmem>>, vector<256x512xbf16>
    %c0_93 = arith.constant 0 : index
    %c0_94 = arith.constant 0 : index
    %236 = vector.load %arg10[%c0_93, %c0_94] : memref<1024x256xbf16, #tpu.memory_space<vmem>>, vector<512x256xbf16>
    %cst_95 = arith.constant dense<0.000000e+00> : vector<256x256xf32>
    %237 = tpu.matmul %235, %236, %cst_95 {dimension_numbers = #tpu.dot_dimension_numbers<[1], [0], [0], [1], [0, 0, 1, 1], [], []>} : vector<256x512xbf16>, vector<512x256xbf16>, vector<256x256xf32> -> vector<256x256xf32>
    %238 = vector.extract_strided_slice %237 {offsets = [0, 0], sizes = [16, 256], strides = [1, 1]} : vector<256x256xf32> to vector<16x256xf32>
    %c0_96 = arith.constant 0 : index
    %c0_97 = arith.constant 0 : index
    %239 = vector.load %arg8[%c0_96, %c0_97] : memref<31x256xf32, #tpu.memory_space<vmem>>, vector<1x256xf32>
    %c240_i32 = arith.constant 240 : i32
    %240 = tpu.dynamic_rotate %238 by %c240_i32 dim 1 : vector<16x256xf32>, i32 -> vector<16x256xf32>
    %241 = vector.broadcast %239 : vector<1x256xf32> to vector<16x256xf32>
    %242 = arith.mulf %241, %240 : vector<16x256xf32>
    %243 = arith.addf %231, %242 : vector<16x256xf32>
    %244 = vector.extract_strided_slice %237 {offsets = [16, 0], sizes = [16, 256], strides = [1, 1]} : vector<256x256xf32> to vector<16x256xf32>
    %c1_98 = arith.constant 1 : index
    %c0_99 = arith.constant 0 : index
    %245 = vector.load %arg8[%c1_98, %c0_99] : memref<31x256xf32, #tpu.memory_space<vmem>>, vector<1x256xf32>
    %c224_i32 = arith.constant 224 : i32
    %246 = tpu.dynamic_rotate %244 by %c224_i32 dim 1 : vector<16x256xf32>, i32 -> vector<16x256xf32>
    %247 = vector.broadcast %245 : vector<1x256xf32> to vector<16x256xf32>
    %248 = arith.mulf %247, %246 : vector<16x256xf32>
    %249 = arith.addf %232, %248 : vector<16x256xf32>
    %250 = vector.extract_strided_slice %237 {offsets = [32, 0], sizes = [16, 256], strides = [1, 1]} : vector<256x256xf32> to vector<16x256xf32>
    %c2_100 = arith.constant 2 : index
    %c0_101 = arith.constant 0 : index
    %251 = vector.load %arg8[%c2_100, %c0_101] : memref<31x256xf32, #tpu.memory_space<vmem>>, vector<1x256xf32>
    %c208_i32 = arith.constant 208 : i32
    %252 = tpu.dynamic_rotate %250 by %c208_i32 dim 1 : vector<16x256xf32>, i32 -> vector<16x256xf32>
    %253 = vector.broadcast %251 : vector<1x256xf32> to vector<16x256xf32>
    %254 = arith.mulf %253, %252 : vector<16x256xf32>
    %255 = arith.addf %233, %254 : vector<16x256xf32>
    %256 = vector.extract_strided_slice %237 {offsets = [48, 0], sizes = [16, 256], strides = [1, 1]} : vector<256x256xf32> to vector<16x256xf32>
    %c3_102 = arith.constant 3 : index
    %c0_103 = arith.constant 0 : index
    %257 = vector.load %arg8[%c3_102, %c0_103] : memref<31x256xf32, #tpu.memory_space<vmem>>, vector<1x256xf32>
    %c192_i32 = arith.constant 192 : i32
    %258 = tpu.dynamic_rotate %256 by %c192_i32 dim 1 : vector<16x256xf32>, i32 -> vector<16x256xf32>
    %259 = vector.broadcast %257 : vector<1x256xf32> to vector<16x256xf32>
    %260 = arith.mulf %259, %258 : vector<16x256xf32>
    %261 = arith.addf %234, %260 : vector<16x256xf32>
    %262 = vector.extract_strided_slice %237 {offsets = [64, 0], sizes = [16, 256], strides = [1, 1]} : vector<256x256xf32> to vector<16x256xf32>
    %c4_104 = arith.constant 4 : index
    %c0_105 = arith.constant 0 : index
    %263 = vector.load %arg8[%c4_104, %c0_105] : memref<31x256xf32, #tpu.memory_space<vmem>>, vector<1x256xf32>
    %c176_i32 = arith.constant 176 : i32
    %264 = tpu.dynamic_rotate %262 by %c176_i32 dim 1 : vector<16x256xf32>, i32 -> vector<16x256xf32>
    %265 = vector.broadcast %263 : vector<1x256xf32> to vector<16x256xf32>
    %266 = arith.mulf %265, %264 : vector<16x256xf32>
    %267 = arith.addf %243, %266 : vector<16x256xf32>
    %268 = vector.extract_strided_slice %237 {offsets = [80, 0], sizes = [16, 256], strides = [1, 1]} : vector<256x256xf32> to vector<16x256xf32>
    %c5_106 = arith.constant 5 : index
    %c0_107 = arith.constant 0 : index
    %269 = vector.load %arg8[%c5_106, %c0_107] : memref<31x256xf32, #tpu.memory_space<vmem>>, vector<1x256xf32>
    %c160_i32 = arith.constant 160 : i32
    %270 = tpu.dynamic_rotate %268 by %c160_i32 dim 1 : vector<16x256xf32>, i32 -> vector<16x256xf32>
    %271 = vector.broadcast %269 : vector<1x256xf32> to vector<16x256xf32>
    %272 = arith.mulf %271, %270 : vector<16x256xf32>
    %273 = arith.addf %249, %272 : vector<16x256xf32>
    %274 = vector.extract_strided_slice %237 {offsets = [96, 0], sizes = [16, 256], strides = [1, 1]} : vector<256x256xf32> to vector<16x256xf32>
    %c6_108 = arith.constant 6 : index
    %c0_109 = arith.constant 0 : index
    %275 = vector.load %arg8[%c6_108, %c0_109] : memref<31x256xf32, #tpu.memory_space<vmem>>, vector<1x256xf32>
    %c144_i32 = arith.constant 144 : i32
    %276 = tpu.dynamic_rotate %274 by %c144_i32 dim 1 : vector<16x256xf32>, i32 -> vector<16x256xf32>
    %277 = vector.broadcast %275 : vector<1x256xf32> to vector<16x256xf32>
    %278 = arith.mulf %277, %276 : vector<16x256xf32>
    %279 = arith.addf %255, %278 : vector<16x256xf32>
    %280 = vector.extract_strided_slice %237 {offsets = [112, 0], sizes = [16, 256], strides = [1, 1]} : vector<256x256xf32> to vector<16x256xf32>
    %c7_110 = arith.constant 7 : index
    %c0_111 = arith.constant 0 : index
    %281 = vector.load %arg8[%c7_110, %c0_111] : memref<31x256xf32, #tpu.memory_space<vmem>>, vector<1x256xf32>
    %c128_i32 = arith.constant 128 : i32
    %282 = tpu.dynamic_rotate %280 by %c128_i32 dim 1 : vector<16x256xf32>, i32 -> vector<16x256xf32>
    %283 = vector.broadcast %281 : vector<1x256xf32> to vector<16x256xf32>
    %284 = arith.mulf %283, %282 : vector<16x256xf32>
    %285 = arith.addf %261, %284 : vector<16x256xf32>
    %286 = vector.extract_strided_slice %237 {offsets = [128, 0], sizes = [16, 256], strides = [1, 1]} : vector<256x256xf32> to vector<16x256xf32>
    %c8_112 = arith.constant 8 : index
    %c0_113 = arith.constant 0 : index
    %287 = vector.load %arg8[%c8_112, %c0_113] : memref<31x256xf32, #tpu.memory_space<vmem>>, vector<1x256xf32>
    %c112_i32 = arith.constant 112 : i32
    %288 = tpu.dynamic_rotate %286 by %c112_i32 dim 1 : vector<16x256xf32>, i32 -> vector<16x256xf32>
    %289 = vector.broadcast %287 : vector<1x256xf32> to vector<16x256xf32>
    %290 = arith.mulf %289, %288 : vector<16x256xf32>
    %291 = arith.addf %267, %290 : vector<16x256xf32>
    %292 = vector.extract_strided_slice %237 {offsets = [144, 0], sizes = [16, 256], strides = [1, 1]} : vector<256x256xf32> to vector<16x256xf32>
    %c9_114 = arith.constant 9 : index
    %c0_115 = arith.constant 0 : index
    %293 = vector.load %arg8[%c9_114, %c0_115] : memref<31x256xf32, #tpu.memory_space<vmem>>, vector<1x256xf32>
    %c96_i32 = arith.constant 96 : i32
    %294 = tpu.dynamic_rotate %292 by %c96_i32 dim 1 : vector<16x256xf32>, i32 -> vector<16x256xf32>
    %295 = vector.broadcast %293 : vector<1x256xf32> to vector<16x256xf32>
    %296 = arith.mulf %295, %294 : vector<16x256xf32>
    %297 = arith.addf %273, %296 : vector<16x256xf32>
    %298 = vector.extract_strided_slice %237 {offsets = [160, 0], sizes = [16, 256], strides = [1, 1]} : vector<256x256xf32> to vector<16x256xf32>
    %c10_116 = arith.constant 10 : index
    %c0_117 = arith.constant 0 : index
    %299 = vector.load %arg8[%c10_116, %c0_117] : memref<31x256xf32, #tpu.memory_space<vmem>>, vector<1x256xf32>
    %c80_i32 = arith.constant 80 : i32
    %300 = tpu.dynamic_rotate %298 by %c80_i32 dim 1 : vector<16x256xf32>, i32 -> vector<16x256xf32>
    %301 = vector.broadcast %299 : vector<1x256xf32> to vector<16x256xf32>
    %302 = arith.mulf %301, %300 : vector<16x256xf32>
    %303 = arith.addf %279, %302 : vector<16x256xf32>
    %304 = vector.extract_strided_slice %237 {offsets = [176, 0], sizes = [16, 256], strides = [1, 1]} : vector<256x256xf32> to vector<16x256xf32>
    %c11_118 = arith.constant 11 : index
    %c0_119 = arith.constant 0 : index
    %305 = vector.load %arg8[%c11_118, %c0_119] : memref<31x256xf32, #tpu.memory_space<vmem>>, vector<1x256xf32>
    %c64_i32 = arith.constant 64 : i32
    %306 = tpu.dynamic_rotate %304 by %c64_i32 dim 1 : vector<16x256xf32>, i32 -> vector<16x256xf32>
    %307 = vector.broadcast %305 : vector<1x256xf32> to vector<16x256xf32>
    %308 = arith.mulf %307, %306 : vector<16x256xf32>
    %309 = arith.addf %285, %308 : vector<16x256xf32>
    %310 = vector.extract_strided_slice %237 {offsets = [192, 0], sizes = [16, 256], strides = [1, 1]} : vector<256x256xf32> to vector<16x256xf32>
    %c12_120 = arith.constant 12 : index
    %c0_121 = arith.constant 0 : index
    %311 = vector.load %arg8[%c12_120, %c0_121] : memref<31x256xf32, #tpu.memory_space<vmem>>, vector<1x256xf32>
    %c48_i32 = arith.constant 48 : i32
    %312 = tpu.dynamic_rotate %310 by %c48_i32 dim 1 : vector<16x256xf32>, i32 -> vector<16x256xf32>
    %313 = vector.broadcast %311 : vector<1x256xf32> to vector<16x256xf32>
    %314 = arith.mulf %313, %312 : vector<16x256xf32>
    %315 = arith.addf %291, %314 : vector<16x256xf32>
    %316 = vector.extract_strided_slice %237 {offsets = [208, 0], sizes = [16, 256], strides = [1, 1]} : vector<256x256xf32> to vector<16x256xf32>
    %c13_122 = arith.constant 13 : index
    %c0_123 = arith.constant 0 : index
    %317 = vector.load %arg8[%c13_122, %c0_123] : memref<31x256xf32, #tpu.memory_space<vmem>>, vector<1x256xf32>
    %c32_i32 = arith.constant 32 : i32
    %318 = tpu.dynamic_rotate %316 by %c32_i32 dim 1 : vector<16x256xf32>, i32 -> vector<16x256xf32>
    %319 = vector.broadcast %317 : vector<1x256xf32> to vector<16x256xf32>
    %320 = arith.mulf %319, %318 : vector<16x256xf32>
    %321 = arith.addf %297, %320 : vector<16x256xf32>
    %322 = vector.extract_strided_slice %237 {offsets = [224, 0], sizes = [16, 256], strides = [1, 1]} : vector<256x256xf32> to vector<16x256xf32>
    %c14_124 = arith.constant 14 : index
    %c0_125 = arith.constant 0 : index
    %323 = vector.load %arg8[%c14_124, %c0_125] : memref<31x256xf32, #tpu.memory_space<vmem>>, vector<1x256xf32>
    %c16_i32 = arith.constant 16 : i32
    %324 = tpu.dynamic_rotate %322 by %c16_i32 dim 1 : vector<16x256xf32>, i32 -> vector<16x256xf32>
    %325 = vector.broadcast %323 : vector<1x256xf32> to vector<16x256xf32>
    %326 = arith.mulf %325, %324 : vector<16x256xf32>
    %327 = arith.addf %303, %326 : vector<16x256xf32>
    %328 = vector.extract_strided_slice %237 {offsets = [240, 0], sizes = [16, 256], strides = [1, 1]} : vector<256x256xf32> to vector<16x256xf32>
    %329 = arith.addf %309, %328 : vector<16x256xf32>
    %c256_126 = arith.constant 256 : index
    %c0_127 = arith.constant 0 : index
    %330 = vector.load %arg6[%c256_126, %c0_127] : memref<512x512xbf16, #tpu.memory_space<vmem>>, vector<256x512xbf16>
    %c0_128 = arith.constant 0 : index
    %c0_129 = arith.constant 0 : index
    %331 = vector.load %arg10[%c0_128, %c0_129] : memref<1024x256xbf16, #tpu.memory_space<vmem>>, vector<512x256xbf16>
    %cst_130 = arith.constant dense<0.000000e+00> : vector<256x256xf32>
    %332 = tpu.matmul %330, %331, %cst_130 {dimension_numbers = #tpu.dot_dimension_numbers<[1], [0], [0], [1], [0, 0, 1, 1], [], []>} : vector<256x512xbf16>, vector<512x256xbf16>, vector<256x256xf32> -> vector<256x256xf32>
    %333 = vector.extract_strided_slice %332 {offsets = [0, 0], sizes = [16, 256], strides = [1, 1]} : vector<256x256xf32> to vector<16x256xf32>
    %c16_131 = arith.constant 16 : index
    %c0_132 = arith.constant 0 : index
    %334 = vector.load %arg8[%c16_131, %c0_132] : memref<31x256xf32, #tpu.memory_space<vmem>>, vector<1x256xf32>
    %c240_i32_133 = arith.constant 240 : i32
    %335 = tpu.dynamic_rotate %333 by %c240_i32_133 dim 1 : vector<16x256xf32>, i32 -> vector<16x256xf32>
    %336 = vector.broadcast %334 : vector<1x256xf32> to vector<16x256xf32>
    %337 = arith.mulf %336, %335 : vector<16x256xf32>
    %338 = arith.addf %315, %337 : vector<16x256xf32>
    %339 = vector.extract_strided_slice %332 {offsets = [16, 0], sizes = [16, 256], strides = [1, 1]} : vector<256x256xf32> to vector<16x256xf32>
    %c17_134 = arith.constant 17 : index
    %c0_135 = arith.constant 0 : index
    %340 = vector.load %arg8[%c17_134, %c0_135] : memref<31x256xf32, #tpu.memory_space<vmem>>, vector<1x256xf32>
    %c224_i32_136 = arith.constant 224 : i32
    %341 = tpu.dynamic_rotate %339 by %c224_i32_136 dim 1 : vector<16x256xf32>, i32 -> vector<16x256xf32>
    %342 = vector.broadcast %340 : vector<1x256xf32> to vector<16x256xf32>
    %343 = arith.mulf %342, %341 : vector<16x256xf32>
    %344 = arith.addf %321, %343 : vector<16x256xf32>
    %345 = vector.extract_strided_slice %332 {offsets = [32, 0], sizes = [16, 256], strides = [1, 1]} : vector<256x256xf32> to vector<16x256xf32>
    %c18_137 = arith.constant 18 : index
    %c0_138 = arith.constant 0 : index
    %346 = vector.load %arg8[%c18_137, %c0_138] : memref<31x256xf32, #tpu.memory_space<vmem>>, vector<1x256xf32>
    %c208_i32_139 = arith.constant 208 : i32
    %347 = tpu.dynamic_rotate %345 by %c208_i32_139 dim 1 : vector<16x256xf32>, i32 -> vector<16x256xf32>
    %348 = vector.broadcast %346 : vector<1x256xf32> to vector<16x256xf32>
    %349 = arith.mulf %348, %347 : vector<16x256xf32>
    %350 = arith.addf %327, %349 : vector<16x256xf32>
    %351 = vector.extract_strided_slice %332 {offsets = [48, 0], sizes = [16, 256], strides = [1, 1]} : vector<256x256xf32> to vector<16x256xf32>
    %c19_140 = arith.constant 19 : index
    %c0_141 = arith.constant 0 : index
    %352 = vector.load %arg8[%c19_140, %c0_141] : memref<31x256xf32, #tpu.memory_space<vmem>>, vector<1x256xf32>
    %c192_i32_142 = arith.constant 192 : i32
    %353 = tpu.dynamic_rotate %351 by %c192_i32_142 dim 1 : vector<16x256xf32>, i32 -> vector<16x256xf32>
    %354 = vector.broadcast %352 : vector<1x256xf32> to vector<16x256xf32>
    %355 = arith.mulf %354, %353 : vector<16x256xf32>
    %356 = arith.addf %329, %355 : vector<16x256xf32>
    %357 = vector.extract_strided_slice %332 {offsets = [64, 0], sizes = [16, 256], strides = [1, 1]} : vector<256x256xf32> to vector<16x256xf32>
    %c20_143 = arith.constant 20 : index
    %c0_144 = arith.constant 0 : index
    %358 = vector.load %arg8[%c20_143, %c0_144] : memref<31x256xf32, #tpu.memory_space<vmem>>, vector<1x256xf32>
    %c176_i32_145 = arith.constant 176 : i32
    %359 = tpu.dynamic_rotate %357 by %c176_i32_145 dim 1 : vector<16x256xf32>, i32 -> vector<16x256xf32>
    %360 = vector.broadcast %358 : vector<1x256xf32> to vector<16x256xf32>
    %361 = arith.mulf %360, %359 : vector<16x256xf32>
    %362 = arith.addf %338, %361 : vector<16x256xf32>
    %363 = vector.extract_strided_slice %332 {offsets = [80, 0], sizes = [16, 256], strides = [1, 1]} : vector<256x256xf32> to vector<16x256xf32>
    %c21_146 = arith.constant 21 : index
    %c0_147 = arith.constant 0 : index
    %364 = vector.load %arg8[%c21_146, %c0_147] : memref<31x256xf32, #tpu.memory_space<vmem>>, vector<1x256xf32>
    %c160_i32_148 = arith.constant 160 : i32
    %365 = tpu.dynamic_rotate %363 by %c160_i32_148 dim 1 : vector<16x256xf32>, i32 -> vector<16x256xf32>
    %366 = vector.broadcast %364 : vector<1x256xf32> to vector<16x256xf32>
    %367 = arith.mulf %366, %365 : vector<16x256xf32>
    %368 = arith.addf %344, %367 : vector<16x256xf32>
    %369 = vector.extract_strided_slice %332 {offsets = [96, 0], sizes = [16, 256], strides = [1, 1]} : vector<256x256xf32> to vector<16x256xf32>
    %c22_149 = arith.constant 22 : index
    %c0_150 = arith.constant 0 : index
    %370 = vector.load %arg8[%c22_149, %c0_150] : memref<31x256xf32, #tpu.memory_space<vmem>>, vector<1x256xf32>
    %c144_i32_151 = arith.constant 144 : i32
    %371 = tpu.dynamic_rotate %369 by %c144_i32_151 dim 1 : vector<16x256xf32>, i32 -> vector<16x256xf32>
    %372 = vector.broadcast %370 : vector<1x256xf32> to vector<16x256xf32>
    %373 = arith.mulf %372, %371 : vector<16x256xf32>
    %374 = arith.addf %350, %373 : vector<16x256xf32>
    %375 = vector.extract_strided_slice %332 {offsets = [112, 0], sizes = [16, 256], strides = [1, 1]} : vector<256x256xf32> to vector<16x256xf32>
    %c23_152 = arith.constant 23 : index
    %c0_153 = arith.constant 0 : index
    %376 = vector.load %arg8[%c23_152, %c0_153] : memref<31x256xf32, #tpu.memory_space<vmem>>, vector<1x256xf32>
    %c128_i32_154 = arith.constant 128 : i32
    %377 = tpu.dynamic_rotate %375 by %c128_i32_154 dim 1 : vector<16x256xf32>, i32 -> vector<16x256xf32>
    %378 = vector.broadcast %376 : vector<1x256xf32> to vector<16x256xf32>
    %379 = arith.mulf %378, %377 : vector<16x256xf32>
    %380 = arith.addf %356, %379 : vector<16x256xf32>
    %381 = vector.extract_strided_slice %332 {offsets = [128, 0], sizes = [16, 256], strides = [1, 1]} : vector<256x256xf32> to vector<16x256xf32>
    %c24_155 = arith.constant 24 : index
    %c0_156 = arith.constant 0 : index
    %382 = vector.load %arg8[%c24_155, %c0_156] : memref<31x256xf32, #tpu.memory_space<vmem>>, vector<1x256xf32>
    %c112_i32_157 = arith.constant 112 : i32
    %383 = tpu.dynamic_rotate %381 by %c112_i32_157 dim 1 : vector<16x256xf32>, i32 -> vector<16x256xf32>
    %384 = vector.broadcast %382 : vector<1x256xf32> to vector<16x256xf32>
    %385 = arith.mulf %384, %383 : vector<16x256xf32>
    %386 = arith.addf %362, %385 : vector<16x256xf32>
    %387 = vector.extract_strided_slice %332 {offsets = [144, 0], sizes = [16, 256], strides = [1, 1]} : vector<256x256xf32> to vector<16x256xf32>
    %c25_158 = arith.constant 25 : index
    %c0_159 = arith.constant 0 : index
    %388 = vector.load %arg8[%c25_158, %c0_159] : memref<31x256xf32, #tpu.memory_space<vmem>>, vector<1x256xf32>
    %c96_i32_160 = arith.constant 96 : i32
    %389 = tpu.dynamic_rotate %387 by %c96_i32_160 dim 1 : vector<16x256xf32>, i32 -> vector<16x256xf32>
    %390 = vector.broadcast %388 : vector<1x256xf32> to vector<16x256xf32>
    %391 = arith.mulf %390, %389 : vector<16x256xf32>
    %392 = arith.addf %368, %391 : vector<16x256xf32>
    %393 = vector.extract_strided_slice %332 {offsets = [160, 0], sizes = [16, 256], strides = [1, 1]} : vector<256x256xf32> to vector<16x256xf32>
    %c26_161 = arith.constant 26 : index
    %c0_162 = arith.constant 0 : index
    %394 = vector.load %arg8[%c26_161, %c0_162] : memref<31x256xf32, #tpu.memory_space<vmem>>, vector<1x256xf32>
    %c80_i32_163 = arith.constant 80 : i32
    %395 = tpu.dynamic_rotate %393 by %c80_i32_163 dim 1 : vector<16x256xf32>, i32 -> vector<16x256xf32>
    %396 = vector.broadcast %394 : vector<1x256xf32> to vector<16x256xf32>
    %397 = arith.mulf %396, %395 : vector<16x256xf32>
    %398 = arith.addf %374, %397 : vector<16x256xf32>
    %399 = vector.extract_strided_slice %332 {offsets = [176, 0], sizes = [16, 256], strides = [1, 1]} : vector<256x256xf32> to vector<16x256xf32>
    %c27_164 = arith.constant 27 : index
    %c0_165 = arith.constant 0 : index
    %400 = vector.load %arg8[%c27_164, %c0_165] : memref<31x256xf32, #tpu.memory_space<vmem>>, vector<1x256xf32>
    %c64_i32_166 = arith.constant 64 : i32
    %401 = tpu.dynamic_rotate %399 by %c64_i32_166 dim 1 : vector<16x256xf32>, i32 -> vector<16x256xf32>
    %402 = vector.broadcast %400 : vector<1x256xf32> to vector<16x256xf32>
    %403 = arith.mulf %402, %401 : vector<16x256xf32>
    %404 = arith.addf %380, %403 : vector<16x256xf32>
    %405 = vector.extract_strided_slice %332 {offsets = [192, 0], sizes = [16, 256], strides = [1, 1]} : vector<256x256xf32> to vector<16x256xf32>
    %c28_167 = arith.constant 28 : index
    %c0_168 = arith.constant 0 : index
    %406 = vector.load %arg8[%c28_167, %c0_168] : memref<31x256xf32, #tpu.memory_space<vmem>>, vector<1x256xf32>
    %c48_i32_169 = arith.constant 48 : i32
    %407 = tpu.dynamic_rotate %405 by %c48_i32_169 dim 1 : vector<16x256xf32>, i32 -> vector<16x256xf32>
    %408 = vector.broadcast %406 : vector<1x256xf32> to vector<16x256xf32>
    %409 = arith.mulf %408, %407 : vector<16x256xf32>
    %410 = arith.addf %386, %409 : vector<16x256xf32>
    %411 = vector.extract_strided_slice %332 {offsets = [208, 0], sizes = [16, 256], strides = [1, 1]} : vector<256x256xf32> to vector<16x256xf32>
    %c29_170 = arith.constant 29 : index
    %c0_171 = arith.constant 0 : index
    %412 = vector.load %arg8[%c29_170, %c0_171] : memref<31x256xf32, #tpu.memory_space<vmem>>, vector<1x256xf32>
    %c32_i32_172 = arith.constant 32 : i32
    %413 = tpu.dynamic_rotate %411 by %c32_i32_172 dim 1 : vector<16x256xf32>, i32 -> vector<16x256xf32>
    %414 = vector.broadcast %412 : vector<1x256xf32> to vector<16x256xf32>
    %415 = arith.mulf %414, %413 : vector<16x256xf32>
    %416 = arith.addf %392, %415 : vector<16x256xf32>
    %417 = vector.extract_strided_slice %332 {offsets = [224, 0], sizes = [16, 256], strides = [1, 1]} : vector<256x256xf32> to vector<16x256xf32>
    %c30_173 = arith.constant 30 : index
    %c0_174 = arith.constant 0 : index
    %418 = vector.load %arg8[%c30_173, %c0_174] : memref<31x256xf32, #tpu.memory_space<vmem>>, vector<1x256xf32>
    %c16_i32_175 = arith.constant 16 : i32
    %419 = tpu.dynamic_rotate %417 by %c16_i32_175 dim 1 : vector<16x256xf32>, i32 -> vector<16x256xf32>
    %420 = vector.broadcast %418 : vector<1x256xf32> to vector<16x256xf32>
    %421 = arith.mulf %420, %419 : vector<16x256xf32>
    %422 = arith.addf %398, %421 : vector<16x256xf32>
    %423 = vector.extract_strided_slice %332 {offsets = [240, 0], sizes = [16, 256], strides = [1, 1]} : vector<256x256xf32> to vector<16x256xf32>
    %424 = arith.addf %404, %423 : vector<16x256xf32>
    %425 = arith.addf %410, %416 : vector<16x256xf32>
    %426 = arith.addf %422, %424 : vector<16x256xf32>
    %427 = arith.addf %425, %426 : vector<16x256xf32>
    %428 = arith.addf %4, %427 : vector<16x256xf32>
    %cst_176 = arith.constant 0.000000e+00 : f32
    %429 = vector.broadcast %cst_176 : f32 to vector<16x256xf32>
    %430 = arith.maximumf %428, %429 : vector<16x256xf32>
    %c0_177 = arith.constant 0 : index
    %c0_178 = arith.constant 0 : index
    %431 = vector.load %arg4[%c0_177, %c0_178] : memref<16x16xf32, #tpu.memory_space<vmem>>, vector<16x16xf32>
    %cst_179 = arith.constant dense<0.000000e+00> : vector<16x256xf32>
    %432 = tpu.matmul %431, %430, %cst_179 {dimension_numbers = #tpu.dot_dimension_numbers<[1], [0], [0], [1], [0, 0, 1, 1], [], []>} : vector<16x16xf32>, vector<16x256xf32>, vector<16x256xf32> -> vector<16x256xf32>
    %c0_180 = arith.constant 0 : index
    %c0_181 = arith.constant 0 : index
    %433 = vector.load %arg5[%c0_180, %c0_181] : memref<16x1xf32, #tpu.memory_space<vmem>>, vector<16x1xf32>
    %434 = vector.broadcast %433 : vector<16x1xf32> to vector<16x256xf32>
    %435 = arith.addf %432, %434 : vector<16x256xf32>
    %c0_182 = arith.constant 0 : index
    %c0_183 = arith.constant 0 : index
    %436 = vector.load %arg9[%c0_182, %c0_183] : memref<32x256xf32, #tpu.memory_space<vmem>>, vector<16x256xf32>
    tpu.vector_store %arg9[%c0_182, %c0_183], %435 {strides = array<i32>} : memref<32x256xf32, #tpu.memory_space<vmem>>, vector<16x256xf32>,
    %c16_184 = arith.constant 16 : index
    %c0_185 = arith.constant 0 : index
    %437 = vector.load %arg1[%c16_184, %c0_185] : memref<32x256xf32, #tpu.memory_space<vmem>>, vector<16x256xf32>
    %c0_186 = arith.constant 0 : index
    %c0_187 = arith.constant 0 : index
    %438 = vector.load %arg2[%c0_186, %c0_187] : memref<16x16xf32, #tpu.memory_space<vmem>>, vector<16x16xf32>
    %cst_188 = arith.constant dense<0.000000e+00> : vector<16x256xf32>
    %439 = tpu.matmul %438, %437, %cst_188 {dimension_numbers = #tpu.dot_dimension_numbers<[1], [0], [0], [1], [0, 0, 1, 1], [], []>} : vector<16x16xf32>, vector<16x256xf32>, vector<16x256xf32> -> vector<16x256xf32>
    %c0_189 = arith.constant 0 : index
    %c0_190 = arith.constant 0 : index
    %440 = vector.load %arg3[%c0_189, %c0_190] : memref<16x1xf32, #tpu.memory_space<vmem>>, vector<16x1xf32>
    %441 = vector.broadcast %440 : vector<16x1xf32> to vector<16x256xf32>
    %442 = arith.addf %439, %441 : vector<16x256xf32>
    %cst_191 = arith.constant 0.707106769 : f32
    %443 = vector.broadcast %cst_191 : f32 to vector<16x256xf32>
    %444 = arith.mulf %442, %443 : vector<16x256xf32>
    %445 = math.absf %444 : vector<16x256xf32>
    %cst_192 = arith.constant 0.327591091 : f32
    %446 = vector.broadcast %cst_192 : f32 to vector<16x256xf32>
    %447 = arith.mulf %446, %445 : vector<16x256xf32>
    %cst_193 = arith.constant 1.000000e+00 : f32
    %448 = vector.broadcast %cst_193 : f32 to vector<16x256xf32>
    %449 = arith.addf %448, %447 : vector<16x256xf32>
    %450 = tpu.reciprocal %449 {approx = true} : vector<16x256xf32> -> vector<16x256xf32>
    %cst_194 = arith.constant 1.06140542 : f32
    %451 = vector.broadcast %cst_194 : f32 to vector<16x256xf32>
    %452 = arith.mulf %450, %451 : vector<16x256xf32>
    %cst_195 = arith.constant -1.45315206 : f32
    %453 = vector.broadcast %cst_195 : f32 to vector<16x256xf32>
    %454 = arith.addf %453, %452 : vector<16x256xf32>
    %455 = arith.mulf %450, %454 : vector<16x256xf32>
    %cst_196 = arith.constant 1.42141378 : f32
    %456 = vector.broadcast %cst_196 : f32 to vector<16x256xf32>
    %457 = arith.addf %456, %455 : vector<16x256xf32>
    %458 = arith.mulf %450, %457 : vector<16x256xf32>
    %cst_197 = arith.constant -0.284496725 : f32
    %459 = vector.broadcast %cst_197 : f32 to vector<16x256xf32>
    %460 = arith.addf %459, %458 : vector<16x256xf32>
    %461 = arith.mulf %450, %460 : vector<16x256xf32>
    %cst_198 = arith.constant 0.254829586 : f32
    %462 = vector.broadcast %cst_198 : f32 to vector<16x256xf32>
    %463 = arith.addf %462, %461 : vector<16x256xf32>
    %464 = arith.mulf %450, %463 : vector<16x256xf32>
    %cst_199 = arith.constant 0.000000e+00 : f32
    %465 = vector.broadcast %cst_199 : f32 to vector<16x256xf32>
    %466 = arith.subf %465, %445 : vector<16x256xf32>
    %467 = arith.mulf %466, %445 : vector<16x256xf32>
    %468 = math.exp %467 : vector<16x256xf32>
    %469 = arith.mulf %464, %468 : vector<16x256xf32>
    %cst_200 = arith.constant 1.000000e+00 : f32
    %470 = vector.broadcast %cst_200 : f32 to vector<16x256xf32>
    %471 = arith.subf %470, %469 : vector<16x256xf32>
    %cst_201 = arith.constant 0.000000e+00 : f32
    %472 = vector.broadcast %cst_201 : f32 to vector<16x256xf32>
    %473 = arith.cmpf oge, %444, %472 : vector<16x256xf32>
    %cst_202 = arith.constant 0.000000e+00 : f32
    %474 = vector.broadcast %cst_202 : f32 to vector<16x256xf32>
    %475 = arith.subf %474, %471 : vector<16x256xf32>
    %476 = arith.select %473, %471, %475 : vector<16x256xi1>, vector<16x256xf32>
    %cst_203 = arith.constant 5.000000e-01 : f32
    %477 = vector.broadcast %cst_203 : f32 to vector<16x256xf32>
    %478 = arith.mulf %477, %442 : vector<16x256xf32>
    %cst_204 = arith.constant 1.000000e+00 : f32
    %479 = vector.broadcast %cst_204 : f32 to vector<16x256xf32>
    %480 = arith.addf %479, %476 : vector<16x256xf32>
    %481 = arith.mulf %478, %480 : vector<16x256xf32>
    %c0_205 = arith.constant 0 : index
    %c0_206 = arith.constant 0 : index
    %482 = vector.load %arg7[%c0_205, %c0_206] : memref<31x256xf32, #tpu.memory_space<vmem>>, vector<1x256xf32>
    %c15_i32_207 = arith.constant 15 : i32
    %483 = tpu.dynamic_rotate %481 by %c15_i32_207 dim 1 : vector<16x256xf32>, i32 -> vector<16x256xf32>
    %484 = vector.broadcast %482 : vector<1x256xf32> to vector<16x256xf32>
    %485 = arith.mulf %484, %483 : vector<16x256xf32>
    %486 = arith.truncf %485 : vector<16x256xf32> to vector<16x256xbf16>
    %c512 = arith.constant 512 : index
    %c0_208 = arith.constant 0 : index
    %487 = vector.load %arg10[%c512, %c0_208] : memref<1024x256xbf16, #tpu.memory_space<vmem>>, vector<16x256xbf16>
    tpu.vector_store %arg10[%c512, %c0_208], %486 {strides = array<i32>} : memref<1024x256xbf16, #tpu.memory_space<vmem>>, vector<16x256xbf16>,
    %c1_209 = arith.constant 1 : index
    %c0_210 = arith.constant 0 : index
    %488 = vector.load %arg7[%c1_209, %c0_210] : memref<31x256xf32, #tpu.memory_space<vmem>>, vector<1x256xf32>
    %c14_i32_211 = arith.constant 14 : i32
    %489 = tpu.dynamic_rotate %481 by %c14_i32_211 dim 1 : vector<16x256xf32>, i32 -> vector<16x256xf32>
    %490 = vector.broadcast %488 : vector<1x256xf32> to vector<16x256xf32>
    %491 = arith.mulf %490, %489 : vector<16x256xf32>
    %492 = arith.truncf %491 : vector<16x256xf32> to vector<16x256xbf16>
    %c528 = arith.constant 528 : index
    %c0_212 = arith.constant 0 : index
    %493 = vector.load %arg10[%c528, %c0_212] : memref<1024x256xbf16, #tpu.memory_space<vmem>>, vector<16x256xbf16>
    tpu.vector_store %arg10[%c528, %c0_212], %492 {strides = array<i32>} : memref<1024x256xbf16, #tpu.memory_space<vmem>>, vector<16x256xbf16>,
    %c2_213 = arith.constant 2 : index
    %c0_214 = arith.constant 0 : index
    %494 = vector.load %arg7[%c2_213, %c0_214] : memref<31x256xf32, #tpu.memory_space<vmem>>, vector<1x256xf32>
    %c13_i32_215 = arith.constant 13 : i32
    %495 = tpu.dynamic_rotate %481 by %c13_i32_215 dim 1 : vector<16x256xf32>, i32 -> vector<16x256xf32>
    %496 = vector.broadcast %494 : vector<1x256xf32> to vector<16x256xf32>
    %497 = arith.mulf %496, %495 : vector<16x256xf32>
    %498 = arith.truncf %497 : vector<16x256xf32> to vector<16x256xbf16>
    %c544 = arith.constant 544 : index
    %c0_216 = arith.constant 0 : index
    %499 = vector.load %arg10[%c544, %c0_216] : memref<1024x256xbf16, #tpu.memory_space<vmem>>, vector<16x256xbf16>
    tpu.vector_store %arg10[%c544, %c0_216], %498 {strides = array<i32>} : memref<1024x256xbf16, #tpu.memory_space<vmem>>, vector<16x256xbf16>,
    %c3_217 = arith.constant 3 : index
    %c0_218 = arith.constant 0 : index
    %500 = vector.load %arg7[%c3_217, %c0_218] : memref<31x256xf32, #tpu.memory_space<vmem>>, vector<1x256xf32>
    %c12_i32_219 = arith.constant 12 : i32
    %501 = tpu.dynamic_rotate %481 by %c12_i32_219 dim 1 : vector<16x256xf32>, i32 -> vector<16x256xf32>
    %502 = vector.broadcast %500 : vector<1x256xf32> to vector<16x256xf32>
    %503 = arith.mulf %502, %501 : vector<16x256xf32>
    %504 = arith.truncf %503 : vector<16x256xf32> to vector<16x256xbf16>
    %c560 = arith.constant 560 : index
    %c0_220 = arith.constant 0 : index
    %505 = vector.load %arg10[%c560, %c0_220] : memref<1024x256xbf16, #tpu.memory_space<vmem>>, vector<16x256xbf16>
    tpu.vector_store %arg10[%c560, %c0_220], %504 {strides = array<i32>} : memref<1024x256xbf16, #tpu.memory_space<vmem>>, vector<16x256xbf16>,
    %c4_221 = arith.constant 4 : index
    %c0_222 = arith.constant 0 : index
    %506 = vector.load %arg7[%c4_221, %c0_222] : memref<31x256xf32, #tpu.memory_space<vmem>>, vector<1x256xf32>
    %c11_i32_223 = arith.constant 11 : i32
    %507 = tpu.dynamic_rotate %481 by %c11_i32_223 dim 1 : vector<16x256xf32>, i32 -> vector<16x256xf32>
    %508 = vector.broadcast %506 : vector<1x256xf32> to vector<16x256xf32>
    %509 = arith.mulf %508, %507 : vector<16x256xf32>
    %510 = arith.truncf %509 : vector<16x256xf32> to vector<16x256xbf16>
    %c576 = arith.constant 576 : index
    %c0_224 = arith.constant 0 : index
    %511 = vector.load %arg10[%c576, %c0_224] : memref<1024x256xbf16, #tpu.memory_space<vmem>>, vector<16x256xbf16>
    tpu.vector_store %arg10[%c576, %c0_224], %510 {strides = array<i32>} : memref<1024x256xbf16, #tpu.memory_space<vmem>>, vector<16x256xbf16>,
    %c5_225 = arith.constant 5 : index
    %c0_226 = arith.constant 0 : index
    %512 = vector.load %arg7[%c5_225, %c0_226] : memref<31x256xf32, #tpu.memory_space<vmem>>, vector<1x256xf32>
    %c10_i32_227 = arith.constant 10 : i32
    %513 = tpu.dynamic_rotate %481 by %c10_i32_227 dim 1 : vector<16x256xf32>, i32 -> vector<16x256xf32>
    %514 = vector.broadcast %512 : vector<1x256xf32> to vector<16x256xf32>
    %515 = arith.mulf %514, %513 : vector<16x256xf32>
    %516 = arith.truncf %515 : vector<16x256xf32> to vector<16x256xbf16>
    %c592 = arith.constant 592 : index
    %c0_228 = arith.constant 0 : index
    %517 = vector.load %arg10[%c592, %c0_228] : memref<1024x256xbf16, #tpu.memory_space<vmem>>, vector<16x256xbf16>
    tpu.vector_store %arg10[%c592, %c0_228], %516 {strides = array<i32>} : memref<1024x256xbf16, #tpu.memory_space<vmem>>, vector<16x256xbf16>,
    %c6_229 = arith.constant 6 : index
    %c0_230 = arith.constant 0 : index
    %518 = vector.load %arg7[%c6_229, %c0_230] : memref<31x256xf32, #tpu.memory_space<vmem>>, vector<1x256xf32>
    %c9_i32_231 = arith.constant 9 : i32
    %519 = tpu.dynamic_rotate %481 by %c9_i32_231 dim 1 : vector<16x256xf32>, i32 -> vector<16x256xf32>
    %520 = vector.broadcast %518 : vector<1x256xf32> to vector<16x256xf32>
    %521 = arith.mulf %520, %519 : vector<16x256xf32>
    %522 = arith.truncf %521 : vector<16x256xf32> to vector<16x256xbf16>
    %c608 = arith.constant 608 : index
    %c0_232 = arith.constant 0 : index
    %523 = vector.load %arg10[%c608, %c0_232] : memref<1024x256xbf16, #tpu.memory_space<vmem>>, vector<16x256xbf16>
    tpu.vector_store %arg10[%c608, %c0_232], %522 {strides = array<i32>} : memref<1024x256xbf16, #tpu.memory_space<vmem>>, vector<16x256xbf16>,
    %c7_233 = arith.constant 7 : index
    %c0_234 = arith.constant 0 : index
    %524 = vector.load %arg7[%c7_233, %c0_234] : memref<31x256xf32, #tpu.memory_space<vmem>>, vector<1x256xf32>
    %c8_i32_235 = arith.constant 8 : i32
    %525 = tpu.dynamic_rotate %481 by %c8_i32_235 dim 1 : vector<16x256xf32>, i32 -> vector<16x256xf32>
    %526 = vector.broadcast %524 : vector<1x256xf32> to vector<16x256xf32>
    %527 = arith.mulf %526, %525 : vector<16x256xf32>
    %528 = arith.truncf %527 : vector<16x256xf32> to vector<16x256xbf16>
    %c624 = arith.constant 624 : index
    %c0_236 = arith.constant 0 : index
    %529 = vector.load %arg10[%c624, %c0_236] : memref<1024x256xbf16, #tpu.memory_space<vmem>>, vector<16x256xbf16>
    tpu.vector_store %arg10[%c624, %c0_236], %528 {strides = array<i32>} : memref<1024x256xbf16, #tpu.memory_space<vmem>>, vector<16x256xbf16>,
    %c8_237 = arith.constant 8 : index
    %c0_238 = arith.constant 0 : index
    %530 = vector.load %arg7[%c8_237, %c0_238] : memref<31x256xf32, #tpu.memory_space<vmem>>, vector<1x256xf32>
    %c7_i32_239 = arith.constant 7 : i32
    %531 = tpu.dynamic_rotate %481 by %c7_i32_239 dim 1 : vector<16x256xf32>, i32 -> vector<16x256xf32>
    %532 = vector.broadcast %530 : vector<1x256xf32> to vector<16x256xf32>
    %533 = arith.mulf %532, %531 : vector<16x256xf32>
    %534 = arith.truncf %533 : vector<16x256xf32> to vector<16x256xbf16>
    %c640 = arith.constant 640 : index
    %c0_240 = arith.constant 0 : index
    %535 = vector.load %arg10[%c640, %c0_240] : memref<1024x256xbf16, #tpu.memory_space<vmem>>, vector<16x256xbf16>
    tpu.vector_store %arg10[%c640, %c0_240], %534 {strides = array<i32>} : memref<1024x256xbf16, #tpu.memory_space<vmem>>, vector<16x256xbf16>,
    %c9_241 = arith.constant 9 : index
    %c0_242 = arith.constant 0 : index
    %536 = vector.load %arg7[%c9_241, %c0_242] : memref<31x256xf32, #tpu.memory_space<vmem>>, vector<1x256xf32>
    %c6_i32_243 = arith.constant 6 : i32
    %537 = tpu.dynamic_rotate %481 by %c6_i32_243 dim 1 : vector<16x256xf32>, i32 -> vector<16x256xf32>
    %538 = vector.broadcast %536 : vector<1x256xf32> to vector<16x256xf32>
    %539 = arith.mulf %538, %537 : vector<16x256xf32>
    %540 = arith.truncf %539 : vector<16x256xf32> to vector<16x256xbf16>
    %c656 = arith.constant 656 : index
    %c0_244 = arith.constant 0 : index
    %541 = vector.load %arg10[%c656, %c0_244] : memref<1024x256xbf16, #tpu.memory_space<vmem>>, vector<16x256xbf16>
    tpu.vector_store %arg10[%c656, %c0_244], %540 {strides = array<i32>} : memref<1024x256xbf16, #tpu.memory_space<vmem>>, vector<16x256xbf16>,
    %c10_245 = arith.constant 10 : index
    %c0_246 = arith.constant 0 : index
    %542 = vector.load %arg7[%c10_245, %c0_246] : memref<31x256xf32, #tpu.memory_space<vmem>>, vector<1x256xf32>
    %c5_i32_247 = arith.constant 5 : i32
    %543 = tpu.dynamic_rotate %481 by %c5_i32_247 dim 1 : vector<16x256xf32>, i32 -> vector<16x256xf32>
    %544 = vector.broadcast %542 : vector<1x256xf32> to vector<16x256xf32>
    %545 = arith.mulf %544, %543 : vector<16x256xf32>
    %546 = arith.truncf %545 : vector<16x256xf32> to vector<16x256xbf16>
    %c672 = arith.constant 672 : index
    %c0_248 = arith.constant 0 : index
    %547 = vector.load %arg10[%c672, %c0_248] : memref<1024x256xbf16, #tpu.memory_space<vmem>>, vector<16x256xbf16>
    tpu.vector_store %arg10[%c672, %c0_248], %546 {strides = array<i32>} : memref<1024x256xbf16, #tpu.memory_space<vmem>>, vector<16x256xbf16>,
    %c11_249 = arith.constant 11 : index
    %c0_250 = arith.constant 0 : index
    %548 = vector.load %arg7[%c11_249, %c0_250] : memref<31x256xf32, #tpu.memory_space<vmem>>, vector<1x256xf32>
    %c4_i32_251 = arith.constant 4 : i32
    %549 = tpu.dynamic_rotate %481 by %c4_i32_251 dim 1 : vector<16x256xf32>, i32 -> vector<16x256xf32>
    %550 = vector.broadcast %548 : vector<1x256xf32> to vector<16x256xf32>
    %551 = arith.mulf %550, %549 : vector<16x256xf32>
    %552 = arith.truncf %551 : vector<16x256xf32> to vector<16x256xbf16>
    %c688 = arith.constant 688 : index
    %c0_252 = arith.constant 0 : index
    %553 = vector.load %arg10[%c688, %c0_252] : memref<1024x256xbf16, #tpu.memory_space<vmem>>, vector<16x256xbf16>
    tpu.vector_store %arg10[%c688, %c0_252], %552 {strides = array<i32>} : memref<1024x256xbf16, #tpu.memory_space<vmem>>, vector<16x256xbf16>,
    %c12_253 = arith.constant 12 : index
    %c0_254 = arith.constant 0 : index
    %554 = vector.load %arg7[%c12_253, %c0_254] : memref<31x256xf32, #tpu.memory_space<vmem>>, vector<1x256xf32>
    %c3_i32_255 = arith.constant 3 : i32
    %555 = tpu.dynamic_rotate %481 by %c3_i32_255 dim 1 : vector<16x256xf32>, i32 -> vector<16x256xf32>
    %556 = vector.broadcast %554 : vector<1x256xf32> to vector<16x256xf32>
    %557 = arith.mulf %556, %555 : vector<16x256xf32>
    %558 = arith.truncf %557 : vector<16x256xf32> to vector<16x256xbf16>
    %c704 = arith.constant 704 : index
    %c0_256 = arith.constant 0 : index
    %559 = vector.load %arg10[%c704, %c0_256] : memref<1024x256xbf16, #tpu.memory_space<vmem>>, vector<16x256xbf16>
    tpu.vector_store %arg10[%c704, %c0_256], %558 {strides = array<i32>} : memref<1024x256xbf16, #tpu.memory_space<vmem>>, vector<16x256xbf16>,
    %c13_257 = arith.constant 13 : index
    %c0_258 = arith.constant 0 : index
    %560 = vector.load %arg7[%c13_257, %c0_258] : memref<31x256xf32, #tpu.memory_space<vmem>>, vector<1x256xf32>
    %c2_i32_259 = arith.constant 2 : i32
    %561 = tpu.dynamic_rotate %481 by %c2_i32_259 dim 1 : vector<16x256xf32>, i32 -> vector<16x256xf32>
    %562 = vector.broadcast %560 : vector<1x256xf32> to vector<16x256xf32>
    %563 = arith.mulf %562, %561 : vector<16x256xf32>
    %564 = arith.truncf %563 : vector<16x256xf32> to vector<16x256xbf16>
    %c720 = arith.constant 720 : index
    %c0_260 = arith.constant 0 : index
    %565 = vector.load %arg10[%c720, %c0_260] : memref<1024x256xbf16, #tpu.memory_space<vmem>>, vector<16x256xbf16>
    tpu.vector_store %arg10[%c720, %c0_260], %564 {strides = array<i32>} : memref<1024x256xbf16, #tpu.memory_space<vmem>>, vector<16x256xbf16>,
    %c14_261 = arith.constant 14 : index
    %c0_262 = arith.constant 0 : index
    %566 = vector.load %arg7[%c14_261, %c0_262] : memref<31x256xf32, #tpu.memory_space<vmem>>, vector<1x256xf32>
    %c1_i32_263 = arith.constant 1 : i32
    %567 = tpu.dynamic_rotate %481 by %c1_i32_263 dim 1 : vector<16x256xf32>, i32 -> vector<16x256xf32>
    %568 = vector.broadcast %566 : vector<1x256xf32> to vector<16x256xf32>
    %569 = arith.mulf %568, %567 : vector<16x256xf32>
    %570 = arith.truncf %569 : vector<16x256xf32> to vector<16x256xbf16>
    %c736 = arith.constant 736 : index
    %c0_264 = arith.constant 0 : index
    %571 = vector.load %arg10[%c736, %c0_264] : memref<1024x256xbf16, #tpu.memory_space<vmem>>, vector<16x256xbf16>
    tpu.vector_store %arg10[%c736, %c0_264], %570 {strides = array<i32>} : memref<1024x256xbf16, #tpu.memory_space<vmem>>, vector<16x256xbf16>,
    %572 = arith.truncf %481 : vector<16x256xf32> to vector<16x256xbf16>
    %c752 = arith.constant 752 : index
    %c0_265 = arith.constant 0 : index
    %573 = vector.load %arg10[%c752, %c0_265] : memref<1024x256xbf16, #tpu.memory_space<vmem>>, vector<16x256xbf16>
    tpu.vector_store %arg10[%c752, %c0_265], %572 {strides = array<i32>} : memref<1024x256xbf16, #tpu.memory_space<vmem>>, vector<16x256xbf16>,
    %c16_266 = arith.constant 16 : index
    %c0_267 = arith.constant 0 : index
    %574 = vector.load %arg7[%c16_266, %c0_267] : memref<31x256xf32, #tpu.memory_space<vmem>>, vector<1x256xf32>
    %c255_i32_268 = arith.constant 255 : i32
    %575 = tpu.dynamic_rotate %481 by %c255_i32_268 dim 1 : vector<16x256xf32>, i32 -> vector<16x256xf32>
    %576 = vector.broadcast %574 : vector<1x256xf32> to vector<16x256xf32>
    %577 = arith.mulf %576, %575 : vector<16x256xf32>
    %578 = arith.truncf %577 : vector<16x256xf32> to vector<16x256xbf16>
    %c768 = arith.constant 768 : index
    %c0_269 = arith.constant 0 : index
    %579 = vector.load %arg10[%c768, %c0_269] : memref<1024x256xbf16, #tpu.memory_space<vmem>>, vector<16x256xbf16>
    tpu.vector_store %arg10[%c768, %c0_269], %578 {strides = array<i32>} : memref<1024x256xbf16, #tpu.memory_space<vmem>>, vector<16x256xbf16>,
    %c17_270 = arith.constant 17 : index
    %c0_271 = arith.constant 0 : index
    %580 = vector.load %arg7[%c17_270, %c0_271] : memref<31x256xf32, #tpu.memory_space<vmem>>, vector<1x256xf32>
    %c254_i32_272 = arith.constant 254 : i32
    %581 = tpu.dynamic_rotate %481 by %c254_i32_272 dim 1 : vector<16x256xf32>, i32 -> vector<16x256xf32>
    %582 = vector.broadcast %580 : vector<1x256xf32> to vector<16x256xf32>
    %583 = arith.mulf %582, %581 : vector<16x256xf32>
    %584 = arith.truncf %583 : vector<16x256xf32> to vector<16x256xbf16>
    %c784 = arith.constant 784 : index
    %c0_273 = arith.constant 0 : index
    %585 = vector.load %arg10[%c784, %c0_273] : memref<1024x256xbf16, #tpu.memory_space<vmem>>, vector<16x256xbf16>
    tpu.vector_store %arg10[%c784, %c0_273], %584 {strides = array<i32>} : memref<1024x256xbf16, #tpu.memory_space<vmem>>, vector<16x256xbf16>,
    %c18_274 = arith.constant 18 : index
    %c0_275 = arith.constant 0 : index
    %586 = vector.load %arg7[%c18_274, %c0_275] : memref<31x256xf32, #tpu.memory_space<vmem>>, vector<1x256xf32>
    %c253_i32_276 = arith.constant 253 : i32
    %587 = tpu.dynamic_rotate %481 by %c253_i32_276 dim 1 : vector<16x256xf32>, i32 -> vector<16x256xf32>
    %588 = vector.broadcast %586 : vector<1x256xf32> to vector<16x256xf32>
    %589 = arith.mulf %588, %587 : vector<16x256xf32>
    %590 = arith.truncf %589 : vector<16x256xf32> to vector<16x256xbf16>
    %c800 = arith.constant 800 : index
    %c0_277 = arith.constant 0 : index
    %591 = vector.load %arg10[%c800, %c0_277] : memref<1024x256xbf16, #tpu.memory_space<vmem>>, vector<16x256xbf16>
    tpu.vector_store %arg10[%c800, %c0_277], %590 {strides = array<i32>} : memref<1024x256xbf16, #tpu.memory_space<vmem>>, vector<16x256xbf16>,
    %c19_278 = arith.constant 19 : index
    %c0_279 = arith.constant 0 : index
    %592 = vector.load %arg7[%c19_278, %c0_279] : memref<31x256xf32, #tpu.memory_space<vmem>>, vector<1x256xf32>
    %c252_i32_280 = arith.constant 252 : i32
    %593 = tpu.dynamic_rotate %481 by %c252_i32_280 dim 1 : vector<16x256xf32>, i32 -> vector<16x256xf32>
    %594 = vector.broadcast %592 : vector<1x256xf32> to vector<16x256xf32>
    %595 = arith.mulf %594, %593 : vector<16x256xf32>
    %596 = arith.truncf %595 : vector<16x256xf32> to vector<16x256xbf16>
    %c816 = arith.constant 816 : index
    %c0_281 = arith.constant 0 : index
    %597 = vector.load %arg10[%c816, %c0_281] : memref<1024x256xbf16, #tpu.memory_space<vmem>>, vector<16x256xbf16>
    tpu.vector_store %arg10[%c816, %c0_281], %596 {strides = array<i32>} : memref<1024x256xbf16, #tpu.memory_space<vmem>>, vector<16x256xbf16>,
    %c20_282 = arith.constant 20 : index
    %c0_283 = arith.constant 0 : index
    %598 = vector.load %arg7[%c20_282, %c0_283] : memref<31x256xf32, #tpu.memory_space<vmem>>, vector<1x256xf32>
    %c251_i32_284 = arith.constant 251 : i32
    %599 = tpu.dynamic_rotate %481 by %c251_i32_284 dim 1 : vector<16x256xf32>, i32 -> vector<16x256xf32>
    %600 = vector.broadcast %598 : vector<1x256xf32> to vector<16x256xf32>
    %601 = arith.mulf %600, %599 : vector<16x256xf32>
    %602 = arith.truncf %601 : vector<16x256xf32> to vector<16x256xbf16>
    %c832 = arith.constant 832 : index
    %c0_285 = arith.constant 0 : index
    %603 = vector.load %arg10[%c832, %c0_285] : memref<1024x256xbf16, #tpu.memory_space<vmem>>, vector<16x256xbf16>
    tpu.vector_store %arg10[%c832, %c0_285], %602 {strides = array<i32>} : memref<1024x256xbf16, #tpu.memory_space<vmem>>, vector<16x256xbf16>,
    %c21_286 = arith.constant 21 : index
    %c0_287 = arith.constant 0 : index
    %604 = vector.load %arg7[%c21_286, %c0_287] : memref<31x256xf32, #tpu.memory_space<vmem>>, vector<1x256xf32>
    %c250_i32_288 = arith.constant 250 : i32
    %605 = tpu.dynamic_rotate %481 by %c250_i32_288 dim 1 : vector<16x256xf32>, i32 -> vector<16x256xf32>
    %606 = vector.broadcast %604 : vector<1x256xf32> to vector<16x256xf32>
    %607 = arith.mulf %606, %605 : vector<16x256xf32>
    %608 = arith.truncf %607 : vector<16x256xf32> to vector<16x256xbf16>
    %c848 = arith.constant 848 : index
    %c0_289 = arith.constant 0 : index
    %609 = vector.load %arg10[%c848, %c0_289] : memref<1024x256xbf16, #tpu.memory_space<vmem>>, vector<16x256xbf16>
    tpu.vector_store %arg10[%c848, %c0_289], %608 {strides = array<i32>} : memref<1024x256xbf16, #tpu.memory_space<vmem>>, vector<16x256xbf16>,
    %c22_290 = arith.constant 22 : index
    %c0_291 = arith.constant 0 : index
    %610 = vector.load %arg7[%c22_290, %c0_291] : memref<31x256xf32, #tpu.memory_space<vmem>>, vector<1x256xf32>
    %c249_i32_292 = arith.constant 249 : i32
    %611 = tpu.dynamic_rotate %481 by %c249_i32_292 dim 1 : vector<16x256xf32>, i32 -> vector<16x256xf32>
    %612 = vector.broadcast %610 : vector<1x256xf32> to vector<16x256xf32>
    %613 = arith.mulf %612, %611 : vector<16x256xf32>
    %614 = arith.truncf %613 : vector<16x256xf32> to vector<16x256xbf16>
    %c864 = arith.constant 864 : index
    %c0_293 = arith.constant 0 : index
    %615 = vector.load %arg10[%c864, %c0_293] : memref<1024x256xbf16, #tpu.memory_space<vmem>>, vector<16x256xbf16>
    tpu.vector_store %arg10[%c864, %c0_293], %614 {strides = array<i32>} : memref<1024x256xbf16, #tpu.memory_space<vmem>>, vector<16x256xbf16>,
    %c23_294 = arith.constant 23 : index
    %c0_295 = arith.constant 0 : index
    %616 = vector.load %arg7[%c23_294, %c0_295] : memref<31x256xf32, #tpu.memory_space<vmem>>, vector<1x256xf32>
    %c248_i32_296 = arith.constant 248 : i32
    %617 = tpu.dynamic_rotate %481 by %c248_i32_296 dim 1 : vector<16x256xf32>, i32 -> vector<16x256xf32>
    %618 = vector.broadcast %616 : vector<1x256xf32> to vector<16x256xf32>
    %619 = arith.mulf %618, %617 : vector<16x256xf32>
    %620 = arith.truncf %619 : vector<16x256xf32> to vector<16x256xbf16>
    %c880 = arith.constant 880 : index
    %c0_297 = arith.constant 0 : index
    %621 = vector.load %arg10[%c880, %c0_297] : memref<1024x256xbf16, #tpu.memory_space<vmem>>, vector<16x256xbf16>
    tpu.vector_store %arg10[%c880, %c0_297], %620 {strides = array<i32>} : memref<1024x256xbf16, #tpu.memory_space<vmem>>, vector<16x256xbf16>,
    %c24_298 = arith.constant 24 : index
    %c0_299 = arith.constant 0 : index
    %622 = vector.load %arg7[%c24_298, %c0_299] : memref<31x256xf32, #tpu.memory_space<vmem>>, vector<1x256xf32>
    %c247_i32_300 = arith.constant 247 : i32
    %623 = tpu.dynamic_rotate %481 by %c247_i32_300 dim 1 : vector<16x256xf32>, i32 -> vector<16x256xf32>
    %624 = vector.broadcast %622 : vector<1x256xf32> to vector<16x256xf32>
    %625 = arith.mulf %624, %623 : vector<16x256xf32>
    %626 = arith.truncf %625 : vector<16x256xf32> to vector<16x256xbf16>
    %c896 = arith.constant 896 : index
    %c0_301 = arith.constant 0 : index
    %627 = vector.load %arg10[%c896, %c0_301] : memref<1024x256xbf16, #tpu.memory_space<vmem>>, vector<16x256xbf16>
    tpu.vector_store %arg10[%c896, %c0_301], %626 {strides = array<i32>} : memref<1024x256xbf16, #tpu.memory_space<vmem>>, vector<16x256xbf16>,
    %c25_302 = arith.constant 25 : index
    %c0_303 = arith.constant 0 : index
    %628 = vector.load %arg7[%c25_302, %c0_303] : memref<31x256xf32, #tpu.memory_space<vmem>>, vector<1x256xf32>
    %c246_i32_304 = arith.constant 246 : i32
    %629 = tpu.dynamic_rotate %481 by %c246_i32_304 dim 1 : vector<16x256xf32>, i32 -> vector<16x256xf32>
    %630 = vector.broadcast %628 : vector<1x256xf32> to vector<16x256xf32>
    %631 = arith.mulf %630, %629 : vector<16x256xf32>
    %632 = arith.truncf %631 : vector<16x256xf32> to vector<16x256xbf16>
    %c912 = arith.constant 912 : index
    %c0_305 = arith.constant 0 : index
    %633 = vector.load %arg10[%c912, %c0_305] : memref<1024x256xbf16, #tpu.memory_space<vmem>>, vector<16x256xbf16>
    tpu.vector_store %arg10[%c912, %c0_305], %632 {strides = array<i32>} : memref<1024x256xbf16, #tpu.memory_space<vmem>>, vector<16x256xbf16>,
    %c26_306 = arith.constant 26 : index
    %c0_307 = arith.constant 0 : index
    %634 = vector.load %arg7[%c26_306, %c0_307] : memref<31x256xf32, #tpu.memory_space<vmem>>, vector<1x256xf32>
    %c245_i32_308 = arith.constant 245 : i32
    %635 = tpu.dynamic_rotate %481 by %c245_i32_308 dim 1 : vector<16x256xf32>, i32 -> vector<16x256xf32>
    %636 = vector.broadcast %634 : vector<1x256xf32> to vector<16x256xf32>
    %637 = arith.mulf %636, %635 : vector<16x256xf32>
    %638 = arith.truncf %637 : vector<16x256xf32> to vector<16x256xbf16>
    %c928 = arith.constant 928 : index
    %c0_309 = arith.constant 0 : index
    %639 = vector.load %arg10[%c928, %c0_309] : memref<1024x256xbf16, #tpu.memory_space<vmem>>, vector<16x256xbf16>
    tpu.vector_store %arg10[%c928, %c0_309], %638 {strides = array<i32>} : memref<1024x256xbf16, #tpu.memory_space<vmem>>, vector<16x256xbf16>,
    %c27_310 = arith.constant 27 : index
    %c0_311 = arith.constant 0 : index
    %640 = vector.load %arg7[%c27_310, %c0_311] : memref<31x256xf32, #tpu.memory_space<vmem>>, vector<1x256xf32>
    %c244_i32_312 = arith.constant 244 : i32
    %641 = tpu.dynamic_rotate %481 by %c244_i32_312 dim 1 : vector<16x256xf32>, i32 -> vector<16x256xf32>
    %642 = vector.broadcast %640 : vector<1x256xf32> to vector<16x256xf32>
    %643 = arith.mulf %642, %641 : vector<16x256xf32>
    %644 = arith.truncf %643 : vector<16x256xf32> to vector<16x256xbf16>
    %c944 = arith.constant 944 : index
    %c0_313 = arith.constant 0 : index
    %645 = vector.load %arg10[%c944, %c0_313] : memref<1024x256xbf16, #tpu.memory_space<vmem>>, vector<16x256xbf16>
    tpu.vector_store %arg10[%c944, %c0_313], %644 {strides = array<i32>} : memref<1024x256xbf16, #tpu.memory_space<vmem>>, vector<16x256xbf16>,
    %c28_314 = arith.constant 28 : index
    %c0_315 = arith.constant 0 : index
    %646 = vector.load %arg7[%c28_314, %c0_315] : memref<31x256xf32, #tpu.memory_space<vmem>>, vector<1x256xf32>
    %c243_i32_316 = arith.constant 243 : i32
    %647 = tpu.dynamic_rotate %481 by %c243_i32_316 dim 1 : vector<16x256xf32>, i32 -> vector<16x256xf32>
    %648 = vector.broadcast %646 : vector<1x256xf32> to vector<16x256xf32>
    %649 = arith.mulf %648, %647 : vector<16x256xf32>
    %650 = arith.truncf %649 : vector<16x256xf32> to vector<16x256xbf16>
    %c960 = arith.constant 960 : index
    %c0_317 = arith.constant 0 : index
    %651 = vector.load %arg10[%c960, %c0_317] : memref<1024x256xbf16, #tpu.memory_space<vmem>>, vector<16x256xbf16>
    tpu.vector_store %arg10[%c960, %c0_317], %650 {strides = array<i32>} : memref<1024x256xbf16, #tpu.memory_space<vmem>>, vector<16x256xbf16>,
    %c29_318 = arith.constant 29 : index
    %c0_319 = arith.constant 0 : index
    %652 = vector.load %arg7[%c29_318, %c0_319] : memref<31x256xf32, #tpu.memory_space<vmem>>, vector<1x256xf32>
    %c242_i32_320 = arith.constant 242 : i32
    %653 = tpu.dynamic_rotate %481 by %c242_i32_320 dim 1 : vector<16x256xf32>, i32 -> vector<16x256xf32>
    %654 = vector.broadcast %652 : vector<1x256xf32> to vector<16x256xf32>
    %655 = arith.mulf %654, %653 : vector<16x256xf32>
    %656 = arith.truncf %655 : vector<16x256xf32> to vector<16x256xbf16>
    %c976 = arith.constant 976 : index
    %c0_321 = arith.constant 0 : index
    %657 = vector.load %arg10[%c976, %c0_321] : memref<1024x256xbf16, #tpu.memory_space<vmem>>, vector<16x256xbf16>
    tpu.vector_store %arg10[%c976, %c0_321], %656 {strides = array<i32>} : memref<1024x256xbf16, #tpu.memory_space<vmem>>, vector<16x256xbf16>,
    %c30_322 = arith.constant 30 : index
    %c0_323 = arith.constant 0 : index
    %658 = vector.load %arg7[%c30_322, %c0_323] : memref<31x256xf32, #tpu.memory_space<vmem>>, vector<1x256xf32>
    %c241_i32_324 = arith.constant 241 : i32
    %659 = tpu.dynamic_rotate %481 by %c241_i32_324 dim 1 : vector<16x256xf32>, i32 -> vector<16x256xf32>
    %660 = vector.broadcast %658 : vector<1x256xf32> to vector<16x256xf32>
    %661 = arith.mulf %660, %659 : vector<16x256xf32>
    %662 = arith.truncf %661 : vector<16x256xf32> to vector<16x256xbf16>
    %c992 = arith.constant 992 : index
    %c0_325 = arith.constant 0 : index
    %663 = vector.load %arg10[%c992, %c0_325] : memref<1024x256xbf16, #tpu.memory_space<vmem>>, vector<16x256xbf16>
    tpu.vector_store %arg10[%c992, %c0_325], %662 {strides = array<i32>} : memref<1024x256xbf16, #tpu.memory_space<vmem>>, vector<16x256xbf16>,
    %cst_326 = arith.constant 0.000000e+00 : f32
    %664 = vector.broadcast %cst_326 : f32 to vector<16x256xf32>
    %cst_327 = arith.constant 0.000000e+00 : f32
    %665 = vector.broadcast %cst_327 : f32 to vector<16x256xf32>
    %cst_328 = arith.constant 0.000000e+00 : f32
    %666 = vector.broadcast %cst_328 : f32 to vector<16x256xf32>
    %cst_329 = arith.constant 0.000000e+00 : f32
    %667 = vector.broadcast %cst_329 : f32 to vector<16x256xf32>
    %c0_330 = arith.constant 0 : index
    %c0_331 = arith.constant 0 : index
    %668 = vector.load %arg6[%c0_330, %c0_331] : memref<512x512xbf16, #tpu.memory_space<vmem>>, vector<256x512xbf16>
    %c512_332 = arith.constant 512 : index
    %c0_333 = arith.constant 0 : index
    %669 = vector.load %arg10[%c512_332, %c0_333] : memref<1024x256xbf16, #tpu.memory_space<vmem>>, vector<512x256xbf16>
    %cst_334 = arith.constant dense<0.000000e+00> : vector<256x256xf32>
    %670 = tpu.matmul %668, %669, %cst_334 {dimension_numbers = #tpu.dot_dimension_numbers<[1], [0], [0], [1], [0, 0, 1, 1], [], []>} : vector<256x512xbf16>, vector<512x256xbf16>, vector<256x256xf32> -> vector<256x256xf32>
    %671 = vector.extract_strided_slice %670 {offsets = [0, 0], sizes = [16, 256], strides = [1, 1]} : vector<256x256xf32> to vector<16x256xf32>
    %c0_335 = arith.constant 0 : index
    %c0_336 = arith.constant 0 : index
    %672 = vector.load %arg8[%c0_335, %c0_336] : memref<31x256xf32, #tpu.memory_space<vmem>>, vector<1x256xf32>
    %c240_i32_337 = arith.constant 240 : i32
    %673 = tpu.dynamic_rotate %671 by %c240_i32_337 dim 1 : vector<16x256xf32>, i32 -> vector<16x256xf32>
    %674 = vector.broadcast %672 : vector<1x256xf32> to vector<16x256xf32>
    %675 = arith.mulf %674, %673 : vector<16x256xf32>
    %676 = arith.addf %664, %675 : vector<16x256xf32>
    %677 = vector.extract_strided_slice %670 {offsets = [16, 0], sizes = [16, 256], strides = [1, 1]} : vector<256x256xf32> to vector<16x256xf32>
    %c1_338 = arith.constant 1 : index
    %c0_339 = arith.constant 0 : index
    %678 = vector.load %arg8[%c1_338, %c0_339] : memref<31x256xf32, #tpu.memory_space<vmem>>, vector<1x256xf32>
    %c224_i32_340 = arith.constant 224 : i32
    %679 = tpu.dynamic_rotate %677 by %c224_i32_340 dim 1 : vector<16x256xf32>, i32 -> vector<16x256xf32>
    %680 = vector.broadcast %678 : vector<1x256xf32> to vector<16x256xf32>
    %681 = arith.mulf %680, %679 : vector<16x256xf32>
    %682 = arith.addf %665, %681 : vector<16x256xf32>
    %683 = vector.extract_strided_slice %670 {offsets = [32, 0], sizes = [16, 256], strides = [1, 1]} : vector<256x256xf32> to vector<16x256xf32>
    %c2_341 = arith.constant 2 : index
    %c0_342 = arith.constant 0 : index
    %684 = vector.load %arg8[%c2_341, %c0_342] : memref<31x256xf32, #tpu.memory_space<vmem>>, vector<1x256xf32>
    %c208_i32_343 = arith.constant 208 : i32
    %685 = tpu.dynamic_rotate %683 by %c208_i32_343 dim 1 : vector<16x256xf32>, i32 -> vector<16x256xf32>
    %686 = vector.broadcast %684 : vector<1x256xf32> to vector<16x256xf32>
    %687 = arith.mulf %686, %685 : vector<16x256xf32>
    %688 = arith.addf %666, %687 : vector<16x256xf32>
    %689 = vector.extract_strided_slice %670 {offsets = [48, 0], sizes = [16, 256], strides = [1, 1]} : vector<256x256xf32> to vector<16x256xf32>
    %c3_344 = arith.constant 3 : index
    %c0_345 = arith.constant 0 : index
    %690 = vector.load %arg8[%c3_344, %c0_345] : memref<31x256xf32, #tpu.memory_space<vmem>>, vector<1x256xf32>
    %c192_i32_346 = arith.constant 192 : i32
    %691 = tpu.dynamic_rotate %689 by %c192_i32_346 dim 1 : vector<16x256xf32>, i32 -> vector<16x256xf32>
    %692 = vector.broadcast %690 : vector<1x256xf32> to vector<16x256xf32>
    %693 = arith.mulf %692, %691 : vector<16x256xf32>
    %694 = arith.addf %667, %693 : vector<16x256xf32>
    %695 = vector.extract_strided_slice %670 {offsets = [64, 0], sizes = [16, 256], strides = [1, 1]} : vector<256x256xf32> to vector<16x256xf32>
    %c4_347 = arith.constant 4 : index
    %c0_348 = arith.constant 0 : index
    %696 = vector.load %arg8[%c4_347, %c0_348] : memref<31x256xf32, #tpu.memory_space<vmem>>, vector<1x256xf32>
    %c176_i32_349 = arith.constant 176 : i32
    %697 = tpu.dynamic_rotate %695 by %c176_i32_349 dim 1 : vector<16x256xf32>, i32 -> vector<16x256xf32>
    %698 = vector.broadcast %696 : vector<1x256xf32> to vector<16x256xf32>
    %699 = arith.mulf %698, %697 : vector<16x256xf32>
    %700 = arith.addf %676, %699 : vector<16x256xf32>
    %701 = vector.extract_strided_slice %670 {offsets = [80, 0], sizes = [16, 256], strides = [1, 1]} : vector<256x256xf32> to vector<16x256xf32>
    %c5_350 = arith.constant 5 : index
    %c0_351 = arith.constant 0 : index
    %702 = vector.load %arg8[%c5_350, %c0_351] : memref<31x256xf32, #tpu.memory_space<vmem>>, vector<1x256xf32>
    %c160_i32_352 = arith.constant 160 : i32
    %703 = tpu.dynamic_rotate %701 by %c160_i32_352 dim 1 : vector<16x256xf32>, i32 -> vector<16x256xf32>
    %704 = vector.broadcast %702 : vector<1x256xf32> to vector<16x256xf32>
    %705 = arith.mulf %704, %703 : vector<16x256xf32>
    %706 = arith.addf %682, %705 : vector<16x256xf32>
    %707 = vector.extract_strided_slice %670 {offsets = [96, 0], sizes = [16, 256], strides = [1, 1]} : vector<256x256xf32> to vector<16x256xf32>
    %c6_353 = arith.constant 6 : index
    %c0_354 = arith.constant 0 : index
    %708 = vector.load %arg8[%c6_353, %c0_354] : memref<31x256xf32, #tpu.memory_space<vmem>>, vector<1x256xf32>
    %c144_i32_355 = arith.constant 144 : i32
    %709 = tpu.dynamic_rotate %707 by %c144_i32_355 dim 1 : vector<16x256xf32>, i32 -> vector<16x256xf32>
    %710 = vector.broadcast %708 : vector<1x256xf32> to vector<16x256xf32>
    %711 = arith.mulf %710, %709 : vector<16x256xf32>
    %712 = arith.addf %688, %711 : vector<16x256xf32>
    %713 = vector.extract_strided_slice %670 {offsets = [112, 0], sizes = [16, 256], strides = [1, 1]} : vector<256x256xf32> to vector<16x256xf32>
    %c7_356 = arith.constant 7 : index
    %c0_357 = arith.constant 0 : index
    %714 = vector.load %arg8[%c7_356, %c0_357] : memref<31x256xf32, #tpu.memory_space<vmem>>, vector<1x256xf32>
    %c128_i32_358 = arith.constant 128 : i32
    %715 = tpu.dynamic_rotate %713 by %c128_i32_358 dim 1 : vector<16x256xf32>, i32 -> vector<16x256xf32>
    %716 = vector.broadcast %714 : vector<1x256xf32> to vector<16x256xf32>
    %717 = arith.mulf %716, %715 : vector<16x256xf32>
    %718 = arith.addf %694, %717 : vector<16x256xf32>
    %719 = vector.extract_strided_slice %670 {offsets = [128, 0], sizes = [16, 256], strides = [1, 1]} : vector<256x256xf32> to vector<16x256xf32>
    %c8_359 = arith.constant 8 : index
    %c0_360 = arith.constant 0 : index
    %720 = vector.load %arg8[%c8_359, %c0_360] : memref<31x256xf32, #tpu.memory_space<vmem>>, vector<1x256xf32>
    %c112_i32_361 = arith.constant 112 : i32
    %721 = tpu.dynamic_rotate %719 by %c112_i32_361 dim 1 : vector<16x256xf32>, i32 -> vector<16x256xf32>
    %722 = vector.broadcast %720 : vector<1x256xf32> to vector<16x256xf32>
    %723 = arith.mulf %722, %721 : vector<16x256xf32>
    %724 = arith.addf %700, %723 : vector<16x256xf32>
    %725 = vector.extract_strided_slice %670 {offsets = [144, 0], sizes = [16, 256], strides = [1, 1]} : vector<256x256xf32> to vector<16x256xf32>
    %c9_362 = arith.constant 9 : index
    %c0_363 = arith.constant 0 : index
    %726 = vector.load %arg8[%c9_362, %c0_363] : memref<31x256xf32, #tpu.memory_space<vmem>>, vector<1x256xf32>
    %c96_i32_364 = arith.constant 96 : i32
    %727 = tpu.dynamic_rotate %725 by %c96_i32_364 dim 1 : vector<16x256xf32>, i32 -> vector<16x256xf32>
    %728 = vector.broadcast %726 : vector<1x256xf32> to vector<16x256xf32>
    %729 = arith.mulf %728, %727 : vector<16x256xf32>
    %730 = arith.addf %706, %729 : vector<16x256xf32>
    %731 = vector.extract_strided_slice %670 {offsets = [160, 0], sizes = [16, 256], strides = [1, 1]} : vector<256x256xf32> to vector<16x256xf32>
    %c10_365 = arith.constant 10 : index
    %c0_366 = arith.constant 0 : index
    %732 = vector.load %arg8[%c10_365, %c0_366] : memref<31x256xf32, #tpu.memory_space<vmem>>, vector<1x256xf32>
    %c80_i32_367 = arith.constant 80 : i32
    %733 = tpu.dynamic_rotate %731 by %c80_i32_367 dim 1 : vector<16x256xf32>, i32 -> vector<16x256xf32>
    %734 = vector.broadcast %732 : vector<1x256xf32> to vector<16x256xf32>
    %735 = arith.mulf %734, %733 : vector<16x256xf32>
    %736 = arith.addf %712, %735 : vector<16x256xf32>
    %737 = vector.extract_strided_slice %670 {offsets = [176, 0], sizes = [16, 256], strides = [1, 1]} : vector<256x256xf32> to vector<16x256xf32>
    %c11_368 = arith.constant 11 : index
    %c0_369 = arith.constant 0 : index
    %738 = vector.load %arg8[%c11_368, %c0_369] : memref<31x256xf32, #tpu.memory_space<vmem>>, vector<1x256xf32>
    %c64_i32_370 = arith.constant 64 : i32
    %739 = tpu.dynamic_rotate %737 by %c64_i32_370 dim 1 : vector<16x256xf32>, i32 -> vector<16x256xf32>
    %740 = vector.broadcast %738 : vector<1x256xf32> to vector<16x256xf32>
    %741 = arith.mulf %740, %739 : vector<16x256xf32>
    %742 = arith.addf %718, %741 : vector<16x256xf32>
    %743 = vector.extract_strided_slice %670 {offsets = [192, 0], sizes = [16, 256], strides = [1, 1]} : vector<256x256xf32> to vector<16x256xf32>
    %c12_371 = arith.constant 12 : index
    %c0_372 = arith.constant 0 : index
    %744 = vector.load %arg8[%c12_371, %c0_372] : memref<31x256xf32, #tpu.memory_space<vmem>>, vector<1x256xf32>
    %c48_i32_373 = arith.constant 48 : i32
    %745 = tpu.dynamic_rotate %743 by %c48_i32_373 dim 1 : vector<16x256xf32>, i32 -> vector<16x256xf32>
    %746 = vector.broadcast %744 : vector<1x256xf32> to vector<16x256xf32>
    %747 = arith.mulf %746, %745 : vector<16x256xf32>
    %748 = arith.addf %724, %747 : vector<16x256xf32>
    %749 = vector.extract_strided_slice %670 {offsets = [208, 0], sizes = [16, 256], strides = [1, 1]} : vector<256x256xf32> to vector<16x256xf32>
    %c13_374 = arith.constant 13 : index
    %c0_375 = arith.constant 0 : index
    %750 = vector.load %arg8[%c13_374, %c0_375] : memref<31x256xf32, #tpu.memory_space<vmem>>, vector<1x256xf32>
    %c32_i32_376 = arith.constant 32 : i32
    %751 = tpu.dynamic_rotate %749 by %c32_i32_376 dim 1 : vector<16x256xf32>, i32 -> vector<16x256xf32>
    %752 = vector.broadcast %750 : vector<1x256xf32> to vector<16x256xf32>
    %753 = arith.mulf %752, %751 : vector<16x256xf32>
    %754 = arith.addf %730, %753 : vector<16x256xf32>
    %755 = vector.extract_strided_slice %670 {offsets = [224, 0], sizes = [16, 256], strides = [1, 1]} : vector<256x256xf32> to vector<16x256xf32>
    %c14_377 = arith.constant 14 : index
    %c0_378 = arith.constant 0 : index
    %756 = vector.load %arg8[%c14_377, %c0_378] : memref<31x256xf32, #tpu.memory_space<vmem>>, vector<1x256xf32>
    %c16_i32_379 = arith.constant 16 : i32
    %757 = tpu.dynamic_rotate %755 by %c16_i32_379 dim 1 : vector<16x256xf32>, i32 -> vector<16x256xf32>
    %758 = vector.broadcast %756 : vector<1x256xf32> to vector<16x256xf32>
    %759 = arith.mulf %758, %757 : vector<16x256xf32>
    %760 = arith.addf %736, %759 : vector<16x256xf32>
    %761 = vector.extract_strided_slice %670 {offsets = [240, 0], sizes = [16, 256], strides = [1, 1]} : vector<256x256xf32> to vector<16x256xf32>
    %762 = arith.addf %742, %761 : vector<16x256xf32>
    %c256_380 = arith.constant 256 : index
    %c0_381 = arith.constant 0 : index
    %763 = vector.load %arg6[%c256_380, %c0_381] : memref<512x512xbf16, #tpu.memory_space<vmem>>, vector<256x512xbf16>
    %c512_382 = arith.constant 512 : index
    %c0_383 = arith.constant 0 : index
    %764 = vector.load %arg10[%c512_382, %c0_383] : memref<1024x256xbf16, #tpu.memory_space<vmem>>, vector<512x256xbf16>
    %cst_384 = arith.constant dense<0.000000e+00> : vector<256x256xf32>
    %765 = tpu.matmul %763, %764, %cst_384 {dimension_numbers = #tpu.dot_dimension_numbers<[1], [0], [0], [1], [0, 0, 1, 1], [], []>} : vector<256x512xbf16>, vector<512x256xbf16>, vector<256x256xf32> -> vector<256x256xf32>
    %766 = vector.extract_strided_slice %765 {offsets = [0, 0], sizes = [16, 256], strides = [1, 1]} : vector<256x256xf32> to vector<16x256xf32>
    %c16_385 = arith.constant 16 : index
    %c0_386 = arith.constant 0 : index
    %767 = vector.load %arg8[%c16_385, %c0_386] : memref<31x256xf32, #tpu.memory_space<vmem>>, vector<1x256xf32>
    %c240_i32_387 = arith.constant 240 : i32
    %768 = tpu.dynamic_rotate %766 by %c240_i32_387 dim 1 : vector<16x256xf32>, i32 -> vector<16x256xf32>
    %769 = vector.broadcast %767 : vector<1x256xf32> to vector<16x256xf32>
    %770 = arith.mulf %769, %768 : vector<16x256xf32>
    %771 = arith.addf %748, %770 : vector<16x256xf32>
    %772 = vector.extract_strided_slice %765 {offsets = [16, 0], sizes = [16, 256], strides = [1, 1]} : vector<256x256xf32> to vector<16x256xf32>
    %c17_388 = arith.constant 17 : index
    %c0_389 = arith.constant 0 : index
    %773 = vector.load %arg8[%c17_388, %c0_389] : memref<31x256xf32, #tpu.memory_space<vmem>>, vector<1x256xf32>
    %c224_i32_390 = arith.constant 224 : i32
    %774 = tpu.dynamic_rotate %772 by %c224_i32_390 dim 1 : vector<16x256xf32>, i32 -> vector<16x256xf32>
    %775 = vector.broadcast %773 : vector<1x256xf32> to vector<16x256xf32>
    %776 = arith.mulf %775, %774 : vector<16x256xf32>
    %777 = arith.addf %754, %776 : vector<16x256xf32>
    %778 = vector.extract_strided_slice %765 {offsets = [32, 0], sizes = [16, 256], strides = [1, 1]} : vector<256x256xf32> to vector<16x256xf32>
    %c18_391 = arith.constant 18 : index
    %c0_392 = arith.constant 0 : index
    %779 = vector.load %arg8[%c18_391, %c0_392] : memref<31x256xf32, #tpu.memory_space<vmem>>, vector<1x256xf32>
    %c208_i32_393 = arith.constant 208 : i32
    %780 = tpu.dynamic_rotate %778 by %c208_i32_393 dim 1 : vector<16x256xf32>, i32 -> vector<16x256xf32>
    %781 = vector.broadcast %779 : vector<1x256xf32> to vector<16x256xf32>
    %782 = arith.mulf %781, %780 : vector<16x256xf32>
    %783 = arith.addf %760, %782 : vector<16x256xf32>
    %784 = vector.extract_strided_slice %765 {offsets = [48, 0], sizes = [16, 256], strides = [1, 1]} : vector<256x256xf32> to vector<16x256xf32>
    %c19_394 = arith.constant 19 : index
    %c0_395 = arith.constant 0 : index
    %785 = vector.load %arg8[%c19_394, %c0_395] : memref<31x256xf32, #tpu.memory_space<vmem>>, vector<1x256xf32>
    %c192_i32_396 = arith.constant 192 : i32
    %786 = tpu.dynamic_rotate %784 by %c192_i32_396 dim 1 : vector<16x256xf32>, i32 -> vector<16x256xf32>
    %787 = vector.broadcast %785 : vector<1x256xf32> to vector<16x256xf32>
    %788 = arith.mulf %787, %786 : vector<16x256xf32>
    %789 = arith.addf %762, %788 : vector<16x256xf32>
    %790 = vector.extract_strided_slice %765 {offsets = [64, 0], sizes = [16, 256], strides = [1, 1]} : vector<256x256xf32> to vector<16x256xf32>
    %c20_397 = arith.constant 20 : index
    %c0_398 = arith.constant 0 : index
    %791 = vector.load %arg8[%c20_397, %c0_398] : memref<31x256xf32, #tpu.memory_space<vmem>>, vector<1x256xf32>
    %c176_i32_399 = arith.constant 176 : i32
    %792 = tpu.dynamic_rotate %790 by %c176_i32_399 dim 1 : vector<16x256xf32>, i32 -> vector<16x256xf32>
    %793 = vector.broadcast %791 : vector<1x256xf32> to vector<16x256xf32>
    %794 = arith.mulf %793, %792 : vector<16x256xf32>
    %795 = arith.addf %771, %794 : vector<16x256xf32>
    %796 = vector.extract_strided_slice %765 {offsets = [80, 0], sizes = [16, 256], strides = [1, 1]} : vector<256x256xf32> to vector<16x256xf32>
    %c21_400 = arith.constant 21 : index
    %c0_401 = arith.constant 0 : index
    %797 = vector.load %arg8[%c21_400, %c0_401] : memref<31x256xf32, #tpu.memory_space<vmem>>, vector<1x256xf32>
    %c160_i32_402 = arith.constant 160 : i32
    %798 = tpu.dynamic_rotate %796 by %c160_i32_402 dim 1 : vector<16x256xf32>, i32 -> vector<16x256xf32>
    %799 = vector.broadcast %797 : vector<1x256xf32> to vector<16x256xf32>
    %800 = arith.mulf %799, %798 : vector<16x256xf32>
    %801 = arith.addf %777, %800 : vector<16x256xf32>
    %802 = vector.extract_strided_slice %765 {offsets = [96, 0], sizes = [16, 256], strides = [1, 1]} : vector<256x256xf32> to vector<16x256xf32>
    %c22_403 = arith.constant 22 : index
    %c0_404 = arith.constant 0 : index
    %803 = vector.load %arg8[%c22_403, %c0_404] : memref<31x256xf32, #tpu.memory_space<vmem>>, vector<1x256xf32>
    %c144_i32_405 = arith.constant 144 : i32
    %804 = tpu.dynamic_rotate %802 by %c144_i32_405 dim 1 : vector<16x256xf32>, i32 -> vector<16x256xf32>
    %805 = vector.broadcast %803 : vector<1x256xf32> to vector<16x256xf32>
    %806 = arith.mulf %805, %804 : vector<16x256xf32>
    %807 = arith.addf %783, %806 : vector<16x256xf32>
    %808 = vector.extract_strided_slice %765 {offsets = [112, 0], sizes = [16, 256], strides = [1, 1]} : vector<256x256xf32> to vector<16x256xf32>
    %c23_406 = arith.constant 23 : index
    %c0_407 = arith.constant 0 : index
    %809 = vector.load %arg8[%c23_406, %c0_407] : memref<31x256xf32, #tpu.memory_space<vmem>>, vector<1x256xf32>
    %c128_i32_408 = arith.constant 128 : i32
    %810 = tpu.dynamic_rotate %808 by %c128_i32_408 dim 1 : vector<16x256xf32>, i32 -> vector<16x256xf32>
    %811 = vector.broadcast %809 : vector<1x256xf32> to vector<16x256xf32>
    %812 = arith.mulf %811, %810 : vector<16x256xf32>
    %813 = arith.addf %789, %812 : vector<16x256xf32>
    %814 = vector.extract_strided_slice %765 {offsets = [128, 0], sizes = [16, 256], strides = [1, 1]} : vector<256x256xf32> to vector<16x256xf32>
    %c24_409 = arith.constant 24 : index
    %c0_410 = arith.constant 0 : index
    %815 = vector.load %arg8[%c24_409, %c0_410] : memref<31x256xf32, #tpu.memory_space<vmem>>, vector<1x256xf32>
    %c112_i32_411 = arith.constant 112 : i32
    %816 = tpu.dynamic_rotate %814 by %c112_i32_411 dim 1 : vector<16x256xf32>, i32 -> vector<16x256xf32>
    %817 = vector.broadcast %815 : vector<1x256xf32> to vector<16x256xf32>
    %818 = arith.mulf %817, %816 : vector<16x256xf32>
    %819 = arith.addf %795, %818 : vector<16x256xf32>
    %820 = vector.extract_strided_slice %765 {offsets = [144, 0], sizes = [16, 256], strides = [1, 1]} : vector<256x256xf32> to vector<16x256xf32>
    %c25_412 = arith.constant 25 : index
    %c0_413 = arith.constant 0 : index
    %821 = vector.load %arg8[%c25_412, %c0_413] : memref<31x256xf32, #tpu.memory_space<vmem>>, vector<1x256xf32>
    %c96_i32_414 = arith.constant 96 : i32
    %822 = tpu.dynamic_rotate %820 by %c96_i32_414 dim 1 : vector<16x256xf32>, i32 -> vector<16x256xf32>
    %823 = vector.broadcast %821 : vector<1x256xf32> to vector<16x256xf32>
    %824 = arith.mulf %823, %822 : vector<16x256xf32>
    %825 = arith.addf %801, %824 : vector<16x256xf32>
    %826 = vector.extract_strided_slice %765 {offsets = [160, 0], sizes = [16, 256], strides = [1, 1]} : vector<256x256xf32> to vector<16x256xf32>
    %c26_415 = arith.constant 26 : index
    %c0_416 = arith.constant 0 : index
    %827 = vector.load %arg8[%c26_415, %c0_416] : memref<31x256xf32, #tpu.memory_space<vmem>>, vector<1x256xf32>
    %c80_i32_417 = arith.constant 80 : i32
    %828 = tpu.dynamic_rotate %826 by %c80_i32_417 dim 1 : vector<16x256xf32>, i32 -> vector<16x256xf32>
    %829 = vector.broadcast %827 : vector<1x256xf32> to vector<16x256xf32>
    %830 = arith.mulf %829, %828 : vector<16x256xf32>
    %831 = arith.addf %807, %830 : vector<16x256xf32>
    %832 = vector.extract_strided_slice %765 {offsets = [176, 0], sizes = [16, 256], strides = [1, 1]} : vector<256x256xf32> to vector<16x256xf32>
    %c27_418 = arith.constant 27 : index
    %c0_419 = arith.constant 0 : index
    %833 = vector.load %arg8[%c27_418, %c0_419] : memref<31x256xf32, #tpu.memory_space<vmem>>, vector<1x256xf32>
    %c64_i32_420 = arith.constant 64 : i32
    %834 = tpu.dynamic_rotate %832 by %c64_i32_420 dim 1 : vector<16x256xf32>, i32 -> vector<16x256xf32>
    %835 = vector.broadcast %833 : vector<1x256xf32> to vector<16x256xf32>
    %836 = arith.mulf %835, %834 : vector<16x256xf32>
    %837 = arith.addf %813, %836 : vector<16x256xf32>
    %838 = vector.extract_strided_slice %765 {offsets = [192, 0], sizes = [16, 256], strides = [1, 1]} : vector<256x256xf32> to vector<16x256xf32>
    %c28_421 = arith.constant 28 : index
    %c0_422 = arith.constant 0 : index
    %839 = vector.load %arg8[%c28_421, %c0_422] : memref<31x256xf32, #tpu.memory_space<vmem>>, vector<1x256xf32>
    %c48_i32_423 = arith.constant 48 : i32
    %840 = tpu.dynamic_rotate %838 by %c48_i32_423 dim 1 : vector<16x256xf32>, i32 -> vector<16x256xf32>
    %841 = vector.broadcast %839 : vector<1x256xf32> to vector<16x256xf32>
    %842 = arith.mulf %841, %840 : vector<16x256xf32>
    %843 = arith.addf %819, %842 : vector<16x256xf32>
    %844 = vector.extract_strided_slice %765 {offsets = [208, 0], sizes = [16, 256], strides = [1, 1]} : vector<256x256xf32> to vector<16x256xf32>
    %c29_424 = arith.constant 29 : index
    %c0_425 = arith.constant 0 : index
    %845 = vector.load %arg8[%c29_424, %c0_425] : memref<31x256xf32, #tpu.memory_space<vmem>>, vector<1x256xf32>
    %c32_i32_426 = arith.constant 32 : i32
    %846 = tpu.dynamic_rotate %844 by %c32_i32_426 dim 1 : vector<16x256xf32>, i32 -> vector<16x256xf32>
    %847 = vector.broadcast %845 : vector<1x256xf32> to vector<16x256xf32>
    %848 = arith.mulf %847, %846 : vector<16x256xf32>
    %849 = arith.addf %825, %848 : vector<16x256xf32>
    %850 = vector.extract_strided_slice %765 {offsets = [224, 0], sizes = [16, 256], strides = [1, 1]} : vector<256x256xf32> to vector<16x256xf32>
    %c30_427 = arith.constant 30 : index
    %c0_428 = arith.constant 0 : index
    %851 = vector.load %arg8[%c30_427, %c0_428] : memref<31x256xf32, #tpu.memory_space<vmem>>, vector<1x256xf32>
    %c16_i32_429 = arith.constant 16 : i32
    %852 = tpu.dynamic_rotate %850 by %c16_i32_429 dim 1 : vector<16x256xf32>, i32 -> vector<16x256xf32>
    %853 = vector.broadcast %851 : vector<1x256xf32> to vector<16x256xf32>
    %854 = arith.mulf %853, %852 : vector<16x256xf32>
    %855 = arith.addf %831, %854 : vector<16x256xf32>
    %856 = vector.extract_strided_slice %765 {offsets = [240, 0], sizes = [16, 256], strides = [1, 1]} : vector<256x256xf32> to vector<16x256xf32>
    %857 = arith.addf %837, %856 : vector<16x256xf32>
    %858 = arith.addf %843, %849 : vector<16x256xf32>
    %859 = arith.addf %855, %857 : vector<16x256xf32>
    %860 = arith.addf %858, %859 : vector<16x256xf32>
    %861 = arith.addf %437, %860 : vector<16x256xf32>
    %cst_430 = arith.constant 0.000000e+00 : f32
    %862 = vector.broadcast %cst_430 : f32 to vector<16x256xf32>
    %863 = arith.maximumf %861, %862 : vector<16x256xf32>
    %c0_431 = arith.constant 0 : index
    %c0_432 = arith.constant 0 : index
    %864 = vector.load %arg4[%c0_431, %c0_432] : memref<16x16xf32, #tpu.memory_space<vmem>>, vector<16x16xf32>
    %cst_433 = arith.constant dense<0.000000e+00> : vector<16x256xf32>
    %865 = tpu.matmul %864, %863, %cst_433 {dimension_numbers = #tpu.dot_dimension_numbers<[1], [0], [0], [1], [0, 0, 1, 1], [], []>} : vector<16x16xf32>, vector<16x256xf32>, vector<16x256xf32> -> vector<16x256xf32>
    %c0_434 = arith.constant 0 : index
    %c0_435 = arith.constant 0 : index
    %866 = vector.load %arg5[%c0_434, %c0_435] : memref<16x1xf32, #tpu.memory_space<vmem>>, vector<16x1xf32>
    %867 = vector.broadcast %866 : vector<16x1xf32> to vector<16x256xf32>
    %868 = arith.addf %865, %867 : vector<16x256xf32>
    %c16_436 = arith.constant 16 : index
    %c0_437 = arith.constant 0 : index
    %869 = vector.load %arg9[%c16_436, %c0_437] : memref<32x256xf32, #tpu.memory_space<vmem>>, vector<16x256xf32>
    tpu.vector_store %arg9[%c16_436, %c0_437], %868 {strides = array<i32>} : memref<32x256xf32, #tpu.memory_space<vmem>>, vector<16x256xf32>,
    return
  }
  func.func @transform_0(%arg0: i32) -> (i32, i32) {
    %c0_i32 = arith.constant 0 : i32
    %c0_i32_0 = arith.constant 0 : i32
    return %arg0, %c0_i32 : i32, i32
  }
  func.func @transform_1(%arg0: i32) -> (i32, i32) {
    %c0_i32 = arith.constant 0 : i32
    %c0_i32_0 = arith.constant 0 : i32
    %c0_i32_1 = arith.constant 0 : i32
    return %c0_i32, %c0_i32_0 : i32, i32
  }
  func.func @transform_2(%arg0: i32) -> (i32, i32) {
    %c0_i32 = arith.constant 0 : i32
    %c0_i32_0 = arith.constant 0 : i32
    %c0_i32_1 = arith.constant 0 : i32
    return %c0_i32, %c0_i32_0 : i32, i32
  }
  func.func @transform_3(%arg0: i32) -> (i32, i32) {
    %c0_i32 = arith.constant 0 : i32
    %c0_i32_0 = arith.constant 0 : i32
    %c0_i32_1 = arith.constant 0 : i32
    return %c0_i32, %c0_i32_0 : i32, i32
  }
  func.func @transform_4(%arg0: i32) -> (i32, i32) {
    %c0_i32 = arith.constant 0 : i32
    %c0_i32_0 = arith.constant 0 : i32
    %c0_i32_1 = arith.constant 0 : i32
    return %c0_i32, %c0_i32_0 : i32, i32
  }
  func.func @transform_5(%arg0: i32) -> (i32, i32) {
    %c0_i32 = arith.constant 0 : i32
    %c0_i32_0 = arith.constant 0 : i32
    %c0_i32_1 = arith.constant 0 : i32
    return %c0_i32, %c0_i32_0 : i32, i32
  }
  func.func @transform_6(%arg0: i32) -> (i32, i32) {
    %c0_i32 = arith.constant 0 : i32
    %c0_i32_0 = arith.constant 0 : i32
    %c0_i32_1 = arith.constant 0 : i32
    return %c0_i32, %c0_i32_0 : i32, i32
  }
  func.func @transform_7(%arg0: i32) -> (i32, i32) {
    %c0_i32 = arith.constant 0 : i32
    %c0_i32_0 = arith.constant 0 : i32
    %c0_i32_1 = arith.constant 0 : i32
    return %c0_i32, %c0_i32_0 : i32, i32
  }
  func.func @transform_8(%arg0: i32) -> (i32, i32) {
    %c0_i32 = arith.constant 0 : i32
    %c0_i32_0 = arith.constant 0 : i32
    return %arg0, %c0_i32 : i32, i32
  }
}

</mosaic_0001>

<bundles_post_ra>
// kernel: tpu_custom_call.1
= control target key start
LH: loop header
LB: loop body
LE: loop exit
PB: predicated region body
PF: predicated region fallthrough
CT: control target
= control target key end

     0   :  { %13 = vsyncpa [#allocation4], 0  ;;  %s13392_s0 = inlined_call_operand.hbm [shape: f32[32,256], index: 0, kind: input, shape index: {}]   ;;  %s13393_s1 = inlined_call_operand.vmem [shape: f32[16,16], index: 1, kind: input, shape index: {}]   ;;  %s13394_s2 = inlined_call_operand.vmem [shape: f32[16,1], index: 2, kind: input, shape index: {}]   ;;  %s13395_s3 = inlined_call_operand.vmem [shape: f32[16,16], index: 3, kind: input, shape index: {}]   ;;  %s13396_s4 = inlined_call_operand.vmem [shape: f32[16,1], index: 4, kind: input, shape index: {}]   ;;  %s13397_s5 = inlined_call_operand.hbm [shape: bf16[512,512], index: 5, kind: input, shape index: {}]   ;;  %s13398_s6 = inlined_call_operand.hbm [shape: f32[31,256], index: 6, kind: input, shape index: {}]   ;;  %s13399_s7 = inlined_call_operand.hbm [shape: f32[31,256], index: 7, kind: input, shape index: {}]   ;;  %s13400_s8 = inlined_call_operand.hbm [shape: f32[32,256], index: 8, kind: output, shape index: {}]  }
   0x1   :  { %14 = vsyncpa [#allocation7], 0 }
   0x2   :  { %15 = vsyncpa [#allocation10], 0 }
   0x3   :  { %16 = vsyncpa [#allocation5], 0  ;;  %s9049_s27 = smov [#allocation6]   ;;  %s9050_s29 = smov [#allocation3]  }
   0x4   :  { %s42_s28 = sshll.u32 %s9049_s27, 4  ;;  %s22_s30 = sshll.u32 %s9050_s29, 4  ;;  %s43_s28 = int_to_ptr.vmem [resolvable:$true] %s42_s28  ;;  %s9140_s30 = int_to_ptr.vmem [resolvable:$true] %s22_s30 }
   0x5   :  { %s8931_s11 = scalar_lea.hbm %s13397_s5, 16384 }
   0x6   :  { %p8932_p0 = scmp.ne.s32.totalorder %s13397_s5, %s8931_s11  ;;  %p8935_p1 = scmp.lt.u32.totalorder %s8931_s11, %s13397_s5 }
   0x8   :  { %p8937_p2 = pnand %p8935_p1, %p8932_p0 }
   0xa   :  { %8940 = shalt.err (!%p8937_p2)
}
   0xb   :  { %s8941_s16 = scalar_lea.vmem %s43_s28, 16384  ;;  %p8946_p4 = scmp.lt.s32.totalorder %s43_s28, %s43_s28 }
   0xc   :  { %p8942_p3 = scmp.ne.s32.totalorder %s43_s28, %s8941_s16  ;;  %p8947_p5 = scmp.lt.s32.totalorder %s8941_s16, %s8941_s16 }
   0xe   :  { %p8948_p6 = por %p8947_p5, %p8946_p4 }
  0x10   :  { %p8949_p7 = pnand %p8948_p6, %p8942_p3 }
  0x12   :  { %8952 = shalt.err (!%p8949_p7)
}
  0x13   :  { %s13401_s17 = smov 256   ;;  %s13538_s18 = smov 16  }
  0x14   :  { %48 = dma.hbm_to_vmem [thread:$0]  %s13397_s5, 16384, %s43_s28, [#allocation7], %s13401_s17, %s13401_s17, %s13538_s18  }
  0x15   :  { %s8953_s23 = scalar_lea.hbm %s13392_s0, 1024 }
  0x16   :  { %p8954_p8 = scmp.ne.s32.totalorder %s13392_s0, %s8953_s23  ;;  %p8957_p9 = scmp.lt.u32.totalorder %s8953_s23, %s13392_s0 }
  0x18   :  { %p8959_p10 = pnand %p8957_p9, %p8954_p8 }
  0x1a   :  { %8962 = shalt.err (!%p8959_p10)
}
  0x1b   :  { %s8963_s29 = scalar_lea.vmem %s9140_s30, 1024  ;;  %p8968_p12 = scmp.lt.s32.totalorder %s9140_s30, %s9140_s30 }
  0x1c   :  { %p8964_p11 = scmp.ne.s32.totalorder %s9140_s30, %s8963_s29  ;;  %p8969_p13 = scmp.lt.s32.totalorder %s8963_s29, %s8963_s29 }
  0x1e   :  { %p8970_p0 = por %p8969_p13, %p8968_p12 }
  0x20   :  { %p8971_p1 = pnand %p8970_p0, %p8964_p11 }
  0x22   :  { %8974 = shalt.err (!%p8971_p1)
}
  0x23   :  { %28 = dma.hbm_to_vmem [thread:$0]  %s13392_s0, 1024, %s9140_s30, [#allocation4], %s13401_s17, %s13401_s17, %s13538_s18  }
  0x24   :  { %s9053_s9 = smov [#allocation8]   ;;  %s9054_s11 = smov [#allocation9]  }
  0x25   :  { %s54_s10 = sshll.u32 %s9053_s9, 4  ;;  %s66_s12 = sshll.u32 %s9054_s11, 4  ;;  %s55_s10 = int_to_ptr.vmem [resolvable:$true] %s54_s10  ;;  %s9177_s12 = int_to_ptr.vmem [resolvable:$true] %s66_s12 }
  0x26   :  { %s8975_s15 = scalar_lea.hbm %s13398_s6, 1024 }
  0x27   :  { %p8976_p2 = scmp.ne.s32.totalorder %s13398_s6, %s8975_s15  ;;  %p8979_p3 = scmp.lt.u32.totalorder %s8975_s15, %s13398_s6 }
  0x29   :  { %p8981_p4 = pnand %p8979_p3, %p8976_p2 }
  0x2b   :  { %8984 = shalt.err (!%p8981_p4)
}
  0x2c   :  { %s8985_s0 = scalar_lea.vmem %s55_s10, 1024  ;;  %p8990_p6 = scmp.lt.s32.totalorder %s55_s10, %s55_s10 }
  0x2d   :  { %p8986_p5 = scmp.ne.s32.totalorder %s55_s10, %s8985_s0  ;;  %p8991_p7 = scmp.lt.s32.totalorder %s8985_s0, %s8985_s0 }
  0x2f   :  { %p8992_p8 = por %p8991_p7, %p8990_p6 }
  0x31   :  { %p8993_p9 = pnand %p8992_p8, %p8986_p5 }
  0x33   :  { %8996 = shalt.err (!%p8993_p9)
}
  0x34   :  { %60 = dma.hbm_to_vmem [thread:$0]  %s13398_s6, 1024, %s55_s10, [#allocation7], %s13401_s17, %s13401_s17, %s13538_s18  }
  0x35   :  { %s8997_s25 = scalar_lea.hbm %s13399_s7, 1024 }
  0x36   :  { %p8998_p10 = scmp.ne.s32.totalorder %s13399_s7, %s8997_s25  ;;  %p9001_p11 = scmp.lt.u32.totalorder %s8997_s25, %s13399_s7 }
  0x38   :  { %p9003_p12 = pnand %p9001_p11, %p8998_p10 }
  0x3a   :  { %9006 = shalt.err (!%p9003_p12)
}
  0x3b   :  { %s9007_s28 = scalar_lea.vmem %s9177_s12, 1024  ;;  %p9012_p0 = scmp.lt.s32.totalorder %s9177_s12, %s9177_s12 }
  0x3c   :  { %p9008_p13 = scmp.ne.s32.totalorder %s9177_s12, %s9007_s28  ;;  %p9013_p1 = scmp.lt.s32.totalorder %s9007_s28, %s9007_s28 }
  0x3e   :  { %p9014_p2 = por %p9013_p1, %p9012_p0 }
  0x40   :  { %p9015_p3 = pnand %p9014_p2, %p9008_p13 }
  0x42   :  { %9018 = shalt.err (!%p9015_p3)
}
  0x43   :  { %72 = dma.hbm_to_vmem [thread:$0]  %s13399_s7, 1024, %s9177_s12, [#allocation10], %s13401_s17, %s13401_s17, %s13538_s18  }
  0x44   :  { %9041 = dma.done.wait [#allocation4], 1024  }
  0x45   :  { %9042 = vsyncadd [#allocation4], 4294966272 }
  0x46   :  { %9043 = dma.done.wait [#allocation7], 17408  }
  0x47   :  { %9044 = vsyncadd [#allocation7], 4294949888 }
  0x48   :  { %9045 = dma.done.wait [#allocation10], 1024  }
  0x49   :  { %9046 = vsyncadd [#allocation10], 4294966272  ;;  %v13412_v0 = vmov 0.0   ;;  %v9056_v1 = vmov 0   ;;  %v91_v2 = vld [vmem:[#allocation3 + $0x8] sm:$0xff]  ;;  %v93_v3 = vld [vmem:[#allocation3 + $0x18] sm:$0xff] }
  0x4a   :  { %179 = vmatprep.mubr.f32.mxu1 %v13412_v0  ;;  %8505 = vset.pattern.permute.xlu0 %v9056_v1  ;;  %v90_v4 = vld [vmem:[#allocation3] sm:$0xff]  ;;  %v8147_v5 = vpack.c.bf16 %v93_v3, %v91_v2  ;;  %v92_v6 = vld [vmem:[#allocation3 + $0x10] sm:$0xff]  ;;  %v97_v10 = vld [vmem:[%s13394_s2 + $0x8] sm:$0xff]  ;;  %vm13544_vm0 = vcmask 130048   ;;  %s9057_s19 = smov 14   ;;  %s9058_s20 = smov 15  }
  0x4b   :  { %4009 = vmatprep.mubr.f32.mxu0 %v13412_v0  ;;  %8506 = vset.pattern.permute.xlu1 %v9056_v1  ;;  %v8149_v7 = vpack.c.bf16 %v92_v6, %v90_v4  ;;  %v94_v8 = vld [vmem:[%s13393_s1] sm:$0xff]  ;;  %v95_v11 = vld [vmem:[%s13393_s1 + $0x8] sm:$0xff]  ;;  %s9059_s21 = smov 13   ;;  %s9060_s0 = smov 12  }
  0x4c   :  { %v96_v9 = vld [vmem:[%s13394_s2] sm:$0xff]  ;;  %8148 = vmatprep.subr.bf16.mxu1 %v8147_v5  ;;  %s9061_s30 = smov 11   ;;  %s9062_s22 = smov 10  }
  0x4d   :  { %100 = vperm.xlu0 %8505, %v96_v9   ;;  %8150 = vmatpush1.bf16.msra.mxu1 %v8149_v7  ;;  %s9063_s23 = smov 9   ;;  %s9064_s24 = smov 8  }
  0x4e   :  { %s9065_s25 = smov 7   ;;  %s9066_s26 = smov 6  }
  0x4f   :  { %s13410_s27 = smov 5   ;;  %s13408_s29 = smov 4  }
  0x50   :  { %7883 = vmatmul.mubr.msk.f32.vlgmr.msra.gmra.mrb[0].mxu1 %vm13544_vm0, %v94_v8  ;;  %s13406_s5 = smov 3   ;;  %s13404_s28 = smov 2  }
  0x51   :  { %105 = vperm.xlu0 %8505, %v97_v10   ;;  %185 = vmatprep.mubr.f32.mxu1 %v13412_v0  ;;  %s13402_s6 = smov 1   ;;  %s9072_s9 = smov 127   ;;  %v8522_v0 = vld [vmem:[#allocation6 + $0xa4] ss:$16 sps:$4 sm:$0xff]  }
  0x52   :  { %s9073_s7 = smov 126   ;;  %s9074_s10 = smov 125  }
  0x53   :  { %s9075_s11 = smov 124   ;;  %s9076_s12 = smov 123  }
  0x54   :  { %7884 = vmatmul.mubr.msk.f32.gmra.mrb[2].mxu1 %vm13544_vm0, %v95_v11  ;;  %s9077_s13 = smov 122   ;;  %s9078_s14 = smov 121  }
  0x55   :  { %s9079_s15 = smov 120   ;;  %s9080_s16 = smov 119  }
  0x56   :  { %s13463_s17 = smov 118  }
  0xcc   :  { %v101_v12 = vpop.permute.xlu0 %100 }
  0xd0   :  { %v106_v17 = vpop.permute.xlu0 %105 }
 0x123   :  { %v181_v13 = vpop.f32.mrb[0].mxu1 }
 0x124   :  { %v9231_v14 = vadd.f32 %v181_v13, %v101_v12  ;;  %v183_v15 = vpop.f32.mrb[1].mxu1 }
 0x125   :  { %v9243_v29 = vadd.f32 %v183_v15, %v101_v12 }
 0x126   :  { %v9234_v16 = vmul.f32 0.70710677, %v9231_v14  ;;  %v284_v10 = vmul.f32 0.5, %v9231_v14 }
 0x127   :  { %v187_v18 = vpop.f32.mrb[2].mxu1  ;;  %v9246_v32 = vmul.f32 0.70710677, %v9243_v29 }
 0x128   :  { %v196_v19 = vand.u32 2147483647, %v9234_v16  ;;  %v9237_v20 = vadd.f32 %v187_v18, %v106_v17  ;;  %v189_v21 = vpop.f32.mrb[3].mxu1  ;;  %vm272_vm1 = vcmp.ge.f32.partialorder %v9234_v16, 0.0 }
 0x129   :  { %v9249_v38 = vand.u32 2147483647, %v9246_v32  ;;  %v9251_v40 = vadd.f32 %v189_v21, %v106_v17  ;;  %vm273_vm3 = vcmp.ge.f32.partialorder %v9246_v32, 0.0 }
 0x12a   :  { %v200_v22 = vmul.f32 0.3275911, %v196_v19  ;;  %v9240_v23 = vmul.f32 0.70710677, %v9237_v20  ;;  %v248_v28 = vsub.f32 0.0, %v196_v19  ;;  %v286_v18 = vmul.f32 0.5, %v9237_v20 }
 0x12b   :  { %v201_v45 = vmul.f32 0.3275911, %v9249_v38  ;;  %v9255_v47 = vmul.f32 0.70710677, %v9251_v40 }
 0x12c   :  { %v204_v24 = vadd.f32 1.0, %v200_v22  ;;  %v198_v25 = vand.u32 2147483647, %v9240_v23  ;;  %v252_v31 = vmul.f32 %v248_v28, %v196_v19  ;;  %vm274_vm2 = vcmp.ge.f32.partialorder %v9240_v23, 0.0 }
 0x12d   :  { %v205_v52 = vadd.f32 1.0, %v201_v45  ;;  %v9258_v53 = vand.u32 2147483647, %v9255_v47  ;;  %vm275_vm4 = vcmp.ge.f32.partialorder %v9255_v47, 0.0 }
 0x12e   :  { %8891 = vrcp.f32 %v204_v24  ;;  %v202_v26 = vmul.f32 0.3275911, %v198_v25  ;;  %v250_v33 = vsub.f32 0.0, %v198_v25  ;;  %v256_v37 = vmul.f32 1.442695, %v252_v31 }
 0x12f   :  { %v203_v58 = vmul.f32 0.3275911, %v9258_v53 }
 0x130   :  { %v206_v27 = vadd.f32 1.0, %v202_v26  ;;  %v254_v39 = vmul.f32 %v250_v33, %v198_v25  ;;  %v249_v25 = vsub.f32 0.0, %v9249_v38 }
 0x131   :  { %v207_v1 = vadd.f32 1.0, %v203_v58 }
 0x132   :  { %8893 = vrcp.f32 %v206_v27  ;;  %v260_v46 = vmul.f32 1.442695, %v254_v39  ;;  %v253_v28 = vmul.f32 %v249_v25, %v9249_v38  ;;  %v305_v25 = vlaneseq }
 0x133   :  { %8895 = vpow2.f32 %v256_v37 }
 0x134   :  { %8897 = vpow2.f32 %v260_v46  ;;  %v258_v33 = vmul.f32 1.442695, %v253_v28  ;;  %v314_v28 = vshrl.u32 %v305_v25, 7 }
 0x135   :  { %8899 = vrcp.f32 %v205_v52 }
 0x136   :  { %8901 = vrcp.f32 %v207_v1 }
 0x137   :  { %8903 = vpow2.f32 %v258_v33 }
 0x138   :  { %v8892_v30 = vpop.eup %8891 }
 0x139   :  { %v212_v34 = vmul.f32 1.0614054, %v8892_v30 }
 0x13b   :  { %v216_v35 = vadd.f32 -1.4531521, %v212_v34  ;;  %v251_v34 = vsub.f32 0.0, %v9258_v53 }
 0x13c   :  { %v8894_v36 = vpop.eup %8893 }
 0x13d   :  { %v220_v41 = vmul.f32 %v8892_v30, %v216_v35  ;;  %v214_v42 = vmul.f32 1.0614054, %v8894_v36  ;;  %v8896_v61 = vpop.eup %8895  ;;  %v255_v37 = vmul.f32 %v251_v34, %v9258_v53  ;;  %v9513_v34 = vsub.s32 0, %v314_v28 }
 0x13e   :  { %v8898_v4 = vpop.eup %8897 }
 0x13f   :  { %v224_v43 = vadd.f32 1.4214138, %v220_v41  ;;  %v218_v44 = vadd.f32 -1.4531521, %v214_v42  ;;  %v8900_v9 = vpop.eup %8899  ;;  %v262_v41 = vmul.f32 1.442695, %v255_v37 }
 0x140   :  { %v213_v15 = vmul.f32 1.0614054, %v8900_v9  ;;  %v8902_v21 = vpop.eup %8901  ;;  %13568 = vst [vmem:[#allocation16_spill] sm:$0xff] %v9513_v34 }
 0x141   :  { %v228_v48 = vmul.f32 %v8892_v30, %v224_v43  ;;  %v222_v49 = vmul.f32 %v8894_v36, %v218_v44  ;;  %v215_v22 = vmul.f32 1.0614054, %v8902_v21  ;;  %8905 = vpow2.f32 %v262_v41  ;;  %v8904_v44 = vpop.eup %8903  ;;  %v332_v41 = vld [vmem:[#allocation8 + $0x1] ss:$8 sm:$0x3] }
 0x142   :  { %v217_v16 = vadd.f32 -1.4531521, %v213_v15 }
 0x143   :  { %v232_v50 = vadd.f32 -0.28449672, %v228_v48  ;;  %v226_v51 = vadd.f32 1.4214138, %v222_v49  ;;  %v219_v24 = vadd.f32 -1.4531521, %v215_v22 }
 0x144   :  { %v221_v20 = vmul.f32 %v8900_v9, %v217_v16 }
 0x145   :  { %v236_v54 = vmul.f32 %v8892_v30, %v232_v50  ;;  %v230_v55 = vmul.f32 %v8894_v36, %v226_v51  ;;  %v223_v27 = vmul.f32 %v8902_v21, %v219_v24 }
 0x146   :  { %v225_v23 = vadd.f32 1.4214138, %v221_v20 }
 0x147   :  { %v240_v56 = vadd.f32 0.2548296, %v236_v54  ;;  %v234_v57 = vadd.f32 -0.28449672, %v230_v55  ;;  %v227_v31 = vadd.f32 1.4214138, %v223_v27 }
 0x148   :  { %v229_v26 = vmul.f32 %v8900_v9, %v225_v23 }
 0x149   :  { %v244_v59 = vmul.f32 %v8892_v30, %v240_v56  ;;  %v238_v60 = vmul.f32 %v8894_v36, %v234_v57  ;;  %v285_v57 = vmul.f32 0.5, %v9243_v29  ;;  %v287_v29 = vmul.f32 0.5, %v9251_v40 }
 0x14a   :  { %v233_v30 = vadd.f32 -0.28449672, %v229_v26 }
 0x14b   :  { %v264_v62 = vmul.f32 %v8896_v61, %v244_v59  ;;  %v242_v63 = vadd.f32 0.2548296, %v238_v60  ;;  %v8906_v50 = vpop.eup %8905 }
 0x14c   :  { %v237_v35 = vmul.f32 %v8900_v9, %v233_v30  ;;  %v9509_v30 = vand.u32 127, %v305_v25 }
 0x14d   :  { %v268_v2 = vsub.f32 1.0, %v264_v62  ;;  %v246_v3 = vmul.f32 %v8894_v36, %v242_v63  ;;  %v231_v36 = vmul.f32 %v8902_v21, %v227_v31  ;;  %v8509_v63 = vld [vmem:[#allocation6 + $0x4] ss:$16 sps:$4 sm:$0xff]  }
 0x14e   :  { %v241_v38 = vadd.f32 0.2548296, %v237_v35  ;;  %1801 = vmatprep.mubr.bf16.mxu1 %v8509_v63  ;;  %v296_v35 = vld [vmem:[#allocation8] ss:$8 sm:$0x3]  ;;  %vm307_vm5 = vcmp.lt.s32.totalorder %v9509_v30, 15 }
 0x14f   :  { %v276_v5 = vsub.f32 0.0, %v268_v2  ;;  %v266_v6 = vmul.f32 %v8898_v4, %v246_v3  ;;  %v235_v39 = vadd.f32 -0.28449672, %v231_v36  ;;  %v9515_v36 = vsub.s32 1, %v314_v28 }
 0x150   :  { %v245_v42 = vmul.f32 %v8900_v9, %v241_v38  ;;  %vm341_vm6 = vcmp.lt.s32.totalorder %v9509_v30, 14  ;;  %vm375_vm7 = vcmp.lt.s32.totalorder %v9509_v30, 13  ;;  %vm409_vm8 = vcmp.lt.s32.totalorder %v9509_v30, 12 }
 0x151   :  { %v280_v7 = vsel %vm272_vm1, %v268_v2, %v276_v5  ;;  %v270_v8 = vsub.f32 1.0, %v266_v6  ;;  %v239_v43 = vmul.f32 %v8902_v21, %v235_v39  ;;  %13569 = vst [vmem:[#allocation17_spill] sm:$0xff] %v9515_v36  ;;  %v316_v39 = vrot.slane %v296_v35, %v9513_v34 }
 0x152   :  { %v288_v11 = vadd.f32 1.0, %v280_v7  ;;  %v265_v45 = vmul.f32 %v8904_v44, %v245_v42  ;;  %v320_v42 = vrot.slane %v296_v35, %v9515_v36  ;;  %vm443_vm9 = vcmp.lt.s32.totalorder %v9509_v30, 11 }
 0x153   :  { %v278_v12 = vsub.f32 0.0, %v270_v8  ;;  %v243_v46 = vadd.f32 0.2548296, %v239_v43  ;;  %vm477_vm10 = vcmp.lt.s32.totalorder %v9509_v30, 10  ;;  %vm511_vm11 = vcmp.lt.s32.totalorder %v9509_v30, 9 }
 0x154   :  { %v9263_v13 = vmul.f32 %v288_v11, %v284_v10  ;;  %v269_v48 = vsub.f32 1.0, %v265_v45  ;;  %v350_v45 = vrot.slane %v332_v41, %v9513_v34  ;;  %vm545_vm12 = vcmp.lt.s32.totalorder %v9509_v30, 8 }
 0x155   :  { %v282_v17 = vsel %vm274_vm2, %v270_v8, %v278_v12  ;;  %v247_v49 = vmul.f32 %v8902_v21, %v243_v46  ;;  %vm13507_vm13 = vcmp.lt.s32.totalorder %v9509_v30, 7  ;;  %vm13506_vm14 = vcmp.lt.s32.totalorder %v9509_v30, 6 }
 0x156   :  { %v290_v19 = vadd.f32 1.0, %v282_v17  ;;  %333 = vrot.lane.b32.xlu0 %v9263_v13, %s9057_s19  ;;  %297 = vrot.lane.b32.xlu1 %v9263_v13, %s9058_s20  ;;  %v277_v51 = vsub.f32 0.0, %v269_v48  ;;  %vm13505_vm15 = vcmp.lt.s32.totalorder %v9509_v30, 5  ;;  %vm13504_vm1 = vcmp.lt.s32.totalorder %v9509_v30, 4 }
 0x157   :  { %v267_v52 = vmul.f32 %v8906_v50, %v247_v49  ;;  %v354_v50 = vrot.slane %v332_v41, %v9515_v36  ;;  %vm13430_vm2 = vcmp.lt.s32.totalorder %v9509_v30, 3 }
 0x158   :  { %v9271_v14 = vmul.f32 %v290_v19, %v286_v18  ;;  %v281_v53 = vsel %vm273_vm3, %v269_v48, %v277_v51  ;;  %v366_v51 = vld [vmem:[#allocation8 + $0x2] ss:$8 sm:$0x3]  ;;  %vm13426_vm3 = vcmp.lt.s32.totalorder %v9509_v30, 2 }
 0x159   :  { %v271_v54 = vsub.f32 1.0, %v267_v52  ;;  %v289_v55 = vadd.f32 1.0, %v281_v53  ;;  %v388_v28 = vrot.slane %v366_v51, %v9515_v36 }
 0x15a   :  { %367 = vrot.lane.b32.xlu0 %v9263_v13, %s9059_s21  ;;  %299 = vrot.lane.b32.xlu1 %v9271_v14, %s9058_s20 }
 0x15b   :  { %v279_v56 = vsub.f32 0.0, %v271_v54  ;;  %v9331_v32 = vmul.f32 %v289_v55, %v285_v57 }
 0x15d   :  { %v283_v58 = vsel %vm275_vm4, %v271_v54, %v279_v56  ;;  %vm13421_vm4 = vcmp.lt.s32.totalorder %v9509_v30, 1 }
 0x15e   :  { %401 = vrot.lane.b32.xlu0 %v9263_v13, %s9060_s0  ;;  %335 = vrot.lane.b32.xlu1 %v9271_v14, %s9057_s19  ;;  %v291_v59 = vadd.f32 1.0, %v283_v58 }
 0x160   :  { %v9343_v60 = vmul.f32 %v291_v59, %v287_v29  ;;  %v384_v59 = vrot.slane %v366_v51, %v9513_v34 }
 0x162   :  { %435 = vrot.lane.b32.xlu0 %v9263_v13, %s9061_s30  ;;  %369 = vrot.lane.b32.xlu1 %v9271_v14, %s9059_s21 }
 0x166   :  { %469 = vrot.lane.b32.xlu0 %v9263_v13, %s9062_s22  ;;  %403 = vrot.lane.b32.xlu1 %v9271_v14, %s9060_s0 }
 0x16a   :  { %503 = vrot.lane.b32.xlu0 %v9263_v13, %s9063_s23  ;;  %437 = vrot.lane.b32.xlu1 %v9271_v14, %s9061_s30 }
 0x16e   :  { %537 = vrot.lane.b32.xlu0 %v9263_v13, %s9064_s24  ;;  %471 = vrot.lane.b32.xlu1 %v9271_v14, %s9062_s22 }
 0x172   :  { %571 = vrot.lane.b32.xlu0 %v9263_v13, %s9065_s25  ;;  %505 = vrot.lane.b32.xlu1 %v9271_v14, %s9063_s23 }
 0x176   :  { %605 = vrot.lane.b32.xlu0 %v9263_v13, %s9066_s26  ;;  %539 = vrot.lane.b32.xlu1 %v9271_v14, %s9064_s24 }
 0x17a   :  { %639 = vrot.lane.b32.xlu0 %v9263_v13, %s13410_s27  ;;  %573 = vrot.lane.b32.xlu1 %v9271_v14, %s9065_s25 }
 0x17e   :  { %673 = vrot.lane.b32.xlu0 %v9263_v13, %s13408_s29  ;;  %607 = vrot.lane.b32.xlu1 %v9271_v14, %s9066_s26 }
 0x182   :  { %707 = vrot.lane.b32.xlu0 %v9263_v13, %s13406_s5  ;;  %641 = vrot.lane.b32.xlu1 %v9271_v14, %s13410_s27 }
 0x186   :  { %741 = vrot.lane.b32.xlu0 %v9263_v13, %s13404_s28  ;;  %675 = vrot.lane.b32.xlu1 %v9271_v14, %s13408_s29 }
 0x18a   :  { %775 = vrot.lane.b32.xlu0 %v9263_v13, %s13402_s6  ;;  %709 = vrot.lane.b32.xlu1 %v9271_v14, %s13406_s5 }
 0x18e   :  { %301 = vrot.lane.b32.xlu0 %v9331_v32, %s9058_s20  ;;  %743 = vrot.lane.b32.xlu1 %v9271_v14, %s13404_s28 }
 0x192   :  { %337 = vrot.lane.b32.xlu0 %v9331_v32, %s9057_s19  ;;  %777 = vrot.lane.b32.xlu1 %v9271_v14, %s13402_s6 }
 0x196   :  { %371 = vrot.lane.b32.xlu0 %v9331_v32, %s9059_s21  ;;  %303 = vrot.lane.b32.xlu1 %v9343_v60, %s9058_s20 }
 0x19a   :  { %405 = vrot.lane.b32.xlu0 %v9331_v32, %s9060_s0  ;;  %339 = vrot.lane.b32.xlu1 %v9343_v60, %s9057_s19 }
 0x19e   :  { %439 = vrot.lane.b32.xlu0 %v9331_v32, %s9061_s30  ;;  %373 = vrot.lane.b32.xlu1 %v9343_v60, %s9059_s21 }
 0x1a2   :  { %473 = vrot.lane.b32.xlu0 %v9331_v32, %s9062_s22  ;;  %407 = vrot.lane.b32.xlu1 %v9343_v60, %s9060_s0 }
 0x1a6   :  { %507 = vrot.lane.b32.xlu0 %v9331_v32, %s9063_s23  ;;  %441 = vrot.lane.b32.xlu1 %v9343_v60, %s9061_s30 }
 0x1aa   :  { %541 = vrot.lane.b32.xlu0 %v9331_v32, %s9064_s24  ;;  %475 = vrot.lane.b32.xlu1 %v9343_v60, %s9062_s22 }
 0x1ae   :  { %575 = vrot.lane.b32.xlu0 %v9331_v32, %s9065_s25  ;;  %509 = vrot.lane.b32.xlu1 %v9343_v60, %s9063_s23 }
 0x1b2   :  { %609 = vrot.lane.b32.xlu0 %v9331_v32, %s9066_s26  ;;  %543 = vrot.lane.b32.xlu1 %v9343_v60, %s9064_s24 }
 0x1b6   :  { %643 = vrot.lane.b32.xlu0 %v9331_v32, %s13410_s27  ;;  %577 = vrot.lane.b32.xlu1 %v9343_v60, %s9065_s25 }
 0x1ba   :  { %677 = vrot.lane.b32.xlu0 %v9331_v32, %s13408_s29  ;;  %611 = vrot.lane.b32.xlu1 %v9343_v60, %s9066_s26 }
 0x1be   :  { %711 = vrot.lane.b32.xlu0 %v9331_v32, %s13406_s5  ;;  %645 = vrot.lane.b32.xlu1 %v9343_v60, %s13410_s27  ;;  %s13453_s27 = smov 113  }
 0x1c2   :  { %745 = vrot.lane.b32.xlu0 %v9331_v32, %s13404_s28  ;;  %679 = vrot.lane.b32.xlu1 %v9343_v60, %s13408_s29  ;;  %s13455_s29 = smov 114  }
 0x1c6   :  { %779 = vrot.lane.b32.xlu0 %v9331_v32, %s13402_s6  ;;  %713 = vrot.lane.b32.xlu1 %v9343_v60, %s13406_s5  ;;  %s13457_s5 = smov 115  }
 0x1c8   :  { %v9397_v40 = vpop.permute.xlu0 %333  ;;  %v9399_v47 = vpop.permute.xlu1 %297 }
 0x1ca   :  { %813 = vrot.lane.b32.xlu0 %v9263_v13, %s9072_s9  ;;  %747 = vrot.lane.b32.xlu1 %v9343_v60, %s13404_s28  ;;  %s13459_s28 = smov 116  }
 0x1cc   :  { %v9405_v61 = vpop.permute.xlu0 %367  ;;  %v9407_v62 = vpop.permute.xlu1 %299 }
 0x1ce   :  { %817 = vrot.lane.b32.xlu0 %v9331_v32, %s9072_s9  ;;  %781 = vrot.lane.b32.xlu1 %v9343_v60, %s13402_s6  ;;  %s13461_s6 = smov 117  }
 0x1d0   :  { %v9413_v1 = vpop.permute.xlu0 %401  ;;  %v9415_v2 = vpop.permute.xlu1 %335 }
 0x1d2   :  { %847 = vrot.lane.b32.xlu0 %v9263_v13, %s9073_s7  ;;  %815 = vrot.lane.b32.xlu1 %v9271_v14, %s9072_s9 }
 0x1d4   :  { %v9421_v3 = vpop.permute.xlu0 %435  ;;  %v9423_v4 = vpop.permute.xlu1 %369 }
 0x1d6   :  { %851 = vrot.lane.b32.xlu0 %v9331_v32, %s9073_s7  ;;  %849 = vrot.lane.b32.xlu1 %v9271_v14, %s9073_s7 }
 0x1d8   :  { %v9429_v5 = vpop.permute.xlu0 %469  ;;  %v9431_v6 = vpop.permute.xlu1 %403 }
 0x1da   :  { %881 = vrot.lane.b32.xlu0 %v9263_v13, %s9074_s10  ;;  %883 = vrot.lane.b32.xlu1 %v9271_v14, %s9074_s10 }
 0x1dc   :  { %v9437_v7 = vpop.permute.xlu0 %503  ;;  %v9439_v8 = vpop.permute.xlu1 %437 }
 0x1de   :  { %885 = vrot.lane.b32.xlu0 %v9331_v32, %s9074_s10  ;;  %917 = vrot.lane.b32.xlu1 %v9271_v14, %s9075_s11 }
 0x1e0   :  { %v9445_v9 = vpop.permute.xlu0 %537  ;;  %v9447_v10 = vpop.permute.xlu1 %471 }
 0x1e2   :  { %915 = vrot.lane.b32.xlu0 %v9263_v13, %s9075_s11  ;;  %951 = vrot.lane.b32.xlu1 %v9271_v14, %s9076_s12 }
 0x1e4   :  { %v9453_v11 = vpop.permute.xlu0 %571  ;;  %v9455_v12 = vpop.permute.xlu1 %505 }
 0x1e6   :  { %919 = vrot.lane.b32.xlu0 %v9331_v32, %s9075_s11  ;;  %985 = vrot.lane.b32.xlu1 %v9271_v14, %s9077_s13 }
 0x1e8   :  { %v9461_v15 = vpop.permute.xlu0 %605  ;;  %v9463_v17 = vpop.permute.xlu1 %539 }
 0x1ea   :  { %949 = vrot.lane.b32.xlu0 %v9263_v13, %s9076_s12  ;;  %1019 = vrot.lane.b32.xlu1 %v9271_v14, %s9078_s14 }
 0x1ec   :  { %v9469_v18 = vpop.permute.xlu0 %639  ;;  %v9471_v19 = vpop.permute.xlu1 %573 }
 0x1ee   :  { %953 = vrot.lane.b32.xlu0 %v9331_v32, %s9076_s12  ;;  %1053 = vrot.lane.b32.xlu1 %v9271_v14, %s9079_s15 }
 0x1f0   :  { %v9477_v16 = vpop.permute.xlu0 %673  ;;  %v9479_v21 = vpop.permute.xlu1 %607 }
 0x1f2   :  { %983 = vrot.lane.b32.xlu0 %v9263_v13, %s9077_s13  ;;  %1087 = vrot.lane.b32.xlu1 %v9271_v14, %s9080_s16 }
 0x1f4   :  { %v9485_v20 = vpop.permute.xlu0 %707  ;;  %v9487_v22 = vpop.permute.xlu1 %641 }
 0x1f6   :  { %987 = vrot.lane.b32.xlu0 %v9331_v32, %s9077_s13  ;;  %1121 = vrot.lane.b32.xlu1 %v9271_v14, %s13463_s17 }
 0x1f8   :  { %v9493_v23 = vpop.permute.xlu0 %741  ;;  %v9495_v24 = vpop.permute.xlu1 %675 }
 0x1fa   :  { %1017 = vrot.lane.b32.xlu0 %v9263_v13, %s9078_s14  ;;  %1155 = vrot.lane.b32.xlu1 %v9271_v14, %s13461_s6 }
 0x1fc   :  { %v9501_v26 = vpop.permute.xlu0 %775  ;;  %v9503_v27 = vpop.permute.xlu1 %709 }
 0x1fe   :  { %1021 = vrot.lane.b32.xlu0 %v9331_v32, %s9078_s14  ;;  %1189 = vrot.lane.b32.xlu1 %v9271_v14, %s13459_s28 }
 0x200   :  { %v302_v31 = vpop.permute.xlu0 %301  ;;  %v9511_v33 = vpop.permute.xlu1 %743 }
 0x201   :  { %v310_v43 = vsel %vm307_vm5, %v302_v31, %v9399_v47  ;;  %v308_v44 = vsel %vm307_vm5, %v9399_v47, %v302_v31  ;;  %v400_v31 = vld [vmem:[#allocation8 + $0x3] ss:$8 sm:$0x3] }
 0x202   :  { %1051 = vrot.lane.b32.xlu0 %v9263_v13, %s9079_s15  ;;  %1223 = vrot.lane.b32.xlu1 %v9271_v14, %s13457_s5  ;;  %v323_v49 = vmul.f32 %v316_v39, %v310_v43  ;;  %v324_v54 = vmul.f32 %v320_v42, %v308_v44 }
 0x204   :  { %v338_v37 = vpop.permute.xlu0 %337  ;;  %v9522_v38 = vpop.permute.xlu1 %777 }
 0x205   :  { %v344_v55 = vsel %vm341_vm6, %v338_v37, %v9397_v40  ;;  %v342_v58 = vsel %vm341_vm6, %v9397_v40, %v338_v37 }
 0x206   :  { %1055 = vrot.lane.b32.xlu0 %v9331_v32, %s9079_s15  ;;  %1257 = vrot.lane.b32.xlu1 %v9271_v14, %s13455_s29  ;;  %v357_v25 = vmul.f32 %v350_v45, %v344_v55  ;;  %v358_v37 = vmul.f32 %v354_v50, %v342_v58 }
 0x208   :  { %v372_v46 = vpop.permute.xlu0 %371  ;;  %v304_v48 = vpop.permute.xlu1 %303 }
 0x209   :  { %v309_v52 = vsel %vm307_vm5, %v9407_v62, %v304_v48  ;;  %v311_v53 = vsel %vm307_vm5, %v304_v48, %v9407_v62  ;;  %v376_v43 = vsel %vm375_vm7, %v9405_v61, %v372_v46 }
 0x20a   :  { %v325_v56 = vmul.f32 %v316_v39, %v311_v53  ;;  %v326_v57 = vmul.f32 %v320_v42, %v309_v52  ;;  %1085 = vrot.lane.b32.xlu0 %v9263_v13, %s9080_s16  ;;  %1291 = vrot.lane.b32.xlu1 %v9271_v14, %s13453_s27  ;;  %v378_v39 = vsel %vm375_vm7, %v372_v46, %v9405_v61  ;;  %v434_v46 = vld [vmem:[#allocation8 + $0x4] ss:$8 sm:$0x3] }
 0x20b   :  { %v422_v61 = vrot.slane %v400_v31, %v9515_v36  ;;  %v392_v53 = vmul.f32 %v388_v28, %v376_v43 }
 0x20c   :  { %v9557_v29 = vpack.c.bf16 %v325_v56, %v323_v49  ;;  %v406_v47 = vpop.permute.xlu0 %405  ;;  %v340_v62 = vpop.permute.xlu1 %339  ;;  %v9559_v63 = vpack.c.bf16 %v326_v57, %v324_v54 }
 0x20d   :  { %v343_v40 = vsel %vm341_vm6, %v9415_v2, %v340_v62  ;;  %v345_v35 = vsel %vm341_vm6, %v340_v62, %v9415_v2  ;;  %v418_v2 = vrot.slane %v400_v31, %v9513_v34  ;;  %v412_v54 = vsel %vm409_vm8, %v406_v47, %v9413_v1 }
 0x20e   :  { %v359_v41 = vmul.f32 %v350_v45, %v345_v35  ;;  %v360_v42 = vmul.f32 %v354_v50, %v343_v40  ;;  %1089 = vrot.lane.b32.xlu0 %v9331_v32, %s9080_s16  ;;  %819 = vrot.lane.b32.xlu1 %v9343_v60, %s9072_s9  ;;  %v391_v50 = vmul.f32 %v384_v59, %v378_v39 }
 0x20f   :  { %1769 = vmatprep.subr.bf16.mxu1 %v9559_v63  ;;  %v410_v57 = vsel %vm409_vm8, %v9413_v1, %v406_v47  ;;  %v456_v1 = vrot.slane %v434_v46, %v9515_v36  ;;  %v468_v47 = vld [vmem:[#allocation8 + $0x5] ss:$8 sm:$0x3] }
 0x210   :  { %v9581_v44 = vpack.c.bf16 %v359_v41, %v357_v25  ;;  %1770 = vmatpush1.bf16.msra.mxu1 %v9557_v29  ;;  %v440_v45 = vpop.permute.xlu0 %439  ;;  %v374_v48 = vpop.permute.xlu1 %373  ;;  %v9584_v49 = vpack.c.bf16 %v360_v42, %v358_v37  ;;  %v426_v35 = vmul.f32 %v422_v61, %v410_v57 }
 0x211   :  { %v377_v51 = vsel %vm375_vm7, %v9423_v4, %v374_v48  ;;  %v379_v52 = vsel %vm375_vm7, %v374_v48, %v9423_v4  ;;  %v452_v4 = vrot.slane %v434_v46, %v9513_v34  ;;  %v446_v37 = vsel %vm443_vm9, %v440_v45, %v9421_v3 }
 0x212   :  { %v393_v55 = vmul.f32 %v384_v59, %v379_v52  ;;  %v394_v56 = vmul.f32 %v388_v28, %v377_v51  ;;  %1119 = vrot.lane.b32.xlu0 %v9263_v13, %s13463_s17  ;;  %853 = vrot.lane.b32.xlu1 %v9343_v60, %s9073_s7  ;;  %v425_v28 = vmul.f32 %v418_v2, %v412_v54 }
 0x213   :  { %1771 = vmatprep.subr.bf16.mxu1 %v9584_v49  ;;  %v444_v42 = vsel %vm443_vm9, %v9421_v3, %v440_v45  ;;  %v490_v3 = vrot.slane %v468_v47, %v9515_v36  ;;  %v502_v45 = vld [vmem:[#allocation8 + $0x6] ss:$8 sm:$0x3] }
 0x214   :  { %v9606_v58 = vpack.c.bf16 %v393_v55, %v391_v50  ;;  %1772 = vmatpush1.bf16.msra.mxu1 %v9581_v44  ;;  %v474_v59 = vpop.permute.xlu0 %473  ;;  %v408_v62 = vpop.permute.xlu1 %407  ;;  %v9609_v25 = vpack.c.bf16 %v394_v56, %v392_v53  ;;  %v460_v52 = vmul.f32 %v456_v1, %v444_v42 }
 0x215   :  { %v411_v31 = vsel %vm409_vm8, %v9431_v6, %v408_v62  ;;  %v413_v40 = vsel %vm409_vm8, %v408_v62, %v9431_v6  ;;  %v486_v6 = vrot.slane %v468_v47, %v9513_v34  ;;  %v480_v53 = vsel %vm477_vm10, %v474_v59, %v9429_v5 }
 0x216   :  { %v427_v39 = vmul.f32 %v418_v2, %v413_v40  ;;  %v428_v41 = vmul.f32 %v422_v61, %v411_v31  ;;  %1123 = vrot.lane.b32.xlu0 %v9331_v32, %s13463_s17  ;;  %887 = vrot.lane.b32.xlu1 %v9343_v60, %s9074_s10  ;;  %v459_v61 = vmul.f32 %v452_v4, %v446_v37 }
 0x217   :  { %1773 = vmatprep.subr.bf16.mxu1 %v9609_v25  ;;  %v478_v56 = vsel %vm477_vm10, %v9429_v5, %v474_v59  ;;  %v524_v5 = vrot.slane %v502_v45, %v9515_v36  ;;  %v536_v59 = vld [vmem:[#allocation8 + $0x7] ss:$8 sm:$0x3] }
 0x218   :  { %v9631_v43 = vpack.c.bf16 %v427_v39, %v425_v28  ;;  %1774 = vmatpush1.bf16.msra.mxu1 %v9606_v58  ;;  %v508_v2 = vpop.permute.xlu0 %507  ;;  %v442_v48 = vpop.permute.xlu1 %441  ;;  %v9634_v50 = vpack.c.bf16 %v428_v41, %v426_v35  ;;  %v494_v40 = vmul.f32 %v490_v3, %v478_v56 }
 0x219   :  { %v445_v46 = vsel %vm443_vm9, %v9439_v8, %v442_v48  ;;  %v447_v51 = vsel %vm443_vm9, %v442_v48, %v9439_v8  ;;  %v520_v8 = vrot.slane %v502_v45, %v9513_v34  ;;  %v514_v35 = vsel %vm511_vm11, %v508_v2, %v9437_v7 }
 0x21a   :  { %v461_v54 = vmul.f32 %v452_v4, %v447_v51  ;;  %v462_v55 = vmul.f32 %v456_v1, %v445_v46  ;;  %1153 = vrot.lane.b32.xlu0 %v9263_v13, %s13461_s6  ;;  %921 = vrot.lane.b32.xlu1 %v9343_v60, %s9075_s11  ;;  %v493_v1 = vmul.f32 %v486_v6, %v480_v53 }
 0x21b   :  { %1775 = vmatprep.subr.bf16.mxu1 %v9634_v50  ;;  %v512_v41 = vsel %vm511_vm11, %v9437_v7, %v508_v2  ;;  %v558_v7 = vrot.slane %v536_v59, %v9515_v36  ;;  %v570_v2 = vld [vmem:[#allocation8 + $0x10] ss:$8 sm:$0x3] }
 0x21c   :  { %v9656_v57 = vpack.c.bf16 %v461_v54, %v459_v61  ;;  %1776 = vmatpush1.bf16.msra.mxu1 %v9631_v43  ;;  %v542_v4 = vpop.permute.xlu0 %541  ;;  %v476_v62 = vpop.permute.xlu1 %475  ;;  %v9659_v28 = vpack.c.bf16 %v462_v55, %v460_v52  ;;  %v528_v51 = vmul.f32 %v524_v5, %v512_v41 }
 0x21d   :  { %v479_v47 = vsel %vm477_vm10, %v9447_v10, %v476_v62  ;;  %v481_v31 = vsel %vm477_vm10, %v476_v62, %v9447_v10  ;;  %v554_v10 = vrot.slane %v536_v59, %v9513_v34  ;;  %v548_v52 = vsel %vm545_vm12, %v542_v4, %v9445_v9 }
 0x21e   :  { %13570 = vst [vmem:[#allocation18_spill] sm:$0xff] %v9656_v57  ;;  %13571 = vst [vmem:[#allocation19_spill] sm:$0xff] %v9659_v28  ;;  %v495_v37 = vmul.f32 %v486_v6, %v481_v31  ;;  %v496_v39 = vmul.f32 %v490_v3, %v479_v47  ;;  %1157 = vrot.lane.b32.xlu0 %v9331_v32, %s13461_s6  ;;  %955 = vrot.lane.b32.xlu1 %v9343_v60, %s9076_s12 }
 0x21f   :  { %1777 = vmatprep.subr.bf16.mxu1 %v9659_v28  ;;  %v527_v3 = vmul.f32 %v520_v8, %v514_v35  ;;  %v546_v55 = vsel %vm545_vm12, %v9445_v9, %v542_v4  ;;  %v592_v9 = vrot.slane %v570_v2, %v9515_v36  ;;  %v604_v4 = vld [vmem:[#allocation8 + $0x11] ss:$8 sm:$0x3] }
 0x220   :  { %v9681_v42 = vpack.c.bf16 %v495_v37, %v493_v1  ;;  %1778 = vmatpush1.bf16.msra.mxu1 %v9656_v57  ;;  %v576_v6 = vpop.permute.xlu0 %575  ;;  %v510_v48 = vpop.permute.xlu1 %509  ;;  %v9684_v61 = vpack.c.bf16 %v496_v39, %v494_v40  ;;  %v562_v31 = vmul.f32 %v558_v7, %v546_v55 }
 0x221   :  { %v513_v45 = vsel %vm511_vm11, %v9455_v12, %v510_v48  ;;  %v515_v46 = vsel %vm511_vm11, %v510_v48, %v9455_v12  ;;  %v588_v12 = vrot.slane %v570_v2, %v9513_v34  ;;  %v582_v40 = vsel %vm13507_vm13, %v576_v6, %v9453_v11 }
 0x222   :  { %13572 = vst [vmem:[#allocation20_spill] sm:$0xff] %v9681_v42  ;;  %13573 = vst [vmem:[#allocation21_spill] sm:$0xff] %v9684_v61  ;;  %v529_v53 = vmul.f32 %v520_v8, %v515_v46  ;;  %v530_v54 = vmul.f32 %v524_v5, %v513_v45  ;;  %1187 = vrot.lane.b32.xlu0 %v9263_v13, %s13459_s28  ;;  %989 = vrot.lane.b32.xlu1 %v9343_v60, %s9077_s13 }
 0x223   :  { %1779 = vmatprep.subr.bf16.mxu1 %v9684_v61  ;;  %v561_v5 = vmul.f32 %v554_v10, %v548_v52  ;;  %v580_v39 = vsel %vm13507_vm13, %v9453_v11, %v576_v6  ;;  %v626_v11 = vrot.slane %v604_v4, %v9515_v36  ;;  %v638_v6 = vld [vmem:[#allocation8 + $0x12] ss:$8 sm:$0x3] }
 0x224   :  { %v9706_v56 = vpack.c.bf16 %v529_v53, %v527_v3  ;;  %1780 = vmatpush1.bf16.msra.mxu1 %v9681_v42  ;;  %v610_v8 = vpop.permute.xlu0 %609  ;;  %v544_v62 = vpop.permute.xlu1 %543  ;;  %v9709_v1 = vpack.c.bf16 %v530_v54, %v528_v51  ;;  %v596_v46 = vmul.f32 %v592_v9, %v580_v39  ;;  %v8531_v42 = vld [vmem:[#allocation6 + $0x104] ss:$16 sps:$4 sm:$0xff]  }
 0x225   :  { %v547_v59 = vsel %vm545_vm12, %v9463_v17, %v544_v62  ;;  %v549_v47 = vsel %vm545_vm12, %v544_v62, %v9463_v17  ;;  %v622_v17 = vrot.slane %v604_v4, %v9513_v34  ;;  %v616_v51 = vsel %vm13506_vm14, %v610_v8, %v9461_v15 }
 0x226   :  { %13574 = vst [vmem:[#allocation22_spill] sm:$0xff] %v9706_v56  ;;  %13575 = vst [vmem:[#allocation23_spill] sm:$0xff] %v9709_v1  ;;  %v563_v35 = vmul.f32 %v554_v10, %v549_v47  ;;  %v564_v37 = vmul.f32 %v558_v7, %v547_v59  ;;  %1191 = vrot.lane.b32.xlu0 %v9331_v32, %s13459_s28  ;;  %1023 = vrot.lane.b32.xlu1 %v9343_v60, %s9078_s14 }
 0x227   :  { %1781 = vmatprep.subr.bf16.mxu1 %v9709_v1  ;;  %v595_v7 = vmul.f32 %v588_v12, %v582_v40  ;;  %v614_v54 = vsel %vm13506_vm14, %v9461_v15, %v610_v8  ;;  %v660_v15 = vrot.slane %v638_v6, %v9515_v36  ;;  %v672_v8 = vld [vmem:[#allocation8 + $0x13] ss:$8 sm:$0x3] }
 0x228   :  { %v9731_v41 = vpack.c.bf16 %v563_v35, %v561_v5  ;;  %1782 = vmatpush1.bf16.msra.mxu1 %v9706_v56  ;;  %v644_v10 = vpop.permute.xlu0 %643  ;;  %v578_v48 = vpop.permute.xlu1 %577  ;;  %v9734_v3 = vpack.c.bf16 %v564_v37, %v562_v31  ;;  %v630_v47 = vmul.f32 %v626_v11, %v614_v54 }
 0x229   :  { %v581_v2 = vsel %vm13507_vm13, %v9471_v19, %v578_v48  ;;  %v583_v45 = vsel %vm13507_vm13, %v578_v48, %v9471_v19  ;;  %v656_v19 = vrot.slane %v638_v6, %v9513_v34  ;;  %v650_v31 = vsel %vm13505_vm15, %v644_v10, %v9469_v18 }
 0x22a   :  { %13576 = vst [vmem:[#allocation24_spill] sm:$0xff] %v9731_v41  ;;  %13577 = vst [vmem:[#allocation25_spill] sm:$0xff] %v9734_v3  ;;  %v597_v52 = vmul.f32 %v588_v12, %v583_v45  ;;  %v598_v53 = vmul.f32 %v592_v9, %v581_v2  ;;  %1221 = vrot.lane.b32.xlu0 %v9263_v13, %s13457_s5  ;;  %1057 = vrot.lane.b32.xlu1 %v9343_v60, %s9079_s15  ;;  %vm2368_vm13 = vcmp.lt.s32.totalorder %v9509_v30, 16 }
 0x22b   :  { %1783 = vmatprep.subr.bf16.mxu1 %v9734_v3  ;;  %v629_v9 = vmul.f32 %v622_v17, %v616_v51  ;;  %v648_v37 = vsel %vm13505_vm15, %v9469_v18, %v644_v10  ;;  %v694_v18 = vrot.slane %v672_v8, %v9515_v36  ;;  %v706_v10 = vld [vmem:[#allocation8 + $0x14] ss:$8 sm:$0x3]  ;;  %v8530_v3 = vld [vmem:[#allocation6 + $0xe0] ss:$16 sps:$4 sm:$0xff]  }
 0x22c   :  { %v9756_v55 = vpack.c.bf16 %v597_v52, %v595_v7  ;;  %1784 = vmatpush1.bf16.msra.mxu1 %v9731_v41  ;;  %v678_v12 = vpop.permute.xlu0 %677  ;;  %v612_v62 = vpop.permute.xlu1 %611  ;;  %v9759_v5 = vpack.c.bf16 %v598_v53, %v596_v46  ;;  %v664_v45 = vmul.f32 %v660_v15, %v648_v37 }
 0x22d   :  { %v615_v4 = vsel %vm13506_vm14, %v9479_v21, %v612_v62  ;;  %v617_v59 = vsel %vm13506_vm14, %v612_v62, %v9479_v21  ;;  %v690_v21 = vrot.slane %v672_v8, %v9513_v34  ;;  %v684_v46 = vsel %vm13504_vm1, %v678_v12, %v9477_v16 }
 0x22e   :  { %13578 = vst [vmem:[#allocation26_spill] sm:$0xff] %v9756_v55  ;;  %13579 = vst [vmem:[#allocation27_spill] sm:$0xff] %v9759_v5  ;;  %v631_v40 = vmul.f32 %v622_v17, %v617_v59  ;;  %v632_v35 = vmul.f32 %v626_v11, %v615_v4  ;;  %1225 = vrot.lane.b32.xlu0 %v9331_v32, %s13457_s5  ;;  %1091 = vrot.lane.b32.xlu1 %v9343_v60, %s9080_s16  ;;  %vm2334_vm14 = vcmp.lt.s32.totalorder %v9509_v30, 32 }
 0x22f   :  { %1785 = vmatprep.subr.bf16.mxu1 %v9759_v5  ;;  %v663_v11 = vmul.f32 %v656_v19, %v650_v31  ;;  %v682_v53 = vsel %vm13504_vm1, %v9477_v16, %v678_v12  ;;  %v728_v16 = vrot.slane %v706_v10, %v9515_v36  ;;  %v740_v12 = vld [vmem:[#allocation8 + $0x15] ss:$8 sm:$0x3] }
 0x230   :  { %v9781_v39 = vpack.c.bf16 %v631_v40, %v629_v9  ;;  %1786 = vmatpush1.bf16.msra.mxu1 %v9756_v55  ;;  %v712_v17 = vpop.permute.xlu0 %711  ;;  %v646_v48 = vpop.permute.xlu1 %645  ;;  %v9784_v7 = vpack.c.bf16 %v632_v35, %v630_v47  ;;  %v698_v59 = vmul.f32 %v694_v18, %v682_v53 }
 0x231   :  { %v649_v6 = vsel %vm13505_vm15, %v9487_v22, %v646_v48  ;;  %v651_v2 = vsel %vm13505_vm15, %v646_v48, %v9487_v22  ;;  %v724_v22 = vrot.slane %v706_v10, %v9513_v34  ;;  %v718_v47 = vsel %vm13430_vm2, %v712_v17, %v9485_v20 }
 0x232   :  { %13580 = vst [vmem:[#allocation28_spill] sm:$0xff] %v9781_v39  ;;  %13581 = vst [vmem:[#allocation29_spill] sm:$0xff] %v9784_v7  ;;  %v665_v51 = vmul.f32 %v656_v19, %v651_v2  ;;  %v666_v52 = vmul.f32 %v660_v15, %v649_v6  ;;  %1255 = vrot.lane.b32.xlu0 %v9263_v13, %s13455_s29  ;;  %1125 = vrot.lane.b32.xlu1 %v9343_v60, %s13463_s17  ;;  %s13491_s17 = smov 32   ;;  %vm2232_vm15 = vcmp.lt.s32.totalorder %v9509_v30, 80 }
 0x233   :  { %1787 = vmatprep.subr.bf16.mxu1 %v9784_v7  ;;  %v697_v15 = vmul.f32 %v690_v21, %v684_v46  ;;  %v716_v35 = vsel %vm13430_vm2, %v9485_v20, %v712_v17  ;;  %v762_v20 = vrot.slane %v740_v12, %v9515_v36  ;;  %v774_v17 = vld [vmem:[#allocation8 + $0x16] ss:$8 sm:$0x3]  ;;  %v880_v7 = vld [vmem:[#allocation8 + $0x22] ss:$8 sm:$0x3] }
 0x234   :  { %v9806_v54 = vpack.c.bf16 %v665_v51, %v663_v11  ;;  %1788 = vmatpush1.bf16.msra.mxu1 %v9781_v39  ;;  %v746_v19 = vpop.permute.xlu0 %745  ;;  %v680_v62 = vpop.permute.xlu1 %679  ;;  %v9809_v9 = vpack.c.bf16 %v666_v52, %v664_v45  ;;  %v732_v2 = vmul.f32 %v728_v16, %v716_v35  ;;  %v898_v56 = vrot.slane %v880_v7, %v9513_v34 }
 0x235   :  { %v683_v8 = vsel %vm13504_vm1, %v9495_v24, %v680_v62  ;;  %v685_v4 = vsel %vm13504_vm1, %v680_v62, %v9495_v24  ;;  %v758_v24 = vrot.slane %v740_v12, %v9513_v34  ;;  %v752_v45 = vsel %vm13426_vm3, %v746_v19, %v9493_v23 }
 0x236   :  { %13582 = vst [vmem:[#allocation30_spill] sm:$0xff] %v9806_v54  ;;  %13583 = vst [vmem:[#allocation31_spill] sm:$0xff] %v9809_v9  ;;  %v699_v31 = vmul.f32 %v690_v21, %v685_v4  ;;  %v700_v40 = vmul.f32 %v694_v18, %v683_v8  ;;  %1259 = vrot.lane.b32.xlu0 %v9331_v32, %s13455_s29  ;;  %1159 = vrot.lane.b32.xlu1 %v9343_v60, %s13461_s6  ;;  %s13493_s6 = smov 48   ;;  %vm2300_vm1 = vcmp.lt.s32.totalorder %v9509_v30, 48 }
 0x237   :  { %1789 = vmatprep.subr.bf16.mxu1 %v9809_v9  ;;  %v731_v18 = vmul.f32 %v724_v22, %v718_v47  ;;  %v750_v52 = vsel %vm13426_vm3, %v9493_v23, %v746_v19  ;;  %v796_v23 = vrot.slane %v774_v17, %v9515_v36  ;;  %v902_v57 = vrot.slane %v880_v7, %v9515_v36 }
 0x238   :  { %v9831_v37 = vpack.c.bf16 %v699_v31, %v697_v15  ;;  %1790 = vmatpush1.bf16.msra.mxu1 %v9806_v54  ;;  %v780_v21 = vpop.permute.xlu0 %779  ;;  %v714_v48 = vpop.permute.xlu1 %713  ;;  %v9834_v11 = vpack.c.bf16 %v700_v40, %v698_v59  ;;  %v766_v8 = vmul.f32 %v762_v20, %v750_v52  ;;  %v9921_v52 = vpack.c.bf16 %v9271_v14, %v9263_v13 }
 0x239   :  { %v717_v10 = vsel %vm13430_vm2, %v9503_v27, %v714_v48  ;;  %v719_v6 = vsel %vm13430_vm2, %v714_v48, %v9503_v27  ;;  %v792_v27 = vrot.slane %v774_v17, %v9513_v34  ;;  %v784_v47 = vsel %vm13421_vm4, %v9501_v26, %v780_v21 }
 0x23a   :  { %13584 = vst [vmem:[#allocation32_spill] sm:$0xff] %v9831_v37  ;;  %13585 = vst [vmem:[#allocation33_spill] sm:$0xff] %v9834_v11  ;;  %v733_v46 = vmul.f32 %v724_v22, %v719_v6  ;;  %v734_v51 = vmul.f32 %v728_v16, %v717_v10  ;;  %1289 = vrot.lane.b32.xlu0 %v9263_v13, %s13453_s27  ;;  %1193 = vrot.lane.b32.xlu1 %v9343_v60, %s13459_s28  ;;  %v8513_v13 = vld [vmem:[#allocation6 + $0x44] ss:$16 sps:$4 sm:$0xff]   ;;  %vm13443_vm2 = vcmp.lt.s32.totalorder %v9509_v30, 125  ;;  %s13540_s28 = smov 64  }
 0x23b   :  { %1791 = vmatprep.subr.bf16.mxu1 %v9834_v11  ;;  %v765_v16 = vmul.f32 %v758_v24, %v752_v45  ;;  %v786_v31 = vsel %vm13421_vm4, %v780_v21, %v9501_v26  ;;  %13593 = vst [vmem:[#allocation41_spill] sm:$0xff] %v9921_v52  ;;  %v846_v11 = vld [vmem:[#allocation8 + $0x21] ss:$8 sm:$0x3] }
 0x23c   :  { %v9856_v53 = vpack.c.bf16 %v733_v46, %v731_v18  ;;  %1792 = vmatpush1.bf16.msra.mxu1 %v9831_v37  ;;  %v9859_v22 = vpop.permute.xlu0 %813  ;;  %v748_v62 = vpop.permute.xlu1 %747  ;;  %v9861_v15 = vpack.c.bf16 %v734_v51, %v732_v2  ;;  %v799_v21 = vmul.f32 %v792_v27, %v786_v31  ;;  %v800_v18 = vmul.f32 %v796_v23, %v784_v47 }
 0x23d   :  { %v751_v19 = vsel %vm13426_vm3, %v9511_v33, %v748_v62  ;;  %v753_v12 = vsel %vm13426_vm3, %v748_v62, %v9511_v33  ;;  %vm13442_vm3 = vcmp.lt.s32.totalorder %v9509_v30, 126  ;;  %v864_v39 = vrot.slane %v846_v11, %v9513_v34 }
 0x23e   :  { %13586 = vst [vmem:[#allocation34_spill] sm:$0xff] %v9856_v53  ;;  %13587 = vst [vmem:[#allocation35_spill] sm:$0xff] %v9861_v15  ;;  %v767_v4 = vmul.f32 %v758_v24, %v753_v12  ;;  %v768_v59 = vmul.f32 %v762_v20, %v751_v19  ;;  %1293 = vrot.lane.b32.xlu0 %v9331_v32, %s13453_s27  ;;  %1793 = vmatprep.subr.bf16.mxu1 %v9861_v15  ;;  %v8512_v19 = vld [vmem:[#allocation6 + $0x20] ss:$16 sps:$4 sm:$0xff]   ;;  %v8528_v15 = vld [vmem:[#allocation6 + $0xe4] ss:$16 sps:$4 sm:$0xff]  }
 0x23f   :  { %1227 = vrot.lane.b32.xlu1 %v9343_v60, %s13457_s5  ;;  %s13542_s5 = smov 80  }
 0x240   :  { %v9881_v33 = vpack.c.bf16 %v767_v4, %v765_v16  ;;  %1794 = vmatpush1.bf16.msra.mxu1 %v9856_v53  ;;  %v9884_v40 = vpop.permute.xlu0 %817  ;;  %v782_v35 = vpop.permute.xlu1 %781  ;;  %v9886_v24 = vpack.c.bf16 %v768_v59, %v766_v8  ;;  %v8515_v59 = vld [vmem:[#allocation6 + $0x40] ss:$16 sps:$4 sm:$0xff]  }
 0x241   :  { %v785_v48 = vsel %vm13421_vm4, %v9522_v38, %v782_v35  ;;  %v787_v26 = vsel %vm13421_vm4, %v782_v35, %v9522_v38  ;;  %v9911_v38 = vpack.c.bf16 %v9343_v60, %v9331_v32  ;;  %v8510_v32 = vld [vmem:[#allocation6 + $0x24] ss:$16 sps:$4 sm:$0xff]   ;;  %v8527_v53 = vld [vmem:[#allocation6 + $0xc0] ss:$16 sps:$4 sm:$0xff]   ;;  %vm13441_vm4 = vcmp.lt.s32.totalorder %v9509_v30, 127 }
 0x242   :  { %13588 = vst [vmem:[#allocation36_spill] sm:$0xff] %v9881_v33  ;;  %13589 = vst [vmem:[#allocation37_spill] sm:$0xff] %v9886_v24  ;;  %v801_v20 = vmul.f32 %v792_v27, %v787_v26  ;;  %v802_v17 = vmul.f32 %v796_v23, %v785_v48  ;;  %1795 = vmatprep.subr.bf16.mxu1 %v9886_v24  ;;  %v8507_v27 = vld [vmem:[#allocation6] ss:$16 sps:$4 sm:$0xff]   ;;  %v8516_v35 = vld [vmem:[#allocation6 + $0x64] ss:$16 sps:$4 sm:$0xff]  }
 0x243   :  { %1261 = vrot.lane.b32.xlu1 %v9343_v60, %s13455_s29  ;;  %13592 = vst [vmem:[#allocation40_spill] sm:$0xff] %v9911_v38  ;;  %v812_v24 = vld [vmem:[#allocation8 + $0x20] ss:$8 sm:$0x3]  ;;  %s9089_s29 = smov 96  }
 0x244   :  { %v9897_v10 = vpack.c.bf16 %v801_v20, %v799_v21  ;;  %1796 = vmatpush1.bf16.msra.mxu1 %v9881_v33  ;;  %v9900_v6 = vpop.permute.xlu0 %847  ;;  %v9902_v2 = vpop.permute.xlu1 %815  ;;  %v9904_v45 = vpack.c.bf16 %v802_v17, %v800_v18  ;;  %v8518_v21 = vld [vmem:[#allocation6 + $0x60] ss:$16 sps:$4 sm:$0xff]   ;;  %v8519_v17 = vld [vmem:[#allocation6 + $0x84] ss:$16 sps:$4 sm:$0xff]   ;;  %v830_v37 = vrot.slane %v812_v24, %v9513_v34  ;;  %v834_v54 = vrot.slane %v812_v24, %v9515_v36 }
 0x245   :  { %v868_v24 = vrot.slane %v846_v11, %v9515_v36 }
 0x246   :  { %13590 = vst [vmem:[#allocation38_spill] sm:$0xff] %v9897_v10  ;;  %13591 = vst [vmem:[#allocation39_spill] sm:$0xff] %v9904_v45  ;;  %1797 = vmatprep.subr.bf16.mxu1 %v9904_v45  ;;  %v8525_v45 = vld [vmem:[#allocation6 + $0xc4] ss:$16 sps:$4 sm:$0xff]  }
 0x247   :  { %1295 = vrot.lane.b32.xlu1 %v9343_v60, %s13453_s27  ;;  %s9088_s27 = smov 112  }
 0x248   :  { %1798 = vmatpush1.bf16.msra.mxu1 %v9897_v10  ;;  %v9914_v46 = vpop.permute.xlu0 %851  ;;  %v9916_v51 = vpop.permute.xlu1 %849 }
 0x249   :  { %1799 = vmatprep.subr.bf16.mxu1 %v9911_v38  ;;  %v8524_v38 = vld [vmem:[#allocation6 + $0xa0] ss:$16 sps:$4 sm:$0xff]   ;;  %v858_v11 = vsel %vm13442_vm3, %v9914_v46, %v9900_v6 }
 0x24c   :  { %1800 = vmatpush1.bf16.msra.mxu1 %v9921_v52  ;;  %v9924_v62 = vpop.permute.xlu0 %881  ;;  %v9926_v16 = vpop.permute.xlu1 %883 }
 0x24f   :  { %1802 = vmatmul.mubr.bf16.vlgmr.msra.gmra.mrb[4].mxu1 %v8507_v27 }
 0x250   :  { %v9928_v60 = vpop.permute.xlu0 %885  ;;  %v9930_v23 = vpop.permute.xlu1 %917  ;;  %1811 = vmatprep.mubr.bf16.mxu1 %v8510_v32 }
 0x254   :  { %v9932_v12 = vpop.permute.xlu0 %915  ;;  %v9934_v8 = vpop.permute.xlu1 %951 }
 0x257   :  { %1812 = vmatmul.mubr.bf16.gmra.mrb[8].mxu1 %v8512_v19  ;;  %v8521_v19 = vld [vmem:[#allocation6 + $0x80] ss:$16 sps:$4 sm:$0xff]  }
 0x258   :  { %v9936_v14 = vpop.permute.xlu0 %919  ;;  %v9938_v4 = vpop.permute.xlu1 %985  ;;  %1821 = vmatprep.mubr.bf16.mxu1 %v8513_v13 }
 0x25c   :  { %v9940_v47 = vpop.permute.xlu0 %949  ;;  %v9942_v31 = vpop.permute.xlu1 %1019 }
 0x25f   :  { %1822 = vmatmul.mubr.bf16.gmra.mrb[12].mxu1 %v8515_v59 }
 0x260   :  { %v9944_v48 = vpop.permute.xlu0 %953  ;;  %v9946_v26 = vpop.permute.xlu1 %1053  ;;  %1831 = vmatprep.mubr.bf16.mxu1 %v8516_v35 }
 0x264   :  { %v9948_v18 = vpop.permute.xlu0 %983  ;;  %v9950_v20 = vpop.permute.xlu1 %1087 }
 0x267   :  { %1832 = vmatmul.mubr.bf16.gmra.mrb[16].mxu1 %v8518_v21 }
 0x268   :  { %v9952_v27 = vpop.permute.xlu0 %987  ;;  %v9954_v32 = vpop.permute.xlu1 %1121  ;;  %1841 = vmatprep.mubr.bf16.mxu1 %v8519_v17 }
 0x26c   :  { %v9956_v13 = vpop.permute.xlu0 %1017  ;;  %v9958_v59 = vpop.permute.xlu1 %1155 }
 0x26f   :  { %1842 = vmatmul.mubr.bf16.gmra.mrb[20].mxu1 %v8521_v19 }
 0x270   :  { %v9960_v35 = vpop.permute.xlu0 %1021  ;;  %v9962_v52 = vpop.permute.xlu1 %1189  ;;  %1851 = vmatprep.mubr.bf16.mxu1 %v8522_v0 }
 0x274   :  { %v9964_v10 = vpop.permute.xlu0 %1051  ;;  %v9966_v21 = vpop.permute.xlu1 %1223 }
 0x277   :  { %1852 = vmatmul.mubr.bf16.gmra.mrb[24].mxu1 %v8524_v38  ;;  %v822_v38 = vsel %vm13441_vm4, %v9859_v22, %v9884_v40 }
 0x278   :  { %v9968_v17 = vpop.permute.xlu0 %1055  ;;  %v9970_v33 = vpop.permute.xlu1 %1257  ;;  %1861 = vmatprep.mubr.bf16.mxu1 %v8525_v45  ;;  %v824_v45 = vsel %vm13441_vm4, %v9884_v40, %v9859_v22  ;;  %v837_v5 = vmul.f32 %v830_v37, %v822_v38 }
 0x279   :  { %v838_v40 = vmul.f32 %v834_v54, %v824_v45  ;;  %v872_v45 = vmul.f32 %v868_v24, %v858_v11 }
 0x27c   :  { %v9973_v19 = vpop.permute.xlu0 %1085  ;;  %v9975_v0 = vpop.permute.xlu1 %1291 }
 0x27f   :  { %1862 = vmatmul.mubr.bf16.gmra.mrb[28].mxu1 %v8527_v53  ;;  %v856_v53 = vsel %vm13442_vm3, %v9900_v6, %v9914_v46 }
 0x280   :  { %v9988_v9 = vpop.permute.xlu0 %1089  ;;  %1871 = vmatprep.mubr.bf16.mxu1 %v8528_v15  ;;  %v820_v55 = vpop.permute.xlu1 %819  ;;  %v871_v61 = vmul.f32 %v864_v39, %v856_v53 }
 0x281   :  { %v823_v22 = vsel %vm13441_vm4, %v9902_v2, %v820_v55  ;;  %v825_v15 = vsel %vm13441_vm4, %v820_v55, %v9902_v2  ;;  %vm13444_vm4 = vcmp.lt.s32.totalorder %v9509_v30, 124 }
 0x282   :  { %v839_v38 = vmul.f32 %v830_v37, %v823_v22  ;;  %v840_v41 = vmul.f32 %v834_v54, %v825_v15  ;;  %v890_v54 = vsel %vm13443_vm2, %v9924_v62, %v9928_v60  ;;  %v914_v37 = vld [vmem:[#allocation8 + $0x23] ss:$8 sm:$0x3]  ;;  %v926_v11 = vsel %vm13444_vm4, %v9936_v14, %v9932_v12 }
 0x283   :  { %v932_v22 = vrot.slane %v914_v37, %v9513_v34 }
 0x284   :  { %v10008_v1 = vpop.permute.xlu0 %1119  ;;  %v10011_v28 = vpack.c.bf16 %v839_v38, %v837_v5  ;;  %v854_v55 = vpop.permute.xlu1 %853  ;;  %v10013_v2 = vpack.c.bf16 %v840_v41, %v838_v40  ;;  %v892_v41 = vsel %vm13443_vm2, %v9928_v60, %v9924_v62  ;;  %v948_v60 = vld [vmem:[#allocation8 + $0x24] ss:$8 sm:$0x3] }
 0x285   :  { %v857_v6 = vsel %vm13442_vm3, %v9916_v51, %v854_v55  ;;  %v859_v7 = vsel %vm13442_vm3, %v854_v55, %v9916_v51  ;;  %v936_v51 = vrot.slane %v914_v37, %v9515_v36  ;;  %vm13445_vm3 = vcmp.lt.s32.totalorder %v9509_v30, 123 }
 0x286   :  { %v873_v5 = vmul.f32 %v864_v39, %v857_v6  ;;  %v874_v46 = vmul.f32 %v868_v24, %v859_v7  ;;  %1962 = vmatprep.subr.bf16.mxu1 %v10013_v2  ;;  %v905_v39 = vmul.f32 %v898_v56, %v890_v54  ;;  %v8534_v54 = vld [vmem:[#allocation6 + $0x124] ss:$16 sps:$4 sm:$0xff]   ;;  %v966_v37 = vrot.slane %v948_v60, %v9513_v34 }
 0x287   :  { %1872 = vmatmul.mubr.bf16.gmra.mrb[32].mxu1 %v8530_v3  ;;  %v906_v3 = vmul.f32 %v902_v57, %v892_v41  ;;  %v970_v6 = vrot.slane %v948_v60, %v9515_v36  ;;  %v982_v7 = vld [vmem:[#allocation8 + $0x25] ss:$8 sm:$0x3]  ;;  %v960_v60 = vsel %vm13445_vm3, %v9944_v48, %v9940_v47 }
 0x288   :  { %1963 = vmatpush1.bf16.msra.mxu1 %v10011_v28  ;;  %v10032_v53 = vpop.permute.xlu0 %1123  ;;  %1881 = vmatprep.mubr.bf16.mxu1 %v8531_v42  ;;  %v10036_v15 = vpack.c.bf16 %v873_v5, %v871_v61  ;;  %v888_v40 = vpop.permute.xlu1 %887  ;;  %v10038_v62 = vpack.c.bf16 %v874_v46, %v872_v45  ;;  %v924_v61 = vsel %vm13444_vm4, %v9932_v12, %v9936_v14  ;;  %v8533_v45 = vld [vmem:[#allocation6 + $0x100] ss:$16 sps:$4 sm:$0xff]  }
 0x289   :  { %v891_v24 = vsel %vm13443_vm2, %v9926_v16, %v888_v40  ;;  %v893_v42 = vsel %vm13443_vm2, %v888_v40, %v9926_v16  ;;  %v940_v14 = vmul.f32 %v936_v51, %v926_v11  ;;  %v958_v40 = vsel %vm13445_vm3, %v9940_v47, %v9944_v48 }
 0x28a   :  { %v907_v38 = vmul.f32 %v898_v56, %v891_v24  ;;  %v908_v55 = vmul.f32 %v902_v57, %v893_v42  ;;  %1964 = vmatprep.subr.bf16.mxu1 %v10038_v62  ;;  %v939_v57 = vmul.f32 %v932_v22, %v924_v61  ;;  %vm13446_vm2 = vcmp.lt.s32.totalorder %v9509_v30, 122  ;;  %v1016_v61 = vld [vmem:[#allocation8 + $0x26] ss:$8 sm:$0x3] }
 0x28b   :  { %v1000_v24 = vrot.slane %v982_v7, %v9513_v34  ;;  %v1004_v42 = vrot.slane %v982_v7, %v9515_v36  ;;  %v992_v47 = vsel %vm13446_vm2, %v9948_v18, %v9952_v27 }
 0x28c   :  { %1965 = vmatpush1.bf16.msra.mxu1 %v10036_v15  ;;  %v10057_v16 = vpop.permute.xlu0 %1153  ;;  %v10061_v41 = vpack.c.bf16 %v907_v38, %v905_v39  ;;  %v922_v12 = vpop.permute.xlu1 %921  ;;  %v10063_v56 = vpack.c.bf16 %v908_v55, %v906_v3  ;;  %v973_v38 = vmul.f32 %v966_v37, %v958_v40 }
 0x28d   :  { %v925_v5 = vsel %vm13444_vm4, %v9930_v23, %v922_v12  ;;  %v927_v46 = vsel %vm13444_vm4, %v922_v12, %v9930_v23  ;;  %vm13447_vm4 = vcmp.lt.s32.totalorder %v9509_v30, 121  ;;  %v1007_v40 = vmul.f32 %v1000_v24, %v992_v47 }
 0x28e   :  { %v941_v39 = vmul.f32 %v932_v22, %v925_v5  ;;  %v942_v3 = vmul.f32 %v936_v51, %v927_v46  ;;  %1966 = vmatprep.subr.bf16.mxu1 %v10063_v56  ;;  %v8537_v46 = vld [vmem:[#allocation6 + $0x144] ss:$16 sps:$4 sm:$0xff]  }
 0x28f   :  { %1882 = vmatmul.mubr.bf16.gmra.mrb[36].mxu1 %v8533_v45  ;;  %v974_v45 = vmul.f32 %v970_v6, %v960_v60 }
 0x290   :  { %1967 = vmatpush1.bf16.msra.mxu1 %v10061_v41  ;;  %v10083_v23 = vpop.permute.xlu0 %1157  ;;  %1891 = vmatprep.mubr.bf16.mxu1 %v8534_v54  ;;  %v10087_v22 = vpack.c.bf16 %v941_v39, %v939_v57  ;;  %v956_v51 = vpop.permute.xlu1 %955  ;;  %v10089_v11 = vpack.c.bf16 %v942_v3, %v940_v14  ;;  %v994_v54 = vsel %vm13446_vm2, %v9952_v27, %v9948_v18  ;;  %v8536_v57 = vld [vmem:[#allocation6 + $0x120] ss:$16 sps:$4 sm:$0xff]  }
 0x291   :  { %v959_v48 = vsel %vm13445_vm3, %v9934_v8, %v956_v51  ;;  %v961_v55 = vsel %vm13445_vm3, %v956_v51, %v9934_v8  ;;  %v1034_v14 = vrot.slane %v1016_v61, %v9513_v34  ;;  %v1038_v8 = vrot.slane %v1016_v61, %v9515_v36 }
 0x292   :  { %v975_v7 = vmul.f32 %v966_v37, %v959_v48  ;;  %v976_v12 = vmul.f32 %v970_v6, %v961_v55  ;;  %1968 = vmatprep.subr.bf16.mxu1 %v10089_v11  ;;  %v1008_v18 = vmul.f32 %v1004_v42, %v994_v54  ;;  %v1026_v27 = vsel %vm13447_vm4, %v9956_v13, %v9960_v35  ;;  %v1050_v37 = vld [vmem:[#allocation8 + $0x27] ss:$8 sm:$0x3] }
 0x293   :  { %v1028_v51 = vsel %vm13447_vm4, %v9960_v35, %v9956_v13  ;;  %vm13448_vm3 = vcmp.lt.s32.totalorder %v9509_v30, 120  ;;  %v1068_v55 = vrot.slane %v1050_v37, %v9513_v34  ;;  %v1041_v35 = vmul.f32 %v1034_v14, %v1026_v27  ;;  %v8540_v27 = vld [vmem:[#allocation6 + $0x164] ss:$16 sps:$4 sm:$0xff]  }
 0x294   :  { %1969 = vmatpush1.bf16.msra.mxu1 %v10087_v22  ;;  %v10108_v5 = vpop.permute.xlu0 %1187  ;;  %v10111_v39 = vpack.c.bf16 %v975_v7, %v973_v38  ;;  %v990_v3 = vpop.permute.xlu1 %989  ;;  %v10113_v60 = vpack.c.bf16 %v976_v12, %v974_v45 }
 0x295   :  { %v993_v6 = vsel %vm13446_vm2, %v9938_v4, %v990_v3  ;;  %v995_v61 = vsel %vm13446_vm2, %v990_v3, %v9938_v4  ;;  %v1072_v4 = vrot.slane %v1050_v37, %v9515_v36  ;;  %vm13449_vm2 = vcmp.lt.s32.totalorder %v9509_v30, 119 }
 0x296   :  { %v1009_v38 = vmul.f32 %v1000_v24, %v993_v6  ;;  %v1010_v47 = vmul.f32 %v1004_v42, %v995_v61  ;;  %1970 = vmatprep.subr.bf16.mxu1 %v10113_v60  ;;  %v1042_v24 = vmul.f32 %v1038_v8, %v1028_v51  ;;  %v1084_v42 = vld [vmem:[#allocation8 + $0x30] ss:$8 sm:$0x3]  ;;  %v1118_v61 = vld [vmem:[#allocation8 + $0x31] ss:$8 sm:$0x3] }
 0x297   :  { %1892 = vmatmul.mubr.bf16.gmra.mrb[40].mxu1 %v8536_v57  ;;  %v1060_v57 = vsel %vm13448_vm3, %v9964_v10, %v9968_v17  ;;  %v1102_v37 = vrot.slane %v1084_v42, %v9513_v34  ;;  %v1106_v6 = vrot.slane %v1084_v42, %v9515_v36  ;;  %v1096_v42 = vsel %vm13449_vm2, %v9988_v9, %v9973_v19 }
 0x298   :  { %1971 = vmatpush1.bf16.msra.mxu1 %v10111_v39  ;;  %v10132_v48 = vpop.permute.xlu0 %1191  ;;  %1901 = vmatprep.mubr.bf16.mxu1 %v8537_v46  ;;  %v10136_v45 = vpack.c.bf16 %v1009_v38, %v1007_v40  ;;  %v1024_v54 = vpop.permute.xlu1 %1023  ;;  %v10138_v13 = vpack.c.bf16 %v1010_v47, %v1008_v18  ;;  %v1062_v46 = vsel %vm13448_vm3, %v9968_v17, %v9964_v10  ;;  %v8539_v18 = vld [vmem:[#allocation6 + $0x140] ss:$16 sps:$4 sm:$0xff]  }
 0x299   :  { %v1027_v7 = vsel %vm13447_vm4, %v9942_v31, %v1024_v54  ;;  %v1029_v12 = vsel %vm13447_vm4, %v1024_v54, %v9942_v31  ;;  %v1094_v54 = vsel %vm13449_vm2, %v9973_v19, %v9988_v9  ;;  %vm13450_vm4 = vcmp.lt.s32.totalorder %v9509_v30, 118 }
 0x29a   :  { %v1043_v40 = vmul.f32 %v1034_v14, %v1027_v7  ;;  %v1044_v3 = vmul.f32 %v1038_v8, %v1029_v12  ;;  %1972 = vmatprep.subr.bf16.mxu1 %v10138_v13  ;;  %v1075_v14 = vmul.f32 %v1068_v55, %v1060_v57  ;;  %v1076_v8 = vmul.f32 %v1072_v4, %v1062_v46  ;;  %v1152_v57 = vld [vmem:[#allocation8 + $0x32] ss:$8 sm:$0x3] }
 0x29b   :  { %v1136_v7 = vrot.slane %v1118_v61, %v9513_v34  ;;  %v1140_v12 = vrot.slane %v1118_v61, %v9515_v36  ;;  %v1128_v9 = vsel %vm13450_vm4, %v10008_v1, %v10032_v53 }
 0x29c   :  { %1973 = vmatpush1.bf16.msra.mxu1 %v10136_v45  ;;  %v10157_v31 = vpop.permute.xlu0 %1221  ;;  %v10161_v51 = vpack.c.bf16 %v1043_v40, %v1041_v35  ;;  %v1058_v10 = vpop.permute.xlu1 %1057  ;;  %v10163_v17 = vpack.c.bf16 %v1044_v3, %v1042_v24  ;;  %v1109_v40 = vmul.f32 %v1102_v37, %v1094_v54 }
 0x29d   :  { %v1061_v38 = vsel %vm13448_vm3, %v9946_v26, %v1058_v10  ;;  %v1063_v47 = vsel %vm13448_vm3, %v1058_v10, %v9946_v26  ;;  %vm13451_vm3 = vcmp.lt.s32.totalorder %v9509_v30, 117  ;;  %v1143_v54 = vmul.f32 %v1136_v7, %v1128_v9 }
 0x29e   :  { %v1077_v35 = vmul.f32 %v1068_v55, %v1061_v38  ;;  %v1078_v24 = vmul.f32 %v1072_v4, %v1063_v47  ;;  %1974 = vmatprep.subr.bf16.mxu1 %v10163_v17  ;;  %v8543_v47 = vld [vmem:[#allocation6 + $0x184] ss:$16 sps:$4 sm:$0xff]  }
 0x29f   :  { %1902 = vmatmul.mubr.bf16.gmra.mrb[44].mxu1 %v8539_v18  ;;  %v1110_v18 = vmul.f32 %v1106_v6, %v1096_v42 }
 0x2a0   :  { %1975 = vmatpush1.bf16.msra.mxu1 %v10161_v51  ;;  %v10183_v26 = vpop.permute.xlu0 %1225  ;;  %1911 = vmatprep.mubr.bf16.mxu1 %v8540_v27  ;;  %v10187_v55 = vpack.c.bf16 %v1077_v35, %v1075_v14  ;;  %v1092_v4 = vpop.permute.xlu1 %1091  ;;  %v10189_v46 = vpack.c.bf16 %v1078_v24, %v1076_v8  ;;  %v1130_v27 = vsel %vm13450_vm4, %v10032_v53, %v10008_v1  ;;  %v8542_v14 = vld [vmem:[#allocation6 + $0x160] ss:$16 sps:$4 sm:$0xff]  }
 0x2a1   :  { %v1095_v19 = vsel %vm13449_vm2, %v9950_v20, %v1092_v4  ;;  %v1097_v3 = vsel %vm13449_vm2, %v1092_v4, %v9950_v20  ;;  %v1170_v8 = vrot.slane %v1152_v57, %v9513_v34  ;;  %v1174_v20 = vrot.slane %v1152_v57, %v9515_v36 }
 0x2a2   :  { %v1111_v61 = vmul.f32 %v1102_v37, %v1095_v19  ;;  %v1112_v10 = vmul.f32 %v1106_v6, %v1097_v3  ;;  %1976 = vmatprep.subr.bf16.mxu1 %v10189_v46  ;;  %v1144_v1 = vmul.f32 %v1140_v12, %v1130_v27  ;;  %v1162_v53 = vsel %vm13451_vm3, %v10057_v16, %v10083_v23  ;;  %v1186_v37 = vld [vmem:[#allocation8 + $0x33] ss:$8 sm:$0x3] }
 0x2a3   :  { %v1164_v4 = vsel %vm13451_vm3, %v10083_v23, %v10057_v16  ;;  %vm13452_vm2 = vcmp.lt.s32.totalorder %v9509_v30, 116  ;;  %v1204_v19 = vrot.slane %v1186_v37, %v9513_v34  ;;  %v1208_v3 = vrot.slane %v1186_v37, %v9515_v36 }
 0x2a4   :  { %1977 = vmatpush1.bf16.msra.mxu1 %v10187_v55  ;;  %v10208_v38 = vpop.permute.xlu0 %1255  ;;  %v10211_v35 = vpack.c.bf16 %v1111_v61, %v1109_v40  ;;  %v1126_v24 = vpop.permute.xlu1 %1125  ;;  %v10213_v42 = vpack.c.bf16 %v1112_v10, %v1110_v18  ;;  %v1177_v16 = vmul.f32 %v1170_v8, %v1162_v53  ;;  %v1178_v23 = vmul.f32 %v1174_v20, %v1164_v4 }
 0x2a5   :  { %v1129_v6 = vsel %vm13450_vm4, %v9954_v32, %v1126_v24  ;;  %v1131_v57 = vsel %vm13450_vm4, %v1126_v24, %v9954_v32  ;;  %vm13503_vm4 = vcmp.lt.s32.totalorder %v9509_v30, 115 }
 0x2a6   :  { %v1145_v40 = vmul.f32 %v1136_v7, %v1129_v6  ;;  %v1146_v9 = vmul.f32 %v1140_v12, %v1131_v57  ;;  %1978 = vmatprep.subr.bf16.mxu1 %v10213_v42  ;;  %v1220_v7 = vld [vmem:[#allocation8 + $0x34] ss:$8 sm:$0x3] }
 0x2a7   :  { %1912 = vmatmul.mubr.bf16.gmra.mrb[48].mxu1 %v8542_v14  ;;  %v1196_v14 = vsel %vm13452_vm2, %v10108_v5, %v10132_v48  ;;  %v1238_v53 = vrot.slane %v1220_v7, %v9513_v34  ;;  %v1242_v37 = vrot.slane %v1220_v7, %v9515_v36  ;;  %v1232_v7 = vsel %vm13503_vm4, %v10183_v26, %v10157_v31 }
 0x2a8   :  { %1979 = vmatpush1.bf16.msra.mxu1 %v10211_v35  ;;  %1921 = vmatprep.mubr.bf16.mxu1 %v8543_v47  ;;  %v10234_v32 = vpack.c.bf16 %v1145_v40, %v1143_v54  ;;  %v1260_v18 = vpop.permute.xlu0 %1259  ;;  %v1160_v27 = vpop.permute.xlu1 %1159  ;;  %v10236_v61 = vpack.c.bf16 %v1146_v9, %v1144_v1  ;;  %v1198_v47 = vsel %vm13452_vm2, %v10132_v48, %v10108_v5  ;;  %v8545_v1 = vld [vmem:[#allocation6 + $0x180] ss:$16 sps:$4 sm:$0xff]  }
 0x2a9   :  { %v1163_v12 = vsel %vm13451_vm3, %v9958_v59, %v1160_v27  ;;  %v1165_v10 = vsel %vm13451_vm3, %v1160_v27, %v9958_v59  ;;  %v8546_v59 = vld [vmem:[#allocation6 + $0x1a4] ss:$16 sps:$4 sm:$0xff]   ;;  %v1211_v5 = vmul.f32 %v1204_v19, %v1196_v14  ;;  %v1212_v48 = vmul.f32 %v1208_v3, %v1198_v47 }
 0x2aa   :  { %v1179_v54 = vmul.f32 %v1170_v8, %v1163_v12  ;;  %v1180_v24 = vmul.f32 %v1174_v20, %v1165_v10  ;;  %1980 = vmatprep.subr.bf16.mxu1 %v10236_v61  ;;  %v1254_v8 = vld [vmem:[#allocation8 + $0x35] ss:$8 sm:$0x3]  ;;  %v1230_v9 = vsel %vm13503_vm4, %v10157_v31, %v10183_v26  ;;  %vm13500_vm3 = vcmp.lt.s32.totalorder %v9509_v30, 114 }
 0x2ab   :  { %v1276_v14 = vrot.slane %v1254_v8, %v9515_v36  ;;  %v1288_v47 = vld [vmem:[#allocation8 + $0x36] ss:$8 sm:$0x3] }
 0x2ac   :  { %1981 = vmatpush1.bf16.msra.mxu1 %v10234_v32  ;;  %v10257_v6 = vpack.c.bf16 %v1179_v54, %v1177_v16  ;;  %v1194_v57 = vpop.permute.xlu1 %1193  ;;  %v10259_v4 = vpack.c.bf16 %v1180_v24, %v1178_v23  ;;  %v1290_v27 = vpop.permute.xlu0 %1289  ;;  %v1246_v54 = vmul.f32 %v1242_v37, %v1232_v7  ;;  %v1264_v24 = vsel %vm13500_vm3, %v10208_v38, %v1260_v18 }
 0x2ad   :  { %v1197_v20 = vsel %vm13452_vm2, %v9962_v52, %v1194_v57  ;;  %v1199_v40 = vsel %vm13452_vm2, %v1194_v57, %v9962_v52  ;;  %v1272_v52 = vrot.slane %v1254_v8, %v9513_v34  ;;  %v8548_v57 = vld [vmem:[#allocation6 + $0x1a0] ss:$16 sps:$4 sm:$0xff]   ;;  %vm13474_vm2 = vcmp.lt.s32.totalorder %v9509_v30, 113 }
 0x2ae   :  { %v1213_v16 = vmul.f32 %v1204_v19, %v1197_v20  ;;  %v1214_v23 = vmul.f32 %v1208_v3, %v1199_v40  ;;  %1982 = vmatprep.subr.bf16.mxu1 %v10259_v4  ;;  %v1245_v3 = vmul.f32 %v1238_v53, %v1230_v9  ;;  %v1310_v9 = vrot.slane %v1288_v47, %v9515_v36 }
 0x2af   :  { %1922 = vmatmul.mubr.bf16.gmra.mrb[52].mxu1 %v8545_v1 }
 0x2b0   :  { %1983 = vmatpush1.bf16.msra.mxu1 %v10257_v6  ;;  %1931 = vmatprep.mubr.bf16.mxu1 %v8546_v59  ;;  %v10279_v12 = vpack.c.bf16 %v1213_v16, %v1211_v5  ;;  %v10281_v19 = vpack.c.bf16 %v1214_v23, %v1212_v48  ;;  %v1266_v5 = vsel %vm13500_vm3, %v1260_v18, %v10208_v38  ;;  %v8549_v48 = vld [vmem:[#allocation6 + $0x1c4] ss:$16 sps:$4 sm:$0xff]   ;;  %v1294_v8 = vpop.permute.xlu0 %1293 }
 0x2b1   :  { %v1228_v10 = vpop.permute.xlu1 %1227  ;;  %v1280_v16 = vmul.f32 %v1276_v14, %v1266_v5 }
 0x2b2   :  { %v1231_v31 = vsel %vm13503_vm4, %v9966_v21, %v1228_v10  ;;  %v1233_v26 = vsel %vm13503_vm4, %v1228_v10, %v9966_v21  ;;  %1984 = vmatprep.subr.bf16.mxu1 %v10281_v19  ;;  %v1306_v21 = vrot.slane %v1288_v47, %v9513_v34  ;;  %v1298_v10 = vsel %vm13474_vm2, %v1290_v27, %v1294_v8 }
 0x2b3   :  { %v1247_v1 = vmul.f32 %v1238_v53, %v1231_v31  ;;  %v1248_v59 = vmul.f32 %v1242_v37, %v1233_v26  ;;  %v1279_v37 = vmul.f32 %v1272_v52, %v1264_v24  ;;  %vm2198_vm4 = vcmp.lt.s32.totalorder %v9509_v30, 96 }
 0x2b4   :  { %1985 = vmatpush1.bf16.msra.mxu1 %v10279_v12 }
 0x2b5   :  { %v10300_v20 = vpack.c.bf16 %v1247_v1, %v1245_v3  ;;  %v1262_v40 = vpop.permute.xlu1 %1261  ;;  %v10302_v53 = vpack.c.bf16 %v1248_v59, %v1246_v54  ;;  %v1300_v3 = vsel %vm13474_vm2, %v1294_v8, %v1290_v27  ;;  %v8551_v1 = vld [vmem:[#allocation6 + $0x1c0] ss:$16 sps:$4 sm:$0xff]   ;;  %v8552_v59 = vld [vmem:[#allocation6 + $0x1e4] ss:$16 sps:$4 sm:$0xff]   ;;  %v8555_v8 = vld [vmem:[#allocation6 + $0x8] ss:$16 sps:$4 sm:$0xff]  }
 0x2b6   :  { %v1265_v38 = vsel %vm13500_vm3, %v9970_v33, %v1262_v40  ;;  %v1267_v18 = vsel %vm13500_vm3, %v1262_v40, %v9970_v33  ;;  %v1314_v54 = vmul.f32 %v1310_v9, %v1300_v3  ;;  %v8558_v40 = vld [vmem:[#allocation6 + $0x2c] ss:$16 sps:$4 sm:$0xff]   ;;  %vm2164_vm3 = vcmp.lt.s32.totalorder %v9509_v30, 112 }
 0x2b7   :  { %v1281_v23 = vmul.f32 %v1272_v52, %v1265_v38  ;;  %v1282_v7 = vmul.f32 %v1276_v14, %v1267_v18  ;;  %1932 = vmatmul.mubr.bf16.gmra.mrb[56].mxu1 %v8548_v57  ;;  %1986 = vmatprep.subr.bf16.mxu1 %v10302_v53  ;;  %v1313_v14 = vmul.f32 %v1306_v21, %v1298_v10  ;;  %v8564_v38 = vld [vmem:[#allocation6 + $0x6c] ss:$16 sps:$4 sm:$0xff]   ;;  %v8566_v18 = vld [vmem:[#allocation6 + $0x68] ss:$16 sps:$4 sm:$0xff]  }
 0x2b8   :  { %1987 = vmatpush1.bf16.msra.mxu1 %v10300_v20  ;;  %1941 = vmatprep.mubr.bf16.mxu1 %v8549_v48  ;;  %v8554_v48 = vld [vmem:[#allocation6 + $0x1e0] ss:$16 sps:$4 sm:$0xff]   ;;  %v8570_v10 = vld [vmem:[#allocation6 + $0xac] ss:$16 sps:$4 sm:$0xff]  }
 0x2b9   :  { %v10317_v47 = vpack.c.bf16 %v1281_v23, %v1279_v37  ;;  %v1296_v31 = vpop.permute.xlu1 %1295  ;;  %v10319_v26 = vpack.c.bf16 %v1282_v7, %v1280_v16  ;;  %v8560_v37 = vld [vmem:[#allocation6 + $0x28] ss:$16 sps:$4 sm:$0xff]   ;;  %v8567_v16 = vld [vmem:[#allocation6 + $0x8c] ss:$16 sps:$4 sm:$0xff]   ;;  %v13601_v7 = vld [vmem:[#allocation24_spill] sm:$0xff] }
 0x2ba   :  { %v1299_v33 = vsel %vm13474_vm2, %v9975_v0, %v1296_v31  ;;  %v1301_v52 = vsel %vm13474_vm2, %v1296_v31, %v9975_v0  ;;  %v13465_v0 = vmov 1065369472   ;;  %v8569_v23 = vld [vmem:[#allocation6 + $0x88] ss:$16 sps:$4 sm:$0xff]   ;;  %v13603_v31 = vld [vmem:[#allocation26_spill] sm:$0xff]  ;;  %vm13545_vm2 = vcmp.lt.s32.totalorder %v9509_v30, 64 }
 0x2bb   :  { %v1315_v24 = vmul.f32 %v1306_v21, %v1299_v33  ;;  %v1316_v27 = vmul.f32 %v1310_v9, %v1301_v52  ;;  %1988 = vmatprep.subr.bf16.mxu1 %v10319_v26  ;;  %v8557_v21 = vld [vmem:[#allocation6 + $0xc] ss:$16 sps:$4 sm:$0xff]   ;;  %v8572_v52 = vld [vmem:[#allocation6 + $0xa8] ss:$16 sps:$4 sm:$0xff]  }
 0x2bc   :  { %1989 = vmatpush1.bf16.msra.mxu1 %v10317_v47  ;;  %v8561_v9 = vld [vmem:[#allocation6 + $0x4c] ss:$16 sps:$4 sm:$0xff]  }
 0x2bd   :  { %v10329_v57 = vpack.c.bf16 %v1315_v24, %v1313_v14  ;;  %v10331_v5 = vpack.c.bf16 %v1316_v27, %v1314_v54  ;;  %v13602_v3 = vld [vmem:[#allocation27_spill] sm:$0xff]  ;;  %v13604_v33 = vld [vmem:[#allocation29_spill] sm:$0xff]  ;;  %v13605_v14 = vld [vmem:[#allocation28_spill] sm:$0xff] }
 0x2be   :  { %v8573_v54 = vld [vmem:[#allocation6 + $0xcc] ss:$16 sps:$4 sm:$0xff]   ;;  %v13607_v27 = vld [vmem:[#allocation30_spill] sm:$0xff] }
 0x2bf   :  { %1942 = vmatmul.mubr.bf16.gmra.mrb[60].mxu1 %v8551_v1  ;;  %1990 = vmatprep.subr.bf16.mxu1 %v10331_v5  ;;  %v13606_v24 = vld [vmem:[#allocation31_spill] sm:$0xff]  ;;  %v13608_v1 = vld [vmem:[#allocation33_spill] sm:$0xff] }
 0x2c0   :  { %1991 = vmatpush1.bf16.msra.mxu1 %v10329_v57  ;;  %1951 = vmatprep.mubr.bf16.mxu1 %v8552_v59  ;;  %v8575_v59 = vld [vmem:[#allocation6 + $0xc8] ss:$16 sps:$4 sm:$0xff]  }
 0x2c1   :  { %1992 = vmatprep.subr.bf16.mxu1 %v13465_v0 }
 0x2c4   :  { %1993 = vmatpush1.bf16.msra.mxu1 %v13465_v0 }
 0x2c5   :  { %3032 = vmatprep.subr.bf16.mxu1 %v9559_v63  ;;  %v8563_v63 = vld [vmem:[#allocation6 + $0x48] ss:$16 sps:$4 sm:$0xff]  }
 0x2c7   :  { %1952 = vmatmul.mubr.bf16.gmra.mrb[64].mxu1 %v8554_v48  ;;  %v13609_v48 = vld [vmem:[#allocation32_spill] sm:$0xff] }
 0x2c8   :  { %1994 = vmatprep.mubr.bf16.mxu1 %v8557_v21  ;;  %v8576_v21 = vld [vmem:[#allocation6 + $0xec] ss:$16 sps:$4 sm:$0xff]  }
 0x2cf   :  { %1995 = vmatmul.mubr.bf16.vlgmr.msra.gmra.mrb[4].mxu1 %v8555_v8  ;;  %v13610_v8 = vld [vmem:[#allocation35_spill] sm:$0xff] }
 0x2d0   :  { %3033 = vmatpush1.bf16.msra.mxu1 %v9557_v29  ;;  %2004 = vmatprep.mubr.bf16.mxu1 %v8558_v40  ;;  %v13594_v29 = vld [vmem:[#allocation19_spill] sm:$0xff]  ;;  %v13611_v40 = vld [vmem:[#allocation34_spill] sm:$0xff] }
 0x2d1   :  { %3034 = vmatprep.subr.bf16.mxu1 %v9584_v49  ;;  %v13595_v49 = vld [vmem:[#allocation18_spill] sm:$0xff] }
 0x2d4   :  { %3035 = vmatpush1.bf16.msra.mxu1 %v9581_v44  ;;  %v13596_v44 = vld [vmem:[#allocation21_spill] sm:$0xff] }
 0x2d5   :  { %3036 = vmatprep.subr.bf16.mxu1 %v9609_v25  ;;  %v13597_v25 = vld [vmem:[#allocation20_spill] sm:$0xff] }
 0x2d7   :  { %2005 = vmatmul.mubr.bf16.gmra.mrb[8].mxu1 %v8560_v37  ;;  %v13612_v37 = vld [vmem:[#allocation37_spill] sm:$0xff] }
 0x2d8   :  { %3037 = vmatpush1.bf16.msra.mxu1 %v9606_v58  ;;  %2014 = vmatprep.mubr.bf16.mxu1 %v8561_v9  ;;  %v13598_v58 = vld [vmem:[#allocation23_spill] sm:$0xff] }
 0x2d9   :  { %3038 = vmatprep.subr.bf16.mxu1 %v9634_v50  ;;  %v13599_v50 = vld [vmem:[#allocation22_spill] sm:$0xff]  ;;  %v8578_v9 = vld [vmem:[#allocation6 + $0xe8] ss:$16 sps:$4 sm:$0xff]  }
 0x2dc   :  { %3039 = vmatpush1.bf16.msra.mxu1 %v9631_v43  ;;  %v13600_v43 = vld [vmem:[#allocation25_spill] sm:$0xff] }
 0x2dd   :  { %3040 = vmatprep.subr.bf16.mxu1 %v13594_v29  ;;  %v13614_v29 = vld [vmem:[#allocation39_spill] sm:$0xff] }
 0x2df   :  { %2015 = vmatmul.mubr.bf16.gmra.mrb[12].mxu1 %v8563_v63  ;;  %v13613_v63 = vld [vmem:[#allocation36_spill] sm:$0xff] }
 0x2e0   :  { %3041 = vmatpush1.bf16.msra.mxu1 %v13595_v49  ;;  %2024 = vmatprep.mubr.bf16.mxu1 %v8564_v38  ;;  %v8579_v38 = vld [vmem:[#allocation6 + $0x10c] ss:$16 sps:$4 sm:$0xff]   ;;  %v13615_v49 = vld [vmem:[#allocation38_spill] sm:$0xff] }
 0x2e1   :  { %3042 = vmatprep.subr.bf16.mxu1 %v13596_v44  ;;  %v13616_v44 = vld [vmem:[#allocation40_spill] sm:$0xff] }
 0x2e4   :  { %3043 = vmatpush1.bf16.msra.mxu1 %v13597_v25  ;;  %v13617_v25 = vld [vmem:[#allocation41_spill] sm:$0xff] }
 0x2e5   :  { %3044 = vmatprep.subr.bf16.mxu1 %v13598_v58  ;;  %v8584_v58 = vld [vmem:[#allocation6 + $0x128] ss:$16 sps:$4 sm:$0xff]  }
 0x2e7   :  { %2025 = vmatmul.mubr.bf16.gmra.mrb[16].mxu1 %v8566_v18  ;;  %v8581_v18 = vld [vmem:[#allocation6 + $0x108] ss:$16 sps:$4 sm:$0xff]  }
 0x2e8   :  { %3045 = vmatpush1.bf16.msra.mxu1 %v13599_v50  ;;  %2034 = vmatprep.mubr.bf16.mxu1 %v8567_v16  ;;  %v8582_v16 = vld [vmem:[#allocation6 + $0x12c] ss:$16 sps:$4 sm:$0xff]  }
 0x2e9   :  { %3046 = vmatprep.subr.bf16.mxu1 %v13600_v43  ;;  %v8585_v50 = vld [vmem:[#allocation6 + $0x14c] ss:$16 sps:$4 sm:$0xff]   ;;  %v8587_v43 = vld [vmem:[#allocation6 + $0x148] ss:$16 sps:$4 sm:$0xff]  }
 0x2ec   :  { %3047 = vmatpush1.bf16.msra.mxu1 %v13601_v7  ;;  %v8590_v7 = vld [vmem:[#allocation6 + $0x168] ss:$16 sps:$4 sm:$0xff]  }
 0x2ed   :  { %3048 = vmatprep.subr.bf16.mxu1 %v13602_v3  ;;  %v8593_v3 = vld [vmem:[#allocation6 + $0x188] ss:$16 sps:$4 sm:$0xff]  }
 0x2ef   :  { %2035 = vmatmul.mubr.bf16.gmra.mrb[20].mxu1 %v8569_v23  ;;  %v8588_v23 = vld [vmem:[#allocation6 + $0x16c] ss:$16 sps:$4 sm:$0xff]  }
 0x2f0   :  { %3049 = vmatpush1.bf16.msra.mxu1 %v13603_v31  ;;  %2044 = vmatprep.mubr.bf16.mxu1 %v8570_v10  ;;  %v8591_v10 = vld [vmem:[#allocation6 + $0x18c] ss:$16 sps:$4 sm:$0xff]  }
 0x2f1   :  { %3050 = vmatprep.subr.bf16.mxu1 %v13604_v33  ;;  %v8594_v31 = vld [vmem:[#allocation6 + $0x1ac] ss:$16 sps:$4 sm:$0xff]   ;;  %v8596_v33 = vld [vmem:[#allocation6 + $0x1a8] ss:$16 sps:$4 sm:$0xff]  }
 0x2f4   :  { %3051 = vmatpush1.bf16.msra.mxu1 %v13605_v14  ;;  %v8600_v14 = vld [vmem:[#allocation6 + $0x1ec] ss:$16 sps:$4 sm:$0xff]  }
 0x2f5   :  { %3052 = vmatprep.subr.bf16.mxu1 %v13606_v24  ;;  %v8605_v24 = vld [vmem:[#allocation6 + $0x204] ss:$16 sps:$4 sm:$0xff]  }
 0x2f7   :  { %2045 = vmatmul.mubr.bf16.gmra.mrb[24].mxu1 %v8572_v52  ;;  %v8599_v52 = vld [vmem:[#allocation6 + $0x1c8] ss:$16 sps:$4 sm:$0xff]  }
 0x2f8   :  { %3053 = vmatpush1.bf16.msra.mxu1 %v13607_v27  ;;  %2054 = vmatprep.mubr.bf16.mxu1 %v8573_v54  ;;  %v8602_v54 = vld [vmem:[#allocation6 + $0x1e8] ss:$16 sps:$4 sm:$0xff]   ;;  %v8603_v27 = vld [vmem:[#allocation6 + $0x200] ss:$16 sps:$4 sm:$0xff]  }
 0x2f9   :  { %3054 = vmatprep.subr.bf16.mxu1 %v13608_v1  ;;  %v8606_v1 = vld [vmem:[#allocation6 + $0x224] ss:$16 sps:$4 sm:$0xff]  }
 0x2fc   :  { %3055 = vmatpush1.bf16.msra.mxu1 %v13609_v48  ;;  %v8609_v48 = vld [vmem:[#allocation6 + $0x244] ss:$16 sps:$4 sm:$0xff]  }
 0x2fd   :  { %3056 = vmatprep.subr.bf16.mxu1 %v13610_v8  ;;  %v8612_v8 = vld [vmem:[#allocation6 + $0x264] ss:$16 sps:$4 sm:$0xff]  }
 0x2ff   :  { %2055 = vmatmul.mubr.bf16.gmra.mrb[28].mxu1 %v8575_v59  ;;  %v8608_v59 = vld [vmem:[#allocation6 + $0x220] ss:$16 sps:$4 sm:$0xff]  }
 0x300   :  { %3057 = vmatpush1.bf16.msra.mxu1 %v13611_v40  ;;  %2064 = vmatprep.mubr.bf16.mxu1 %v8576_v21  ;;  %v8611_v21 = vld [vmem:[#allocation6 + $0x240] ss:$16 sps:$4 sm:$0xff]  }
 0x301   :  { %3058 = vmatprep.subr.bf16.mxu1 %v13612_v37  ;;  %v8644_v37 = vld [vmem:[#allocation6 + $0x3a0] ss:$16 sps:$4 sm:$0xff]  }
 0x304   :  { %3059 = vmatpush1.bf16.msra.mxu1 %v13613_v63  ;;  %v8645_v63 = vld [vmem:[#allocation6 + $0x3c4] ss:$16 sps:$4 sm:$0xff]  }
 0x305   :  { %3060 = vmatprep.subr.bf16.mxu1 %v13614_v29 }
 0x307   :  { %2065 = vmatmul.mubr.bf16.gmra.mrb[32].mxu1 %v8578_v9 }
 0x308   :  { %3061 = vmatpush1.bf16.msra.mxu1 %v13615_v49  ;;  %2074 = vmatprep.mubr.bf16.mxu1 %v8579_v38 }
 0x309   :  { %3062 = vmatprep.subr.bf16.mxu1 %v13616_v44  ;;  %v8647_v44 = vld [vmem:[#allocation6 + $0x3c0] ss:$16 sps:$4 sm:$0xff]  }
 0x30c   :  { %3063 = vmatpush1.bf16.msra.mxu1 %v13617_v25  ;;  %v8648_v25 = vld [vmem:[#allocation6 + $0x3e4] ss:$16 sps:$4 sm:$0xff]  }
 0x30d   :  { %3225 = vmatprep.subr.bf16.mxu1 %v10013_v2  ;;  %v8597_v2 = vld [vmem:[#allocation6 + $0x1cc] ss:$16 sps:$4 sm:$0xff]  }
 0x30f   :  { %2075 = vmatmul.mubr.bf16.gmra.mrb[36].mxu1 %v8581_v18 }
 0x310   :  { %2084 = vmatprep.mubr.bf16.mxu1 %v8582_v16 }
 0x317   :  { %2085 = vmatmul.mubr.bf16.gmra.mrb[40].mxu1 %v8584_v58 }
 0x318   :  { %2094 = vmatprep.mubr.bf16.mxu1 %v8585_v50 }
 0x31f   :  { %2095 = vmatmul.mubr.bf16.gmra.mrb[44].mxu1 %v8587_v43  ;;  %v8650_v43 = vld [vmem:[#allocation6 + $0x3e0] ss:$16 sps:$4 sm:$0xff]  }
 0x320   :  { %2104 = vmatprep.mubr.bf16.mxu1 %v8588_v23 }
 0x327   :  { %2105 = vmatmul.mubr.bf16.gmra.mrb[48].mxu1 %v8590_v7  ;;  %v8653_v7 = vld [vmem:[#allocation6 + $0x20c] ss:$16 sps:$4 sm:$0xff]  }
 0x328   :  { %2114 = vmatprep.mubr.bf16.mxu1 %v8591_v10 }
 0x32f   :  { %2115 = vmatmul.mubr.bf16.gmra.mrb[52].mxu1 %v8593_v3 }
 0x330   :  { %2124 = vmatprep.mubr.bf16.mxu1 %v8594_v31 }
 0x337   :  { %2125 = vmatmul.mubr.bf16.gmra.mrb[56].mxu1 %v8596_v33  ;;  %v8651_v33 = vld [vmem:[#allocation6 + $0x208] ss:$16 sps:$4 sm:$0xff]  }
 0x338   :  { %2134 = vmatprep.mubr.bf16.mxu1 %v8597_v2 }
 0x33f   :  { %2135 = vmatmul.mubr.bf16.gmra.mrb[60].mxu1 %v8599_v52  ;;  %v8654_v52 = vld [vmem:[#allocation6 + $0x22c] ss:$16 sps:$4 sm:$0xff]  }
 0x340   :  { %2144 = vmatprep.mubr.bf16.mxu1 %v8600_v14 }
 0x347   :  { %2145 = vmatmul.mubr.bf16.gmra.mrb[64].mxu1 %v8602_v54 }
 0x348   :  { %3064 = vmatprep.mubr.bf16.mxu1 %v8605_v24 }
 0x34f   :  { %3065 = vmatmul.mubr.bf16.vlgmr.msra.gmra.mrb[68].mxu1 %v8603_v27  ;;  %v8656_v27 = vld [vmem:[#allocation6 + $0x228] ss:$16 sps:$4 sm:$0xff]  }
 0x350   :  { %3226 = vmatpush1.bf16.msra.mxu1 %v10011_v28  ;;  %3074 = vmatprep.mubr.bf16.mxu1 %v8606_v1  ;;  %v8614_v28 = vld [vmem:[#allocation6 + $0x260] ss:$16 sps:$4 sm:$0xff]  }
 0x351   :  { %3227 = vmatprep.subr.bf16.mxu1 %v10038_v62  ;;  %v8617_v62 = vld [vmem:[#allocation6 + $0x280] ss:$16 sps:$4 sm:$0xff]  }
 0x354   :  { %3228 = vmatpush1.bf16.msra.mxu1 %v10036_v15  ;;  %v8615_v15 = vld [vmem:[#allocation6 + $0x284] ss:$16 sps:$4 sm:$0xff]  }
 0x355   :  { %3229 = vmatprep.subr.bf16.mxu1 %v10063_v56  ;;  %v8620_v56 = vld [vmem:[#allocation6 + $0x2a0] ss:$16 sps:$4 sm:$0xff]  }
 0x357   :  { %3075 = vmatmul.mubr.bf16.gmra.mrb[72].mxu1 %v8608_v59  ;;  %v8657_v59 = vld [vmem:[#allocation6 + $0x24c] ss:$16 sps:$4 sm:$0xff]  }
 0x358   :  { %3230 = vmatpush1.bf16.msra.mxu1 %v10061_v41  ;;  %3084 = vmatprep.mubr.bf16.mxu1 %v8609_v48  ;;  %v8618_v41 = vld [vmem:[#allocation6 + $0x2a4] ss:$16 sps:$4 sm:$0xff]  }
 0x359   :  { %3231 = vmatprep.subr.bf16.mxu1 %v10089_v11  ;;  %v8623_v11 = vld [vmem:[#allocation6 + $0x2c0] ss:$16 sps:$4 sm:$0xff]  }
 0x35c   :  { %3232 = vmatpush1.bf16.msra.mxu1 %v10087_v22  ;;  %v8621_v22 = vld [vmem:[#allocation6 + $0x2c4] ss:$16 sps:$4 sm:$0xff]  }
 0x35d   :  { %3233 = vmatprep.subr.bf16.mxu1 %v10113_v60  ;;  %v8626_v60 = vld [vmem:[#allocation6 + $0x2e0] ss:$16 sps:$4 sm:$0xff]  }
 0x35f   :  { %3085 = vmatmul.mubr.bf16.gmra.mrb[76].mxu1 %v8611_v21 }
 0x360   :  { %3234 = vmatpush1.bf16.msra.mxu1 %v10111_v39  ;;  %3094 = vmatprep.mubr.bf16.mxu1 %v8612_v8  ;;  %v8624_v39 = vld [vmem:[#allocation6 + $0x2e4] ss:$16 sps:$4 sm:$0xff]  }
 0x361   :  { %3235 = vmatprep.subr.bf16.mxu1 %v10138_v13  ;;  %v8629_v13 = vld [vmem:[#allocation6 + $0x300] ss:$16 sps:$4 sm:$0xff]  }
 0x364   :  { %3236 = vmatpush1.bf16.msra.mxu1 %v10136_v45  ;;  %v8627_v45 = vld [vmem:[#allocation6 + $0x304] ss:$16 sps:$4 sm:$0xff]  }
 0x365   :  { %3237 = vmatprep.subr.bf16.mxu1 %v10163_v17  ;;  %v8632_v17 = vld [vmem:[#allocation6 + $0x320] ss:$16 sps:$4 sm:$0xff]  }
 0x367   :  { %3095 = vmatmul.mubr.bf16.gmra.mrb[80].mxu1 %v8614_v28  ;;  %v8659_v28 = vld [vmem:[#allocation6 + $0x248] ss:$16 sps:$4 sm:$0xff]  }
 0x368   :  { %3238 = vmatpush1.bf16.msra.mxu1 %v10161_v51  ;;  %3104 = vmatprep.mubr.bf16.mxu1 %v8615_v15  ;;  %v8630_v51 = vld [vmem:[#allocation6 + $0x324] ss:$16 sps:$4 sm:$0xff]  }
 0x369   :  { %3239 = vmatprep.subr.bf16.mxu1 %v10189_v46  ;;  %v8635_v46 = vld [vmem:[#allocation6 + $0x340] ss:$16 sps:$4 sm:$0xff]  }
 0x36c   :  { %3240 = vmatpush1.bf16.msra.mxu1 %v10187_v55  ;;  %v8633_v55 = vld [vmem:[#allocation6 + $0x344] ss:$16 sps:$4 sm:$0xff]  }
 0x36d   :  { %3241 = vmatprep.subr.bf16.mxu1 %v10213_v42 }
 0x36f   :  { %3105 = vmatmul.mubr.bf16.gmra.mrb[84].mxu1 %v8617_v62  ;;  %v8660_v62 = vld [vmem:[#allocation6 + $0x26c] ss:$16 sps:$4 sm:$0xff]  }
 0x370   :  { %3242 = vmatpush1.bf16.msra.mxu1 %v10211_v35  ;;  %3114 = vmatprep.mubr.bf16.mxu1 %v8618_v41  ;;  %v8636_v35 = vld [vmem:[#allocation6 + $0x364] ss:$16 sps:$4 sm:$0xff]  }
 0x371   :  { %3243 = vmatprep.subr.bf16.mxu1 %v10236_v61  ;;  %v8638_v61 = vld [vmem:[#allocation6 + $0x360] ss:$16 sps:$4 sm:$0xff]  }
 0x374   :  { %3244 = vmatpush1.bf16.msra.mxu1 %v10234_v32 }
 0x375   :  { %3245 = vmatprep.subr.bf16.mxu1 %v10259_v4  ;;  %v8639_v4 = vld [vmem:[#allocation6 + $0x384] ss:$16 sps:$4 sm:$0xff]  }
 0x377   :  { %3115 = vmatmul.mubr.bf16.gmra.mrb[88].mxu1 %v8620_v56 }
 0x378   :  { %3246 = vmatpush1.bf16.msra.mxu1 %v10257_v6  ;;  %3124 = vmatprep.mubr.bf16.mxu1 %v8621_v22 }
 0x379   :  { %3247 = vmatprep.subr.bf16.mxu1 %v10281_v19 }
 0x37c   :  { %3248 = vmatpush1.bf16.msra.mxu1 %v10279_v12 }
 0x37d   :  { %3249 = vmatprep.subr.bf16.mxu1 %v10302_v53  ;;  %v8641_v53 = vld [vmem:[#allocation6 + $0x380] ss:$16 sps:$4 sm:$0xff]  }
 0x37f   :  { %3125 = vmatmul.mubr.bf16.gmra.mrb[92].mxu1 %v8623_v11  ;;  %v8662_v11 = vld [vmem:[#allocation6 + $0x268] ss:$16 sps:$4 sm:$0xff]  }
 0x380   :  { %3250 = vmatpush1.bf16.msra.mxu1 %v10300_v20  ;;  %3134 = vmatprep.mubr.bf16.mxu1 %v8624_v39 }
 0x381   :  { %3251 = vmatprep.subr.bf16.mxu1 %v10319_v26  ;;  %v8642_v26 = vld [vmem:[#allocation6 + $0x3a4] ss:$16 sps:$4 sm:$0xff]  }
 0x384   :  { %3252 = vmatpush1.bf16.msra.mxu1 %v10317_v47 }
 0x385   :  { %3253 = vmatprep.subr.bf16.mxu1 %v10331_v5 }
 0x387   :  { %3135 = vmatmul.mubr.bf16.gmra.mrb[96].mxu1 %v8626_v60  ;;  %v8663_v60 = vld [vmem:[#allocation6 + $0x28c] ss:$16 sps:$4 sm:$0xff]  }
 0x388   :  { %3254 = vmatpush1.bf16.msra.mxu1 %v10329_v57  ;;  %3144 = vmatprep.mubr.bf16.mxu1 %v8627_v45 }
 0x389   :  { %3255 = vmatprep.subr.bf16.mxu1 %v13465_v0 }
 0x38c   :  { %3256 = vmatpush1.bf16.msra.mxu1 %v13465_v0 }
 0x38f   :  { %3145 = vmatmul.mubr.bf16.gmra.mrb[100].mxu1 %v8629_v13 }
 0x390   :  { %3154 = vmatprep.mubr.bf16.mxu1 %v8630_v51 }
 0x397   :  { %3155 = vmatmul.mubr.bf16.gmra.mrb[104].mxu1 %v8632_v17  ;;  %v8665_v17 = vld [vmem:[#allocation6 + $0x288] ss:$16 sps:$4 sm:$0xff]  }
 0x398   :  { %3164 = vmatprep.mubr.bf16.mxu1 %v8633_v55 }
 0x39f   :  { %3165 = vmatmul.mubr.bf16.gmra.mrb[108].mxu1 %v8635_v46  ;;  %v8666_v46 = vld [vmem:[#allocation6 + $0x2ac] ss:$16 sps:$4 sm:$0xff]  }
 0x3a0   :  { %3174 = vmatprep.mubr.bf16.mxu1 %v8636_v35 }
 0x3a2   :  { %v1996_v42 = vpop.f32.mrb[4].mxu1 }
 0x3a3   :  { %2156 = vrot.lane.b32.xlu0 %v1996_v42, %s9088_s27  ;;  %v1998_v32 = vpop.f32.mrb[5].mxu1 }
 0x3a4   :  { %v2000_v6 = vpop.f32.mrb[6].mxu1 }
 0x3a5   :  { %2158 = vrot.lane.b32.xlu1 %v2000_v6, %s9088_s27  ;;  %v2002_v12 = vpop.f32.mrb[7].mxu1 }
 0x3a7   :  { %3175 = vmatmul.mubr.bf16.gmra.mrb[112].mxu1 %v8638_v61  ;;  %2160 = vrot.lane.b32.xlu0 %v1998_v32, %s9088_s27  ;;  %v8668_v61 = vld [vmem:[#allocation6 + $0x2a8] ss:$16 sps:$4 sm:$0xff]  }
 0x3a8   :  { %3184 = vmatprep.mubr.bf16.mxu1 %v8639_v4  ;;  %v8669_v4 = vld [vmem:[#allocation6 + $0x2cc] ss:$16 sps:$4 sm:$0xff]  }
 0x3a9   :  { %2162 = vrot.lane.b32.xlu1 %v2002_v12, %s9088_s27 }
 0x3aa   :  { %v2006_v19 = vpop.f32.mrb[8].mxu1 }
 0x3ab   :  { %2190 = vrot.lane.b32.xlu0 %v2006_v19, %s9089_s29  ;;  %v2008_v20 = vpop.f32.mrb[9].mxu1 }
 0x3ac   :  { %v2010_v47 = vpop.f32.mrb[10].mxu1 }
 0x3ad   :  { %2192 = vrot.lane.b32.xlu1 %v2010_v47, %s9089_s29  ;;  %v2012_v57 = vpop.f32.mrb[11].mxu1 }
 0x3af   :  { %3185 = vmatmul.mubr.bf16.gmra.mrb[116].mxu1 %v8641_v53  ;;  %2194 = vrot.lane.b32.xlu0 %v2008_v20, %s9089_s29  ;;  %v8671_v53 = vld [vmem:[#allocation6 + $0x2c8] ss:$16 sps:$4 sm:$0xff]  }
 0x3b0   :  { %3194 = vmatprep.mubr.bf16.mxu1 %v8642_v26  ;;  %v8672_v26 = vld [vmem:[#allocation6 + $0x2ec] ss:$16 sps:$4 sm:$0xff]  }
 0x3b1   :  { %2196 = vrot.lane.b32.xlu1 %v2012_v57, %s9089_s29 }
 0x3b2   :  { %v2016_v5 = vpop.f32.mrb[12].mxu1 }
 0x3b3   :  { %2224 = vrot.lane.b32.xlu0 %v2016_v5, %s13542_s5  ;;  %v2018_v40 = vpop.f32.mrb[13].mxu1 }
 0x3b4   :  { %v2020_v9 = vpop.f32.mrb[14].mxu1 }
 0x3b5   :  { %2226 = vrot.lane.b32.xlu1 %v2020_v9, %s13542_s5  ;;  %v2022_v38 = vpop.f32.mrb[15].mxu1 }
 0x3b7   :  { %3195 = vmatmul.mubr.bf16.gmra.mrb[120].mxu1 %v8644_v37  ;;  %2228 = vrot.lane.b32.xlu0 %v2018_v40, %s13542_s5  ;;  %v8674_v37 = vld [vmem:[#allocation6 + $0x2e8] ss:$16 sps:$4 sm:$0xff]  }
 0x3b8   :  { %3204 = vmatprep.mubr.bf16.mxu1 %v8645_v63  ;;  %v8675_v63 = vld [vmem:[#allocation6 + $0x30c] ss:$16 sps:$4 sm:$0xff]  }
 0x3b9   :  { %2230 = vrot.lane.b32.xlu1 %v2022_v38, %s13542_s5 }
 0x3ba   :  { %v2026_v29 = vpop.f32.mrb[16].mxu1 }
 0x3bb   :  { %2258 = vrot.lane.b32.xlu0 %v2026_v29, %s13540_s28  ;;  %v2028_v49 = vpop.f32.mrb[17].mxu1 }
 0x3bc   :  { %v2030_v18 = vpop.f32.mrb[18].mxu1 }
 0x3bd   :  { %2260 = vrot.lane.b32.xlu1 %v2030_v18, %s13540_s28  ;;  %v2032_v16 = vpop.f32.mrb[19].mxu1 }
 0x3bf   :  { %3205 = vmatmul.mubr.bf16.gmra.mrb[124].mxu1 %v8647_v44  ;;  %2262 = vrot.lane.b32.xlu0 %v2028_v49, %s13540_s28  ;;  %v8677_v44 = vld [vmem:[#allocation6 + $0x308] ss:$16 sps:$4 sm:$0xff]  }
 0x3c0   :  { %3214 = vmatprep.mubr.bf16.mxu1 %v8648_v25  ;;  %v8678_v25 = vld [vmem:[#allocation6 + $0x32c] ss:$16 sps:$4 sm:$0xff]  }
 0x3c1   :  { %2264 = vrot.lane.b32.xlu1 %v2032_v16, %s13540_s28 }
 0x3c2   :  { %v2036_v58 = vpop.f32.mrb[20].mxu1 }
 0x3c3   :  { %2292 = vrot.lane.b32.xlu0 %v2036_v58, %s13493_s6  ;;  %v2038_v50 = vpop.f32.mrb[21].mxu1 }
 0x3c4   :  { %v2040_v23 = vpop.f32.mrb[22].mxu1 }
 0x3c5   :  { %2294 = vrot.lane.b32.xlu1 %v2040_v23, %s13493_s6  ;;  %v2042_v10 = vpop.f32.mrb[23].mxu1 }
 0x3c7   :  { %3215 = vmatmul.mubr.bf16.gmra.mrb[64].mxu1 %v8650_v43  ;;  %2296 = vrot.lane.b32.xlu0 %v2038_v50, %s13493_s6  ;;  %v8680_v43 = vld [vmem:[#allocation6 + $0x328] ss:$16 sps:$4 sm:$0xff]  }
 0x3c8   :  { %3257 = vmatprep.mubr.bf16.mxu1 %v8653_v7  ;;  %v8681_v7 = vld [vmem:[#allocation6 + $0x34c] ss:$16 sps:$4 sm:$0xff]  }
 0x3c9   :  { %2298 = vrot.lane.b32.xlu1 %v2042_v10, %s13493_s6 }
 0x3ca   :  { %v2046_v3 = vpop.f32.mrb[24].mxu1 }
 0x3cb   :  { %2326 = vrot.lane.b32.xlu0 %v2046_v3, %s13491_s17  ;;  %v2048_v31 = vpop.f32.mrb[25].mxu1  ;;  %v8683_v3 = vld [vmem:[#allocation6 + $0x348] ss:$16 sps:$4 sm:$0xff]  }
 0x3cc   :  { %v2050_v2 = vpop.f32.mrb[26].mxu1 }
 0x3cd   :  { %2328 = vrot.lane.b32.xlu1 %v2050_v2, %s13491_s17  ;;  %v2052_v14 = vpop.f32.mrb[27].mxu1  ;;  %v8687_v2 = vld [vmem:[#allocation6 + $0x38c] ss:$16 sps:$4 sm:$0xff]  }
 0x3cf   :  { %3258 = vmatmul.mubr.bf16.vlgmr.msra.gmra.mrb[68].mxu1 %v8651_v33  ;;  %2330 = vrot.lane.b32.xlu0 %v2048_v31, %s13491_s17  ;;  %v8684_v31 = vld [vmem:[#allocation6 + $0x36c] ss:$16 sps:$4 sm:$0xff]   ;;  %v8686_v33 = vld [vmem:[#allocation6 + $0x368] ss:$16 sps:$4 sm:$0xff]  }
 0x3d0   :  { %3267 = vmatprep.mubr.bf16.mxu1 %v8654_v52  ;;  %v8689_v52 = vld [vmem:[#allocation6 + $0x388] ss:$16 sps:$4 sm:$0xff]  }
 0x3d1   :  { %2332 = vrot.lane.b32.xlu1 %v2052_v14, %s13491_s17  ;;  %v8690_v14 = vld [vmem:[#allocation6 + $0x3ac] ss:$16 sps:$4 sm:$0xff]  }
 0x3d2   :  { %v2056_v54 = vpop.f32.mrb[28].mxu1 }
 0x3d3   :  { %2360 = vrot.lane.b32.xlu0 %v2056_v54, %s13538_s18  ;;  %v2058_v24 = vpop.f32.mrb[29].mxu1  ;;  %v8692_v54 = vld [vmem:[#allocation6 + $0x3a8] ss:$16 sps:$4 sm:$0xff]  }
 0x3d4   :  { %v2060_v1 = vpop.f32.mrb[30].mxu1 }
 0x3d5   :  { %2362 = vrot.lane.b32.xlu1 %v2060_v1, %s13538_s18  ;;  %v2062_v48 = vpop.f32.mrb[31].mxu1  ;;  %v8696_v1 = vld [vmem:[#allocation6 + $0x3ec] ss:$16 sps:$4 sm:$0xff]  }
 0x3d7   :  { %3268 = vmatmul.mubr.bf16.gmra.mrb[72].mxu1 %v8656_v27  ;;  %2364 = vrot.lane.b32.xlu0 %v2058_v24, %s13538_s18  ;;  %v8693_v24 = vld [vmem:[#allocation6 + $0x3cc] ss:$16 sps:$4 sm:$0xff]   ;;  %v8695_v27 = vld [vmem:[#allocation6 + $0x3c8] ss:$16 sps:$4 sm:$0xff]  }
 0x3d8   :  { %3277 = vmatprep.mubr.bf16.mxu1 %v8657_v59  ;;  %v8698_v59 = vld [vmem:[#allocation6 + $0x3e8] ss:$16 sps:$4 sm:$0xff]  }
 0x3d9   :  { %2366 = vrot.lane.b32.xlu1 %v2062_v48, %s13538_s18  ;;  %v13618_v48 = vmov 0.0  }
 0x3da   :  { %v10429_v21 = vpop.f32.mrb[32].mxu1 }
 0x3db   :  { %v10431_v8 = vpop.f32.mrb[33].mxu1 }
 0x3dc   :  { %v10433_v15 = vpop.f32.mrb[34].mxu1 }
 0x3dd   :  { %v10435_v41 = vpop.f32.mrb[35].mxu1 }
 0x3df   :  { %3278 = vmatmul.mubr.bf16.gmra.mrb[76].mxu1 %v8659_v28 }
 0x3e0   :  { %3287 = vmatprep.mubr.bf16.mxu1 %v8660_v62 }
 0x3e2   :  { %v2076_v56 = vpop.f32.mrb[36].mxu1 }
 0x3e3   :  { %2415 = vrot.lane.b32.xlu0 %v2076_v56, %s9088_s27  ;;  %v2078_v22 = vpop.f32.mrb[37].mxu1 }
 0x3e4   :  { %v2080_v39 = vpop.f32.mrb[38].mxu1 }
 0x3e5   :  { %2417 = vrot.lane.b32.xlu1 %v2080_v39, %s9088_s27  ;;  %v2082_v45 = vpop.f32.mrb[39].mxu1 }
 0x3e7   :  { %3288 = vmatmul.mubr.bf16.gmra.mrb[80].mxu1 %v8662_v11  ;;  %2419 = vrot.lane.b32.xlu0 %v2078_v22, %s9088_s27 }
 0x3e8   :  { %3297 = vmatprep.mubr.bf16.mxu1 %v8663_v60 }
 0x3e9   :  { %2421 = vrot.lane.b32.xlu1 %v2082_v45, %s9088_s27 }
 0x3ea   :  { %v2086_v13 = vpop.f32.mrb[40].mxu1 }
 0x3eb   :  { %2448 = vrot.lane.b32.xlu0 %v2086_v13, %s9089_s29  ;;  %v2088_v51 = vpop.f32.mrb[41].mxu1 }
 0x3ec   :  { %v2090_v55 = vpop.f32.mrb[42].mxu1 }
 0x3ed   :  { %2450 = vrot.lane.b32.xlu1 %v2090_v55, %s9089_s29  ;;  %v2092_v35 = vpop.f32.mrb[43].mxu1 }
 0x3ef   :  { %3298 = vmatmul.mubr.bf16.gmra.mrb[84].mxu1 %v8665_v17  ;;  %2452 = vrot.lane.b32.xlu0 %v2088_v51, %s9089_s29 }
 0x3f0   :  { %3307 = vmatprep.mubr.bf16.mxu1 %v8666_v46 }
 0x3f1   :  { %2454 = vrot.lane.b32.xlu1 %v2092_v35, %s9089_s29 }
 0x3f2   :  { %v2096_v42 = vpop.f32.mrb[44].mxu1 }
 0x3f3   :  { %2481 = vrot.lane.b32.xlu0 %v2096_v42, %s13542_s5  ;;  %v2098_v32 = vpop.f32.mrb[45].mxu1 }
 0x3f4   :  { %v2100_v6 = vpop.f32.mrb[46].mxu1 }
 0x3f5   :  { %2483 = vrot.lane.b32.xlu1 %v2100_v6, %s13542_s5  ;;  %v2102_v12 = vpop.f32.mrb[47].mxu1 }
 0x3f7   :  { %3308 = vmatmul.mubr.bf16.gmra.mrb[88].mxu1 %v8668_v61  ;;  %2485 = vrot.lane.b32.xlu0 %v2098_v32, %s13542_s5 }
 0x3f8   :  { %3317 = vmatprep.mubr.bf16.mxu1 %v8669_v4 }
 0x3f9   :  { %2487 = vrot.lane.b32.xlu1 %v2102_v12, %s13542_s5 }
 0x3fa   :  { %v2106_v19 = vpop.f32.mrb[48].mxu1 }
 0x3fb   :  { %2514 = vrot.lane.b32.xlu0 %v2106_v19, %s13540_s28  ;;  %v2108_v20 = vpop.f32.mrb[49].mxu1 }
 0x3fc   :  { %v2110_v47 = vpop.f32.mrb[50].mxu1 }
 0x3fd   :  { %2516 = vrot.lane.b32.xlu1 %v2110_v47, %s13540_s28  ;;  %v2112_v57 = vpop.f32.mrb[51].mxu1 }
 0x3ff   :  { %3318 = vmatmul.mubr.bf16.gmra.mrb[92].mxu1 %v8671_v53  ;;  %2518 = vrot.lane.b32.xlu0 %v2108_v20, %s13540_s28 }
 0x400   :  { %3327 = vmatprep.mubr.bf16.mxu1 %v8672_v26 }
 0x401   :  { %2520 = vrot.lane.b32.xlu1 %v2112_v57, %s13540_s28 }
 0x402   :  { %v2116_v5 = vpop.f32.mrb[52].mxu1 }
 0x403   :  { %2547 = vrot.lane.b32.xlu0 %v2116_v5, %s13493_s6  ;;  %v2118_v40 = vpop.f32.mrb[53].mxu1 }
 0x404   :  { %v2120_v9 = vpop.f32.mrb[54].mxu1 }
 0x405   :  { %2549 = vrot.lane.b32.xlu1 %v2120_v9, %s13493_s6  ;;  %v2122_v38 = vpop.f32.mrb[55].mxu1 }
 0x407   :  { %3328 = vmatmul.mubr.bf16.gmra.mrb[96].mxu1 %v8674_v37  ;;  %2551 = vrot.lane.b32.xlu0 %v2118_v40, %s13493_s6 }
 0x408   :  { %3337 = vmatprep.mubr.bf16.mxu1 %v8675_v63 }
 0x409   :  { %2553 = vrot.lane.b32.xlu1 %v2122_v38, %s13493_s6 }
 0x40a   :  { %v2126_v29 = vpop.f32.mrb[56].mxu1 }
 0x40b   :  { %2580 = vrot.lane.b32.xlu0 %v2126_v29, %s13491_s17  ;;  %v2128_v49 = vpop.f32.mrb[57].mxu1 }
 0x40c   :  { %v2130_v18 = vpop.f32.mrb[58].mxu1 }
 0x40d   :  { %2582 = vrot.lane.b32.xlu1 %v2130_v18, %s13491_s17  ;;  %v2132_v16 = vpop.f32.mrb[59].mxu1 }
 0x40f   :  { %3338 = vmatmul.mubr.bf16.gmra.mrb[100].mxu1 %v8677_v44  ;;  %2584 = vrot.lane.b32.xlu0 %v2128_v49, %s13491_s17 }
 0x410   :  { %3347 = vmatprep.mubr.bf16.mxu1 %v8678_v25 }
 0x411   :  { %2586 = vrot.lane.b32.xlu1 %v2132_v16, %s13491_s17 }
 0x412   :  { %v2136_v58 = vpop.f32.mrb[60].mxu1 }
 0x413   :  { %2613 = vrot.lane.b32.xlu0 %v2136_v58, %s13538_s18  ;;  %v2138_v50 = vpop.f32.mrb[61].mxu1 }
 0x414   :  { %v2140_v23 = vpop.f32.mrb[62].mxu1 }
 0x415   :  { %2615 = vrot.lane.b32.xlu1 %v2140_v23, %s13538_s18  ;;  %v2142_v10 = vpop.f32.mrb[63].mxu1  ;;  %v10466_v28 = vpop.permute.xlu0 %2156 }
 0x417   :  { %3348 = vmatmul.mubr.bf16.gmra.mrb[104].mxu1 %v8680_v43  ;;  %2617 = vrot.lane.b32.xlu0 %v2138_v50, %s13538_s18  ;;  %v10468_v62 = vpop.permute.xlu1 %2158 }
 0x418   :  { %3357 = vmatprep.mubr.bf16.mxu1 %v8681_v7 }
 0x419   :  { %2619 = vrot.lane.b32.xlu1 %v2142_v10, %s13538_s18  ;;  %v10470_v56 = vpop.permute.xlu0 %2160 }
 0x41b   :  { %v10472_v22 = vpop.permute.xlu1 %2162 }
 0x41d   :  { %v10474_v11 = vpop.permute.xlu0 %2190 }
 0x41f   :  { %3358 = vmatmul.mubr.bf16.gmra.mrb[108].mxu1 %v8683_v3  ;;  %v10476_v39 = vpop.permute.xlu1 %2192 }
 0x420   :  { %3367 = vmatprep.mubr.bf16.mxu1 %v8684_v31 }
 0x421   :  { %v10478_v60 = vpop.permute.xlu0 %2194 }
 0x423   :  { %v10480_v45 = vpop.permute.xlu1 %2196 }
 0x425   :  { %v10482_v13 = vpop.permute.xlu0 %2224 }
 0x427   :  { %3368 = vmatmul.mubr.bf16.gmra.mrb[112].mxu1 %v8686_v33  ;;  %v10484_v51 = vpop.permute.xlu1 %2226 }
 0x428   :  { %3377 = vmatprep.mubr.bf16.mxu1 %v8687_v2 }
 0x429   :  { %v10486_v17 = vpop.permute.xlu0 %2228 }
 0x42b   :  { %v10488_v55 = vpop.permute.xlu1 %2230 }
 0x42d   :  { %v10490_v46 = vpop.permute.xlu0 %2258 }
 0x42f   :  { %3378 = vmatmul.mubr.bf16.gmra.mrb[116].mxu1 %v8689_v52  ;;  %v10492_v35 = vpop.permute.xlu1 %2260 }
 0x430   :  { %3387 = vmatprep.mubr.bf16.mxu1 %v8690_v14 }
 0x431   :  { %v10494_v42 = vpop.permute.xlu0 %2262 }
 0x433   :  { %v10496_v32 = vpop.permute.xlu1 %2264 }
 0x435   :  { %v10498_v61 = vpop.permute.xlu0 %2292 }
 0x437   :  { %3388 = vmatmul.mubr.bf16.gmra.mrb[120].mxu1 %v8692_v54  ;;  %v10500_v4 = vpop.permute.xlu1 %2294 }
 0x438   :  { %3397 = vmatprep.mubr.bf16.mxu1 %v8693_v24 }
 0x439   :  { %v10504_v53 = vpop.permute.xlu0 %2296 }
 0x43b   :  { %v10507_v47 = vpop.permute.xlu1 %2298 }
 0x43d   :  { %v10511_v40 = vpop.permute.xlu0 %2326 }
 0x43f   :  { %3398 = vmatmul.mubr.bf16.gmra.mrb[124].mxu1 %v8695_v27  ;;  %v10514_v9 = vpop.permute.xlu1 %2328 }
 0x440   :  { %3407 = vmatprep.mubr.bf16.mxu1 %v8696_v1 }
 0x441   :  { %v10518_v38 = vpop.permute.xlu0 %2330 }
 0x443   :  { %v10521_v44 = vpop.permute.xlu1 %2332 }
 0x445   :  { %v10525_v25 = vpop.permute.xlu0 %2360 }
 0x447   :  { %3408 = vmatmul.mubr.bf16.gmra.mrb[64].mxu1 %v8698_v59  ;;  %v10528_v58 = vpop.permute.xlu1 %2362 }
 0x448   :  { %7847 = vmatprep.mubr.f32.mxu1 %v13618_v48 }
 0x449   :  { %v10532_v7 = vpop.permute.xlu0 %2364 }
 0x44b   :  { %v10535_v10 = vpop.permute.xlu1 %2366 }
 0x455   :  { %v10538_v31 = vpop.permute.xlu0 %2415 }
 0x456   :  { %13619 = vst [vmem:[#allocation19_spill] sm:$0xff] %v10538_v31 }
 0x457   :  { %v10541_v52 = vpop.permute.xlu1 %2417 }
 0x458   :  { %13620 = vst [vmem:[#allocation18_spill] sm:$0xff] %v10541_v52 }
 0x459   :  { %v10545_v54 = vpop.permute.xlu0 %2419 }
 0x45b   :  { %v10548_v27 = vpop.permute.xlu1 %2421 }
 0x45c   :  { %13621 = vst [vmem:[#allocation21_spill] sm:$0xff] %v10548_v27 }
 0x4a2   :  { %v3259_v6 = vpop.f32.mrb[68].mxu1 }
 0x4a3   :  { %3420 = vrot.lane.b32.xlu0 %v3259_v6, %s9088_s27  ;;  %v3261_v12 = vpop.f32.mrb[69].mxu1 }
 0x4a4   :  { %v3263_v19 = vpop.f32.mrb[70].mxu1 }
 0x4a5   :  { %3422 = vrot.lane.b32.xlu1 %v3263_v19, %s9088_s27  ;;  %v3265_v20 = vpop.f32.mrb[71].mxu1  ;;  %v10555_v19 = vpop.permute.xlu1 %2450 }
 0x4a6   :  { %13623 = vst [vmem:[#allocation23_spill] sm:$0xff] %v10555_v19 }
 0x4a7   :  { %3424 = vrot.lane.b32.xlu0 %v3261_v12, %s9088_s27  ;;  %v10552_v12 = vpop.permute.xlu0 %2448 }
 0x4a8   :  { %13622 = vst [vmem:[#allocation20_spill] sm:$0xff] %v10552_v12 }
 0x4a9   :  { %3426 = vrot.lane.b32.xlu1 %v3265_v20, %s9088_s27 }
 0x4aa   :  { %v3269_v26 = vpop.f32.mrb[72].mxu1 }
 0x4ab   :  { %3453 = vrot.lane.b32.xlu0 %v3269_v26, %s9089_s29  ;;  %v3271_v57 = vpop.f32.mrb[73].mxu1 }
 0x4ac   :  { %v3273_v5 = vpop.f32.mrb[74].mxu1 }
 0x4ad   :  { %3455 = vrot.lane.b32.xlu1 %v3273_v5, %s9089_s29  ;;  %v3275_v37 = vpop.f32.mrb[75].mxu1  ;;  %v10559_v5 = vpop.permute.xlu0 %2452 }
 0x4ae   :  { %13624 = vst [vmem:[#allocation22_spill] sm:$0xff] %v10559_v5 }
 0x4af   :  { %3457 = vrot.lane.b32.xlu0 %v3271_v57, %s9089_s29 }
 0x4b1   :  { %3459 = vrot.lane.b32.xlu1 %v3275_v37, %s9089_s29 }
 0x4b2   :  { %v3279_v63 = vpop.f32.mrb[76].mxu1 }
 0x4b3   :  { %3486 = vrot.lane.b32.xlu0 %v3279_v63, %s13542_s5  ;;  %v3281_v29 = vpop.f32.mrb[77].mxu1  ;;  %v10562_v63 = vpop.permute.xlu1 %2454 }
 0x4b4   :  { %v3283_v49 = vpop.f32.mrb[78].mxu1  ;;  %13625 = vst [vmem:[#allocation25_spill] sm:$0xff] %v10562_v63 }
 0x4b5   :  { %3488 = vrot.lane.b32.xlu1 %v3283_v49, %s13542_s5  ;;  %v3285_v18 = vpop.f32.mrb[79].mxu1  ;;  %v10568_v49 = vpop.permute.xlu0 %2481 }
 0x4b6   :  { %13626 = vst [vmem:[#allocation24_spill] sm:$0xff] %v10568_v49 }
 0x4b7   :  { %3490 = vrot.lane.b32.xlu0 %v3281_v29, %s13542_s5 }
 0x4b9   :  { %3492 = vrot.lane.b32.xlu1 %v3285_v18, %s13542_s5 }
 0x4ba   :  { %v3289_v16 = vpop.f32.mrb[80].mxu1 }
 0x4bb   :  { %3519 = vrot.lane.b32.xlu0 %v3289_v16, %s13540_s28  ;;  %v3291_v50 = vpop.f32.mrb[81].mxu1 }
 0x4bc   :  { %v3293_v43 = vpop.f32.mrb[82].mxu1 }
 0x4bd   :  { %3521 = vrot.lane.b32.xlu1 %v3293_v43, %s13540_s28  ;;  %v3295_v23 = vpop.f32.mrb[83].mxu1 }
 0x4bf   :  { %3523 = vrot.lane.b32.xlu0 %v3291_v50, %s13540_s28  ;;  %v10574_v50 = vpop.permute.xlu1 %2483 }
 0x4c0   :  { %13627 = vst [vmem:[#allocation27_spill] sm:$0xff] %v10574_v50 }
 0x4c1   :  { %3525 = vrot.lane.b32.xlu1 %v3295_v23, %s13540_s28  ;;  %v10578_v23 = vpop.permute.xlu0 %2485 }
 0x4c2   :  { %v3299_v3 = vpop.f32.mrb[84].mxu1  ;;  %13628 = vst [vmem:[#allocation26_spill] sm:$0xff] %v10578_v23 }
 0x4c3   :  { %3552 = vrot.lane.b32.xlu0 %v3299_v3, %s13493_s6  ;;  %v3301_v33 = vpop.f32.mrb[85].mxu1 }
 0x4c4   :  { %v3303_v2 = vpop.f32.mrb[86].mxu1 }
 0x4c5   :  { %3554 = vrot.lane.b32.xlu1 %v3303_v2, %s13493_s6  ;;  %v3305_v14 = vpop.f32.mrb[87].mxu1 }
 0x4c7   :  { %3556 = vrot.lane.b32.xlu0 %v3301_v33, %s13493_s6  ;;  %v10580_v33 = vpop.permute.xlu1 %2487 }
 0x4c8   :  { %13629 = vst [vmem:[#allocation29_spill] sm:$0xff] %v10580_v33  ;;  %v2513_v33 = vld [vmem:[#allocation9 + $0x13] ss:$8 sm:$0x3] }
 0x4c9   :  { %3558 = vrot.lane.b32.xlu1 %v3305_v14, %s13493_s6  ;;  %v2534_v19 = vrot.slane %v2513_v33, %v9515_v36 }
 0x4ca   :  { %v3309_v24 = vpop.f32.mrb[88].mxu1 }
 0x4cb   :  { %3585 = vrot.lane.b32.xlu0 %v3309_v24, %s13491_s17  ;;  %v3311_v1 = vpop.f32.mrb[89].mxu1 }
 0x4cc   :  { %v3313_v59 = vpop.f32.mrb[90].mxu1 }
 0x4cd   :  { %3587 = vrot.lane.b32.xlu1 %v3313_v59, %s13491_s17  ;;  %v3315_v6 = vpop.f32.mrb[91].mxu1  ;;  %v10587_v59 = vpop.permute.xlu1 %2516 }
 0x4cf   :  { %3589 = vrot.lane.b32.xlu0 %v3311_v1, %s13491_s17  ;;  %v10584_v1 = vpop.permute.xlu0 %2514 }
 0x4d1   :  { %3591 = vrot.lane.b32.xlu1 %v3315_v6, %s13491_s17 }
 0x4d2   :  { %v3319_v20 = vpop.f32.mrb[92].mxu1 }
 0x4d3   :  { %3618 = vrot.lane.b32.xlu0 %v3319_v20, %s13538_s18  ;;  %v3321_v26 = vpop.f32.mrb[93].mxu1 }
 0x4d4   :  { %v3323_v57 = vpop.f32.mrb[94].mxu1 }
 0x4d5   :  { %3620 = vrot.lane.b32.xlu1 %v3323_v57, %s13538_s18  ;;  %v3325_v37 = vpop.f32.mrb[95].mxu1  ;;  %v10591_v57 = vpop.permute.xlu0 %2518 }
 0x4d6   :  { %v2524_v49 = vsel %vm13545_vm2, %v10591_v57, %v10584_v1 }
 0x4d7   :  { %3622 = vrot.lane.b32.xlu0 %v3321_v26, %s13538_s18 }
 0x4d9   :  { %3624 = vrot.lane.b32.xlu1 %v3325_v37, %s13538_s18 }
 0x4da   :  { %v10566_v29 = vpop.f32.mrb[96].mxu1 }
 0x4db   :  { %v10570_v18 = vpop.f32.mrb[97].mxu1 }
 0x4dc   :  { %v10572_v16 = vpop.f32.mrb[98].mxu1 }
 0x4dd   :  { %v10576_v43 = vpop.f32.mrb[99].mxu1 }
 0x4e2   :  { %v3339_v3 = vpop.f32.mrb[100].mxu1 }
 0x4e3   :  { %3672 = vrot.lane.b32.xlu0 %v3339_v3, %s9088_s27  ;;  %v3341_v2 = vpop.f32.mrb[101].mxu1  ;;  %v10594_v3 = vpop.permute.xlu1 %2520 }
 0x4e4   :  { %v3343_v14 = vpop.f32.mrb[102].mxu1  ;;  %v2523_v5 = vsel %vm13545_vm2, %v10587_v59, %v10594_v3 }
 0x4e5   :  { %3674 = vrot.lane.b32.xlu1 %v3343_v14, %s9088_s27  ;;  %v3345_v24 = vpop.f32.mrb[103].mxu1  ;;  %v10598_v14 = vpop.permute.xlu0 %2547 }
 0x4e6   :  { %13630 = vst [vmem:[#allocation28_spill] sm:$0xff] %v10598_v14 }
 0x4e7   :  { %3676 = vrot.lane.b32.xlu0 %v3341_v2, %s9088_s27  ;;  %v10601_v0 = vpop.permute.xlu1 %2549 }
 0x4e8   :  { %13631 = vst [vmem:[#allocation31_spill] sm:$0xff] %v10601_v0 }
 0x4e9   :  { %3678 = vrot.lane.b32.xlu1 %v3345_v24, %s9088_s27 }
 0x4ea   :  { %v3349_v6 = vpop.f32.mrb[104].mxu1 }
 0x4eb   :  { %3705 = vrot.lane.b32.xlu0 %v3349_v6, %s9089_s29  ;;  %v3351_v20 = vpop.f32.mrb[105].mxu1 }
 0x4ec   :  { %v3353_v26 = vpop.f32.mrb[106].mxu1 }
 0x4ed   :  { %3707 = vrot.lane.b32.xlu1 %v3353_v26, %s9089_s29  ;;  %v3355_v37 = vpop.f32.mrb[107].mxu1  ;;  %v10605_v26 = vpop.permute.xlu0 %2551 }
 0x4ee   :  { %13632 = vst [vmem:[#allocation30_spill] sm:$0xff] %v10605_v26 }
 0x4ef   :  { %3709 = vrot.lane.b32.xlu0 %v3351_v20, %s9089_s29 }
 0x4f1   :  { %3711 = vrot.lane.b32.xlu1 %v3355_v37, %s9089_s29  ;;  %v10608_v37 = vpop.permute.xlu1 %2553  ;;  %v10612_v0 = vpop.permute.xlu0 %2580 }
 0x4f2   :  { %v3359_v2 = vpop.f32.mrb[108].mxu1  ;;  %13633 = vst [vmem:[#allocation33_spill] sm:$0xff] %v10608_v37  ;;  %13634 = vst [vmem:[#allocation32_spill] sm:$0xff] %v10612_v0 }
 0x4f3   :  { %3738 = vrot.lane.b32.xlu0 %v3359_v2, %s13542_s5  ;;  %v3361_v24 = vpop.f32.mrb[109].mxu1 }
 0x4f4   :  { %v3363_v6 = vpop.f32.mrb[110].mxu1 }
 0x4f5   :  { %3740 = vrot.lane.b32.xlu1 %v3363_v6, %s13542_s5  ;;  %v3365_v48 = vpop.f32.mrb[111].mxu1  ;;  %v10615_v6 = vpop.permute.xlu1 %2582 }
 0x4f6   :  { %13635 = vst [vmem:[#allocation35_spill] sm:$0xff] %v10615_v6  ;;  %v10619_v26 = vpop.permute.xlu0 %2584 }
 0x4f7   :  { %3742 = vrot.lane.b32.xlu0 %v3361_v24, %s13542_s5  ;;  %13636 = vst [vmem:[#allocation34_spill] sm:$0xff] %v10619_v26 }
 0x4f9   :  { %3744 = vrot.lane.b32.xlu1 %v3365_v48, %s13542_s5  ;;  %s13746_s5 = smov 3  }
 0x4fa   :  { %v3369_v20 = vpop.f32.mrb[112].mxu1  ;;  %v10626_v6 = vpop.permute.xlu0 %2613 }
 0x4fb   :  { %3771 = vrot.lane.b32.xlu0 %v3369_v20, %s13540_s28  ;;  %v3371_v14 = vpop.f32.mrb[113].mxu1  ;;  %13638 = vst [vmem:[#allocation36_spill] sm:$0xff] %v10626_v6 }
 0x4fc   :  { %v3373_v2 = vpop.f32.mrb[114].mxu1 }
 0x4fd   :  { %3773 = vrot.lane.b32.xlu1 %v3373_v2, %s13540_s28  ;;  %v3375_v50 = vpop.f32.mrb[115].mxu1  ;;  %v10622_v2 = vpop.permute.xlu1 %2586 }
 0x4fe   :  { %13637 = vst [vmem:[#allocation37_spill] sm:$0xff] %v10622_v2  ;;  %v2393_v2 = vld [vmem:[#allocation9 + $0x7] ss:$8 sm:$0x3] }
 0x4ff   :  { %3775 = vrot.lane.b32.xlu0 %v3371_v14, %s13540_s28  ;;  %v2398_v6 = vrot.slane %v2393_v2, %v9513_v34 }
 0x501   :  { %3777 = vrot.lane.b32.xlu1 %v3375_v50, %s13540_s28  ;;  %v10630_v26 = vpop.permute.xlu1 %2615  ;;  %v2405_v12 = vmul.f32 %v2398_v6, %v10431_v8  ;;  %s13747_s28 = smov 2  }
 0x502   :  { %v3379_v24 = vpop.f32.mrb[116].mxu1  ;;  %13639 = vst [vmem:[#allocation39_spill] sm:$0xff] %v10630_v26  ;;  %v10645_v26 = vpop.permute.xlu0 %2617 }
 0x503   :  { %3804 = vrot.lane.b32.xlu0 %v3379_v24, %s13493_s6  ;;  %v3381_v48 = vpop.f32.mrb[117].mxu1  ;;  %v2257_v24 = vld [vmem:[#allocation9 + $0x3] ss:$8 sm:$0x3]  ;;  %13640 = vst [vmem:[#allocation38_spill] sm:$0xff] %v10645_v26 }
 0x504   :  { %v3383_v37 = vpop.f32.mrb[118].mxu1 }
 0x505   :  { %3806 = vrot.lane.b32.xlu1 %v3383_v37, %s13493_s6  ;;  %v3385_v20 = vpop.f32.mrb[119].mxu1 }
 0x507   :  { %3808 = vrot.lane.b32.xlu0 %v3381_v48, %s13493_s6  ;;  %v2275_v48 = vrot.slane %v2257_v24, %v9513_v34 }
 0x509   :  { %3810 = vrot.lane.b32.xlu1 %v3385_v20, %s13493_s6  ;;  %v2279_v20 = vrot.slane %v2257_v24, %v9515_v36  ;;  %v2402_v24 = vrot.slane %v2393_v2, %v9515_v36  ;;  %v2522_v2 = vsel %vm13545_vm2, %v10584_v1, %v10591_v57  ;;  %s13748_s6 = smov 1  }
 0x50a   :  { %v3389_v14 = vpop.f32.mrb[120].mxu1 }
 0x50b   :  { %3837 = vrot.lane.b32.xlu0 %v3389_v14, %s13491_s17  ;;  %v3391_v50 = vpop.f32.mrb[121].mxu1  ;;  %v2267_v14 = vsel %vm13545_vm2, %v10490_v46, %v10494_v42  ;;  %v2406_v57 = vmul.f32 %v2402_v24, %v10429_v21  ;;  %v2408_v52 = vmul.f32 %v2402_v24, %v10433_v15 }
 0x50c   :  { %v3393_v0 = vpop.f32.mrb[122].mxu1  ;;  %v2282_v63 = vmul.f32 %v2275_v48, %v2267_v14 }
 0x50d   :  { %3839 = vrot.lane.b32.xlu1 %v3393_v0, %s13491_s17  ;;  %v3395_v37 = vpop.f32.mrb[123].mxu1  ;;  %v2269_v0 = vsel %vm13545_vm2, %v10494_v42, %v10490_v46  ;;  %v2268_v46 = vsel %vm13545_vm2, %v10492_v35, %v10496_v32  ;;  %v2270_v42 = vsel %vm13545_vm2, %v10496_v32, %v10492_v35  ;;  %v2525_v35 = vsel %vm13545_vm2, %v10594_v3, %v10587_v59  ;;  %v4032_v3 = vld [vmem:[%s13394_s2] sm:$0xff] }
 0x50e   :  { %v2283_v14 = vmul.f32 %v2279_v20, %v2269_v0  ;;  %v2284_v0 = vmul.f32 %v2275_v48, %v2268_v46  ;;  %v2285_v8 = vmul.f32 %v2279_v20, %v2270_v42  ;;  %v2409_v31 = vadd.f32 %v2405_v12, %v2282_v63 }
 0x50f   :  { %3841 = vrot.lane.b32.xlu0 %v3391_v50, %s13491_s17  ;;  %v2530_v50 = vrot.slane %v2513_v33, %v9513_v34  ;;  %v2407_v59 = vmul.f32 %v2398_v6, %v10435_v41 }
 0x510   :  { %v2412_v46 = vadd.f32 %v2408_v52, %v2285_v8  ;;  %v3650_v8 = vld [vmem:[#allocation9 + $0x27] ss:$8 sm:$0x3] }
 0x511   :  { %3843 = vrot.lane.b32.xlu1 %v3395_v37, %s13491_s17  ;;  %v10667_v37 = vpop.permute.xlu1 %2619  ;;  %v2537_v1 = vmul.f32 %v2530_v50, %v2524_v49  ;;  %v2539_v49 = vmul.f32 %v2530_v50, %v2525_v35  ;;  %v2411_v24 = vadd.f32 %v2407_v59, %v2284_v0  ;;  %v3518_v0 = vld [vmem:[#allocation9 + $0x23] ss:$8 sm:$0x3] }
 0x512   :  { %v3399_v23 = vpop.f32.mrb[124].mxu1  ;;  %13641 = vst [vmem:[#allocation40_spill] sm:$0xff] %v10667_v37  ;;  %v2538_v37 = vmul.f32 %v2534_v19, %v2522_v2 }
 0x513   :  { %3870 = vrot.lane.b32.xlu0 %v3399_v23, %s13538_s18  ;;  %v3401_v33 = vpop.f32.mrb[125].mxu1  ;;  %v2541_v48 = vadd.f32 %v2537_v1, %v2409_v31  ;;  %v2543_v6 = vadd.f32 %v2539_v49, %v2411_v24  ;;  %v3539_v49 = vrot.slane %v3518_v0, %v9515_v36 }
 0x514   :  { %v3403_v26 = vpop.f32.mrb[126].mxu1 }
 0x515   :  { %v10679_v32 = vpop.permute.xlu0 %3420  ;;  %3872 = vrot.lane.b32.xlu1 %v3403_v26, %s13538_s18  ;;  %v3405_v23 = vpop.f32.mrb[127].mxu1  ;;  %v2410_v26 = vadd.f32 %v2406_v57, %v2283_v14 }
 0x516   :  { %13642 = vst [vmem:[#allocation41_spill] sm:$0xff] %v10679_v32  ;;  %v2540_v32 = vmul.f32 %v2534_v19, %v2523_v5 }
 0x517   :  { %v10684_v27 = vpop.permute.xlu1 %3422  ;;  %3874 = vrot.lane.b32.xlu0 %v3401_v33, %s13538_s18  ;;  %v2542_v20 = vadd.f32 %v2538_v37, %v2410_v26  ;;  %v3535_v26 = vrot.slane %v3518_v0, %v9513_v34 }
 0x518   :  { %13643 = vst [vmem:[#allocation42_spill] sm:$0xff] %v10684_v27  ;;  %v2544_v33 = vadd.f32 %v2540_v32, %v2412_v46  ;;  %v4033_v32 = vld [vmem:[%s13394_s2 + $0x8] sm:$0xff] }
 0x519   :  { %v10691_v21 = vpop.permute.xlu0 %3424  ;;  %3876 = vrot.lane.b32.xlu1 %v3405_v23, %s13538_s18  ;;  %s13745_s18 = smov 4  }
 0x51a   :  { %v3409_v15 = vpop.f32.mrb[64].mxu1 }
 0x51b   :  { %v8163_v42 = vadd.f32 %v3409_v15, %v2541_v48  ;;  %v10694_v12 = vpop.permute.xlu1 %3426  ;;  %4036 = vperm.xlu0 %8505, %v4032_v3   ;;  %v3411_v41 = vpop.f32.mrb[65].mxu1  ;;  %v3659_v48 = vrot.slane %v3650_v8, %v9515_v36  ;;  %v3655_v15 = vrot.slane %v3650_v8, %v9513_v34 }
 0x51c   :  { %13644 = vst [vmem:[#allocation43_spill] sm:$0xff] %v10694_v12  ;;  %v8167_v63 = vadd.f32 %v3411_v41, %v2542_v20  ;;  %v3413_v2 = vpop.f32.mrb[66].mxu1 }
 0x51d   :  { %v10696_v50 = vpop.permute.xlu0 %3453  ;;  %v3415_v19 = vpop.f32.mrb[67].mxu1  ;;  %v8171_v5 = vadd.f32 %v3413_v2, %v2543_v6  ;;  %4041 = vperm.xlu1 %8506, %v4033_v32  }
 0x51e   :  { %13645 = vst [vmem:[#allocation44_spill] sm:$0xff] %v10696_v50  ;;  %v8175_v14 = vadd.f32 %v3415_v19, %v2544_v33  ;;  %v3663_v33 = vmul.f32 %v3659_v48, %v10566_v29  ;;  %v3662_v19 = vmul.f32 %v3655_v15, %v10570_v18  ;;  %v3664_v29 = vmul.f32 %v3655_v15, %v10576_v43  ;;  %v2189_v18 = vld [vmem:[#allocation9 + $0x1] ss:$8 sm:$0x3] }
 0x51f   :  { %v10698_v35 = vpop.permute.xlu1 %3455 }
 0x520   :  { %13646 = vst [vmem:[#allocation45_spill] sm:$0xff] %v10698_v35 }
 0x521   :  { %v10700_v31 = vpop.permute.xlu0 %3457 }
 0x522   :  { %13647 = vst [vmem:[#allocation46_spill] sm:$0xff] %v10700_v31 }
 0x523   :  { %v10702_v37 = vpop.permute.xlu1 %3459 }
 0x524   :  { %13648 = vst [vmem:[#allocation47_spill] sm:$0xff] %v10702_v37 }
 0x525   :  { %v10704_v52 = vpop.permute.xlu0 %3486 }
 0x526   :  { %13649 = vst [vmem:[#allocation48_spill] sm:$0xff] %v10704_v52 }
 0x527   :  { %v10706_v23 = vpop.permute.xlu1 %3488 }
 0x528   :  { %13650 = vst [vmem:[#allocation49_spill] sm:$0xff] %v10706_v23 }
 0x529   :  { %v10708_v1 = vpop.permute.xlu0 %3490 }
 0x52a   :  { %13651 = vst [vmem:[#allocation50_spill] sm:$0xff] %v10708_v1 }
 0x52b   :  { %v10710_v57 = vpop.permute.xlu1 %3492 }
 0x52c   :  { %13652 = vst [vmem:[#allocation51_spill] sm:$0xff] %v10710_v57 }
 0x52d   :  { %v3520_v59 = vpop.permute.xlu0 %3519 }
 0x52f   :  { %v3522_v3 = vpop.permute.xlu1 %3521 }
 0x531   :  { %v3524_v20 = vpop.permute.xlu0 %3523 }
 0x532   :  { %v3527_v24 = vsel %vm13545_vm2, %v3520_v59, %v3524_v20  ;;  %v3529_v46 = vsel %vm13545_vm2, %v3524_v20, %v3520_v59  ;;  %v3665_v59 = vmul.f32 %v3659_v48, %v10572_v16  ;;  %v2155_v20 = vld [vmem:[#allocation9] ss:$8 sm:$0x3]  ;;  %v10755_v48 = vrot.slane %v2189_v18, %v9515_v36 }
 0x533   :  { %v3542_v41 = vmul.f32 %v3535_v26, %v3527_v24  ;;  %v3543_v6 = vmul.f32 %v3539_v49, %v3529_v46  ;;  %v3526_v2 = vpop.permute.xlu1 %3525 }
 0x534   :  { %v3528_v32 = vsel %vm13545_vm2, %v3522_v3, %v3526_v2  ;;  %v3530_v0 = vsel %vm13545_vm2, %v3526_v2, %v3522_v3  ;;  %v2291_v3 = vld [vmem:[#allocation9 + $0x4] ss:$8 sm:$0x3]  ;;  %v2447_v2 = vld [vmem:[#allocation9 + $0x11] ss:$8 sm:$0x3] }
 0x535   :  { %v8164_v8 = vadd.f32 %v8163_v42, %v3542_v41  ;;  %v8168_v23 = vadd.f32 %v8167_v63, %v3543_v6  ;;  %v3544_v57 = vmul.f32 %v3535_v26, %v3528_v32  ;;  %v3545_v52 = vmul.f32 %v3539_v49, %v3530_v0  ;;  %v10729_v1 = vpop.permute.xlu0 %3552  ;;  %v2223_v63 = vld [vmem:[#allocation9 + $0x2] ss:$8 sm:$0x3]  ;;  %v2325_v26 = vld [vmem:[#allocation9 + $0x5] ss:$8 sm:$0x3] }
 0x536   :  { %13653 = vst [vmem:[#allocation52_spill] sm:$0xff] %v10729_v1  ;;  %v10758_v15 = vrot.slane %v2223_v63, %v9513_v34  ;;  %v10761_v41 = vrot.slane %v2223_v63, %v9515_v36  ;;  %v2309_v6 = vrot.slane %v2291_v3, %v9513_v34  ;;  %v2313_v32 = vrot.slane %v2291_v3, %v9515_v36 }
 0x537   :  { %v8172_v24 = vadd.f32 %v8171_v5, %v3544_v57  ;;  %v8176_v46 = vadd.f32 %v8175_v14, %v3545_v52  ;;  %v10734_v35 = vpop.permute.xlu1 %3554  ;;  %v10736_v37 = vadd.f32 %v8164_v8, %v3662_v19  ;;  %v10738_v42 = vadd.f32 %v8168_v23, %v3663_v33  ;;  %v2359_v23 = vld [vmem:[#allocation9 + $0x6] ss:$8 sm:$0x3]  ;;  %v2414_v57 = vld [vmem:[#allocation9 + $0x10] ss:$8 sm:$0x3] }
 0x538   :  { %13654 = vst [vmem:[#allocation53_spill] sm:$0xff] %v10734_v35  ;;  %v2173_v5 = vrot.slane %v2155_v20, %v9513_v34  ;;  %v2177_v14 = vrot.slane %v2155_v20, %v9515_v36  ;;  %v10751_v52 = vrot.slane %v2189_v18, %v9513_v34  ;;  %v2480_v33 = vld [vmem:[#allocation9 + $0x12] ss:$8 sm:$0x3]  ;;  %v10769_v0 = vrot.slane %v2325_v26, %v9513_v34 }
 0x539   :  { %13655 = vst [vmem:[#allocation54_spill] sm:$0xff] %v10736_v37  ;;  %13656 = vst [vmem:[#allocation55_spill] sm:$0xff] %v10738_v42  ;;  %v10742_v16 = vpop.permute.xlu0 %3556  ;;  %v10744_v43 = vadd.f32 %v8172_v24, %v3664_v29  ;;  %v10746_v49 = vadd.f32 %v8176_v46, %v3665_v59  ;;  %v10772_v8 = vrot.slane %v2325_v26, %v9515_v36  ;;  %v2546_v24 = vld [vmem:[#allocation9 + $0x14] ss:$8 sm:$0x3] }
 0x53a   :  { %13657 = vst [vmem:[#allocation56_spill] sm:$0xff] %v10742_v16  ;;  %v10775_v59 = vrot.slane %v2359_v23, %v9513_v34  ;;  %v10778_v29 = vrot.slane %v2359_v23, %v9515_v36  ;;  %v10781_v20 = vrot.slane %v2414_v57, %v9513_v34  ;;  %v10784_v18 = vrot.slane %v2414_v57, %v9515_v36  ;;  %v2579_v23 = vld [vmem:[#allocation9 + $0x15] ss:$8 sm:$0x3] }
 0x53b   :  { %13658 = vst [vmem:[#allocation57_spill] sm:$0xff] %v10744_v43  ;;  %13659 = vst [vmem:[#allocation58_spill] sm:$0xff] %v10746_v49  ;;  %v10764_v19 = vpop.permute.xlu1 %3558  ;;  %v10787_v46 = vrot.slane %v2447_v2, %v9513_v34  ;;  %v10790_v63 = vrot.slane %v2447_v2, %v9515_v36  ;;  %v10793_v3 = vrot.slane %v2480_v33, %v9513_v34  ;;  %v2612_v49 = vld [vmem:[#allocation9 + $0x16] ss:$8 sm:$0x3] }
 0x53c   :  { %13660 = vst [vmem:[#allocation59_spill] sm:$0xff] %v10764_v19  ;;  %v10796_v26 = vrot.slane %v2480_v33, %v9515_v36  ;;  %v2165_v57 = vsel %vm2164_vm3, %v10466_v28, %v10470_v56  ;;  %v2167_v43 = vsel %vm2164_vm3, %v10470_v56, %v10466_v28  ;;  %v2166_v2 = vsel %vm2164_vm3, %v10468_v62, %v10472_v22 }
 0x53d   :  { %v2168_v33 = vsel %vm2164_vm3, %v10472_v22, %v10468_v62  ;;  %v10815_v42 = vpop.permute.xlu0 %3585  ;;  %v2199_v37 = vsel %vm2198_vm4, %v10474_v11, %v10478_v60  ;;  %v2201_v28 = vsel %vm2198_vm4, %v10478_v60, %v10474_v11  ;;  %v10826_v56 = vrot.slane %v2546_v24, %v9513_v34 }
 0x53e   :  { %13661 = vst [vmem:[#allocation60_spill] sm:$0xff] %v10815_v42  ;;  %v10829_v35 = vrot.slane %v2546_v24, %v9515_v36  ;;  %v10832_v62 = vrot.slane %v2579_v23, %v9513_v34  ;;  %v10835_v22 = vrot.slane %v2579_v23, %v9515_v36  ;;  %v10838_v42 = vrot.slane %v2612_v49, %v9513_v34 }
 0x53f   :  { %v10841_v19 = vrot.slane %v2612_v49, %v9515_v36  ;;  %v10843_v1 = vpop.permute.xlu1 %3587  ;;  %v2180_v11 = vmul.f32 %v2173_v5, %v2165_v57  ;;  %v2181_v60 = vmul.f32 %v2177_v14, %v2167_v43  ;;  %v2182_v16 = vmul.f32 %v2173_v5, %v2166_v2 }
 0x540   :  { %13662 = vst [vmem:[#allocation61_spill] sm:$0xff] %v10843_v1  ;;  %v2183_v50 = vmul.f32 %v2177_v14, %v2168_v33  ;;  %v2214_v24 = vmul.f32 %v10751_v52, %v2199_v37  ;;  %v2215_v31 = vmul.f32 %v10755_v48, %v2201_v28  ;;  %v2301_v23 = vsel %vm2300_vm1, %v10498_v61, %v10504_v53 }
 0x541   :  { %v2303_v49 = vsel %vm2300_vm1, %v10504_v53, %v10498_v61  ;;  %v2302_v43 = vsel %vm2300_vm1, %v10500_v4, %v10507_v47  ;;  %v2304_v37 = vsel %vm2300_vm1, %v10507_v47, %v10500_v4  ;;  %v2335_v5 = vsel %vm2334_vm14, %v10511_v40, %v10518_v38 }
 0x542   :  { %v2337_v61 = vsel %vm2334_vm14, %v10518_v38, %v10511_v40  ;;  %v2200_v53 = vsel %vm2198_vm4, %v10476_v39, %v10480_v45  ;;  %v2202_v4 = vsel %vm2198_vm4, %v10480_v45, %v10476_v39  ;;  %v2233_v47 = vsel %vm2232_vm15, %v10482_v13, %v10486_v17  ;;  %v10887_v38 = vpop.permute.xlu0 %3589 }
 0x543   :  { %v2235_v40 = vsel %vm2232_vm15, %v10486_v17, %v10482_v13  ;;  %13663 = vst [vmem:[#allocation62_spill] sm:$0xff] %v10887_v38  ;;  %v2234_v14 = vsel %vm2232_vm15, %v10484_v51, %v10488_v55  ;;  %v2236_v39 = vsel %vm2232_vm15, %v10488_v55, %v10484_v51  ;;  %v2316_v45 = vmul.f32 %v2309_v6, %v2301_v23  ;;  %v10899_v17 = vpop.permute.xlu1 %3591 }
 0x544   :  { %v2317_v57 = vmul.f32 %v2313_v32, %v2303_v49  ;;  %v2318_v2 = vmul.f32 %v2309_v6, %v2302_v43  ;;  %v2319_v33 = vmul.f32 %v2313_v32, %v2304_v37  ;;  %v2350_v28 = vmul.f32 %v10769_v0, %v2335_v5 }
 0x545   :  { %v2351_v13 = vmul.f32 %v10772_v8, %v2337_v61  ;;  %v2216_v1 = vmul.f32 %v10751_v52, %v2200_v53  ;;  %v2217_v38 = vmul.f32 %v10755_v48, %v2202_v4  ;;  %v2248_v27 = vmul.f32 %v10758_v15, %v2233_v47  ;;  %v13667_v61 = vld [vmem:[#allocation22_spill] sm:$0xff]  ;;  %v13668_v53 = vld [vmem:[#allocation20_spill] sm:$0xff] }
 0x546   :  { %v2249_v12 = vmul.f32 %v10761_v41, %v2235_v40  ;;  %v2250_v51 = vmul.f32 %v10758_v15, %v2234_v14  ;;  %v2251_v55 = vmul.f32 %v10761_v41, %v2236_v39  ;;  %v2336_v6 = vsel %vm2334_vm14, %v10514_v9, %v10521_v44  ;;  %v10923_v5 = vpop.permute.xlu0 %3618  ;;  %v13669_v14 = vld [vmem:[#allocation25_spill] sm:$0xff]  ;;  %v13670_v39 = vld [vmem:[#allocation23_spill] sm:$0xff] }
 0x547   :  { %v2338_v52 = vsel %vm2334_vm14, %v10521_v44, %v10514_v9  ;;  %v2320_v32 = vadd.f32 %v2316_v45, %v2180_v11  ;;  %v2321_v48 = vadd.f32 %v2317_v57, %v2181_v60  ;;  %v2369_v23 = vsel %vm2368_vm13, %v10525_v25, %v10532_v7  ;;  %v13665_v60 = vld [vmem:[#allocation21_spill] sm:$0xff] }
 0x548   :  { %v2371_v15 = vsel %vm2368_vm13, %v10532_v7, %v10525_v25  ;;  %v2322_v41 = vadd.f32 %v2318_v2, %v2182_v16  ;;  %v2323_v49 = vadd.f32 %v2319_v33, %v2183_v50  ;;  %v2354_v43 = vadd.f32 %v2350_v28, %v2214_v24  ;;  %v13666_v24 = vld [vmem:[#allocation18_spill] sm:$0xff] }
 0x549   :  { %v2355_v37 = vadd.f32 %v2351_v13, %v2215_v31  ;;  %v2352_v9 = vmul.f32 %v10769_v0, %v2336_v6  ;;  %v2353_v44 = vmul.f32 %v10772_v8, %v2338_v52  ;;  %v2370_v11 = vsel %vm2368_vm13, %v10528_v58, %v10535_v10  ;;  %v13664_v31 = vld [vmem:[#allocation19_spill] sm:$0xff]  ;;  %v10945_v8 = vpop.permute.xlu1 %3620 }
 0x54a   :  { %v2372_v25 = vsel %vm2368_vm13, %v10535_v10, %v10528_v58  ;;  %v2384_v7 = vmul.f32 %v10775_v59, %v2369_v23  ;;  %v2385_v50 = vmul.f32 %v10778_v29, %v2371_v15  ;;  %v2423_v16 = vsel %vm2164_vm3, %v13664_v31, %v10545_v54  ;;  %v10979_v23 = vpop.permute.xlu0 %3622 }
 0x54b   :  { %v2425_v0 = vsel %vm2164_vm3, %v10545_v54, %v13664_v31  ;;  %v2424_v58 = vsel %vm2164_vm3, %v13666_v24, %v13665_v60  ;;  %v2426_v10 = vsel %vm2164_vm3, %v13665_v60, %v13666_v24  ;;  %v2456_v4 = vsel %vm2198_vm4, %v13668_v53, %v13667_v61  ;;  %v13672_v31 = vld [vmem:[#allocation24_spill] sm:$0xff] }
 0x54c   :  { %v2458_v54 = vsel %vm2198_vm4, %v13667_v61, %v13668_v53  ;;  %v2386_v47 = vmul.f32 %v10775_v59, %v2370_v11  ;;  %v2387_v40 = vmul.f32 %v10778_v29, %v2372_v25  ;;  %v2457_v45 = vsel %vm2198_vm4, %v13670_v39, %v13669_v14 }
 0x54d   :  { %v2459_v57 = vsel %vm2198_vm4, %v13669_v14, %v13670_v39  ;;  %v2356_v2 = vadd.f32 %v2352_v9, %v2216_v1  ;;  %v2357_v33 = vadd.f32 %v2353_v44, %v2217_v38  ;;  %v2438_v28 = vmul.f32 %v10781_v20, %v2425_v0  ;;  %v13671_v44 = vld [vmem:[#allocation26_spill] sm:$0xff]  ;;  %v13680_v14 = vld [vmem:[#allocation32_spill] sm:$0xff] }
 0x54e   :  { %v2439_v13 = vmul.f32 %v10784_v18, %v2423_v16  ;;  %v2440_v59 = vmul.f32 %v10781_v20, %v2426_v10  ;;  %v2441_v29 = vmul.f32 %v10784_v18, %v2424_v58  ;;  %v2471_v6 = vmul.f32 %v10787_v46, %v2458_v54  ;;  %v10991_v16 = vpop.permute.xlu1 %3624  ;;  %v13676_v54 = vld [vmem:[#allocation28_spill] sm:$0xff] }
 0x54f   :  { %v2472_v52 = vmul.f32 %v10790_v63, %v2456_v4  ;;  %v2388_v15 = vadd.f32 %v2384_v7, %v2248_v27  ;;  %v2389_v11 = vadd.f32 %v2385_v50, %v2249_v12  ;;  %v2473_v25 = vmul.f32 %v10787_v46, %v2459_v57  ;;  %v13673_v7 = vld [vmem:[#allocation29_spill] sm:$0xff]  ;;  %v13674_v46 = vld [vmem:[#allocation27_spill] sm:$0xff]  ;;  %v13675_v4 = vld [vmem:[#allocation30_spill] sm:$0xff] }
 0x550   :  { %v2474_v1 = vmul.f32 %v10790_v63, %v2457_v45  ;;  %v2390_v38 = vadd.f32 %v2386_v47, %v2250_v51  ;;  %v2391_v9 = vadd.f32 %v2387_v40, %v2251_v55  ;;  %v2489_v20 = vsel %vm2232_vm15, %v13672_v31, %v13671_v44  ;;  %v13678_v47 = vld [vmem:[#allocation31_spill] sm:$0xff]  ;;  %v13681_v57 = vld [vmem:[#allocation37_spill] sm:$0xff] }
 0x551   :  { %v2491_v18 = vsel %vm2232_vm15, %v13671_v44, %v13672_v31  ;;  %v2442_v27 = vadd.f32 %v2438_v28, %v2320_v32  ;;  %v2443_v12 = vadd.f32 %v2439_v13, %v2321_v48  ;;  %v2490_v63 = vsel %vm2232_vm15, %v13674_v46, %v13673_v7  ;;  %v13683_v13 = vld [vmem:[#allocation38_spill] sm:$0xff]  ;;  %v13685_v44 = vld [vmem:[#allocation40_spill] sm:$0xff]  ;;  %v13686_v31 = vld [vmem:[#allocation39_spill] sm:$0xff] }
 0x552   :  { %v2492_v51 = vsel %vm2232_vm15, %v13673_v7, %v13674_v46  ;;  %v2444_v55 = vadd.f32 %v2440_v59, %v2322_v41  ;;  %v2445_v50 = vadd.f32 %v2441_v29, %v2323_v49  ;;  %v2475_v0 = vadd.f32 %v2471_v6, %v2354_v43  ;;  %v13684_v59 = vld [vmem:[#allocation36_spill] sm:$0xff] }
 0x553   :  { %v2476_v60 = vadd.f32 %v2472_v52, %v2355_v37  ;;  %v2477_v58 = vadd.f32 %v2473_v25, %v2356_v2  ;;  %v2478_v10 = vadd.f32 %v2474_v1, %v2357_v33  ;;  %v2504_v32 = vmul.f32 %v10793_v3, %v2491_v18  ;;  %v13677_v37 = vld [vmem:[#allocation33_spill] sm:$0xff]  ;;  %v13682_v2 = vld [vmem:[#allocation35_spill] sm:$0xff] }
 0x554   :  { %v2505_v48 = vmul.f32 %v10796_v26, %v2489_v20  ;;  %v2506_v61 = vmul.f32 %v10793_v3, %v2492_v51  ;;  %v2507_v53 = vmul.f32 %v10796_v26, %v2490_v63  ;;  %v2555_v41 = vsel %vm2300_vm1, %v13676_v54, %v13675_v4  ;;  %v13679_v26 = vld [vmem:[#allocation34_spill] sm:$0xff] }
 0x555   :  { %v11001_v24 = vpop.permute.xlu0 %3672  ;;  %v2557_v49 = vsel %vm2300_vm1, %v13675_v4, %v13676_v54  ;;  %v2556_v40 = vsel %vm2300_vm1, %v13678_v47, %v13677_v37  ;;  %v2558_v3 = vsel %vm2300_vm1, %v13677_v37, %v13678_v47  ;;  %v2588_v39 = vsel %vm2334_vm14, %v13680_v14, %v13679_v26 }
 0x556   :  { %v2590_v45 = vsel %vm2334_vm14, %v13679_v26, %v13680_v14  ;;  %v2589_v33 = vsel %vm2334_vm14, %v13682_v2, %v13681_v57  ;;  %v2591_v28 = vsel %vm2334_vm14, %v13681_v57, %v13682_v2  ;;  %v2621_v29 = vsel %vm2368_vm13, %v13684_v59, %v13683_v13 }
 0x557   :  { %v11015_v43 = vpop.permute.xlu1 %3674  ;;  %v2623_v6 = vsel %vm2368_vm13, %v13683_v13, %v13684_v59  ;;  %v2570_v25 = vmul.f32 %v10826_v56, %v2557_v49  ;;  %v2571_v1 = vmul.f32 %v10829_v35, %v2555_v41  ;;  %v2622_v20 = vsel %vm2368_vm13, %v13686_v31, %v13685_v44  ;;  %v3671_v13 = vld [vmem:[#allocation9 + $0x30] ss:$8 sm:$0x3]  ;;  %v3704_v59 = vld [vmem:[#allocation9 + $0x31] ss:$8 sm:$0x3] }
 0x558   :  { %v2624_v18 = vsel %vm2368_vm13, %v13685_v44, %v13686_v31  ;;  %v2572_v7 = vmul.f32 %v10826_v56, %v2558_v3  ;;  %v2573_v46 = vmul.f32 %v10829_v35, %v2556_v40  ;;  %v2603_v63 = vmul.f32 %v10832_v62, %v2590_v45 }
 0x559   :  { %v11049_v52 = vpop.permute.xlu0 %3676  ;;  %v2604_v51 = vmul.f32 %v10835_v22, %v2588_v39  ;;  %v2605_v54 = vmul.f32 %v10832_v62, %v2591_v28  ;;  %v2606_v41 = vmul.f32 %v10835_v22, %v2589_v33  ;;  %v2636_v49 = vmul.f32 %v10838_v42, %v2623_v6  ;;  %v3419_v62 = vld [vmem:[#allocation9 + $0x20] ss:$8 sm:$0x3] }
 0x55a   :  { %v2637_v37 = vmul.f32 %v10841_v19, %v2621_v29  ;;  %v2508_v47 = vadd.f32 %v2504_v32, %v2388_v15  ;;  %v2509_v26 = vadd.f32 %v2505_v48, %v2389_v11  ;;  %v2638_v56 = vmul.f32 %v10838_v42, %v2624_v18  ;;  %v3452_v42 = vld [vmem:[#allocation9 + $0x21] ss:$8 sm:$0x3]  ;;  %v3485_v11 = vld [vmem:[#allocation9 + $0x22] ss:$8 sm:$0x3] }
 0x55b   :  { %v11065_v4 = vpop.permute.xlu1 %3678  ;;  %v2639_v35 = vmul.f32 %v10841_v19, %v2622_v20  ;;  %v2510_v3 = vadd.f32 %v2506_v61, %v2390_v38  ;;  %v2511_v14 = vadd.f32 %v2507_v53, %v2391_v9  ;;  %v11075_v39 = vadd.f32 %v2570_v25, %v2442_v27  ;;  %v3584_v48 = vld [vmem:[#allocation9 + $0x25] ss:$8 sm:$0x3]  ;;  %v3617_v61 = vld [vmem:[#allocation9 + $0x26] ss:$8 sm:$0x3] }
 0x55c   :  { %v11077_v45 = vadd.f32 %v2571_v1, %v2443_v12  ;;  %v11079_v22 = vadd.f32 %v2572_v7, %v2444_v55  ;;  %v11081_v57 = vadd.f32 %v2573_v46, %v2445_v50  ;;  %v11083_v2 = vadd.f32 %v2603_v63, %v2475_v0  ;;  %v3551_v12 = vld [vmem:[#allocation9 + $0x24] ss:$8 sm:$0x3]  ;;  %v3737_v20 = vld [vmem:[#allocation9 + $0x32] ss:$8 sm:$0x3] }
 0x55d   :  { %v11073_v40 = vpop.permute.xlu0 %3705  ;;  %v11085_v15 = vadd.f32 %v2604_v51, %v2476_v60  ;;  %v11089_v32 = vadd.f32 %v2605_v54, %v2477_v58  ;;  %v11091_v38 = vadd.f32 %v2606_v41, %v2478_v10  ;;  %v11093_v9 = vadd.f32 %v2636_v49, %v2508_v47  ;;  %v13687_v29 = vld [vmem:[#allocation41_spill] sm:$0xff]  ;;  %v3770_v63 = vld [vmem:[#allocation9 + $0x33] ss:$8 sm:$0x3] }
 0x55e   :  { %v11095_v27 = vadd.f32 %v2637_v37, %v2509_v26  ;;  %v11097_v55 = vadd.f32 %v2638_v56, %v2510_v3  ;;  %v11099_v50 = vadd.f32 %v2639_v35, %v2511_v14  ;;  %v3436_v0 = vrot.slane %v3419_v62, %v9513_v34  ;;  %v3803_v51 = vld [vmem:[#allocation9 + $0x34] ss:$8 sm:$0x3]  ;;  %v3836_v26 = vld [vmem:[#allocation9 + $0x35] ss:$8 sm:$0x3] }
 0x55f   :  { %v11087_v19 = vpop.permute.xlu1 %3707  ;;  %v3440_v60 = vrot.slane %v3419_v62, %v9515_v36  ;;  %v3469_v58 = vrot.slane %v3452_v42, %v9513_v34  ;;  %v3473_v10 = vrot.slane %v3452_v42, %v9515_v36  ;;  %v11108_v33 = vrot.slane %v3485_v11, %v9513_v34  ;;  %v3869_v62 = vld [vmem:[#allocation9 + $0x36] ss:$8 sm:$0x3] }
 0x560   :  { %v11111_v28 = vrot.slane %v3485_v11, %v9515_v36  ;;  %v3428_v6 = vsel %vm2164_vm3, %v13687_v29, %v10691_v21  ;;  %v3430_v25 = vsel %vm2164_vm3, %v10691_v21, %v13687_v29  ;;  %v11122_v1 = vrot.slane %v3551_v12, %v9513_v34 }
 0x561   :  { %v11103_v53 = vpop.permute.xlu0 %3709  ;;  %v11125_v44 = vrot.slane %v3551_v12, %v9515_v36  ;;  %v11130_v18 = vrot.slane %v3584_v48, %v9513_v34  ;;  %v11133_v7 = vrot.slane %v3584_v48, %v9515_v36  ;;  %v11136_v46 = vrot.slane %v3617_v61, %v9513_v34 }
 0x562   :  { %v11139_v21 = vrot.slane %v3617_v61, %v9515_v36  ;;  %v11142_v54 = vrot.slane %v3671_v13, %v9513_v34  ;;  %v11145_v41 = vrot.slane %v3671_v13, %v9515_v36  ;;  %v11148_v49 = vrot.slane %v3704_v59, %v9513_v34  ;;  %v13697_v13 = vld [vmem:[#allocation43_spill] sm:$0xff] }
 0x563   :  { %v11127_v31 = vpop.permute.xlu1 %3711  ;;  %v11151_v37 = vrot.slane %v3704_v59, %v9515_v36  ;;  %v3443_v56 = vmul.f32 %v3436_v0, %v3428_v6  ;;  %v3444_v35 = vmul.f32 %v3440_v60, %v3430_v25  ;;  %v11156_v3 = vrot.slane %v3737_v20, %v9513_v34  ;;  %v13698_v59 = vld [vmem:[#allocation42_spill] sm:$0xff] }
 0x564   :  { %13688 = vst [vmem:[#allocation19_spill] sm:$0xff] %v11148_v49  ;;  %v11159_v14 = vrot.slane %v3737_v20, %v9515_v36  ;;  %v11164_v11 = vrot.slane %v3770_v63, %v9513_v34  ;;  %v11167_v12 = vrot.slane %v3770_v63, %v9515_v36  ;;  %v11170_v48 = vrot.slane %v3803_v51, %v9513_v34  ;;  %v13701_v63 = vld [vmem:[#allocation46_spill] sm:$0xff] }
 0x565   :  { %13689 = vst [vmem:[#allocation21_spill] sm:$0xff] %v11151_v37  ;;  %v11153_v47 = vpop.permute.xlu0 %3738  ;;  %13690 = vst [vmem:[#allocation18_spill] sm:$0xff] %v11156_v3  ;;  %v11173_v61 = vrot.slane %v3803_v51, %v9515_v36  ;;  %v3429_v29 = vsel %vm2164_vm3, %v13698_v59, %v13697_v13  ;;  %v3431_v6 = vsel %vm2164_vm3, %v13697_v13, %v13698_v59  ;;  %v13715_v3 = vld [vmem:[#allocation59_spill] sm:$0xff] }
 0x566   :  { %13691 = vst [vmem:[#allocation22_spill] sm:$0xff] %v11159_v14  ;;  %13693 = vst [vmem:[#allocation25_spill] sm:$0xff] %v11164_v11  ;;  %v11184_v25 = vrot.slane %v3836_v26, %v9513_v34  ;;  %v11187_v20 = vrot.slane %v3836_v26, %v9515_v36  ;;  %v11200_v13 = vrot.slane %v3869_v62, %v9513_v34  ;;  %v13706_v11 = vld [vmem:[#allocation45_spill] sm:$0xff]  ;;  %v13708_v14 = vld [vmem:[#allocation48_spill] sm:$0xff] }
 0x567   :  { %v11161_v42 = vpop.permute.xlu1 %3740  ;;  %13694 = vst [vmem:[#allocation23_spill] sm:$0xff] %v11167_v12  ;;  %13695 = vst [vmem:[#allocation26_spill] sm:$0xff] %v11170_v48  ;;  %v13702_v48 = vld [vmem:[#allocation44_spill] sm:$0xff]  ;;  %v11203_v59 = vrot.slane %v3869_v62, %v9515_v36  ;;  %v3447_v26 = vadd.f32 %v3443_v56, %v11075_v39  ;;  %v3446_v34 = vmul.f32 %v3440_v60, %v3431_v6  ;;  %v13710_v36 = vld [vmem:[#allocation51_spill] sm:$0xff] }
 0x568   :  { %13692 = vst [vmem:[#allocation20_spill] sm:$0xff] %v11161_v42  ;;  %13696 = vst [vmem:[#allocation24_spill] sm:$0xff] %v11173_v61  ;;  %v3461_v51 = vsel %vm2198_vm4, %v13702_v48, %v13701_v63  ;;  %v3463_v61 = vsel %vm2198_vm4, %v13701_v63, %v13702_v48  ;;  %v3445_v63 = vmul.f32 %v3436_v0, %v3429_v29  ;;  %v13712_v6 = vld [vmem:[#allocation56_spill] sm:$0xff] }
 0x569   :  { %13699 = vst [vmem:[#allocation29_spill] sm:$0xff] %v11184_v25  ;;  %13700 = vst [vmem:[#allocation27_spill] sm:$0xff] %v11187_v20  ;;  %v11197_v12 = vpop.permute.xlu0 %3742  ;;  %v3448_v20 = vadd.f32 %v3444_v35, %v11077_v45  ;;  %v13705_v25 = vld [vmem:[#allocation47_spill] sm:$0xff]  ;;  %v3476_v56 = vmul.f32 %v3469_v58, %v3461_v51  ;;  %v3477_v35 = vmul.f32 %v3473_v10, %v3463_v61 }
 0x56a   :  { %13703 = vst [vmem:[#allocation30_spill] sm:$0xff] %v11200_v13  ;;  %13704 = vst [vmem:[#allocation28_spill] sm:$0xff] %v11203_v59  ;;  %v3462_v42 = vsel %vm2198_vm4, %v13706_v11, %v13705_v25  ;;  %v3464_v48 = vsel %vm2198_vm4, %v13705_v25, %v13706_v11  ;;  %v13707_v13 = vld [vmem:[#allocation50_spill] sm:$0xff]  ;;  %v13711_v59 = vld [vmem:[#allocation49_spill] sm:$0xff] }
 0x56b   :  { %v3494_v62 = vsel %vm2232_vm15, %v13708_v14, %v13707_v13  ;;  %v3496_v39 = vsel %vm2232_vm15, %v13707_v13, %v13708_v14  ;;  %v11223_v45 = vpop.permute.xlu1 %3744  ;;  %v3495_v0 = vsel %vm2232_vm15, %v13711_v59, %v13710_v36  ;;  %v3497_v60 = vsel %vm2232_vm15, %v13710_v36, %v13711_v59  ;;  %v13713_v25 = vld [vmem:[#allocation52_spill] sm:$0xff]  ;;  %v13716_v36 = vld [vmem:[#allocation53_spill] sm:$0xff] }
 0x56c   :  { %13709 = vst [vmem:[#allocation33_spill] sm:$0xff] %v11223_v45  ;;  %v3478_v11 = vmul.f32 %v3469_v58, %v3462_v42  ;;  %v3479_v29 = vmul.f32 %v3473_v10, %v3464_v48  ;;  %v3560_v14 = vsel %vm2300_vm1, %v13713_v25, %v13712_v6  ;;  %v3562_v61 = vsel %vm2300_vm1, %v13712_v6, %v13713_v25  ;;  %v13717_v48 = vld [vmem:[#allocation62_spill] sm:$0xff]  ;;  %v13718_v6 = vld [vmem:[#allocation60_spill] sm:$0xff] }
 0x56d   :  { %v11241_v51 = vpop.permute.xlu0 %3771  ;;  %v3509_v13 = vmul.f32 %v11108_v33, %v3494_v62  ;;  %v3510_v45 = vmul.f32 %v11111_v28, %v3496_v39  ;;  %v3561_v58 = vsel %vm2300_vm1, %v13716_v36, %v13715_v3  ;;  %v3563_v10 = vsel %vm2300_vm1, %v13715_v3, %v13716_v36 }
 0x56e   :  { %13714 = vst [vmem:[#allocation31_spill] sm:$0xff] %v11241_v51  ;;  %v3511_v42 = vmul.f32 %v11108_v33, %v3495_v0  ;;  %v3512_v59 = vmul.f32 %v11111_v28, %v3497_v60  ;;  %v3593_v62 = vsel %vm2334_vm14, %v13718_v6, %v13717_v48  ;;  %v3595_v39 = vsel %vm2334_vm14, %v13717_v48, %v13718_v6 }
 0x56f   :  { %v11263_v25 = vpop.permute.xlu1 %3773  ;;  %v3449_v51 = vadd.f32 %v3445_v63, %v11079_v22  ;;  %v3450_v3 = vadd.f32 %v3446_v34, %v11081_v57  ;;  %v3575_v33 = vmul.f32 %v11122_v1, %v3560_v14  ;;  %v3576_v28 = vmul.f32 %v11125_v44, %v3562_v61 }
 0x570   :  { %v3480_v0 = vadd.f32 %v3476_v56, %v11083_v2  ;;  %v3481_v60 = vadd.f32 %v3477_v35, %v11085_v15  ;;  %v3577_v36 = vmul.f32 %v11122_v1, %v3561_v58  ;;  %v3578_v37 = vmul.f32 %v11125_v44, %v3563_v10 }
 0x571   :  { %v11273_v49 = vpop.permute.xlu0 %3775  ;;  %v3482_v48 = vadd.f32 %v3478_v11, %v11089_v32  ;;  %v3483_v22 = vadd.f32 %v3479_v29, %v11091_v38  ;;  %v3608_v34 = vmul.f32 %v11130_v18, %v3593_v62  ;;  %v3609_v57 = vmul.f32 %v11133_v7, %v3595_v39  ;;  %v13719_v32 = vld [vmem:[#allocation61_spill] sm:$0xff]  ;;  %v13720_v39 = vld [vmem:[#allocation19_spill] sm:$0xff] }
 0x572   :  { %v3513_v63 = vadd.f32 %v3509_v13, %v11093_v9  ;;  %v3514_v2 = vadd.f32 %v3510_v45, %v11095_v27  ;;  %v3515_v15 = vadd.f32 %v3511_v42, %v11097_v55  ;;  %v3516_v1 = vadd.f32 %v3512_v59, %v11099_v50 }
 0x573   :  { %v11283_v56 = vpop.permute.xlu1 %3777  ;;  %v3579_v44 = vadd.f32 %v3575_v33, %v3447_v26  ;;  %v3580_v35 = vadd.f32 %v3576_v28, %v3448_v20  ;;  %v3594_v38 = vsel %vm2334_vm14, %v13719_v32, %v10899_v17  ;;  %v3596_v9 = vsel %vm2334_vm14, %v10899_v17, %v13719_v32  ;;  %v13723_v32 = vld [vmem:[#allocation22_spill] sm:$0xff] }
 0x574   :  { %v3581_v11 = vadd.f32 %v3577_v36, %v3449_v51  ;;  %v3582_v27 = vadd.f32 %v3578_v37, %v3450_v3  ;;  %v3626_v55 = vsel %vm2368_vm13, %v10923_v5, %v10979_v23  ;;  %v3628_v50 = vsel %vm2368_vm13, %v10979_v23, %v10923_v5 }
 0x575   :  { %v11301_v20 = vpop.permute.xlu0 %3804  ;;  %v3612_v26 = vadd.f32 %v3608_v34, %v3480_v0  ;;  %v3613_v45 = vadd.f32 %v3609_v57, %v3481_v60  ;;  %v3627_v17 = vsel %vm2368_vm13, %v10945_v8, %v10991_v16  ;;  %v3629_v37 = vsel %vm2368_vm13, %v10991_v16, %v10945_v8  ;;  %v13722_v34 = vld [vmem:[#allocation18_spill] sm:$0xff] }
 0x576   :  { %v3610_v29 = vmul.f32 %v11130_v18, %v3594_v38  ;;  %v3611_v14 = vmul.f32 %v11133_v7, %v3596_v9  ;;  %v3680_v5 = vsel %vm2164_vm3, %v11001_v24, %v11049_v52  ;;  %v3682_v23 = vsel %vm2164_vm3, %v11049_v52, %v11001_v24 }
 0x577   :  { %v11321_v61 = vpop.permute.xlu1 %3806  ;;  %v3641_v51 = vmul.f32 %v11136_v46, %v3626_v55  ;;  %v3642_v8 = vmul.f32 %v11139_v21, %v3628_v50  ;;  %v3681_v16 = vsel %vm2164_vm3, %v11015_v43, %v11065_v4  ;;  %v3683_v18 = vsel %vm2164_vm3, %v11065_v4, %v11015_v43  ;;  %v13724_v55 = vld [vmem:[#allocation33_spill] sm:$0xff]  ;;  %v13725_v50 = vld [vmem:[#allocation20_spill] sm:$0xff] }
 0x578   :  { %v3643_v7 = vmul.f32 %v11136_v46, %v3627_v17  ;;  %v3644_v24 = vmul.f32 %v11139_v21, %v3629_v37  ;;  %v3713_v52 = vsel %vm2198_vm4, %v11073_v40, %v11103_v53  ;;  %v3715_v13 = vsel %vm2198_vm4, %v11103_v53, %v11073_v40 }
 0x579   :  { %v3809_v58 = vpop.permute.xlu0 %3808  ;;  %v3695_v10 = vmul.f32 %v11142_v54, %v3682_v23  ;;  %v3696_v42 = vmul.f32 %v11145_v41, %v3680_v5  ;;  %v3714_v43 = vsel %vm2198_vm4, %v11087_v19, %v11127_v31  ;;  %v3716_v4 = vsel %vm2198_vm4, %v11127_v31, %v11087_v19  ;;  %v13721_v19 = vld [vmem:[#allocation21_spill] sm:$0xff] }
 0x57a   :  { %v3697_v46 = vmul.f32 %v11142_v54, %v3683_v18  ;;  %v3698_v21 = vmul.f32 %v11145_v41, %v3681_v16  ;;  %v3746_v40 = vsel %vm2232_vm15, %v11153_v47, %v11197_v12  ;;  %v3748_v53 = vsel %vm2232_vm15, %v11197_v12, %v11153_v47  ;;  %v13727_v16 = vld [vmem:[#allocation25_spill] sm:$0xff] }
 0x57b   :  { %v3811_v59 = vpop.permute.xlu1 %3810  ;;  %v3614_v6 = vadd.f32 %v3610_v29, %v3482_v48  ;;  %v3615_v62 = vadd.f32 %v3611_v14, %v3483_v22  ;;  %v3728_v3 = vmul.f32 %v13720_v39, %v3715_v13  ;;  %v3729_v31 = vmul.f32 %v13721_v19, %v3713_v52 }
 0x57c   :  { %v3645_v54 = vadd.f32 %v3641_v51, %v3513_v63  ;;  %v3646_v33 = vadd.f32 %v3642_v8, %v3514_v2  ;;  %v3730_v41 = vmul.f32 %v13720_v39, %v3716_v4  ;;  %v3731_v28 = vmul.f32 %v13721_v19, %v3714_v43 }
 0x57d   :  { %v3838_v0 = vpop.permute.xlu0 %3837  ;;  %v3647_v60 = vadd.f32 %v3643_v7, %v3515_v15  ;;  %v3648_v36 = vadd.f32 %v3644_v24, %v3516_v1  ;;  %v3761_v57 = vmul.f32 %v13722_v34, %v3748_v53  ;;  %v3762_v47 = vmul.f32 %v13723_v32, %v3746_v40  ;;  %v13728_v7 = vld [vmem:[#allocation23_spill] sm:$0xff] }
 0x57e   :  { %v3699_v12 = vadd.f32 %v3695_v10, %v3579_v44  ;;  %v3700_v48 = vadd.f32 %v3696_v42, %v3580_v35  ;;  %v11369_v22 = vadd.f32 %v3697_v46, %v3581_v11  ;;  %v11371_v38 = vadd.f32 %v3698_v21, %v3582_v27  ;;  %v13726_v35 = vld [vmem:[#allocation31_spill] sm:$0xff] }
 0x57f   :  { %v3840_v9 = vpop.permute.xlu1 %3839  ;;  %v3732_v63 = vadd.f32 %v3728_v3, %v3612_v26  ;;  %v3733_v2 = vadd.f32 %v3729_v31, %v3613_v45  ;;  %v3747_v17 = vsel %vm2232_vm15, %v13725_v50, %v13724_v55  ;;  %v3749_v15 = vsel %vm2232_vm15, %v13724_v55, %v13725_v50  ;;  %v13730_v21 = vld [vmem:[#allocation27_spill] sm:$0xff]  ;;  %v13732_v3 = vld [vmem:[#allocation24_spill] sm:$0xff] }
 0x580   :  { %v3734_v1 = vadd.f32 %v3730_v41, %v3614_v6  ;;  %v3735_v44 = vadd.f32 %v3731_v28, %v3615_v62  ;;  %v3779_v11 = vsel %vm13545_vm2, %v13726_v35, %v11273_v49  ;;  %v3781_v27 = vsel %vm13545_vm2, %v11273_v49, %v13726_v35  ;;  %v13731_v62 = vld [vmem:[#allocation26_spill] sm:$0xff]  ;;  %v13734_v41 = vld [vmem:[#allocation55_spill] sm:$0xff] }
 0x581   :  { %v3842_v26 = vpop.permute.xlu0 %3841  ;;  %v3765_v45 = vadd.f32 %v3761_v57, %v3645_v54  ;;  %v3766_v37 = vadd.f32 %v3762_v47, %v3646_v33  ;;  %v3780_v29 = vsel %vm13545_vm2, %v11263_v25, %v11283_v56  ;;  %v3782_v14 = vsel %vm13545_vm2, %v11283_v56, %v11263_v25  ;;  %v13733_v54 = vld [vmem:[#allocation54_spill] sm:$0xff] }
 0x582   :  { %v3763_v5 = vmul.f32 %v13722_v34, %v3749_v15  ;;  %v3764_v23 = vmul.f32 %v13723_v32, %v3747_v17  ;;  %v3845_v49 = vsel %vm2334_vm14, %v3838_v0, %v3842_v26  ;;  %v3847_v51 = vsel %vm2334_vm14, %v3842_v26, %v3838_v0  ;;  %v13736_v57 = vld [vmem:[#allocation58_spill] sm:$0xff]  ;;  %v13738_v26 = vld [vmem:[#allocation28_spill] sm:$0xff] }
 0x583   :  { %v3844_v8 = vpop.permute.xlu1 %3843  ;;  %v3794_v18 = vmul.f32 %v13727_v16, %v3781_v27  ;;  %v3795_v24 = vmul.f32 %v13728_v7, %v3779_v11  ;;  %v3812_v52 = vsel %vm2300_vm1, %v11301_v20, %v3809_v58  ;;  %v3814_v25 = vsel %vm2300_vm1, %v3809_v58, %v11301_v20  ;;  %v13729_v20 = vld [vmem:[#allocation29_spill] sm:$0xff]  ;;  %v13737_v11 = vld [vmem:[#allocation30_spill] sm:$0xff] }
 0x584   :  { %v3796_v56 = vmul.f32 %v13727_v16, %v3782_v14  ;;  %v3797_v13 = vmul.f32 %v13728_v7, %v3780_v29  ;;  %v3846_v10 = vsel %vm2334_vm14, %v3840_v9, %v3844_v8  ;;  %v3848_v42 = vsel %vm2334_vm14, %v3844_v8, %v3840_v9 }
 0x585   :  { %v3871_v43 = vpop.permute.xlu0 %3870  ;;  %v3813_v4 = vsel %vm2300_vm1, %v11321_v61, %v3811_v59  ;;  %v3815_v46 = vsel %vm2300_vm1, %v3811_v59, %v11321_v61  ;;  %v3860_v58 = vmul.f32 %v13729_v20, %v3847_v51  ;;  %v3861_v40 = vmul.f32 %v13730_v21, %v3845_v49  ;;  %v13735_v61 = vld [vmem:[#allocation57_spill] sm:$0xff] }
 0x586   :  { %v3767_v53 = vadd.f32 %v3763_v5, %v3647_v60  ;;  %v3768_v6 = vadd.f32 %v3764_v23, %v3648_v36  ;;  %v3827_v39 = vmul.f32 %v13731_v62, %v3814_v25  ;;  %v3828_v19 = vmul.f32 %v13732_v3, %v3812_v52 }
 0x587   :  { %v3873_v31 = vpop.permute.xlu1 %3872  ;;  %v8166_v33 = vadd.f32 %v13733_v54, %v3794_v18  ;;  %v8170_v28 = vadd.f32 %v13734_v41, %v3795_v24  ;;  %v3862_v0 = vmul.f32 %v13729_v20, %v3848_v42  ;;  %v3863_v34 = vmul.f32 %v13730_v21, %v3846_v10  ;;  %v8924_v20 = vld [vmem:[#allocation3] sm:$0xff]  ;;  %v8926_v21 = vld [vmem:[#allocation3 + $0x10] sm:$0xff] }
 0x588   :  { %v8174_v59 = vadd.f32 %v13735_v61, %v3796_v56  ;;  %v8178_v32 = vadd.f32 %v13736_v57, %v3797_v13  ;;  %v3829_v60 = vmul.f32 %v13731_v62, %v3815_v46  ;;  %v3830_v36 = vmul.f32 %v13732_v3, %v3813_v4  ;;  %v4026_v41 = vld [vmem:[#allocation3 + $0x20] sm:$0xff] }
 0x589   :  { %v3875_v47 = vpop.permute.xlu0 %3874  ;;  %v3864_v9 = vadd.f32 %v3860_v58, %v3732_v63  ;;  %v3865_v55 = vadd.f32 %v3861_v40, %v3733_v2  ;;  %v3831_v15 = vadd.f32 %v3827_v39, %v3699_v12  ;;  %v3832_v35 = vadd.f32 %v3828_v19, %v3700_v48  ;;  %v8925_v58 = vld [vmem:[#allocation3 + $0x18] sm:$0xff]  ;;  %v4030_v57 = vld [vmem:[%s13393_s1] sm:$0xff] }
 0x58a   :  { %v3878_v50 = vsel %vm2368_vm13, %v3871_v43, %v3875_v47  ;;  %v3880_v17 = vsel %vm2368_vm13, %v3875_v47, %v3871_v43  ;;  %v3866_v5 = vadd.f32 %v3862_v0, %v3734_v1  ;;  %v3867_v23 = vadd.f32 %v3863_v34, %v3735_v44  ;;  %v8923_v43 = vld [vmem:[#allocation3 + $0x8] sm:$0xff]  ;;  %v3925_v0 = vld [vmem:[%s13395_s3] sm:$0xff] }
 0x58b   :  { %v3893_v27 = vmul.f32 %v13737_v11, %v3880_v17  ;;  %v3894_v29 = vmul.f32 %v13738_v26, %v3878_v50  ;;  %v3877_v14 = vpop.permute.xlu1 %3876  ;;  %v3833_v48 = vadd.f32 %v3829_v60, %v11369_v22  ;;  %v3834_v16 = vadd.f32 %v3830_v36, %v11371_v38 }
 0x58c   :  { %v3879_v49 = vsel %vm2368_vm13, %v3873_v31, %v3877_v14  ;;  %v3881_v63 = vsel %vm2368_vm13, %v3877_v14, %v3873_v31  ;;  %v3906_v18 = vadd.f32 %v3865_v55, %v3832_v35  ;;  %v3905_v7 = vadd.f32 %v3864_v9, %v3831_v15 }
 0x58d   :  { %v3897_v2 = vadd.f32 %v3893_v27, %v3765_v45  ;;  %v3898_v51 = vadd.f32 %v3894_v29, %v3766_v37  ;;  %v3895_v8 = vmul.f32 %v13737_v11, %v3881_v63  ;;  %v3896_v12 = vmul.f32 %v13738_v26, %v3879_v49 }
 0x58e   :  { %v3908_v25 = vadd.f32 %v3867_v23, %v3834_v16  ;;  %v3907_v56 = vadd.f32 %v3866_v5, %v3833_v48  ;;  %v13739_v61 = vmov 0.0  }
 0x58f   :  { %v3899_v1 = vadd.f32 %v3895_v8, %v3767_v53  ;;  %v3900_v44 = vadd.f32 %v3896_v12, %v3768_v6  ;;  %v3910_v24 = vadd.f32 %v8170_v28, %v3898_v51  ;;  %v3909_v52 = vadd.f32 %v8166_v33, %v3897_v2  ;;  %v4027_v53 = vld [vmem:[#allocation3 + $0x28] sm:$0xff]  ;;  %v4029_v6 = vld [vmem:[#allocation3 + $0x38] sm:$0xff]  ;;  %v4028_v28 = vld [vmem:[#allocation3 + $0x30] sm:$0xff] }
 0x590   :  { %v8155_v33 = vpack.c.bf16 %v4029_v6, %v4027_v53  ;;  %v8157_v34 = vpack.c.bf16 %v4028_v28, %v4026_v41 }
 0x591   :  { %v3912_v13 = vadd.f32 %v8178_v32, %v3900_v44  ;;  %v3914_v10 = vadd.f32 %v3910_v24, %v3906_v18  ;;  %v3911_v45 = vadd.f32 %v8174_v59, %v3899_v1  ;;  %v3913_v37 = vadd.f32 %v3909_v52, %v3905_v7  ;;  %v3926_v59 = vld [vmem:[%s13395_s3 + $0x8] sm:$0xff] }
 0x592   :  { %v4031_v32 = vld [vmem:[%s13393_s1 + $0x8] sm:$0xff]  ;;  %s13744_s1 = smov 5  }
 0x593   :  { %v3916_v42 = vadd.f32 %v3912_v13, %v3908_v25  ;;  %v3918_v4 = vadd.f32 %v8923_v43, %v3914_v10  ;;  %v3915_v46 = vadd.f32 %v3911_v45, %v3907_v56  ;;  %v3917_v22 = vadd.f32 %v8924_v20, %v3913_v37 }
 0x595   :  { %v3920_v38 = vadd.f32 %v8925_v58, %v3916_v42  ;;  %v3919_v40 = vadd.f32 %v8926_v21, %v3915_v46  ;;  %v3922_v62 = vmax.f32 %v3918_v4, 0.0  ;;  %v3921_v3 = vmax.f32 %v3917_v22, 0.0 }
 0x597   :  { %v3924_v39 = vmax.f32 %v3920_v38, 0.0  ;;  %v3923_v19 = vmax.f32 %v3919_v40, 0.0 }
 0x599   :  { %v8151_v31 = vpack.c.bf16 %v3924_v39, %v3922_v62  ;;  %v8153_v54 = vpack.c.bf16 %v3923_v19, %v3921_v3 }
 0x59a   :  { %v4037_v55 = vpop.permute.xlu0 %4036 }
 0x59b   :  { %8152 = vmatprep.subr.bf16.mxu0 %v8151_v31 }
 0x59c   :  { %8154 = vmatpush1.bf16.msra.mxu0 %v8153_v54  ;;  %v4042_v35 = vpop.permute.xlu1 %4041 }
 0x59d   :  { %8156 = vmatprep.subr.bf16.mxu0 %v8155_v33 }
 0x59f   :  { %8013 = vmatmul.mubr.msk.f32.vlgmr.msra.gmra.mrb[0].mxu0 %vm13544_vm0, %v3925_v0 }
 0x5a0   :  { %4015 = vmatprep.mubr.f32.mxu0 %v13739_v61  ;;  %8158 = vmatpush1.bf16.msra.mxu0 %v8157_v34 }
 0x5a3   :  { %8014 = vmatmul.mubr.msk.f32.gmra.mrb[2].mxu0 %vm13544_vm0, %v3926_v59 }
 0x5a4   :  { %4114 = vmatprep.mubr.f32.mxu0 %v13739_v61 }
 0x5a7   :  { %8015 = vmatmul.mubr.msk.f32.vlgmr.msra.gmra.mrb[4].mxu0 %vm13544_vm0, %v4030_v57 }
 0x5a8   :  { %4120 = vmatprep.mubr.f32.mxu0 %v13739_v61 }
 0x5ab   :  { %8016 = vmatmul.mubr.msk.f32.gmra.mrb[6].mxu0 %vm13544_vm0, %v4031_v32 }
 0x672   :  { %v11468_v60 = vpop.f32.mrb[0].mxu0 }
 0x673   :  { %13740 = vst [vmem:[#allocation34_spill] sm:$0xff] %v11468_v60  ;;  %v11470_v36 = vpop.f32.mrb[1].mxu0 }
 0x674   :  { %13741 = vst [vmem:[#allocation32_spill] sm:$0xff] %v11470_v36  ;;  %v8714_v36 = vld [vmem:[#allocation6 + $0xa4] ss:$16 sps:$4 sm:$0xff]  }
 0x676   :  { %v11472_v47 = vpop.f32.mrb[2].mxu0 }
 0x677   :  { %13742 = vst [vmem:[#allocation37_spill] sm:$0xff] %v11472_v47  ;;  %v11474_v9 = vpop.f32.mrb[3].mxu0 }
 0x678   :  { %13743 = vst [vmem:[#allocation35_spill] sm:$0xff] %v11474_v9  ;;  %v8713_v9 = vld [vmem:[#allocation6 + $0x80] ss:$16 sps:$4 sm:$0xff]  }
 0x67a   :  { %v4116_v50 = vpop.f32.mrb[4].mxu0 }
 0x67b   :  { %v11476_v17 = vadd.f32 %v4116_v50, %v4037_v55  ;;  %v4118_v15 = vpop.f32.mrb[5].mxu0 }
 0x67c   :  { %v11485_v16 = vadd.f32 %v4118_v15, %v4037_v55 }
 0x67d   :  { %v4127_v11 = vmul.f32 0.70710677, %v11476_v17  ;;  %v4219_v15 = vmul.f32 0.5, %v11476_v17 }
 0x67e   :  { %v4122_v27 = vpop.f32.mrb[6].mxu0  ;;  %v11488_v52 = vmul.f32 0.70710677, %v11485_v16 }
 0x67f   :  { %v4131_v26 = vand.u32 2147483647, %v4127_v11  ;;  %v11479_v29 = vadd.f32 %v4122_v27, %v4042_v35  ;;  %v4124_v14 = vpop.f32.mrb[7].mxu0  ;;  %vm4207_vm0 = vcmp.ge.f32.partialorder %v4127_v11, 0.0 }
 0x680   :  { %v11490_v56 = vadd.f32 %v4124_v14, %v4042_v35  ;;  %v4132_v42 = vand.u32 2147483647, %v11488_v52 }
 0x681   :  { %v4135_v5 = vmul.f32 0.3275911, %v4131_v26  ;;  %v11482_v23 = vmul.f32 0.70710677, %v11479_v29  ;;  %v4183_v8 = vsub.f32 0.0, %v4131_v26 }
 0x682   :  { %v11494_v4 = vmul.f32 0.70710677, %v11490_v56  ;;  %v4136_v38 = vmul.f32 0.3275911, %v4132_v42 }
 0x683   :  { %v4139_v49 = vadd.f32 1.0, %v4135_v5  ;;  %v4133_v63 = vand.u32 2147483647, %v11482_v23  ;;  %v4187_v48 = vmul.f32 %v4183_v8, %v4131_v26  ;;  %vm4209_vm2 = vcmp.ge.f32.partialorder %v11482_v23, 0.0 }
 0x684   :  { %v4134_v21 = vand.u32 2147483647, %v11494_v4  ;;  %v4140_v39 = vadd.f32 1.0, %v4136_v38 }
 0x685   :  { %8907 = vrcp.f32 %v4139_v49  ;;  %v4137_v2 = vmul.f32 0.3275911, %v4133_v63  ;;  %v4185_v18 = vsub.f32 0.0, %v4133_v63  ;;  %v4191_v24 = vmul.f32 1.442695, %v4187_v48 }
 0x686   :  { %v4138_v3 = vmul.f32 0.3275911, %v4134_v21  ;;  %v4221_v49 = vmul.f32 0.5, %v11479_v29 }
 0x687   :  { %v4141_v51 = vadd.f32 1.0, %v4137_v2  ;;  %v4189_v25 = vmul.f32 %v4185_v18, %v4133_v63  ;;  %v4184_v18 = vsub.f32 0.0, %v4132_v42 }
 0x688   :  { %v4142_v28 = vadd.f32 1.0, %v4138_v3 }
 0x689   :  { %8909 = vrcp.f32 %v4141_v51  ;;  %v4195_v43 = vmul.f32 1.442695, %v4189_v25 }
 0x68a   :  { %8911 = vpow2.f32 %v4191_v24  ;;  %v4186_v24 = vsub.f32 0.0, %v4134_v21 }
 0x68b   :  { %8913 = vpow2.f32 %v4195_v43 }
 0x68c   :  { %8915 = vrcp.f32 %v4140_v39 }
 0x68d   :  { %8917 = vrcp.f32 %v4142_v28 }
 0x68f   :  { %v8908_v12 = vpop.eup %8907 }
 0x690   :  { %v4147_v7 = vmul.f32 1.0614054, %v8908_v12 }
 0x692   :  { %v4151_v1 = vadd.f32 -1.4531521, %v4147_v7 }
 0x693   :  { %v8910_v44 = vpop.eup %8909 }
 0x694   :  { %v4155_v13 = vmul.f32 %v8908_v12, %v4151_v1  ;;  %v4149_v10 = vmul.f32 1.0614054, %v8910_v44  ;;  %v8912_v54 = vpop.eup %8911 }
 0x695   :  { %v8914_v59 = vpop.eup %8913 }
 0x696   :  { %v4159_v45 = vadd.f32 1.4214138, %v4155_v13  ;;  %v4153_v37 = vadd.f32 -1.4531521, %v4149_v10  ;;  %v8916_v5 = vpop.eup %8915 }
 0x697   :  { %v4148_v2 = vmul.f32 1.0614054, %v8916_v5  ;;  %v8918_v51 = vpop.eup %8917 }
 0x698   :  { %v4163_v46 = vmul.f32 %v8908_v12, %v4159_v45  ;;  %v4157_v20 = vmul.f32 %v8910_v44, %v4153_v37  ;;  %v4150_v23 = vmul.f32 1.0614054, %v8918_v51  ;;  %v4190_v45 = vmul.f32 %v4186_v24, %v4134_v21 }
 0x699   :  { %v4152_v17 = vadd.f32 -1.4531521, %v4148_v2 }
 0x69a   :  { %v4167_v22 = vadd.f32 -0.28449672, %v4163_v46  ;;  %v4161_v58 = vadd.f32 1.4214138, %v4157_v20  ;;  %v4154_v8 = vadd.f32 -1.4531521, %v4150_v23 }
 0x69b   :  { %v4156_v29 = vmul.f32 %v8916_v5, %v4152_v17 }
 0x69c   :  { %v4171_v40 = vmul.f32 %v8908_v12, %v4167_v22  ;;  %v4165_v53 = vmul.f32 %v8910_v44, %v4161_v58  ;;  %v4158_v48 = vmul.f32 %v8918_v51, %v4154_v8 }
 0x69e   :  { %v4175_v6 = vadd.f32 0.2548296, %v4171_v40  ;;  %v4169_v62 = vadd.f32 -0.28449672, %v4165_v53  ;;  %v4162_v1 = vadd.f32 1.4214138, %v4158_v48 }
 0x6a0   :  { %v4179_v19 = vmul.f32 %v8908_v12, %v4175_v6  ;;  %v4173_v31 = vmul.f32 %v8910_v44, %v4169_v62  ;;  %v4160_v12 = vadd.f32 1.4214138, %v4156_v29  ;;  %v4166_v13 = vmul.f32 %v8918_v51, %v4162_v1 }
 0x6a2   :  { %v4199_v33 = vmul.f32 %v8912_v54, %v4179_v19  ;;  %v4177_v41 = vadd.f32 0.2548296, %v4173_v31  ;;  %v4164_v7 = vmul.f32 %v8916_v5, %v4160_v12  ;;  %v4170_v43 = vadd.f32 -0.28449672, %v4166_v13 }
 0x6a4   :  { %v4203_v0 = vsub.f32 1.0, %v4199_v33  ;;  %v4181_v34 = vmul.f32 %v8910_v44, %v4177_v41  ;;  %v4188_v44 = vmul.f32 %v4184_v18, %v4132_v42  ;;  %v4168_v25 = vadd.f32 -0.28449672, %v4164_v7 }
 0x6a5   :  { %v4197_v42 = vmul.f32 1.442695, %v4190_v45  ;;  %v4174_v20 = vmul.f32 %v8918_v51, %v4170_v43  ;;  %v4220_v41 = vmul.f32 0.5, %v11485_v16  ;;  %v13753_v43 = vld [vmem:[#allocation16_spill] sm:$0xff] }
 0x6a6   :  { %v4211_v57 = vsub.f32 0.0, %v4203_v0  ;;  %v4201_v32 = vmul.f32 %v8914_v59, %v4181_v34  ;;  %v4193_v10 = vmul.f32 1.442695, %v4188_v44  ;;  %v4172_v37 = vmul.f32 %v8916_v5, %v4168_v25  ;;  %v8701_v59 = vld [vmem:[#allocation6 + $0x4] ss:$16 sps:$4 sm:$0xff]  }
 0x6a7   :  { %v4178_v58 = vadd.f32 0.2548296, %v4174_v20  ;;  %5675 = vmatprep.mubr.bf16.mxu0 %v8701_v59  ;;  %v13754_v20 = vld [vmem:[#allocation17_spill] sm:$0xff] }
 0x6a8   :  { %v4215_v55 = vsel %vm4207_vm0, %v4203_v0, %v4211_v57  ;;  %v4205_v50 = vsub.f32 1.0, %v4201_v32  ;;  %8919 = vpow2.f32 %v4193_v10  ;;  %v4176_v46 = vadd.f32 0.2548296, %v4172_v37  ;;  %v4231_v10 = vld [vmem:[#allocation8] ss:$8 sm:$0x3] }
 0x6a9   :  { %v4223_v35 = vadd.f32 1.0, %v4215_v55  ;;  %8921 = vpow2.f32 %v4197_v42  ;;  %v4182_v40 = vmul.f32 %v8918_v51, %v4178_v58  ;;  %vm4208_vm0 = vcmp.ge.f32.partialorder %v11488_v52, 0.0 }
 0x6aa   :  { %v4213_v27 = vsub.f32 0.0, %v4205_v50  ;;  %v4180_v22 = vmul.f32 %v8916_v5, %v4176_v46  ;;  %v4222_v0 = vmul.f32 0.5, %v11490_v56  ;;  %v4248_v42 = vrot.slane %v4231_v10, %v13753_v43  ;;  %v4263_v46 = vld [vmem:[#allocation8 + $0x1] ss:$8 sm:$0x3] }
 0x6ab   :  { %v11498_v26 = vmul.f32 %v4223_v35, %v4219_v15 }
 0x6ac   :  { %v4217_v14 = vsel %vm4209_vm2, %v4205_v50, %v4213_v27  ;;  %vm4210_vm2 = vcmp.ge.f32.partialorder %v11494_v4, 0.0 }
 0x6ad   :  { %v4225_v63 = vadd.f32 1.0, %v4217_v14  ;;  %4232 = vrot.lane.b32.xlu0 %v11498_v26, %s9058_s20 }
 0x6af   :  { %v11504_v11 = vmul.f32 %v4225_v63, %v4221_v49 }
 0x6b1   :  { %4234 = vrot.lane.b32.xlu1 %v11504_v11, %s9058_s20  ;;  %4264 = vrot.lane.b32.xlu0 %v11498_v26, %s9057_s19 }
 0x6b2   :  { %v8920_v38 = vpop.eup %8919 }
 0x6b3   :  { %v4200_v21 = vmul.f32 %v8920_v38, %v4180_v22  ;;  %v8922_v53 = vpop.eup %8921  ;;  %v4252_v22 = vrot.slane %v4231_v10, %v13754_v20 }
 0x6b4   :  { %v4202_v62 = vmul.f32 %v8922_v53, %v4182_v40  ;;  %v4280_v40 = vrot.slane %v4263_v46, %v13753_v43 }
 0x6b5   :  { %4266 = vrot.lane.b32.xlu1 %v11504_v11, %s9057_s19  ;;  %4296 = vrot.lane.b32.xlu0 %v11498_v26, %s9059_s21  ;;  %v4204_v6 = vsub.f32 1.0, %v4200_v21 }
 0x6b6   :  { %v4206_v3 = vsub.f32 1.0, %v4202_v62 }
 0x6b7   :  { %v4212_v39 = vsub.f32 0.0, %v4204_v6 }
 0x6b8   :  { %v4214_v31 = vsub.f32 0.0, %v4206_v3 }
 0x6b9   :  { %4298 = vrot.lane.b32.xlu1 %v11504_v11, %s9059_s21  ;;  %4328 = vrot.lane.b32.xlu0 %v11498_v26, %s9060_s0  ;;  %v4216_v19 = vsel %vm4208_vm0, %v4204_v6, %v4212_v39  ;;  %vm13770_vm0 = vcmp.lt.s32.totalorder %v9509_v30, 5 }
 0x6ba   :  { %v4224_v54 = vadd.f32 1.0, %v4216_v19  ;;  %v4218_v33 = vsel %vm4210_vm2, %v4206_v3, %v4214_v31  ;;  %v4284_v3 = vrot.slane %v4263_v46, %v13754_v20  ;;  %v4295_v19 = vld [vmem:[#allocation8 + $0x2] ss:$8 sm:$0x3]  ;;  %vm13771_vm2 = vmmov %vm13770_vm0 }
 0x6bb   :  { %v4226_v28 = vadd.f32 1.0, %v4218_v33  ;;  %v4316_v46 = vrot.slane %v4295_v19, %v13754_v20 }
 0x6bc   :  { %v11565_v52 = vmul.f32 %v4224_v54, %v4220_v41 }
 0x6bd   :  { %4330 = vrot.lane.b32.xlu1 %v11504_v11, %s9060_s0  ;;  %4360 = vrot.lane.b32.xlu0 %v11498_v26, %s9061_s30  ;;  %v11572_v4 = vmul.f32 %v4226_v28, %v4222_v0 }
 0x6c1   :  { %4362 = vrot.lane.b32.xlu1 %v11504_v11, %s9061_s30  ;;  %4392 = vrot.lane.b32.xlu0 %v11498_v26, %s9062_s22 }
 0x6c5   :  { %4394 = vrot.lane.b32.xlu1 %v11504_v11, %s9062_s22  ;;  %4424 = vrot.lane.b32.xlu0 %v11498_v26, %s9063_s23 }
 0x6c9   :  { %4426 = vrot.lane.b32.xlu1 %v11504_v11, %s9063_s23  ;;  %4456 = vrot.lane.b32.xlu0 %v11498_v26, %s9064_s24 }
 0x6cd   :  { %4458 = vrot.lane.b32.xlu1 %v11504_v11, %s9064_s24  ;;  %4488 = vrot.lane.b32.xlu0 %v11498_v26, %s9065_s25 }
 0x6d1   :  { %4490 = vrot.lane.b32.xlu1 %v11504_v11, %s9065_s25  ;;  %4520 = vrot.lane.b32.xlu0 %v11498_v26, %s9066_s26 }
 0x6d5   :  { %4522 = vrot.lane.b32.xlu1 %v11504_v11, %s9066_s26  ;;  %4552 = vrot.lane.b32.xlu0 %v11498_v26, %s13744_s1 }
 0x6d9   :  { %4554 = vrot.lane.b32.xlu1 %v11504_v11, %s13744_s1  ;;  %4584 = vrot.lane.b32.xlu0 %v11498_v26, %s13745_s18 }
 0x6dd   :  { %4586 = vrot.lane.b32.xlu1 %v11504_v11, %s13745_s18  ;;  %4616 = vrot.lane.b32.xlu0 %v11498_v26, %s13746_s5 }
 0x6e1   :  { %4618 = vrot.lane.b32.xlu1 %v11504_v11, %s13746_s5  ;;  %4648 = vrot.lane.b32.xlu0 %v11498_v26, %s13747_s28 }
 0x6e5   :  { %4650 = vrot.lane.b32.xlu1 %v11504_v11, %s13747_s28  ;;  %4680 = vrot.lane.b32.xlu0 %v11498_v26, %s13748_s6 }
 0x6e9   :  { %4682 = vrot.lane.b32.xlu1 %v11504_v11, %s13748_s6  ;;  %4236 = vrot.lane.b32.xlu0 %v11565_v52, %s9058_s20 }
 0x6ed   :  { %4238 = vrot.lane.b32.xlu1 %v11572_v4, %s9058_s20  ;;  %4268 = vrot.lane.b32.xlu0 %v11565_v52, %s9057_s19  ;;  %s13750_s20 = smov 117  }
 0x6f1   :  { %4270 = vrot.lane.b32.xlu1 %v11572_v4, %s9057_s19  ;;  %4300 = vrot.lane.b32.xlu0 %v11565_v52, %s9059_s21  ;;  %s13749_s19 = smov 118  }
 0x6f5   :  { %4302 = vrot.lane.b32.xlu1 %v11572_v4, %s9059_s21  ;;  %4332 = vrot.lane.b32.xlu0 %v11565_v52, %s9060_s0  ;;  %s13751_s21 = smov 116  }
 0x6f9   :  { %4334 = vrot.lane.b32.xlu1 %v11572_v4, %s9060_s0  ;;  %4364 = vrot.lane.b32.xlu0 %v11565_v52, %s9061_s30  ;;  %s13752_s0 = smov 115  }
 0x6fd   :  { %4366 = vrot.lane.b32.xlu1 %v11572_v4, %s9061_s30  ;;  %4396 = vrot.lane.b32.xlu0 %v11565_v52, %s9062_s22  ;;  %s13755_s30 = smov 114  }
 0x701   :  { %4398 = vrot.lane.b32.xlu1 %v11572_v4, %s9062_s22  ;;  %4428 = vrot.lane.b32.xlu0 %v11565_v52, %s9063_s23  ;;  %s13756_s22 = smov 113  }
 0x705   :  { %4430 = vrot.lane.b32.xlu1 %v11572_v4, %s9063_s23  ;;  %4460 = vrot.lane.b32.xlu0 %v11565_v52, %s9064_s24  ;;  %s13886_s23 = smov 80  }
 0x709   :  { %4462 = vrot.lane.b32.xlu1 %v11572_v4, %s9064_s24  ;;  %4492 = vrot.lane.b32.xlu0 %v11565_v52, %s9065_s25  ;;  %s13887_s24 = smov 64  }
 0x70d   :  { %4494 = vrot.lane.b32.xlu1 %v11572_v4, %s9065_s25  ;;  %4524 = vrot.lane.b32.xlu0 %v11565_v52, %s9066_s26  ;;  %s13888_s25 = smov 48  }
 0x711   :  { %4526 = vrot.lane.b32.xlu1 %v11572_v4, %s9066_s26  ;;  %4556 = vrot.lane.b32.xlu0 %v11565_v52, %s13744_s1  ;;  %s13889_s26 = smov 32  }
 0x715   :  { %4558 = vrot.lane.b32.xlu1 %v11572_v4, %s13744_s1  ;;  %4588 = vrot.lane.b32.xlu0 %v11565_v52, %s13745_s18 }
 0x719   :  { %4590 = vrot.lane.b32.xlu1 %v11572_v4, %s13745_s18  ;;  %4620 = vrot.lane.b32.xlu0 %v11565_v52, %s13746_s5 }
 0x71d   :  { %4622 = vrot.lane.b32.xlu1 %v11572_v4, %s13746_s5  ;;  %4652 = vrot.lane.b32.xlu0 %v11565_v52, %s13747_s28 }
 0x71f   :  { %v11626_v16 = vpop.permute.xlu0 %4232 }
 0x721   :  { %4654 = vrot.lane.b32.xlu1 %v11572_v4, %s13747_s28  ;;  %4684 = vrot.lane.b32.xlu0 %v11565_v52, %s13748_s6 }
 0x723   :  { %v11632_v56 = vpop.permute.xlu1 %4234  ;;  %v11634_v34 = vpop.permute.xlu0 %4264 }
 0x725   :  { %4686 = vrot.lane.b32.xlu1 %v11572_v4, %s13748_s6  ;;  %4716 = vrot.lane.b32.xlu0 %v11498_v26, %s9072_s9 }
 0x727   :  { %v11640_v57 = vpop.permute.xlu1 %4266  ;;  %v11642_v32 = vpop.permute.xlu0 %4296 }
 0x729   :  { %4718 = vrot.lane.b32.xlu1 %v11504_v11, %s9072_s9  ;;  %4720 = vrot.lane.b32.xlu0 %v11565_v52, %s9072_s9 }
 0x72b   :  { %v11648_v55 = vpop.permute.xlu1 %4298  ;;  %v11650_v50 = vpop.permute.xlu0 %4328 }
 0x72d   :  { %4750 = vrot.lane.b32.xlu1 %v11504_v11, %s9073_s7  ;;  %4748 = vrot.lane.b32.xlu0 %v11498_v26, %s9073_s7 }
 0x72f   :  { %v11656_v15 = vpop.permute.xlu1 %4330  ;;  %v11658_v35 = vpop.permute.xlu0 %4360 }
 0x731   :  { %4782 = vrot.lane.b32.xlu1 %v11504_v11, %s9074_s10  ;;  %4752 = vrot.lane.b32.xlu0 %v11565_v52, %s9073_s7 }
 0x733   :  { %v11664_v27 = vpop.permute.xlu1 %4362  ;;  %v11666_v14 = vpop.permute.xlu0 %4392 }
 0x735   :  { %4814 = vrot.lane.b32.xlu1 %v11504_v11, %s9075_s11  ;;  %4780 = vrot.lane.b32.xlu0 %v11498_v26, %s9074_s10 }
 0x737   :  { %v11672_v5 = vpop.permute.xlu1 %4394  ;;  %v11674_v49 = vpop.permute.xlu0 %4424 }
 0x739   :  { %4846 = vrot.lane.b32.xlu1 %v11504_v11, %s9076_s12  ;;  %4784 = vrot.lane.b32.xlu0 %v11565_v52, %s9074_s10 }
 0x73b   :  { %v11680_v63 = vpop.permute.xlu1 %4426  ;;  %v11682_v2 = vpop.permute.xlu0 %4456 }
 0x73d   :  { %4878 = vrot.lane.b32.xlu1 %v11504_v11, %s9077_s13  ;;  %4812 = vrot.lane.b32.xlu0 %v11498_v26, %s9075_s11 }
 0x73f   :  { %v11688_v51 = vpop.permute.xlu1 %4458  ;;  %v11690_v17 = vpop.permute.xlu0 %4488 }
 0x741   :  { %4910 = vrot.lane.b32.xlu1 %v11504_v11, %s9078_s14  ;;  %4816 = vrot.lane.b32.xlu0 %v11565_v52, %s9075_s11 }
 0x743   :  { %v11696_v23 = vpop.permute.xlu1 %4490  ;;  %v11698_v29 = vpop.permute.xlu0 %4520 }
 0x745   :  { %4942 = vrot.lane.b32.xlu1 %v11504_v11, %s9079_s15  ;;  %4844 = vrot.lane.b32.xlu0 %v11498_v26, %s9076_s12 }
 0x747   :  { %v11704_v8 = vpop.permute.xlu1 %4522  ;;  %v11706_v12 = vpop.permute.xlu0 %4552 }
 0x749   :  { %4974 = vrot.lane.b32.xlu1 %v11504_v11, %s9080_s16  ;;  %4848 = vrot.lane.b32.xlu0 %v11565_v52, %s9076_s12 }
 0x74b   :  { %v11712_v48 = vpop.permute.xlu1 %4554  ;;  %v11714_v18 = vpop.permute.xlu0 %4584 }
 0x74d   :  { %5006 = vrot.lane.b32.xlu1 %v11504_v11, %s13749_s19  ;;  %4876 = vrot.lane.b32.xlu0 %v11498_v26, %s9077_s13 }
 0x74f   :  { %v11720_v7 = vpop.permute.xlu1 %4586  ;;  %v11722_v1 = vpop.permute.xlu0 %4616 }
 0x751   :  { %5038 = vrot.lane.b32.xlu1 %v11504_v11, %s13750_s20  ;;  %4880 = vrot.lane.b32.xlu0 %v11565_v52, %s9077_s13 }
 0x753   :  { %v11728_v44 = vpop.permute.xlu1 %4618  ;;  %v11730_v24 = vpop.permute.xlu0 %4648 }
 0x755   :  { %5070 = vrot.lane.b32.xlu1 %v11504_v11, %s13751_s21  ;;  %4908 = vrot.lane.b32.xlu0 %v11498_v26, %s9078_s14 }
 0x757   :  { %v11736_v25 = vpop.permute.xlu1 %4650  ;;  %v11738_v13 = vpop.permute.xlu0 %4680 }
 0x759   :  { %5102 = vrot.lane.b32.xlu1 %v11504_v11, %s13752_s0  ;;  %4912 = vrot.lane.b32.xlu0 %v11565_v52, %s9078_s14 }
 0x75b   :  { %v11744_v45 = vpop.permute.xlu1 %4682  ;;  %v4237_v37 = vpop.permute.xlu0 %4236 }
 0x75c   :  { %v4242_v58 = vsel %vm307_vm5, %v4237_v37, %v11626_v16  ;;  %v4240_v38 = vsel %vm307_vm5, %v11626_v16, %v4237_v37 }
 0x75d   :  { %5134 = vrot.lane.b32.xlu1 %v11504_v11, %s13755_s30  ;;  %4940 = vrot.lane.b32.xlu0 %v11498_v26, %s9079_s15  ;;  %v4255_v6 = vmul.f32 %v4248_v42, %v4242_v58  ;;  %v4256_v31 = vmul.f32 %v4252_v22, %v4240_v38 }
 0x75f   :  { %v4239_v21 = vpop.permute.xlu1 %4238  ;;  %v4269_v53 = vpop.permute.xlu0 %4268 }
 0x760   :  { %v4241_v62 = vsel %vm307_vm5, %v11632_v56, %v4239_v21  ;;  %v4243_v39 = vsel %vm307_vm5, %v4239_v21, %v11632_v56  ;;  %v4274_v41 = vsel %vm341_vm6, %v4269_v53, %v11634_v34  ;;  %v4272_v28 = vsel %vm341_vm6, %v11634_v34, %v4269_v53 }
 0x761   :  { %v4257_v54 = vmul.f32 %v4248_v42, %v4243_v39  ;;  %v4258_v33 = vmul.f32 %v4252_v22, %v4241_v62  ;;  %5166 = vrot.lane.b32.xlu1 %v11504_v11, %s13756_s22  ;;  %4944 = vrot.lane.b32.xlu0 %v11565_v52, %s9079_s15  ;;  %v4312_v56 = vrot.slane %v4295_v19, %v13753_v43  ;;  %v4327_v22 = vld [vmem:[#allocation8 + $0x3] ss:$8 sm:$0x3]  ;;  %vm13758_vm5 = vcmp.lt.s32.totalorder %v9509_v30, 7 }
 0x762   :  { %v4287_v37 = vmul.f32 %v4280_v40, %v4274_v41  ;;  %v4288_v58 = vmul.f32 %v4284_v3, %v4272_v28  ;;  %v4344_v62 = vrot.slane %v4327_v22, %v13753_v43 }
 0x763   :  { %v11776_v0 = vpack.c.bf16 %v4257_v54, %v4255_v6  ;;  %v4271_v16 = vpop.permute.xlu1 %4270  ;;  %v4301_v59 = vpop.permute.xlu0 %4300  ;;  %v11779_v10 = vpack.c.bf16 %v4258_v33, %v4256_v31  ;;  %v4348_v54 = vrot.slane %v4327_v22, %v13754_v20  ;;  %v4359_v33 = vld [vmem:[#allocation8 + $0x4] ss:$8 sm:$0x3] }
 0x764   :  { %v4273_v42 = vsel %vm341_vm6, %v11640_v57, %v4271_v16  ;;  %v4275_v34 = vsel %vm341_vm6, %v4271_v16, %v11640_v57  ;;  %v4306_v53 = vsel %vm375_vm7, %v4301_v59, %v11642_v32  ;;  %v4304_v6 = vsel %vm375_vm7, %v11642_v32, %v4301_v59  ;;  %vm13759_vm6 = vmmov %vm13758_vm5 }
 0x765   :  { %v4289_v38 = vmul.f32 %v4280_v40, %v4275_v34  ;;  %v4290_v21 = vmul.f32 %v4284_v3, %v4273_v42  ;;  %4722 = vrot.lane.b32.xlu1 %v11572_v4, %s9072_s9  ;;  %4972 = vrot.lane.b32.xlu0 %v11498_v26, %s9080_s16  ;;  %v4319_v19 = vmul.f32 %v4312_v56, %v4306_v53  ;;  %s13890_s9 = smov 16  }
 0x766   :  { %5643 = vmatprep.subr.bf16.mxu0 %v11779_v10  ;;  %v4320_v41 = vmul.f32 %v4316_v46, %v4304_v6  ;;  %v4376_v42 = vrot.slane %v4359_v33, %v13753_v43 }
 0x767   :  { %v11799_v57 = vpack.c.bf16 %v4289_v38, %v4287_v37  ;;  %5644 = vmatpush1.bf16.msra.mxu0 %v11776_v0  ;;  %v4303_v40 = vpop.permute.xlu1 %4302  ;;  %v4333_v39 = vpop.permute.xlu0 %4332  ;;  %v11803_v3 = vpack.c.bf16 %v4290_v21, %v4288_v58  ;;  %v4380_v38 = vrot.slane %v4359_v33, %v13754_v20  ;;  %v4391_v21 = vld [vmem:[#allocation8 + $0x5] ss:$8 sm:$0x3] }
 0x768   :  { %v4305_v32 = vsel %vm375_vm7, %v11648_v55, %v4303_v40  ;;  %v4307_v31 = vsel %vm375_vm7, %v4303_v40, %v11648_v55  ;;  %v4338_v59 = vsel %vm409_vm8, %v4333_v39, %v11650_v50  ;;  %v4336_v37 = vsel %vm409_vm8, %v11650_v50, %v4333_v39  ;;  %vm13762_vm7 = vmmov %vm13758_vm5 }
 0x769   :  { %v4321_v28 = vmul.f32 %v4312_v56, %v4307_v31  ;;  %v4322_v16 = vmul.f32 %v4316_v46, %v4305_v32  ;;  %4754 = vrot.lane.b32.xlu1 %v11572_v4, %s9073_s7  ;;  %4976 = vrot.lane.b32.xlu0 %v11565_v52, %s9080_s16  ;;  %v4351_v22 = vmul.f32 %v4344_v62, %v4338_v59 }
 0x76a   :  { %5645 = vmatprep.subr.bf16.mxu0 %v11803_v3  ;;  %v4352_v53 = vmul.f32 %v4348_v54, %v4336_v37  ;;  %v4408_v32 = vrot.slane %v4391_v21, %v13753_v43 }
 0x76b   :  { %v11823_v55 = vpack.c.bf16 %v4321_v28, %v4319_v19  ;;  %5646 = vmatpush1.bf16.msra.mxu0 %v11799_v57  ;;  %v4335_v56 = vpop.permute.xlu1 %4334  ;;  %v4365_v34 = vpop.permute.xlu0 %4364  ;;  %v11827_v46 = vpack.c.bf16 %v4322_v16, %v4320_v41  ;;  %v4412_v28 = vrot.slane %v4391_v21, %v13754_v20  ;;  %v4423_v16 = vld [vmem:[#allocation8 + $0x6] ss:$8 sm:$0x3] }
 0x76c   :  { %v4337_v50 = vsel %vm409_vm8, %v11656_v15, %v4335_v56  ;;  %v4339_v58 = vsel %vm409_vm8, %v4335_v56, %v11656_v15  ;;  %v4370_v39 = vsel %vm443_vm9, %v4365_v34, %v11658_v35  ;;  %v4368_v19 = vsel %vm443_vm9, %v11658_v35, %v4365_v34  ;;  %vm13763_vm8 = vmmov %vm13758_vm5 }
 0x76d   :  { %v4353_v6 = vmul.f32 %v4344_v62, %v4339_v58  ;;  %v4354_v40 = vmul.f32 %v4348_v54, %v4337_v50  ;;  %4786 = vrot.lane.b32.xlu1 %v11572_v4, %s9074_s10  ;;  %5004 = vrot.lane.b32.xlu0 %v11498_v26, %s13749_s19  ;;  %v4383_v33 = vmul.f32 %v4376_v42, %v4370_v39 }
 0x76e   :  { %5647 = vmatprep.subr.bf16.mxu0 %v11827_v46  ;;  %v4384_v59 = vmul.f32 %v4380_v38, %v4368_v19  ;;  %v4440_v50 = vrot.slane %v4423_v16, %v13753_v43 }
 0x76f   :  { %v11847_v15 = vpack.c.bf16 %v4353_v6, %v4351_v22  ;;  %5648 = vmatpush1.bf16.msra.mxu0 %v11823_v55  ;;  %v4367_v62 = vpop.permute.xlu1 %4366  ;;  %v4397_v31 = vpop.permute.xlu0 %4396  ;;  %v11851_v54 = vpack.c.bf16 %v4354_v40, %v4352_v53  ;;  %v4444_v6 = vrot.slane %v4423_v16, %v13754_v20  ;;  %v4455_v40 = vld [vmem:[#allocation8 + $0x7] ss:$8 sm:$0x3] }
 0x770   :  { %v4369_v35 = vsel %vm443_vm9, %v11664_v27, %v4367_v62  ;;  %v4371_v41 = vsel %vm443_vm9, %v4367_v62, %v11664_v27  ;;  %v4402_v34 = vsel %vm477_vm10, %v4397_v31, %v11666_v14  ;;  %v4400_v22 = vsel %vm477_vm10, %v11666_v14, %v4397_v31 }
 0x771   :  { %v4385_v37 = vmul.f32 %v4376_v42, %v4371_v41  ;;  %v4386_v56 = vmul.f32 %v4380_v38, %v4369_v35  ;;  %4818 = vrot.lane.b32.xlu1 %v11572_v4, %s9075_s11  ;;  %5008 = vrot.lane.b32.xlu0 %v11565_v52, %s13749_s19  ;;  %v4415_v21 = vmul.f32 %v4408_v32, %v4402_v34  ;;  %vm13764_vm9 = vcmp.lt.s32.totalorder %v9509_v30, 6 }
 0x772   :  { %5649 = vmatprep.subr.bf16.mxu0 %v11851_v54  ;;  %v4416_v39 = vmul.f32 %v4412_v28, %v4400_v22  ;;  %v4472_v35 = vrot.slane %v4455_v40, %v13753_v43 }
 0x773   :  { %v11871_v27 = vpack.c.bf16 %v4385_v37, %v4383_v33  ;;  %5650 = vmatpush1.bf16.msra.mxu0 %v11847_v15  ;;  %v4399_v42 = vpop.permute.xlu1 %4398  ;;  %v4429_v58 = vpop.permute.xlu0 %4428  ;;  %v11875_v38 = vpack.c.bf16 %v4386_v56, %v4384_v59  ;;  %v4476_v37 = vrot.slane %v4455_v40, %v13754_v20  ;;  %v4487_v56 = vld [vmem:[#allocation8 + $0x10] ss:$8 sm:$0x3] }
 0x774   :  { %v4401_v14 = vsel %vm477_vm10, %v11672_v5, %v4399_v42  ;;  %v4403_v53 = vsel %vm477_vm10, %v4399_v42, %v11672_v5  ;;  %v4434_v31 = vsel %vm511_vm11, %v4429_v58, %v11674_v49  ;;  %v4432_v33 = vsel %vm511_vm11, %v11674_v49, %v4429_v58  ;;  %vm13765_vm10 = vmmov %vm13764_vm9 }
 0x775   :  { %v4417_v19 = vmul.f32 %v4408_v32, %v4403_v53  ;;  %v4418_v62 = vmul.f32 %v4412_v28, %v4401_v14  ;;  %4850 = vrot.lane.b32.xlu1 %v11572_v4, %s9076_s12  ;;  %5036 = vrot.lane.b32.xlu0 %v11498_v26, %s13750_s20  ;;  %v4447_v16 = vmul.f32 %v4440_v50, %v4434_v31 }
 0x776   :  { %5651 = vmatprep.subr.bf16.mxu0 %v11875_v38  ;;  %v4448_v34 = vmul.f32 %v4444_v6, %v4432_v33  ;;  %v4504_v14 = vrot.slane %v4487_v56, %v13753_v43 }
 0x777   :  { %v11895_v5 = vpack.c.bf16 %v4417_v19, %v4415_v21  ;;  %5652 = vmatpush1.bf16.msra.mxu0 %v11871_v27  ;;  %v4431_v32 = vpop.permute.xlu1 %4430  ;;  %v4461_v41 = vpop.permute.xlu0 %4460  ;;  %v11899_v28 = vpack.c.bf16 %v4418_v62, %v4416_v39  ;;  %v4508_v19 = vrot.slane %v4487_v56, %v13754_v20  ;;  %v4519_v62 = vld [vmem:[#allocation8 + $0x11] ss:$8 sm:$0x3] }
 0x778   :  { %v4433_v49 = vsel %vm511_vm11, %v11680_v63, %v4431_v32  ;;  %v4435_v59 = vsel %vm511_vm11, %v4431_v32, %v11680_v63  ;;  %v4466_v58 = vsel %vm545_vm12, %v4461_v41, %v11682_v2  ;;  %v4464_v21 = vsel %vm545_vm12, %v11682_v2, %v4461_v41  ;;  %vm13768_vm11 = vmmov %vm13764_vm9 }
 0x779   :  { %v4449_v22 = vmul.f32 %v4440_v50, %v4435_v59  ;;  %v4450_v42 = vmul.f32 %v4444_v6, %v4433_v49  ;;  %4882 = vrot.lane.b32.xlu1 %v11572_v4, %s9077_s13  ;;  %5040 = vrot.lane.b32.xlu0 %v11565_v52, %s13750_s20  ;;  %v4479_v40 = vmul.f32 %v4472_v35, %v4466_v58 }
 0x77a   :  { %5653 = vmatprep.subr.bf16.mxu0 %v11899_v28  ;;  %v4480_v31 = vmul.f32 %v4476_v37, %v4464_v21  ;;  %v4536_v49 = vrot.slane %v4519_v62, %v13753_v43 }
 0x77b   :  { %v11919_v63 = vpack.c.bf16 %v4449_v22, %v4447_v16  ;;  %5654 = vmatpush1.bf16.msra.mxu0 %v11895_v5  ;;  %v4463_v50 = vpop.permute.xlu1 %4462  ;;  %v4493_v53 = vpop.permute.xlu0 %4492  ;;  %v11923_v6 = vpack.c.bf16 %v4450_v42, %v4448_v34  ;;  %v4540_v22 = vrot.slane %v4519_v62, %v13754_v20  ;;  %v4551_v42 = vld [vmem:[#allocation8 + $0x12] ss:$8 sm:$0x3] }
 0x77c   :  { %v4465_v2 = vsel %vm545_vm12, %v11688_v51, %v4463_v50  ;;  %v4467_v39 = vsel %vm545_vm12, %v4463_v50, %v11688_v51  ;;  %v4498_v41 = vsel %vm13758_vm5, %v4493_v53, %v11690_v17  ;;  %v4496_v16 = vsel %vm13759_vm6, %v11690_v17, %v4493_v53  ;;  %vm13769_vm12 = vmmov %vm13764_vm9 }
 0x77d   :  { %13757 = vst [vmem:[#allocation38_spill] sm:$0xff] %v11919_v63  ;;  %v4481_v33 = vmul.f32 %v4472_v35, %v4467_v39  ;;  %v4482_v32 = vmul.f32 %v4476_v37, %v4465_v2  ;;  %4914 = vrot.lane.b32.xlu1 %v11572_v4, %s9078_s14  ;;  %5068 = vrot.lane.b32.xlu0 %v11498_v26, %s13751_s21  ;;  %vm13774_vm5 = vmmov %vm13770_vm0  ;;  %s9094_s14 = smov [#allocation11]  }
 0x77e   :  { %5655 = vmatprep.subr.bf16.mxu0 %v11923_v6  ;;  %v4511_v56 = vmul.f32 %v4504_v14, %v4498_v41  ;;  %v4512_v58 = vmul.f32 %v4508_v19, %v4496_v16  ;;  %v4568_v2 = vrot.slane %v4551_v42, %v13753_v43  ;;  %vm13775_vm6 = vmmov %vm13770_vm0 }
 0x77f   :  { %v11943_v51 = vpack.c.bf16 %v4481_v33, %v4479_v40  ;;  %5656 = vmatpush1.bf16.msra.mxu0 %v11919_v63  ;;  %v4495_v35 = vpop.permute.xlu1 %4494  ;;  %v4525_v59 = vpop.permute.xlu0 %4524  ;;  %v11947_v37 = vpack.c.bf16 %v4482_v32, %v4480_v31  ;;  %v4572_v33 = vrot.slane %v4551_v42, %v13754_v20  ;;  %v4583_v32 = vld [vmem:[#allocation8 + $0x13] ss:$8 sm:$0x3] }
 0x780   :  { %v4497_v17 = vsel %vm13762_vm7, %v11696_v23, %v4495_v35  ;;  %v4499_v34 = vsel %vm13763_vm8, %v4495_v35, %v11696_v23  ;;  %v4530_v53 = vsel %vm13764_vm9, %v4525_v59, %v11698_v29  ;;  %v4528_v40 = vsel %vm13765_vm10, %v11698_v29, %v4525_v59 }
 0x781   :  { %13760 = vst [vmem:[#allocation36_spill] sm:$0xff] %v11943_v51  ;;  %13761 = vst [vmem:[#allocation40_spill] sm:$0xff] %v11947_v37  ;;  %v4513_v21 = vmul.f32 %v4504_v14, %v4499_v34  ;;  %v4514_v50 = vmul.f32 %v4508_v19, %v4497_v17  ;;  %4946 = vrot.lane.b32.xlu1 %v11572_v4, %s9079_s15  ;;  %5072 = vrot.lane.b32.xlu0 %v11565_v52, %s13751_s21  ;;  %vm13776_vm7 = vcmp.lt.s32.totalorder %v9509_v30, 4  ;;  %s7869_s15 = sshll.u32 %s9094_s14, 4  ;;  %s7870_s15 = int_to_ptr.vmem [resolvable:$true] %s7869_s15 }
 0x782   :  { %5657 = vmatprep.subr.bf16.mxu0 %v11947_v37  ;;  %v4543_v62 = vmul.f32 %v4536_v49, %v4530_v53  ;;  %v4544_v41 = vmul.f32 %v4540_v22, %v4528_v40  ;;  %v4600_v17 = vrot.slane %v4583_v32, %v13753_v43  ;;  %vm13777_vm8 = vmmov %vm13776_vm7  ;;  %v8722_v37 = vld [vmem:[#allocation6 + $0xe0] ss:$16 sps:$4 sm:$0xff]   ;;  %p9024_p5 = scmp.lt.s32.totalorder %s7870_s15, %s7870_s15 }
 0x783   :  { %v11967_v23 = vpack.c.bf16 %v4513_v21, %v4511_v56  ;;  %5658 = vmatpush1.bf16.msra.mxu0 %v11943_v51  ;;  %v4527_v14 = vpop.permute.xlu1 %4526  ;;  %v4557_v39 = vpop.permute.xlu0 %4556  ;;  %v11971_v19 = vpack.c.bf16 %v4514_v50, %v4512_v58  ;;  %v4604_v21 = vrot.slane %v4583_v32, %v13754_v20  ;;  %v4615_v50 = vld [vmem:[#allocation8 + $0x14] ss:$8 sm:$0x3]  ;;  %vm13780_vm9 = vmmov %vm13776_vm7 }
 0x784   :  { %v4529_v29 = vsel %vm13768_vm11, %v11704_v8, %v4527_v14  ;;  %v4531_v31 = vsel %vm13769_vm12, %v4527_v14, %v11704_v8  ;;  %v4562_v59 = vsel %vm13770_vm0, %v4557_v39, %v11706_v12  ;;  %v4560_v56 = vsel %vm13771_vm2, %v11706_v12, %v4557_v39  ;;  %vm13781_vm10 = vmmov %vm13776_vm7 }
 0x785   :  { %13766 = vst [vmem:[#allocation39_spill] sm:$0xff] %v11967_v23  ;;  %13767 = vst [vmem:[#allocation41_spill] sm:$0xff] %v11971_v19  ;;  %v4545_v16 = vmul.f32 %v4536_v49, %v4531_v31  ;;  %v4546_v35 = vmul.f32 %v4540_v22, %v4529_v29  ;;  %4978 = vrot.lane.b32.xlu1 %v11572_v4, %s9080_s16  ;;  %5100 = vrot.lane.b32.xlu0 %v11498_v26, %s13752_s0  ;;  %vm13782_vm11 = vcmp.lt.s32.totalorder %v9509_v30, 3 }
 0x786   :  { %5659 = vmatprep.subr.bf16.mxu0 %v11971_v19  ;;  %v4575_v42 = vmul.f32 %v4568_v2, %v4562_v59  ;;  %v4576_v53 = vmul.f32 %v4572_v33, %v4560_v56  ;;  %v4632_v29 = vrot.slane %v4615_v50, %v13753_v43  ;;  %vm13783_vm12 = vmmov %vm13782_vm11 }
 0x787   :  { %v11991_v8 = vpack.c.bf16 %v4545_v16, %v4543_v62  ;;  %5660 = vmatpush1.bf16.msra.mxu0 %v11967_v23  ;;  %v4559_v49 = vpop.permute.xlu1 %4558  ;;  %v4589_v34 = vpop.permute.xlu0 %4588  ;;  %v11995_v22 = vpack.c.bf16 %v4546_v35, %v4544_v41  ;;  %v4636_v16 = vrot.slane %v4615_v50, %v13754_v20  ;;  %v4647_v35 = vld [vmem:[#allocation8 + $0x15] ss:$8 sm:$0x3]  ;;  %vm13786_vm0 = vmmov %vm13782_vm11 }
 0x788   :  { %v4561_v12 = vsel %vm13774_vm5, %v11712_v48, %v4559_v49  ;;  %v4563_v58 = vsel %vm13775_vm6, %v4559_v49, %v11712_v48  ;;  %v4594_v39 = vsel %vm13776_vm7, %v4589_v34, %v11714_v18  ;;  %v4592_v62 = vsel %vm13777_vm8, %v11714_v18, %v4589_v34  ;;  %vm13787_vm2 = vmmov %vm13786_vm0 }
 0x789   :  { %13772 = vst [vmem:[#allocation43_spill] sm:$0xff] %v11991_v8  ;;  %13773 = vst [vmem:[#allocation42_spill] sm:$0xff] %v11995_v22  ;;  %v4577_v40 = vmul.f32 %v4568_v2, %v4563_v58  ;;  %v4578_v14 = vmul.f32 %v4572_v33, %v4561_v12  ;;  %5010 = vrot.lane.b32.xlu1 %v11572_v4, %s13749_s19  ;;  %5104 = vrot.lane.b32.xlu0 %v11565_v52, %s13752_s0  ;;  %vm13788_vm5 = vcmp.lt.s32.totalorder %v9509_v30, 2 }
 0x78a   :  { %5661 = vmatprep.subr.bf16.mxu0 %v11995_v22  ;;  %v4607_v32 = vmul.f32 %v4600_v17, %v4594_v39  ;;  %v4608_v59 = vmul.f32 %v4604_v21, %v4592_v62  ;;  %v4664_v12 = vrot.slane %v4647_v35, %v13753_v43  ;;  %vm13789_vm6 = vmmov %vm13788_vm5 }
 0x78b   :  { %v12015_v48 = vpack.c.bf16 %v4577_v40, %v4575_v42  ;;  %5662 = vmatpush1.bf16.msra.mxu0 %v11991_v8  ;;  %v4591_v2 = vpop.permute.xlu1 %4590  ;;  %v4621_v31 = vpop.permute.xlu0 %4620  ;;  %v12019_v33 = vpack.c.bf16 %v4578_v14, %v4576_v53  ;;  %v4668_v40 = vrot.slane %v4647_v35, %v13754_v20  ;;  %v4679_v14 = vld [vmem:[#allocation8 + $0x16] ss:$8 sm:$0x3]  ;;  %vm13792_vm7 = vmmov %vm13788_vm5 }
 0x78c   :  { %v4593_v18 = vsel %vm13780_vm9, %v11720_v7, %v4591_v2  ;;  %v4595_v41 = vsel %vm13781_vm10, %v4591_v2, %v11720_v7  ;;  %v4626_v34 = vsel %vm13782_vm11, %v4621_v31, %v11722_v1  ;;  %v4624_v42 = vsel %vm13783_vm12, %v11722_v1, %v4621_v31  ;;  %vm13793_vm8 = vmmov %vm13788_vm5 }
 0x78d   :  { %13778 = vst [vmem:[#allocation46_spill] sm:$0xff] %v12015_v48  ;;  %13779 = vst [vmem:[#allocation44_spill] sm:$0xff] %v12019_v33  ;;  %v4609_v56 = vmul.f32 %v4600_v17, %v4595_v41  ;;  %v4610_v49 = vmul.f32 %v4604_v21, %v4593_v18  ;;  %5042 = vrot.lane.b32.xlu1 %v11572_v4, %s13750_s20  ;;  %5132 = vrot.lane.b32.xlu0 %v11498_v26, %s13755_s30  ;;  %vm13794_vm9 = vcmp.lt.s32.totalorder %v9509_v30, 1 }
 0x78e   :  { %5663 = vmatprep.subr.bf16.mxu0 %v12019_v33  ;;  %v4639_v50 = vmul.f32 %v4632_v29, %v4626_v34  ;;  %v4640_v39 = vmul.f32 %v4636_v16, %v4624_v42  ;;  %v4696_v18 = vrot.slane %v4679_v14, %v13753_v43  ;;  %vm13795_vm10 = vmmov %vm13794_vm9 }
 0x78f   :  { %v12039_v7 = vpack.c.bf16 %v4609_v56, %v4607_v32  ;;  %5664 = vmatpush1.bf16.msra.mxu0 %v12015_v48  ;;  %v4623_v17 = vpop.permute.xlu1 %4622  ;;  %v4653_v58 = vpop.permute.xlu0 %4652  ;;  %v12043_v21 = vpack.c.bf16 %v4610_v49, %v4608_v59  ;;  %v4700_v56 = vrot.slane %v4679_v14, %v13754_v20  ;;  %vm13798_vm11 = vmmov %vm13794_vm9 }
 0x790   :  { %v4625_v1 = vsel %vm13786_vm0, %v11728_v44, %v4623_v17  ;;  %v4627_v53 = vsel %vm13787_vm2, %v4623_v17, %v11728_v44  ;;  %v4658_v31 = vsel %vm13788_vm5, %v4653_v58, %v11730_v24  ;;  %v4656_v32 = vsel %vm13789_vm6, %v11730_v24, %v4653_v58  ;;  %vm13799_vm12 = vmmov %vm13794_vm9 }
 0x791   :  { %13784 = vst [vmem:[#allocation47_spill] sm:$0xff] %v12039_v7  ;;  %13785 = vst [vmem:[#allocation45_spill] sm:$0xff] %v12043_v21  ;;  %v4641_v62 = vmul.f32 %v4632_v29, %v4627_v53  ;;  %v4642_v2 = vmul.f32 %v4636_v16, %v4625_v1  ;;  %5074 = vrot.lane.b32.xlu1 %v11572_v4, %s13751_s21  ;;  %5136 = vrot.lane.b32.xlu0 %v11565_v52, %s13755_s30  ;;  %vm13804_vm0 = vcmp.lt.s32.totalorder %v9509_v30, 127 }
 0x792   :  { %5665 = vmatprep.subr.bf16.mxu0 %v12043_v21  ;;  %v4671_v35 = vmul.f32 %v4664_v12, %v4658_v31  ;;  %v4672_v49 = vmul.f32 %v4668_v40, %v4656_v32  ;;  %v4747_v21 = vld [vmem:[#allocation8 + $0x21] ss:$8 sm:$0x3]  ;;  %vm13805_vm2 = vmmov %vm13804_vm0 }
 0x793   :  { %v12063_v44 = vpack.c.bf16 %v4641_v62, %v4639_v50  ;;  %5666 = vmatpush1.bf16.msra.mxu0 %v12039_v7  ;;  %v4655_v29 = vpop.permute.xlu1 %4654  ;;  %v4685_v41 = vpop.permute.xlu0 %4684  ;;  %v12067_v16 = vpack.c.bf16 %v4642_v2, %v4640_v39  ;;  %v4764_v33 = vrot.slane %v4747_v21, %v13753_v43  ;;  %v4768_v8 = vrot.slane %v4747_v21, %v13754_v20  ;;  %vm13806_vm5 = vmmov %vm13804_vm0 }
 0x794   :  { %v4657_v24 = vsel %vm13792_vm7, %v11736_v25, %v4655_v29  ;;  %v4659_v59 = vsel %vm13793_vm8, %v4655_v29, %v11736_v25  ;;  %v4690_v17 = vsel %vm13794_vm9, %v4685_v41, %v11738_v13  ;;  %v4688_v58 = vsel %vm13795_vm10, %v11738_v13, %v4685_v41  ;;  %vm13807_vm6 = vmmov %vm13804_vm0 }
 0x795   :  { %13790 = vst [vmem:[#allocation50_spill] sm:$0xff] %v12063_v44  ;;  %13791 = vst [vmem:[#allocation48_spill] sm:$0xff] %v12067_v16  ;;  %v4673_v34 = vmul.f32 %v4664_v12, %v4659_v59  ;;  %v4674_v42 = vmul.f32 %v4668_v40, %v4657_v24  ;;  %5106 = vrot.lane.b32.xlu1 %v11572_v4, %s13752_s0  ;;  %5164 = vrot.lane.b32.xlu0 %v11498_v26, %s13756_s22  ;;  %v8699_v24 = vld [vmem:[#allocation6] ss:$16 sps:$4 sm:$0xff]   ;;  %vm13808_vm7 = vcmp.lt.s32.totalorder %v9509_v30, 126 }
 0x796   :  { %5667 = vmatprep.subr.bf16.mxu0 %v12067_v16  ;;  %v4703_v53 = vmul.f32 %v4696_v18, %v4690_v17  ;;  %v4704_v14 = vmul.f32 %v4700_v56, %v4688_v58  ;;  %v12119_v29 = vpack.c.bf16 %v11572_v4, %v11565_v52  ;;  %vm13809_vm8 = vmmov %vm13808_vm7 }
 0x797   :  { %v12087_v25 = vpack.c.bf16 %v4673_v34, %v4671_v35  ;;  %5668 = vmatpush1.bf16.msra.mxu0 %v12063_v44  ;;  %v4687_v12 = vpop.permute.xlu1 %4686  ;;  %v12090_v50 = vpop.permute.xlu0 %4716  ;;  %v12092_v1 = vpack.c.bf16 %v4674_v42, %v4672_v49  ;;  %v12129_v35 = vpack.c.bf16 %v11504_v11, %v11498_v26  ;;  %v8704_v34 = vld [vmem:[#allocation6 + $0x20] ss:$16 sps:$4 sm:$0xff]   ;;  %v8705_v26 = vld [vmem:[#allocation6 + $0x44] ss:$16 sps:$4 sm:$0xff]   ;;  %vm13810_vm9 = vmmov %vm13808_vm7 }
 0x798   :  { %v4689_v40 = vsel %vm13798_vm11, %v11744_v45, %v4687_v12  ;;  %v4691_v13 = vsel %vm13799_vm12, %v4687_v12, %v11744_v45  ;;  %13802 = vst [vmem:[#allocation59_spill] sm:$0xff] %v12119_v29  ;;  %v8707_v12 = vld [vmem:[#allocation6 + $0x40] ss:$16 sps:$4 sm:$0xff]   ;;  %v8720_v44 = vld [vmem:[#allocation6 + $0xe4] ss:$16 sps:$4 sm:$0xff]   ;;  %vm13811_vm10 = vmmov %vm13808_vm7  ;;  %vm13812_vm11 = vcmp.lt.s32.totalorder %v9509_v30, 125 }
 0x799   :  { %13796 = vst [vmem:[#allocation51_spill] sm:$0xff] %v12087_v25  ;;  %13797 = vst [vmem:[#allocation49_spill] sm:$0xff] %v12092_v1  ;;  %v4705_v39 = vmul.f32 %v4696_v18, %v4691_v13  ;;  %v4706_v62 = vmul.f32 %v4700_v56, %v4689_v40  ;;  %5138 = vrot.lane.b32.xlu1 %v11572_v4, %s13755_s30  ;;  %5669 = vmatprep.subr.bf16.mxu0 %v12092_v1  ;;  %v8708_v13 = vld [vmem:[#allocation6 + $0x64] ss:$16 sps:$4 sm:$0xff]   ;;  %v8719_v1 = vld [vmem:[#allocation6 + $0xc0] ss:$16 sps:$4 sm:$0xff]  }
 0x79a   :  { %5168 = vrot.lane.b32.xlu0 %v11565_v52, %s13756_s22  ;;  %13803 = vst [vmem:[#allocation53_spill] sm:$0xff] %v12129_v35  ;;  %v8702_v52 = vld [vmem:[#allocation6 + $0x24] ss:$16 sps:$4 sm:$0xff]   ;;  %vm13813_vm12 = vmmov %vm13812_vm11 }
 0x79b   :  { %v12105_v2 = vpack.c.bf16 %v4705_v39, %v4703_v53  ;;  %5670 = vmatpush1.bf16.msra.mxu0 %v12087_v25  ;;  %v12108_v31 = vpop.permute.xlu1 %4718  ;;  %v12110_v32 = vpop.permute.xlu0 %4720  ;;  %v12112_v45 = vpack.c.bf16 %v4706_v62, %v4704_v14  ;;  %v8710_v62 = vld [vmem:[#allocation6 + $0x60] ss:$16 sps:$4 sm:$0xff]  }
 0x79c   :  { %v4715_v25 = vld [vmem:[#allocation8 + $0x20] ss:$8 sm:$0x3] }
 0x79d   :  { %13800 = vst [vmem:[#allocation56_spill] sm:$0xff] %v12105_v2  ;;  %13801 = vst [vmem:[#allocation52_spill] sm:$0xff] %v12112_v45  ;;  %5170 = vrot.lane.b32.xlu1 %v11572_v4, %s13756_s22  ;;  %5671 = vmatprep.subr.bf16.mxu0 %v12112_v45  ;;  %v4736_v7 = vrot.slane %v4715_v25, %v13754_v20 }
 0x79f   :  { %5672 = vmatpush1.bf16.msra.mxu0 %v12105_v2  ;;  %v12122_v18 = vpop.permute.xlu1 %4750  ;;  %v12124_v41 = vpop.permute.xlu0 %4748  ;;  %v8717_v2 = vld [vmem:[#allocation6 + $0xc4] ss:$16 sps:$4 sm:$0xff]  }
 0x7a0   :  { %5673 = vmatprep.subr.bf16.mxu0 %v12119_v29 }
 0x7a3   :  { %5674 = vmatpush1.bf16.msra.mxu0 %v12129_v35  ;;  %v12132_v59 = vpop.permute.xlu1 %4782  ;;  %v12134_v56 = vpop.permute.xlu0 %4752  ;;  %v8716_v35 = vld [vmem:[#allocation6 + $0xa0] ss:$16 sps:$4 sm:$0xff]  }
 0x7a4   :  { %v4756_v21 = vsel %vm13808_vm7, %v12124_v41, %v12134_v56 }
 0x7a6   :  { %5676 = vmatmul.mubr.bf16.vlgmr.msra.gmra.mrb[8].mxu0 %v8699_v24 }
 0x7a7   :  { %v12136_v4 = vpop.permute.xlu1 %4814  ;;  %v12138_v49 = vpop.permute.xlu0 %4780  ;;  %5685 = vmatprep.mubr.bf16.mxu0 %v8702_v52 }
 0x7ab   :  { %v12140_v42 = vpop.permute.xlu1 %4846  ;;  %v12142_v17 = vpop.permute.xlu0 %4784 }
 0x7ae   :  { %5686 = vmatmul.mubr.bf16.gmra.mrb[12].mxu0 %v8704_v34  ;;  %v8711_v34 = vld [vmem:[#allocation6 + $0x84] ss:$16 sps:$4 sm:$0xff]  }
 0x7af   :  { %v12144_v11 = vpop.permute.xlu1 %4878  ;;  %v12146_v58 = vpop.permute.xlu0 %4812  ;;  %5695 = vmatprep.mubr.bf16.mxu0 %v8705_v26 }
 0x7b3   :  { %v12148_v53 = vpop.permute.xlu1 %4910  ;;  %v12150_v40 = vpop.permute.xlu0 %4816 }
 0x7b6   :  { %5696 = vmatmul.mubr.bf16.gmra.mrb[16].mxu0 %v8707_v12 }
 0x7b7   :  { %v12152_v14 = vpop.permute.xlu1 %4942  ;;  %v12154_v39 = vpop.permute.xlu0 %4844  ;;  %5705 = vmatprep.mubr.bf16.mxu0 %v8708_v13 }
 0x7bb   :  { %v12156_v24 = vpop.permute.xlu1 %4974  ;;  %v12158_v52 = vpop.permute.xlu0 %4848 }
 0x7be   :  { %5706 = vmatmul.mubr.bf16.gmra.mrb[20].mxu0 %v8710_v62 }
 0x7bf   :  { %v12160_v26 = vpop.permute.xlu1 %5006  ;;  %v12162_v61 = vpop.permute.xlu0 %4876  ;;  %5715 = vmatprep.mubr.bf16.mxu0 %v8711_v34 }
 0x7c3   :  { %v12164_v47 = vpop.permute.xlu1 %5038  ;;  %v12166_v12 = vpop.permute.xlu0 %4880 }
 0x7c6   :  { %5716 = vmatmul.mubr.bf16.gmra.mrb[24].mxu0 %v8713_v9 }
 0x7c7   :  { %v12168_v13 = vpop.permute.xlu1 %5070  ;;  %v12170_v60 = vpop.permute.xlu0 %4908  ;;  %5725 = vmatprep.mubr.bf16.mxu0 %v8714_v36  ;;  %v4732_v36 = vrot.slane %v4715_v25, %v13753_v43 }
 0x7cb   :  { %v12172_v29 = vpop.permute.xlu1 %5102  ;;  %v12174_v62 = vpop.permute.xlu0 %4912 }
 0x7ce   :  { %5726 = vmatmul.mubr.bf16.gmra.mrb[28].mxu0 %v8716_v35  ;;  %v4724_v35 = vsel %vm13804_vm0, %v12090_v50, %v12110_v32  ;;  %vm13814_vm0 = vmmov %vm13812_vm11 }
 0x7cf   :  { %v12176_v34 = vpop.permute.xlu1 %5134  ;;  %v12178_v45 = vpop.permute.xlu0 %4940  ;;  %5735 = vmatprep.mubr.bf16.mxu0 %v8717_v2  ;;  %v4726_v2 = vsel %vm13805_vm2, %v12110_v32, %v12090_v50  ;;  %v4739_v19 = vmul.f32 %v4732_v36, %v4724_v35  ;;  %v4779_v50 = vld [vmem:[#allocation8 + $0x22] ss:$8 sm:$0x3]  ;;  %v8723_v35 = vld [vmem:[#allocation6 + $0x104] ss:$16 sps:$4 sm:$0xff]   ;;  %vm13815_vm2 = vmmov %vm13814_vm0 }
 0x7d0   :  { %v4740_v51 = vmul.f32 %v4736_v7, %v4726_v2 }
 0x7d3   :  { %v12180_v9 = vpop.permute.xlu1 %5166  ;;  %v12182_v16 = vpop.permute.xlu0 %4944 }
 0x7d6   :  { %5736 = vmatmul.mubr.bf16.gmra.mrb[32].mxu0 %v8719_v1 }
 0x7d7   :  { %v4723_v48 = vpop.permute.xlu1 %4722  ;;  %5745 = vmatprep.mubr.bf16.mxu0 %v8720_v44  ;;  %v12202_v23 = vpop.permute.xlu0 %4972  ;;  %v4758_v44 = vsel %vm13809_vm8, %v12134_v56, %v12124_v41 }
 0x7d8   :  { %v4725_v25 = vsel %vm13806_vm5, %v12108_v31, %v4723_v48  ;;  %v4727_v22 = vsel %vm13807_vm6, %v4723_v48, %v12108_v31  ;;  %v4772_v56 = vmul.f32 %v4768_v8, %v4758_v44  ;;  %vm13816_vm5 = vcmp.lt.s32.totalorder %v9509_v30, 124 }
 0x7d9   :  { %v4741_v1 = vmul.f32 %v4732_v36, %v4725_v25  ;;  %v4742_v32 = vmul.f32 %v4736_v7, %v4727_v22  ;;  %v4796_v36 = vrot.slane %v4779_v50, %v13753_v43  ;;  %v4800_v22 = vrot.slane %v4779_v50, %v13754_v20  ;;  %v4811_v25 = vld [vmem:[#allocation8 + $0x23] ss:$8 sm:$0x3]  ;;  %vm13817_vm6 = vmmov %vm13816_vm5 }
 0x7da   :  { %v4788_v50 = vsel %vm13812_vm11, %v12138_v49, %v12142_v17  ;;  %v4832_v44 = vrot.slane %v4811_v25, %v13754_v20  ;;  %vm13818_vm7 = vmmov %vm13816_vm5 }
 0x7db   :  { %v12212_v63 = vpack.c.bf16 %v4741_v1, %v4739_v19  ;;  %v4755_v48 = vpop.permute.xlu1 %4754  ;;  %v12214_v31 = vpack.c.bf16 %v4742_v32, %v4740_v51  ;;  %v12224_v41 = vpop.permute.xlu0 %4976  ;;  %v4771_v19 = vmul.f32 %v4764_v33, %v4756_v21  ;;  %v4790_v32 = vsel %vm13813_vm12, %v12142_v17, %v12138_v49  ;;  %vm13819_vm8 = vmmov %vm13816_vm5 }
 0x7dc   :  { %v4757_v7 = vsel %vm13810_vm9, %v12122_v18, %v4755_v48  ;;  %v4759_v2 = vsel %vm13811_vm10, %v4755_v48, %v12122_v18  ;;  %v4803_v17 = vmul.f32 %v4796_v36, %v4788_v50  ;;  %vm13820_vm9 = vcmp.lt.s32.totalorder %v9509_v30, 123 }
 0x7dd   :  { %v4773_v51 = vmul.f32 %v4764_v33, %v4757_v7  ;;  %v4774_v1 = vmul.f32 %v4768_v8, %v4759_v2  ;;  %5836 = vmatprep.subr.bf16.mxu0 %v12214_v31  ;;  %v4828_v8 = vrot.slane %v4811_v25, %v13753_v43  ;;  %v4804_v7 = vmul.f32 %v4800_v22, %v4790_v32  ;;  %v4843_v2 = vld [vmem:[#allocation8 + $0x24] ss:$8 sm:$0x3]  ;;  %vm13821_vm10 = vmmov %vm13820_vm9 }
 0x7de   :  { %5746 = vmatmul.mubr.bf16.gmra.mrb[36].mxu0 %v8722_v37  ;;  %v4822_v25 = vsel %vm13817_vm6, %v12150_v40, %v12146_v58  ;;  %v4860_v50 = vrot.slane %v4843_v2, %v13753_v43  ;;  %v4864_v32 = vrot.slane %v4843_v2, %v13754_v20  ;;  %v4852_v2 = vsel %vm13820_vm9, %v12154_v39, %v12158_v52  ;;  %vm13822_vm11 = vmmov %vm13820_vm9 }
 0x7df   :  { %v12235_v18 = vpack.c.bf16 %v4773_v51, %v4771_v19  ;;  %5837 = vmatpush1.bf16.msra.mxu0 %v12212_v63  ;;  %v4787_v21 = vpop.permute.xlu1 %4786  ;;  %v12238_v33 = vpack.c.bf16 %v4774_v1, %v4772_v56  ;;  %5755 = vmatprep.mubr.bf16.mxu0 %v8723_v35  ;;  %v12248_v49 = vpop.permute.xlu0 %5004  ;;  %v4820_v35 = vsel %vm13816_vm5, %v12146_v58, %v12150_v40  ;;  %vm13823_vm12 = vmmov %vm13820_vm9 }
 0x7e0   :  { %v4789_v48 = vsel %vm13814_vm0, %v12132_v59, %v4787_v21  ;;  %v4791_v37 = vsel %vm13815_vm2, %v4787_v21, %v12132_v59  ;;  %v8725_v59 = vld [vmem:[#allocation6 + $0x100] ss:$16 sps:$4 sm:$0xff]   ;;  %vm13824_vm0 = vcmp.lt.s32.totalorder %v9509_v30, 122 }
 0x7e1   :  { %v4805_v19 = vmul.f32 %v4796_v36, %v4789_v48  ;;  %v4806_v56 = vmul.f32 %v4800_v22, %v4791_v37  ;;  %5838 = vmatprep.subr.bf16.mxu0 %v12238_v33  ;;  %v8726_v22 = vld [vmem:[#allocation6 + $0x124] ss:$16 sps:$4 sm:$0xff]   ;;  %v4835_v48 = vmul.f32 %v4828_v8, %v4820_v35  ;;  %v4836_v37 = vmul.f32 %v4832_v44, %v4822_v25  ;;  %vm13825_vm2 = vmmov %vm13824_vm0 }
 0x7e2   :  { %vm13826_vm5 = vmmov %vm13824_vm0 }
 0x7e3   :  { %v12259_v51 = vpack.c.bf16 %v4805_v19, %v4803_v17  ;;  %5839 = vmatpush1.bf16.msra.mxu0 %v12235_v18  ;;  %v4819_v1 = vpop.permute.xlu1 %4818  ;;  %v12262_v36 = vpack.c.bf16 %v4806_v56, %v4804_v7  ;;  %v12272_v40 = vpop.permute.xlu0 %5008  ;;  %v4875_v17 = vld [vmem:[#allocation8 + $0x25] ss:$8 sm:$0x3]  ;;  %v4854_v56 = vsel %vm13821_vm10, %v12158_v52, %v12154_v39  ;;  %vm13827_vm6 = vmmov %vm13824_vm0 }
 0x7e4   :  { %v4821_v21 = vsel %vm13818_vm7, %v12136_v4, %v4819_v1  ;;  %v4823_v58 = vsel %vm13819_vm8, %v4819_v1, %v12136_v4  ;;  %v4896_v25 = vrot.slane %v4875_v17, %v13754_v20  ;;  %vm13828_vm7 = vcmp.lt.s32.totalorder %v9509_v30, 121 }
 0x7e5   :  { %v4837_v7 = vmul.f32 %v4828_v8, %v4821_v21  ;;  %v4838_v19 = vmul.f32 %v4832_v44, %v4823_v58  ;;  %5840 = vmatprep.subr.bf16.mxu0 %v12262_v36  ;;  %v4892_v44 = vrot.slane %v4875_v17, %v13753_v43  ;;  %v4868_v21 = vmul.f32 %v4864_v32, %v4854_v56  ;;  %v4907_v58 = vld [vmem:[#allocation8 + $0x26] ss:$8 sm:$0x3]  ;;  %vm13829_vm8 = vmmov %vm13828_vm7 }
 0x7e6   :  { %5756 = vmatmul.mubr.bf16.gmra.mrb[40].mxu0 %v8725_v59  ;;  %v4867_v59 = vmul.f32 %v4860_v50, %v4852_v2  ;;  %v4886_v17 = vsel %vm13825_vm2, %v12166_v12, %v12162_v61  ;;  %v4924_v2 = vrot.slane %v4907_v58, %v13753_v43  ;;  %v4928_v56 = vrot.slane %v4907_v58, %v13754_v20  ;;  %vm13830_vm9 = vmmov %vm13828_vm7 }
 0x7e7   :  { %v12283_v4 = vpack.c.bf16 %v4837_v7, %v4835_v48  ;;  %5841 = vmatpush1.bf16.msra.mxu0 %v12259_v51  ;;  %v4851_v35 = vpop.permute.xlu1 %4850  ;;  %v12286_v8 = vpack.c.bf16 %v4838_v19, %v4836_v37  ;;  %5765 = vmatprep.mubr.bf16.mxu0 %v8726_v22  ;;  %v12296_v52 = vpop.permute.xlu0 %5036  ;;  %v4884_v22 = vsel %vm13824_vm0, %v12162_v61, %v12166_v12  ;;  %vm13831_vm10 = vmmov %vm13828_vm7 }
 0x7e8   :  { %v4853_v1 = vsel %vm13822_vm11, %v12140_v42, %v4851_v35  ;;  %v4855_v39 = vsel %vm13823_vm12, %v4851_v35, %v12140_v42  ;;  %v8728_v42 = vld [vmem:[#allocation6 + $0x120] ss:$16 sps:$4 sm:$0xff]   ;;  %v4916_v58 = vsel %vm13828_vm7, %v12170_v60, %v12174_v62  ;;  %vm13832_vm11 = vcmp.lt.s32.totalorder %v9509_v30, 120 }
 0x7e9   :  { %v4869_v48 = vmul.f32 %v4860_v50, %v4853_v1  ;;  %v4870_v37 = vmul.f32 %v4864_v32, %v4855_v39  ;;  %5842 = vmatprep.subr.bf16.mxu0 %v12286_v8  ;;  %v8729_v32 = vld [vmem:[#allocation6 + $0x144] ss:$16 sps:$4 sm:$0xff]   ;;  %v4899_v1 = vmul.f32 %v4892_v44, %v4884_v22  ;;  %v4900_v39 = vmul.f32 %v4896_v25, %v4886_v17  ;;  %vm13833_vm12 = vmmov %vm13832_vm11 }
 0x7ea   :  { %vm13834_vm0 = vmmov %vm13832_vm11 }
 0x7eb   :  { %v12307_v7 = vpack.c.bf16 %v4869_v48, %v4867_v59  ;;  %5843 = vmatpush1.bf16.msra.mxu0 %v12283_v4  ;;  %v4883_v19 = vpop.permute.xlu1 %4882  ;;  %v12310_v50 = vpack.c.bf16 %v4870_v37, %v4868_v21  ;;  %v12320_v12 = vpop.permute.xlu0 %5040  ;;  %v4939_v59 = vld [vmem:[#allocation8 + $0x27] ss:$8 sm:$0x3]  ;;  %v4918_v37 = vsel %vm13829_vm8, %v12174_v62, %v12170_v60  ;;  %vm13835_vm2 = vmmov %vm13834_vm0 }
 0x7ec   :  { %v4885_v35 = vsel %vm13826_vm5, %v12144_v11, %v4883_v19  ;;  %v4887_v61 = vsel %vm13827_vm6, %v4883_v19, %v12144_v11  ;;  %v4960_v17 = vrot.slane %v4939_v59, %v13754_v20  ;;  %vm13836_vm5 = vcmp.lt.s32.totalorder %v9509_v30, 119 }
 0x7ed   :  { %v4901_v21 = vmul.f32 %v4892_v44, %v4885_v35  ;;  %v4902_v48 = vmul.f32 %v4896_v25, %v4887_v61  ;;  %5844 = vmatprep.subr.bf16.mxu0 %v12310_v50  ;;  %v4956_v25 = vrot.slane %v4939_v59, %v13753_v43  ;;  %v4932_v35 = vmul.f32 %v4928_v56, %v4918_v37  ;;  %v4971_v61 = vld [vmem:[#allocation8 + $0x30] ss:$8 sm:$0x3]  ;;  %vm13837_vm6 = vmmov %vm13836_vm5 }
 0x7ee   :  { %5766 = vmatmul.mubr.bf16.gmra.mrb[44].mxu0 %v8728_v42  ;;  %v4931_v42 = vmul.f32 %v4924_v2, %v4916_v58  ;;  %v4950_v59 = vsel %vm13833_vm12, %v12182_v16, %v12178_v45  ;;  %v4988_v58 = vrot.slane %v4971_v61, %v13753_v43  ;;  %v4992_v37 = vrot.slane %v4971_v61, %v13754_v20  ;;  %vm13838_vm7 = vmmov %vm13836_vm5 }
 0x7ef   :  { %v12331_v11 = vpack.c.bf16 %v4901_v21, %v4899_v1  ;;  %5845 = vmatpush1.bf16.msra.mxu0 %v12307_v7  ;;  %v4915_v22 = vpop.permute.xlu1 %4914  ;;  %v12334_v44 = vpack.c.bf16 %v4902_v48, %v4900_v39  ;;  %5775 = vmatprep.mubr.bf16.mxu0 %v8729_v32  ;;  %v12344_v62 = vpop.permute.xlu0 %5068  ;;  %v4948_v32 = vsel %vm13832_vm11, %v12178_v45, %v12182_v16  ;;  %vm13839_vm8 = vmmov %vm13836_vm5 }
 0x7f0   :  { %v4917_v19 = vsel %vm13830_vm9, %v12148_v53, %v4915_v22  ;;  %v4919_v60 = vsel %vm13831_vm10, %v4915_v22, %v12148_v53  ;;  %v8731_v53 = vld [vmem:[#allocation6 + $0x140] ss:$16 sps:$4 sm:$0xff]   ;;  %v4980_v61 = vsel %vm13836_vm5, %v12202_v23, %v12224_v41  ;;  %vm13840_vm9 = vcmp.lt.s32.totalorder %v9509_v30, 118 }
 0x7f1   :  { %v4933_v1 = vmul.f32 %v4924_v2, %v4917_v19  ;;  %v4934_v39 = vmul.f32 %v4928_v56, %v4919_v60  ;;  %5846 = vmatprep.subr.bf16.mxu0 %v12334_v44  ;;  %v8732_v56 = vld [vmem:[#allocation6 + $0x164] ss:$16 sps:$4 sm:$0xff]   ;;  %v4963_v19 = vmul.f32 %v4956_v25, %v4948_v32  ;;  %v4964_v60 = vmul.f32 %v4960_v17, %v4950_v59  ;;  %vm13841_vm10 = vmmov %vm13840_vm9 }
 0x7f2   :  { %vm13842_vm11 = vmmov %vm13840_vm9 }
 0x7f3   :  { %v12355_v21 = vpack.c.bf16 %v4933_v1, %v4931_v42  ;;  %5847 = vmatpush1.bf16.msra.mxu0 %v12331_v11  ;;  %v4947_v48 = vpop.permute.xlu1 %4946  ;;  %v12358_v2 = vpack.c.bf16 %v4934_v39, %v4932_v35  ;;  %v12368_v45 = vpop.permute.xlu0 %5072  ;;  %v5003_v42 = vld [vmem:[#allocation8 + $0x31] ss:$8 sm:$0x3]  ;;  %v4982_v39 = vsel %vm13837_vm6, %v12224_v41, %v12202_v23  ;;  %vm13843_vm12 = vmmov %vm13840_vm9 }
 0x7f4   :  { %v4949_v22 = vsel %vm13834_vm0, %v12152_v14, %v4947_v48  ;;  %v4951_v16 = vsel %vm13835_vm2, %v4947_v48, %v12152_v14  ;;  %v5024_v59 = vrot.slane %v5003_v42, %v13754_v20  ;;  %vm13844_vm0 = vcmp.lt.s32.totalorder %v9509_v30, 117 }
 0x7f5   :  { %v4965_v35 = vmul.f32 %v4956_v25, %v4949_v22  ;;  %v4966_v1 = vmul.f32 %v4960_v17, %v4951_v16  ;;  %5848 = vmatprep.subr.bf16.mxu0 %v12358_v2  ;;  %v5020_v17 = vrot.slane %v5003_v42, %v13753_v43  ;;  %v4996_v22 = vmul.f32 %v4992_v37, %v4982_v39  ;;  %v5035_v16 = vld [vmem:[#allocation8 + $0x32] ss:$8 sm:$0x3]  ;;  %vm13845_vm2 = vmmov %vm13844_vm0 }
 0x7f6   :  { %5776 = vmatmul.mubr.bf16.gmra.mrb[48].mxu0 %v8731_v53  ;;  %v4995_v53 = vmul.f32 %v4988_v58, %v4980_v61  ;;  %v5014_v42 = vsel %vm13841_vm10, %v12272_v40, %v12248_v49  ;;  %v5052_v61 = vrot.slane %v5035_v16, %v13753_v43  ;;  %v5056_v39 = vrot.slane %v5035_v16, %v13754_v20  ;;  %vm13847_vm5 = vmmov %vm13844_vm0 }
 0x7f7   :  { %v12379_v14 = vpack.c.bf16 %v4965_v35, %v4963_v19  ;;  %5849 = vmatpush1.bf16.msra.mxu0 %v12355_v21  ;;  %v4979_v32 = vpop.permute.xlu1 %4978  ;;  %v12382_v25 = vpack.c.bf16 %v4966_v1, %v4964_v60  ;;  %5785 = vmatprep.mubr.bf16.mxu0 %v8732_v56  ;;  %v12392_v41 = vpop.permute.xlu0 %5100  ;;  %v5012_v56 = vsel %vm13840_vm9, %v12248_v49, %v12272_v40  ;;  %vm13848_vm6 = vmmov %vm13844_vm0 }
 0x7f8   :  { %v4981_v48 = vsel %vm13838_vm7, %v12156_v24, %v4979_v32  ;;  %v4983_v23 = vsel %vm13839_vm8, %v4979_v32, %v12156_v24  ;;  %v8734_v24 = vld [vmem:[#allocation6 + $0x160] ss:$16 sps:$4 sm:$0xff]   ;;  %v5044_v16 = vsel %vm13844_vm0, %v12296_v52, %v12320_v12  ;;  %vm13849_vm7 = vcmp.lt.s32.totalorder %v9509_v30, 116 }
 0x7f9   :  { %v4997_v19 = vmul.f32 %v4988_v58, %v4981_v48  ;;  %v4998_v60 = vmul.f32 %v4992_v37, %v4983_v23  ;;  %5850 = vmatprep.subr.bf16.mxu0 %v12382_v25  ;;  %v8735_v37 = vld [vmem:[#allocation6 + $0x184] ss:$16 sps:$4 sm:$0xff]   ;;  %v5027_v48 = vmul.f32 %v5020_v17, %v5012_v56  ;;  %v5028_v23 = vmul.f32 %v5024_v59, %v5014_v42  ;;  %vm13850_vm8 = vmmov %vm13849_vm7 }
 0x7fa   :  { %vm13851_vm9 = vmmov %vm13849_vm7 }
 0x7fb   :  { %v12403_v35 = vpack.c.bf16 %v4997_v19, %v4995_v53  ;;  %5851 = vmatpush1.bf16.msra.mxu0 %v12379_v14  ;;  %v5011_v1 = vpop.permute.xlu1 %5010  ;;  %v12406_v58 = vpack.c.bf16 %v4998_v60, %v4996_v22  ;;  %v5105_v40 = vpop.permute.xlu0 %5104  ;;  %v5067_v53 = vld [vmem:[#allocation8 + $0x33] ss:$8 sm:$0x3]  ;;  %v5046_v60 = vsel %vm13845_vm2, %v12320_v12, %v12296_v52  ;;  %vm13852_vm10 = vmmov %vm13849_vm7 }
 0x7fc   :  { %v5013_v32 = vsel %vm13842_vm11, %v12160_v26, %v5011_v1  ;;  %v5015_v49 = vsel %vm13843_vm12, %v5011_v1, %v12160_v26  ;;  %v5088_v42 = vrot.slane %v5067_v53, %v13754_v20  ;;  %vm13853_vm11 = vcmp.lt.s32.totalorder %v9509_v30, 115 }
 0x7fd   :  { %v5029_v19 = vmul.f32 %v5020_v17, %v5013_v32  ;;  %v5030_v22 = vmul.f32 %v5024_v59, %v5015_v49  ;;  %5852 = vmatprep.subr.bf16.mxu0 %v12406_v58  ;;  %v5084_v59 = vrot.slane %v5067_v53, %v13753_v43  ;;  %v5060_v32 = vmul.f32 %v5056_v39, %v5046_v60  ;;  %v5099_v49 = vld [vmem:[#allocation8 + $0x34] ss:$8 sm:$0x3]  ;;  %vm13854_vm12 = vmmov %vm13853_vm11 }
 0x7fe   :  { %5786 = vmatmul.mubr.bf16.gmra.mrb[52].mxu0 %v8734_v24  ;;  %v5059_v24 = vmul.f32 %v5052_v61, %v5044_v16  ;;  %v5078_v53 = vsel %vm13850_vm8, %v12368_v45, %v12344_v62  ;;  %v5116_v16 = vrot.slane %v5099_v49, %v13753_v43  ;;  %v5120_v60 = vrot.slane %v5099_v49, %v13754_v20  ;;  %vm13855_vm0 = vmmov %vm13853_vm11 }
 0x7ff   :  { %v12425_v26 = vpack.c.bf16 %v5029_v19, %v5027_v48  ;;  %5853 = vmatpush1.bf16.msra.mxu0 %v12403_v35  ;;  %v5043_v56 = vpop.permute.xlu1 %5042  ;;  %v12428_v17 = vpack.c.bf16 %v5030_v22, %v5028_v23  ;;  %5795 = vmatprep.mubr.bf16.mxu0 %v8735_v37  ;;  %v5133_v12 = vpop.permute.xlu0 %5132  ;;  %v5076_v37 = vsel %vm13849_vm7, %v12344_v62, %v12368_v45  ;;  %v8737_v19 = vld [vmem:[#allocation6 + $0x180] ss:$16 sps:$4 sm:$0xff]   ;;  %vm13856_vm2 = vmmov %vm13855_vm0 }
 0x800   :  { %v5045_v1 = vsel %vm13847_vm5, %v12164_v47, %v5043_v56  ;;  %v5047_v52 = vsel %vm13848_vm6, %v5043_v56, %v12164_v47  ;;  %v5108_v49 = vsel %vm13853_vm11, %v12392_v41, %v5105_v40  ;;  %vm13857_vm5 = vcmp.lt.s32.totalorder %v9509_v30, 114 }
 0x801   :  { %13846 = vst [vmem:[#allocation62_spill] sm:$0xff] %v12425_v26  ;;  %v5061_v48 = vmul.f32 %v5052_v61, %v5045_v1  ;;  %v5062_v23 = vmul.f32 %v5056_v39, %v5047_v52  ;;  %5854 = vmatprep.subr.bf16.mxu0 %v12428_v17  ;;  %v8738_v39 = vld [vmem:[#allocation6 + $0x1a4] ss:$16 sps:$4 sm:$0xff]   ;;  %v5091_v1 = vmul.f32 %v5084_v59, %v5076_v37  ;;  %vm13858_vm6 = vmmov %vm13857_vm5 }
 0x802   :  { %v5092_v52 = vmul.f32 %v5088_v42, %v5078_v53  ;;  %vm13859_vm7 = vmmov %vm13857_vm5 }
 0x803   :  { %v12447_v47 = vpack.c.bf16 %v5061_v48, %v5059_v24  ;;  %5855 = vmatpush1.bf16.msra.mxu0 %v12425_v26  ;;  %v5075_v22 = vpop.permute.xlu1 %5074  ;;  %v12450_v61 = vpack.c.bf16 %v5062_v23, %v5060_v32  ;;  %v5137_v45 = vpop.permute.xlu0 %5136  ;;  %v5131_v32 = vld [vmem:[#allocation8 + $0x35] ss:$8 sm:$0x3]  ;;  %v5110_v23 = vsel %vm13854_vm12, %v5105_v40, %v12392_v41  ;;  %vm13860_vm8 = vmmov %vm13857_vm5 }
 0x804   :  { %v5077_v56 = vsel %vm13851_vm9, %v12168_v13, %v5075_v22  ;;  %v5079_v62 = vsel %vm13852_vm10, %v5075_v22, %v12168_v13  ;;  %v5124_v22 = vmul.f32 %v5120_v60, %v5110_v23  ;;  %vm13861_vm9 = vcmp.lt.s32.totalorder %v9509_v30, 113 }
 0x805   :  { %v5093_v24 = vmul.f32 %v5084_v59, %v5077_v56  ;;  %v5094_v48 = vmul.f32 %v5088_v42, %v5079_v62  ;;  %5856 = vmatprep.subr.bf16.mxu0 %v12450_v61  ;;  %v5148_v59 = vrot.slane %v5131_v32, %v13753_v43  ;;  %v5152_v42 = vrot.slane %v5131_v32, %v13754_v20  ;;  %vm13862_vm10 = vmmov %vm13861_vm9 }
 0x806   :  { %5796 = vmatmul.mubr.bf16.gmra.mrb[56].mxu0 %v8737_v19  ;;  %v5123_v19 = vmul.f32 %v5116_v16, %v5108_v49  ;;  %v8741_v49 = vld [vmem:[#allocation6 + $0x1c4] ss:$16 sps:$4 sm:$0xff]   ;;  %vm13863_vm11 = vmmov %vm13861_vm9 }
 0x807   :  { %v12467_v26 = vpack.c.bf16 %v5093_v24, %v5091_v1  ;;  %5857 = vmatpush1.bf16.msra.mxu0 %v12447_v47  ;;  %v5107_v13 = vpop.permute.xlu1 %5106  ;;  %v12470_v37 = vpack.c.bf16 %v5094_v48, %v5092_v52  ;;  %5805 = vmatprep.mubr.bf16.mxu0 %v8738_v39  ;;  %v5165_v40 = vpop.permute.xlu0 %5164  ;;  %v5163_v39 = vld [vmem:[#allocation8 + $0x36] ss:$8 sm:$0x3]  ;;  %v5140_v1 = vsel %vm13857_vm5, %v5133_v12, %v5137_v45  ;;  %v8740_v24 = vld [vmem:[#allocation6 + $0x1a0] ss:$16 sps:$4 sm:$0xff]   ;;  %vm13864_vm12 = vmmov %vm13861_vm9 }
 0x808   :  { %v5109_v53 = vsel %vm13855_vm0, %v12172_v29, %v5107_v13  ;;  %v5111_v41 = vsel %vm13856_vm2, %v5107_v13, %v12172_v29  ;;  %v5142_v52 = vsel %vm13858_vm6, %v5137_v45, %v5133_v12  ;;  %v5180_v23 = vrot.slane %v5163_v39, %v13753_v43 }
 0x809   :  { %v5125_v56 = vmul.f32 %v5116_v16, %v5109_v53  ;;  %v5126_v62 = vmul.f32 %v5120_v60, %v5111_v41  ;;  %5858 = vmatprep.subr.bf16.mxu0 %v12470_v37  ;;  %v5184_v12 = vrot.slane %v5163_v39, %v13754_v20  ;;  %v5155_v13 = vmul.f32 %v5148_v59, %v5140_v1 }
 0x80a   :  { %v5156_v53 = vmul.f32 %v5152_v42, %v5142_v52  ;;  %vm13895_vm0 = vcmp.lt.s32.totalorder %v9509_v30, 64 }
 0x80b   :  { %v12485_v48 = vpack.c.bf16 %v5125_v56, %v5123_v19  ;;  %5859 = vmatpush1.bf16.msra.mxu0 %v12467_v26  ;;  %v5139_v29 = vpop.permute.xlu1 %5138  ;;  %v12488_v32 = vpack.c.bf16 %v5126_v62, %v5124_v22  ;;  %vm13896_vm2 = vmmov %vm13895_vm0 }
 0x80c   :  { %v5141_v16 = vsel %vm13859_vm7, %v12176_v34, %v5139_v29  ;;  %v5143_v60 = vsel %vm13860_vm8, %v5139_v29, %v12176_v34  ;;  %v5169_v45 = vpop.permute.xlu0 %5168  ;;  %v8743_v29 = vld [vmem:[#allocation6 + $0x1c0] ss:$16 sps:$4 sm:$0xff]   ;;  %vm13897_vm5 = vmmov %vm13895_vm0 }
 0x80d   :  { %v5157_v41 = vmul.f32 %v5148_v59, %v5141_v16  ;;  %v5158_v19 = vmul.f32 %v5152_v42, %v5143_v60  ;;  %5860 = vmatprep.subr.bf16.mxu0 %v12488_v32  ;;  %v5172_v22 = vsel %vm13861_vm9, %v5165_v40, %v5169_v45  ;;  %v5174_v56 = vsel %vm13862_vm10, %v5169_v45, %v5165_v40  ;;  %v8744_v60 = vld [vmem:[#allocation6 + $0x1e4] ss:$16 sps:$4 sm:$0xff]   ;;  %v8747_v45 = vld [vmem:[#allocation6 + $0x8] ss:$16 sps:$4 sm:$0xff]   ;;  %vm13898_vm6 = vmmov %vm13895_vm0 }
 0x80e   :  { %5806 = vmatmul.mubr.bf16.gmra.mrb[60].mxu0 %v8740_v24  ;;  %v5187_v1 = vmul.f32 %v5180_v23, %v5172_v22  ;;  %v5188_v52 = vmul.f32 %v5184_v12, %v5174_v56  ;;  %v8765_v22 = vld [vmem:[#allocation6 + $0xcc] ss:$16 sps:$4 sm:$0xff]   ;;  %v13873_v56 = vld [vmem:[#allocation44_spill] sm:$0xff]  ;;  %vm13903_vm7 = vmmov %vm13895_vm0 }
 0x80f   :  { %v12503_v62 = vpack.c.bf16 %v5157_v41, %v5155_v13  ;;  %5861 = vmatpush1.bf16.msra.mxu0 %v12485_v48  ;;  %v5171_v34 = vpop.permute.xlu1 %5170  ;;  %v12506_v39 = vpack.c.bf16 %v5158_v19, %v5156_v53  ;;  %5815 = vmatprep.mubr.bf16.mxu0 %v8741_v49  ;;  %v8750_v13 = vld [vmem:[#allocation6 + $0x2c] ss:$16 sps:$4 sm:$0xff]   ;;  %v8752_v53 = vld [vmem:[#allocation6 + $0x28] ss:$16 sps:$4 sm:$0xff]   ;;  %vm13904_vm8 = vmmov %vm13895_vm0 }
 0x810   :  { %v5173_v59 = vsel %vm13863_vm11, %v12180_v9, %v5171_v34  ;;  %v5175_v42 = vsel %vm13864_vm12, %v5171_v34, %v12180_v9  ;;  %v13865_v9 = vmov 1065369472   ;;  %v8753_v41 = vld [vmem:[#allocation6 + $0x4c] ss:$16 sps:$4 sm:$0xff]   ;;  %v13874_v34 = vld [vmem:[#allocation46_spill] sm:$0xff]  ;;  %vm13905_vm9 = vmmov %vm13895_vm0 }
 0x811   :  { %v5189_v40 = vmul.f32 %v5180_v23, %v5173_v59  ;;  %v5190_v24 = vmul.f32 %v5184_v12, %v5175_v42  ;;  %5862 = vmatprep.subr.bf16.mxu0 %v12506_v39  ;;  %v8746_v23 = vld [vmem:[#allocation6 + $0x1e0] ss:$16 sps:$4 sm:$0xff]   ;;  %v8749_v12 = vld [vmem:[#allocation6 + $0xc] ss:$16 sps:$4 sm:$0xff]   ;;  %v8767_v42 = vld [vmem:[#allocation6 + $0xc8] ss:$16 sps:$4 sm:$0xff]  }
 0x812   :  { %v8756_v19 = vld [vmem:[#allocation6 + $0x6c] ss:$16 sps:$4 sm:$0xff]   ;;  %vm13906_vm10 = vmmov %vm13895_vm0 }
 0x813   :  { %v12515_v16 = vpack.c.bf16 %v5189_v40, %v5187_v1  ;;  %5863 = vmatpush1.bf16.msra.mxu0 %v12503_v62  ;;  %v12518_v49 = vpack.c.bf16 %v5190_v24, %v5188_v52  ;;  %v13875_v59 = vld [vmem:[#allocation45_spill] sm:$0xff]  ;;  %v13876_v1 = vld [vmem:[#allocation47_spill] sm:$0xff]  ;;  %v13877_v40 = vld [vmem:[#allocation48_spill] sm:$0xff] }
 0x814   :  { %v8768_v52 = vld [vmem:[#allocation6 + $0xec] ss:$16 sps:$4 sm:$0xff]   ;;  %v13878_v24 = vld [vmem:[#allocation50_spill] sm:$0xff]  ;;  %vm13907_vm11 = vmmov %vm13895_vm0 }
 0x815   :  { %5864 = vmatprep.subr.bf16.mxu0 %v12518_v49  ;;  %vm13908_vm12 = vmmov %vm13895_vm0 }
 0x816   :  { %5816 = vmatmul.mubr.bf16.gmra.mrb[64].mxu0 %v8743_v29  ;;  %v13879_v29 = vld [vmem:[#allocation49_spill] sm:$0xff] }
 0x817   :  { %5865 = vmatpush1.bf16.msra.mxu0 %v12515_v16  ;;  %5825 = vmatprep.mubr.bf16.mxu0 %v8744_v60  ;;  %v8770_v60 = vld [vmem:[#allocation6 + $0xe8] ss:$16 sps:$4 sm:$0xff]  }
 0x818   :  { %5866 = vmatprep.subr.bf16.mxu0 %v13865_v9 }
 0x81b   :  { %5867 = vmatpush1.bf16.msra.mxu0 %v13865_v9 }
 0x81c   :  { %6885 = vmatprep.subr.bf16.mxu0 %v11779_v10  ;;  %v8755_v10 = vld [vmem:[#allocation6 + $0x48] ss:$16 sps:$4 sm:$0xff]  }
 0x81e   :  { %5826 = vmatmul.mubr.bf16.gmra.mrb[68].mxu0 %v8746_v23  ;;  %v13880_v23 = vld [vmem:[#allocation51_spill] sm:$0xff] }
 0x81f   :  { %5868 = vmatprep.mubr.bf16.mxu0 %v8749_v12  ;;  %v8771_v12 = vld [vmem:[#allocation6 + $0x10c] ss:$16 sps:$4 sm:$0xff]  }
 0x826   :  { %5869 = vmatmul.mubr.bf16.vlgmr.msra.gmra.mrb[8].mxu0 %v8747_v45  ;;  %v13881_v45 = vld [vmem:[#allocation52_spill] sm:$0xff] }
 0x827   :  { %6886 = vmatpush1.bf16.msra.mxu0 %v11776_v0  ;;  %5878 = vmatprep.mubr.bf16.mxu0 %v8750_v13  ;;  %v8758_v0 = vld [vmem:[#allocation6 + $0x68] ss:$16 sps:$4 sm:$0xff]   ;;  %v13882_v13 = vld [vmem:[#allocation56_spill] sm:$0xff] }
 0x828   :  { %6887 = vmatprep.subr.bf16.mxu0 %v11803_v3  ;;  %v13866_v3 = vld [vmem:[#allocation38_spill] sm:$0xff] }
 0x82b   :  { %6888 = vmatpush1.bf16.msra.mxu0 %v11799_v57  ;;  %v8759_v57 = vld [vmem:[#allocation6 + $0x8c] ss:$16 sps:$4 sm:$0xff]  }
 0x82c   :  { %6889 = vmatprep.subr.bf16.mxu0 %v11827_v46  ;;  %v8761_v46 = vld [vmem:[#allocation6 + $0x88] ss:$16 sps:$4 sm:$0xff]  }
 0x82e   :  { %5879 = vmatmul.mubr.bf16.gmra.mrb[12].mxu0 %v8752_v53  ;;  %v13883_v53 = vld [vmem:[#allocation59_spill] sm:$0xff] }
 0x82f   :  { %6890 = vmatpush1.bf16.msra.mxu0 %v11823_v55  ;;  %5888 = vmatprep.mubr.bf16.mxu0 %v8753_v41  ;;  %v13867_v55 = vld [vmem:[#allocation40_spill] sm:$0xff]  ;;  %v8773_v41 = vld [vmem:[#allocation6 + $0x108] ss:$16 sps:$4 sm:$0xff]  }
 0x830   :  { %6891 = vmatprep.subr.bf16.mxu0 %v11851_v54  ;;  %v8762_v54 = vld [vmem:[#allocation6 + $0xac] ss:$16 sps:$4 sm:$0xff]  }
 0x833   :  { %6892 = vmatpush1.bf16.msra.mxu0 %v11847_v15  ;;  %v13868_v15 = vld [vmem:[#allocation36_spill] sm:$0xff] }
 0x834   :  { %6893 = vmatprep.subr.bf16.mxu0 %v11875_v38  ;;  %v13870_v38 = vld [vmem:[#allocation39_spill] sm:$0xff] }
 0x836   :  { %5889 = vmatmul.mubr.bf16.gmra.mrb[16].mxu0 %v8755_v10  ;;  %v13884_v10 = vld [vmem:[#allocation53_spill] sm:$0xff] }
 0x837   :  { %6894 = vmatpush1.bf16.msra.mxu0 %v11871_v27  ;;  %5898 = vmatprep.mubr.bf16.mxu0 %v8756_v19  ;;  %v13869_v27 = vld [vmem:[#allocation41_spill] sm:$0xff] }
 0x838   :  { %6895 = vmatprep.subr.bf16.mxu0 %v11899_v28  ;;  %v8764_v28 = vld [vmem:[#allocation6 + $0xa8] ss:$16 sps:$4 sm:$0xff]   ;;  %v8774_v19 = vld [vmem:[#allocation6 + $0x12c] ss:$16 sps:$4 sm:$0xff]  }
 0x83b   :  { %6896 = vmatpush1.bf16.msra.mxu0 %v11895_v5  ;;  %v13871_v5 = vld [vmem:[#allocation42_spill] sm:$0xff] }
 0x83c   :  { %6897 = vmatprep.subr.bf16.mxu0 %v11923_v6  ;;  %v13872_v6 = vld [vmem:[#allocation43_spill] sm:$0xff] }
 0x83e   :  { %5899 = vmatmul.mubr.bf16.gmra.mrb[20].mxu0 %v8758_v0  ;;  %v8776_v0 = vld [vmem:[#allocation6 + $0x128] ss:$16 sps:$4 sm:$0xff]  }
 0x83f   :  { %6898 = vmatpush1.bf16.msra.mxu0 %v13866_v3  ;;  %5908 = vmatprep.mubr.bf16.mxu0 %v8759_v57  ;;  %v8777_v57 = vld [vmem:[#allocation6 + $0x14c] ss:$16 sps:$4 sm:$0xff]   ;;  %v8779_v3 = vld [vmem:[#allocation6 + $0x148] ss:$16 sps:$4 sm:$0xff]  }
 0x840   :  { %6899 = vmatprep.subr.bf16.mxu0 %v13867_v55  ;;  %v8780_v55 = vld [vmem:[#allocation6 + $0x16c] ss:$16 sps:$4 sm:$0xff]  }
 0x843   :  { %6900 = vmatpush1.bf16.msra.mxu0 %v13868_v15  ;;  %v8783_v15 = vld [vmem:[#allocation6 + $0x18c] ss:$16 sps:$4 sm:$0xff]  }
 0x844   :  { %6901 = vmatprep.subr.bf16.mxu0 %v13869_v27  ;;  %v8786_v27 = vld [vmem:[#allocation6 + $0x1ac] ss:$16 sps:$4 sm:$0xff]  }
 0x846   :  { %5909 = vmatmul.mubr.bf16.gmra.mrb[24].mxu0 %v8761_v46  ;;  %v8782_v46 = vld [vmem:[#allocation6 + $0x168] ss:$16 sps:$4 sm:$0xff]  }
 0x847   :  { %6902 = vmatpush1.bf16.msra.mxu0 %v13870_v38  ;;  %5918 = vmatprep.mubr.bf16.mxu0 %v8762_v54  ;;  %v8785_v54 = vld [vmem:[#allocation6 + $0x188] ss:$16 sps:$4 sm:$0xff]  }
 0x848   :  { %6903 = vmatprep.subr.bf16.mxu0 %v13871_v5  ;;  %v8788_v38 = vld [vmem:[#allocation6 + $0x1a8] ss:$16 sps:$4 sm:$0xff]  }
 0x849   :  { %v8791_v5 = vld [vmem:[#allocation6 + $0x1c8] ss:$16 sps:$4 sm:$0xff]  }
 0x84b   :  { %6904 = vmatpush1.bf16.msra.mxu0 %v13872_v6  ;;  %v8794_v6 = vld [vmem:[#allocation6 + $0x1e8] ss:$16 sps:$4 sm:$0xff]  }
 0x84c   :  { %6905 = vmatprep.subr.bf16.mxu0 %v13873_v56  ;;  %v8795_v56 = vld [vmem:[#allocation6 + $0x200] ss:$16 sps:$4 sm:$0xff]  }
 0x84e   :  { %5919 = vmatmul.mubr.bf16.gmra.mrb[28].mxu0 %v8764_v28  ;;  %v8792_v28 = vld [vmem:[#allocation6 + $0x1ec] ss:$16 sps:$4 sm:$0xff]  }
 0x84f   :  { %6906 = vmatpush1.bf16.msra.mxu0 %v13874_v34  ;;  %5928 = vmatprep.mubr.bf16.mxu0 %v8765_v22  ;;  %v8797_v22 = vld [vmem:[#allocation6 + $0x204] ss:$16 sps:$4 sm:$0xff]  }
 0x850   :  { %6907 = vmatprep.subr.bf16.mxu0 %v13875_v59  ;;  %v8798_v34 = vld [vmem:[#allocation6 + $0x224] ss:$16 sps:$4 sm:$0xff]   ;;  %v8800_v59 = vld [vmem:[#allocation6 + $0x220] ss:$16 sps:$4 sm:$0xff]  }
 0x853   :  { %6908 = vmatpush1.bf16.msra.mxu0 %v13876_v1  ;;  %v8803_v1 = vld [vmem:[#allocation6 + $0x240] ss:$16 sps:$4 sm:$0xff]  }
 0x854   :  { %6909 = vmatprep.subr.bf16.mxu0 %v13877_v40 }
 0x856   :  { %5929 = vmatmul.mubr.bf16.gmra.mrb[32].mxu0 %v8767_v42  ;;  %v8801_v42 = vld [vmem:[#allocation6 + $0x244] ss:$16 sps:$4 sm:$0xff]  }
 0x857   :  { %6910 = vmatpush1.bf16.msra.mxu0 %v13878_v24  ;;  %5938 = vmatprep.mubr.bf16.mxu0 %v8768_v52  ;;  %v8804_v52 = vld [vmem:[#allocation6 + $0x264] ss:$16 sps:$4 sm:$0xff]  }
 0x858   :  { %6911 = vmatprep.subr.bf16.mxu0 %v13879_v29  ;;  %v8836_v29 = vld [vmem:[#allocation6 + $0x3a0] ss:$16 sps:$4 sm:$0xff]  }
 0x85b   :  { %6912 = vmatpush1.bf16.msra.mxu0 %v13880_v23  ;;  %v8837_v23 = vld [vmem:[#allocation6 + $0x3c4] ss:$16 sps:$4 sm:$0xff]  }
 0x85c   :  { %6913 = vmatprep.subr.bf16.mxu0 %v13881_v45 }
 0x85e   :  { %5939 = vmatmul.mubr.bf16.gmra.mrb[36].mxu0 %v8770_v60 }
 0x85f   :  { %6914 = vmatpush1.bf16.msra.mxu0 %v13882_v13  ;;  %5948 = vmatprep.mubr.bf16.mxu0 %v8771_v12 }
 0x860   :  { %6915 = vmatprep.subr.bf16.mxu0 %v13883_v53  ;;  %v8839_v53 = vld [vmem:[#allocation6 + $0x3c0] ss:$16 sps:$4 sm:$0xff]  }
 0x863   :  { %6916 = vmatpush1.bf16.msra.mxu0 %v13884_v10  ;;  %v8840_v10 = vld [vmem:[#allocation6 + $0x3e4] ss:$16 sps:$4 sm:$0xff]  }
 0x864   :  { %7078 = vmatprep.subr.bf16.mxu0 %v12214_v31  ;;  %v8789_v31 = vld [vmem:[#allocation6 + $0x1cc] ss:$16 sps:$4 sm:$0xff]  }
 0x866   :  { %5949 = vmatmul.mubr.bf16.gmra.mrb[40].mxu0 %v8773_v41 }
 0x867   :  { %5958 = vmatprep.mubr.bf16.mxu0 %v8774_v19 }
 0x86e   :  { %5959 = vmatmul.mubr.bf16.gmra.mrb[44].mxu0 %v8776_v0 }
 0x86f   :  { %5968 = vmatprep.mubr.bf16.mxu0 %v8777_v57 }
 0x876   :  { %5969 = vmatmul.mubr.bf16.gmra.mrb[48].mxu0 %v8779_v3  ;;  %v8842_v3 = vld [vmem:[#allocation6 + $0x3e0] ss:$16 sps:$4 sm:$0xff]  }
 0x877   :  { %5978 = vmatprep.mubr.bf16.mxu0 %v8780_v55 }
 0x87e   :  { %5979 = vmatmul.mubr.bf16.gmra.mrb[52].mxu0 %v8782_v46  ;;  %v8845_v46 = vld [vmem:[#allocation6 + $0x20c] ss:$16 sps:$4 sm:$0xff]  }
 0x87f   :  { %5988 = vmatprep.mubr.bf16.mxu0 %v8783_v15 }
 0x886   :  { %5989 = vmatmul.mubr.bf16.gmra.mrb[56].mxu0 %v8785_v54 }
 0x887   :  { %5998 = vmatprep.mubr.bf16.mxu0 %v8786_v27 }
 0x88e   :  { %5999 = vmatmul.mubr.bf16.gmra.mrb[60].mxu0 %v8788_v38  ;;  %v8843_v38 = vld [vmem:[#allocation6 + $0x208] ss:$16 sps:$4 sm:$0xff]  }
 0x88f   :  { %6008 = vmatprep.mubr.bf16.mxu0 %v8789_v31 }
 0x896   :  { %6009 = vmatmul.mubr.bf16.gmra.mrb[64].mxu0 %v8791_v5  ;;  %v8846_v5 = vld [vmem:[#allocation6 + $0x22c] ss:$16 sps:$4 sm:$0xff]  }
 0x897   :  { %6018 = vmatprep.mubr.bf16.mxu0 %v8792_v28 }
 0x89e   :  { %6019 = vmatmul.mubr.bf16.gmra.mrb[68].mxu0 %v8794_v6 }
 0x89f   :  { %6917 = vmatprep.mubr.bf16.mxu0 %v8797_v22 }
 0x8a6   :  { %6918 = vmatmul.mubr.bf16.vlgmr.msra.gmra.mrb[72].mxu0 %v8795_v56  ;;  %v8848_v56 = vld [vmem:[#allocation6 + $0x228] ss:$16 sps:$4 sm:$0xff]  }
 0x8a7   :  { %7079 = vmatpush1.bf16.msra.mxu0 %v12212_v63  ;;  %6927 = vmatprep.mubr.bf16.mxu0 %v8798_v34  ;;  %v8806_v63 = vld [vmem:[#allocation6 + $0x260] ss:$16 sps:$4 sm:$0xff]  }
 0x8a8   :  { %7080 = vmatprep.subr.bf16.mxu0 %v12238_v33  ;;  %v8809_v33 = vld [vmem:[#allocation6 + $0x280] ss:$16 sps:$4 sm:$0xff]  }
 0x8ab   :  { %7081 = vmatpush1.bf16.msra.mxu0 %v12235_v18  ;;  %v8807_v18 = vld [vmem:[#allocation6 + $0x284] ss:$16 sps:$4 sm:$0xff]  }
 0x8ac   :  { %7082 = vmatprep.subr.bf16.mxu0 %v12262_v36  ;;  %v8812_v36 = vld [vmem:[#allocation6 + $0x2a0] ss:$16 sps:$4 sm:$0xff]  }
 0x8ae   :  { %6928 = vmatmul.mubr.bf16.gmra.mrb[76].mxu0 %v8800_v59  ;;  %v8849_v59 = vld [vmem:[#allocation6 + $0x24c] ss:$16 sps:$4 sm:$0xff]  }
 0x8af   :  { %7083 = vmatpush1.bf16.msra.mxu0 %v12259_v51  ;;  %6937 = vmatprep.mubr.bf16.mxu0 %v8801_v42  ;;  %v8810_v51 = vld [vmem:[#allocation6 + $0x2a4] ss:$16 sps:$4 sm:$0xff]  }
 0x8b0   :  { %7084 = vmatprep.subr.bf16.mxu0 %v12286_v8  ;;  %v8813_v8 = vld [vmem:[#allocation6 + $0x2c4] ss:$16 sps:$4 sm:$0xff]  }
 0x8b3   :  { %7085 = vmatpush1.bf16.msra.mxu0 %v12283_v4  ;;  %v13885_v4 = vld [vmem:[#allocation62_spill] sm:$0xff] }
 0x8b4   :  { %7086 = vmatprep.subr.bf16.mxu0 %v12310_v50  ;;  %v8816_v50 = vld [vmem:[#allocation6 + $0x2e4] ss:$16 sps:$4 sm:$0xff]  }
 0x8b6   :  { %6938 = vmatmul.mubr.bf16.gmra.mrb[80].mxu0 %v8803_v1 }
 0x8b7   :  { %7087 = vmatpush1.bf16.msra.mxu0 %v12307_v7  ;;  %6947 = vmatprep.mubr.bf16.mxu0 %v8804_v52  ;;  %v8815_v7 = vld [vmem:[#allocation6 + $0x2c0] ss:$16 sps:$4 sm:$0xff]  }
 0x8b8   :  { %7088 = vmatprep.subr.bf16.mxu0 %v12334_v44  ;;  %v8819_v44 = vld [vmem:[#allocation6 + $0x304] ss:$16 sps:$4 sm:$0xff]  }
 0x8bb   :  { %7089 = vmatpush1.bf16.msra.mxu0 %v12331_v11  ;;  %v8818_v11 = vld [vmem:[#allocation6 + $0x2e0] ss:$16 sps:$4 sm:$0xff]  }
 0x8bc   :  { %7090 = vmatprep.subr.bf16.mxu0 %v12358_v2  ;;  %v8822_v2 = vld [vmem:[#allocation6 + $0x324] ss:$16 sps:$4 sm:$0xff]  }
 0x8be   :  { %6948 = vmatmul.mubr.bf16.gmra.mrb[84].mxu0 %v8806_v63  ;;  %v8851_v63 = vld [vmem:[#allocation6 + $0x248] ss:$16 sps:$4 sm:$0xff]  }
 0x8bf   :  { %7091 = vmatpush1.bf16.msra.mxu0 %v12355_v21  ;;  %6957 = vmatprep.mubr.bf16.mxu0 %v8807_v18  ;;  %v8821_v21 = vld [vmem:[#allocation6 + $0x300] ss:$16 sps:$4 sm:$0xff]  }
 0x8c0   :  { %7092 = vmatprep.subr.bf16.mxu0 %v12382_v25  ;;  %v8825_v25 = vld [vmem:[#allocation6 + $0x344] ss:$16 sps:$4 sm:$0xff]  }
 0x8c3   :  { %7093 = vmatpush1.bf16.msra.mxu0 %v12379_v14  ;;  %v8824_v14 = vld [vmem:[#allocation6 + $0x320] ss:$16 sps:$4 sm:$0xff]  }
 0x8c4   :  { %7094 = vmatprep.subr.bf16.mxu0 %v12406_v58  ;;  %v8828_v58 = vld [vmem:[#allocation6 + $0x364] ss:$16 sps:$4 sm:$0xff]  }
 0x8c6   :  { %6958 = vmatmul.mubr.bf16.gmra.mrb[88].mxu0 %v8809_v33  ;;  %v8852_v33 = vld [vmem:[#allocation6 + $0x26c] ss:$16 sps:$4 sm:$0xff]  }
 0x8c7   :  { %7095 = vmatpush1.bf16.msra.mxu0 %v12403_v35  ;;  %6967 = vmatprep.mubr.bf16.mxu0 %v8810_v51  ;;  %v8827_v35 = vld [vmem:[#allocation6 + $0x340] ss:$16 sps:$4 sm:$0xff]  }
 0x8c8   :  { %7096 = vmatprep.subr.bf16.mxu0 %v12428_v17 }
 0x8cb   :  { %7097 = vmatpush1.bf16.msra.mxu0 %v13885_v4 }
 0x8cc   :  { %7098 = vmatprep.subr.bf16.mxu0 %v12450_v61 }
 0x8ce   :  { %6968 = vmatmul.mubr.bf16.gmra.mrb[92].mxu0 %v8812_v36 }
 0x8cf   :  { %7099 = vmatpush1.bf16.msra.mxu0 %v12447_v47  ;;  %6977 = vmatprep.mubr.bf16.mxu0 %v8813_v8  ;;  %v8830_v47 = vld [vmem:[#allocation6 + $0x360] ss:$16 sps:$4 sm:$0xff]   ;;  %v8854_v8 = vld [vmem:[#allocation6 + $0x268] ss:$16 sps:$4 sm:$0xff]  }
 0x8d0   :  { %7100 = vmatprep.subr.bf16.mxu0 %v12470_v37  ;;  %v8831_v37 = vld [vmem:[#allocation6 + $0x384] ss:$16 sps:$4 sm:$0xff]  }
 0x8d3   :  { %7101 = vmatpush1.bf16.msra.mxu0 %v12467_v26 }
 0x8d4   :  { %7102 = vmatprep.subr.bf16.mxu0 %v12488_v32 }
 0x8d6   :  { %6978 = vmatmul.mubr.bf16.gmra.mrb[96].mxu0 %v8815_v7 }
 0x8d7   :  { %7103 = vmatpush1.bf16.msra.mxu0 %v12485_v48  ;;  %6987 = vmatprep.mubr.bf16.mxu0 %v8816_v50  ;;  %v8855_v50 = vld [vmem:[#allocation6 + $0x28c] ss:$16 sps:$4 sm:$0xff]  }
 0x8d8   :  { %7104 = vmatprep.subr.bf16.mxu0 %v12506_v39  ;;  %v8833_v39 = vld [vmem:[#allocation6 + $0x380] ss:$16 sps:$4 sm:$0xff]  }
 0x8db   :  { %7105 = vmatpush1.bf16.msra.mxu0 %v12503_v62 }
 0x8dc   :  { %7106 = vmatprep.subr.bf16.mxu0 %v12518_v49  ;;  %v8834_v49 = vld [vmem:[#allocation6 + $0x3a4] ss:$16 sps:$4 sm:$0xff]  }
 0x8de   :  { %6988 = vmatmul.mubr.bf16.gmra.mrb[100].mxu0 %v8818_v11 }
 0x8df   :  { %7107 = vmatpush1.bf16.msra.mxu0 %v12515_v16  ;;  %6997 = vmatprep.mubr.bf16.mxu0 %v8819_v44 }
 0x8e0   :  { %7108 = vmatprep.subr.bf16.mxu0 %v13865_v9 }
 0x8e3   :  { %7109 = vmatpush1.bf16.msra.mxu0 %v13865_v9 }
 0x8e6   :  { %6998 = vmatmul.mubr.bf16.gmra.mrb[104].mxu0 %v8821_v21 }
 0x8e7   :  { %7007 = vmatprep.mubr.bf16.mxu0 %v8822_v2  ;;  %v8857_v2 = vld [vmem:[#allocation6 + $0x288] ss:$16 sps:$4 sm:$0xff]  }
 0x8ee   :  { %7008 = vmatmul.mubr.bf16.gmra.mrb[108].mxu0 %v8824_v14 }
 0x8ef   :  { %7017 = vmatprep.mubr.bf16.mxu0 %v8825_v25  ;;  %v8858_v25 = vld [vmem:[#allocation6 + $0x2ac] ss:$16 sps:$4 sm:$0xff]  }
 0x8f6   :  { %7018 = vmatmul.mubr.bf16.gmra.mrb[112].mxu0 %v8827_v35 }
 0x8f7   :  { %7027 = vmatprep.mubr.bf16.mxu0 %v8828_v58 }
 0x8f9   :  { %v5870_v26 = vpop.f32.mrb[8].mxu0 }
 0x8fa   :  { %6030 = vrot.lane.b32.xlu0 %v5870_v26, %s9088_s27  ;;  %v5872_v17 = vpop.f32.mrb[9].mxu0 }
 0x8fb   :  { %v5874_v61 = vpop.f32.mrb[10].mxu0 }
 0x8fc   :  { %6032 = vrot.lane.b32.xlu1 %v5874_v61, %s9088_s27  ;;  %v5876_v48 = vpop.f32.mrb[11].mxu0  ;;  %v8861_v61 = vld [vmem:[#allocation6 + $0x2cc] ss:$16 sps:$4 sm:$0xff]  }
 0x8fe   :  { %7028 = vmatmul.mubr.bf16.gmra.mrb[116].mxu0 %v8830_v47  ;;  %6034 = vrot.lane.b32.xlu0 %v5872_v17, %s9088_s27  ;;  %v8860_v17 = vld [vmem:[#allocation6 + $0x2a8] ss:$16 sps:$4 sm:$0xff]  }
 0x8ff   :  { %7037 = vmatprep.mubr.bf16.mxu0 %v8831_v37 }
 0x900   :  { %6036 = vrot.lane.b32.xlu1 %v5876_v48, %s9088_s27 }
 0x901   :  { %v5880_v32 = vpop.f32.mrb[12].mxu0 }
 0x902   :  { %6062 = vrot.lane.b32.xlu0 %v5880_v32, %s9089_s29  ;;  %v5882_v62 = vpop.f32.mrb[13].mxu0 }
 0x903   :  { %v5884_v16 = vpop.f32.mrb[14].mxu0 }
 0x904   :  { %6064 = vrot.lane.b32.xlu1 %v5884_v16, %s9089_s29  ;;  %v5886_v9 = vpop.f32.mrb[15].mxu0  ;;  %v8864_v16 = vld [vmem:[#allocation6 + $0x2ec] ss:$16 sps:$4 sm:$0xff]  }
 0x906   :  { %7038 = vmatmul.mubr.bf16.gmra.mrb[120].mxu0 %v8833_v39  ;;  %6066 = vrot.lane.b32.xlu0 %v5882_v62, %s9089_s29  ;;  %v8863_v62 = vld [vmem:[#allocation6 + $0x2c8] ss:$16 sps:$4 sm:$0xff]  }
 0x907   :  { %7047 = vmatprep.mubr.bf16.mxu0 %v8834_v49 }
 0x908   :  { %6068 = vrot.lane.b32.xlu1 %v5886_v9, %s9089_s29 }
 0x909   :  { %v5890_v40 = vpop.f32.mrb[16].mxu0 }
 0x90a   :  { %6094 = vrot.lane.b32.xlu0 %v5890_v40, %s13886_s23  ;;  %v5892_v24 = vpop.f32.mrb[17].mxu0 }
 0x90b   :  { %v5894_v60 = vpop.f32.mrb[18].mxu0 }
 0x90c   :  { %6096 = vrot.lane.b32.xlu1 %v5894_v60, %s13886_s23  ;;  %v5896_v12 = vpop.f32.mrb[19].mxu0  ;;  %v8867_v60 = vld [vmem:[#allocation6 + $0x30c] ss:$16 sps:$4 sm:$0xff]  }
 0x90e   :  { %7048 = vmatmul.mubr.bf16.gmra.mrb[124].mxu0 %v8836_v29  ;;  %6098 = vrot.lane.b32.xlu0 %v5892_v24, %s13886_s23  ;;  %v8866_v24 = vld [vmem:[#allocation6 + $0x2e8] ss:$16 sps:$4 sm:$0xff]  }
 0x90f   :  { %7057 = vmatprep.mubr.bf16.mxu0 %v8837_v23 }
 0x910   :  { %6100 = vrot.lane.b32.xlu1 %v5896_v12, %s13886_s23 }
 0x911   :  { %v5900_v45 = vpop.f32.mrb[20].mxu0 }
 0x912   :  { %6126 = vrot.lane.b32.xlu0 %v5900_v45, %s13887_s24  ;;  %v5902_v13 = vpop.f32.mrb[21].mxu0 }
 0x913   :  { %v5904_v41 = vpop.f32.mrb[22].mxu0 }
 0x914   :  { %6128 = vrot.lane.b32.xlu1 %v5904_v41, %s13887_s24  ;;  %v5906_v19 = vpop.f32.mrb[23].mxu0  ;;  %v8870_v41 = vld [vmem:[#allocation6 + $0x32c] ss:$16 sps:$4 sm:$0xff]  }
 0x916   :  { %7058 = vmatmul.mubr.bf16.gmra.mrb[128].mxu0 %v8839_v53  ;;  %6130 = vrot.lane.b32.xlu0 %v5902_v13, %s13887_s24  ;;  %v8869_v13 = vld [vmem:[#allocation6 + $0x308] ss:$16 sps:$4 sm:$0xff]  }
 0x917   :  { %7067 = vmatprep.mubr.bf16.mxu0 %v8840_v10 }
 0x918   :  { %6132 = vrot.lane.b32.xlu1 %v5906_v19, %s13887_s24 }
 0x919   :  { %v5910_v0 = vpop.f32.mrb[24].mxu0 }
 0x91a   :  { %6158 = vrot.lane.b32.xlu0 %v5910_v0, %s13888_s25  ;;  %v5912_v57 = vpop.f32.mrb[25].mxu0 }
 0x91b   :  { %v5914_v55 = vpop.f32.mrb[26].mxu0 }
 0x91c   :  { %6160 = vrot.lane.b32.xlu1 %v5914_v55, %s13888_s25  ;;  %v5916_v15 = vpop.f32.mrb[27].mxu0  ;;  %v8873_v55 = vld [vmem:[#allocation6 + $0x34c] ss:$16 sps:$4 sm:$0xff]  }
 0x91e   :  { %7068 = vmatmul.mubr.bf16.gmra.mrb[68].mxu0 %v8842_v3  ;;  %6162 = vrot.lane.b32.xlu0 %v5912_v57, %s13888_s25  ;;  %v8872_v57 = vld [vmem:[#allocation6 + $0x328] ss:$16 sps:$4 sm:$0xff]  }
 0x91f   :  { %7110 = vmatprep.mubr.bf16.mxu0 %v8845_v46 }
 0x920   :  { %6164 = vrot.lane.b32.xlu1 %v5916_v15, %s13888_s25 }
 0x921   :  { %v5920_v54 = vpop.f32.mrb[28].mxu0 }
 0x922   :  { %6190 = vrot.lane.b32.xlu0 %v5920_v54, %s13889_s26  ;;  %v5922_v27 = vpop.f32.mrb[29].mxu0 }
 0x923   :  { %v5924_v31 = vpop.f32.mrb[30].mxu0 }
 0x924   :  { %6192 = vrot.lane.b32.xlu1 %v5924_v31, %s13889_s26  ;;  %v5926_v28 = vpop.f32.mrb[31].mxu0  ;;  %v8875_v31 = vld [vmem:[#allocation6 + $0x348] ss:$16 sps:$4 sm:$0xff]  }
 0x926   :  { %7111 = vmatmul.mubr.bf16.vlgmr.msra.gmra.mrb[72].mxu0 %v8843_v38  ;;  %6194 = vrot.lane.b32.xlu0 %v5922_v27, %s13889_s26 }
 0x927   :  { %7120 = vmatprep.mubr.bf16.mxu0 %v8846_v5  ;;  %v8876_v5 = vld [vmem:[#allocation6 + $0x36c] ss:$16 sps:$4 sm:$0xff]  }
 0x928   :  { %6196 = vrot.lane.b32.xlu1 %v5926_v28, %s13889_s26 }
 0x929   :  { %v5930_v6 = vpop.f32.mrb[32].mxu0 }
 0x92a   :  { %6222 = vrot.lane.b32.xlu0 %v5930_v6, %s13890_s9  ;;  %v5932_v22 = vpop.f32.mrb[33].mxu0 }
 0x92b   :  { %v5934_v34 = vpop.f32.mrb[34].mxu0 }
 0x92c   :  { %6224 = vrot.lane.b32.xlu1 %v5934_v34, %s13890_s9  ;;  %v5936_v42 = vpop.f32.mrb[35].mxu0  ;;  %v8878_v34 = vld [vmem:[#allocation6 + $0x368] ss:$16 sps:$4 sm:$0xff]  }
 0x92e   :  { %7121 = vmatmul.mubr.bf16.gmra.mrb[76].mxu0 %v8848_v56  ;;  %6226 = vrot.lane.b32.xlu0 %v5932_v22, %s13890_s9 }
 0x92f   :  { %7130 = vmatprep.mubr.bf16.mxu0 %v8849_v59  ;;  %v8879_v59 = vld [vmem:[#allocation6 + $0x38c] ss:$16 sps:$4 sm:$0xff]  }
 0x930   :  { %6228 = vrot.lane.b32.xlu1 %v5936_v42, %s13890_s9 }
 0x931   :  { %v12616_v1 = vpop.f32.mrb[36].mxu0 }
 0x932   :  { %v12618_v52 = vpop.f32.mrb[37].mxu0 }
 0x933   :  { %13891 = vst [vmem:[#allocation60_spill] sm:$0xff] %v12618_v52  ;;  %v12620_v18 = vpop.f32.mrb[38].mxu0 }
 0x934   :  { %13892 = vst [vmem:[#allocation61_spill] sm:$0xff] %v12620_v18  ;;  %v12622_v51 = vpop.f32.mrb[39].mxu0 }
 0x935   :  { %13893 = vst [vmem:[#allocation19_spill] sm:$0xff] %v12622_v51 }
 0x936   :  { %7131 = vmatmul.mubr.bf16.gmra.mrb[80].mxu0 %v8851_v63 }
 0x937   :  { %7140 = vmatprep.mubr.bf16.mxu0 %v8852_v33 }
 0x939   :  { %v5950_v36 = vpop.f32.mrb[40].mxu0 }
 0x93a   :  { %6274 = vrot.lane.b32.xlu0 %v5950_v36, %s9088_s27  ;;  %v5952_v4 = vpop.f32.mrb[41].mxu0 }
 0x93b   :  { %v5954_v7 = vpop.f32.mrb[42].mxu0 }
 0x93c   :  { %6276 = vrot.lane.b32.xlu1 %v5954_v7, %s9088_s27  ;;  %v5956_v11 = vpop.f32.mrb[43].mxu0 }
 0x93e   :  { %7141 = vmatmul.mubr.bf16.gmra.mrb[84].mxu0 %v8854_v8  ;;  %6278 = vrot.lane.b32.xlu0 %v5952_v4, %s9088_s27  ;;  %v8881_v4 = vld [vmem:[#allocation6 + $0x388] ss:$16 sps:$4 sm:$0xff]   ;;  %v8882_v8 = vld [vmem:[#allocation6 + $0x3ac] ss:$16 sps:$4 sm:$0xff]  }
 0x93f   :  { %7150 = vmatprep.mubr.bf16.mxu0 %v8855_v50 }
 0x940   :  { %6280 = vrot.lane.b32.xlu1 %v5956_v11, %s9088_s27 }
 0x941   :  { %v5960_v44 = vpop.f32.mrb[44].mxu0 }
 0x942   :  { %6306 = vrot.lane.b32.xlu0 %v5960_v44, %s9089_s29  ;;  %v5962_v21 = vpop.f32.mrb[45].mxu0 }
 0x943   :  { %v5964_v14 = vpop.f32.mrb[46].mxu0 }
 0x944   :  { %6308 = vrot.lane.b32.xlu1 %v5964_v14, %s9089_s29  ;;  %v5966_v35 = vpop.f32.mrb[47].mxu0 }
 0x946   :  { %7151 = vmatmul.mubr.bf16.gmra.mrb[88].mxu0 %v8857_v2  ;;  %6310 = vrot.lane.b32.xlu0 %v5962_v21, %s9089_s29  ;;  %v8884_v21 = vld [vmem:[#allocation6 + $0x3a8] ss:$16 sps:$4 sm:$0xff]   ;;  %v8885_v2 = vld [vmem:[#allocation6 + $0x3cc] ss:$16 sps:$4 sm:$0xff]  }
 0x947   :  { %7160 = vmatprep.mubr.bf16.mxu0 %v8858_v25 }
 0x948   :  { %6312 = vrot.lane.b32.xlu1 %v5966_v35, %s9089_s29 }
 0x949   :  { %v5970_v58 = vpop.f32.mrb[48].mxu0 }
 0x94a   :  { %6338 = vrot.lane.b32.xlu0 %v5970_v58, %s13886_s23  ;;  %v5972_v26 = vpop.f32.mrb[49].mxu0 }
 0x94b   :  { %v5974_v47 = vpop.f32.mrb[50].mxu0 }
 0x94c   :  { %6340 = vrot.lane.b32.xlu1 %v5974_v47, %s13886_s23  ;;  %v5976_v37 = vpop.f32.mrb[51].mxu0 }
 0x94e   :  { %7161 = vmatmul.mubr.bf16.gmra.mrb[92].mxu0 %v8860_v17  ;;  %6342 = vrot.lane.b32.xlu0 %v5972_v26, %s13886_s23  ;;  %v8887_v26 = vld [vmem:[#allocation6 + $0x3c8] ss:$16 sps:$4 sm:$0xff]   ;;  %v8888_v17 = vld [vmem:[#allocation6 + $0x3ec] ss:$16 sps:$4 sm:$0xff]  }
 0x94f   :  { %7170 = vmatprep.mubr.bf16.mxu0 %v8861_v61 }
 0x950   :  { %6344 = vrot.lane.b32.xlu1 %v5976_v37, %s13886_s23 }
 0x951   :  { %v5980_v48 = vpop.f32.mrb[52].mxu0 }
 0x952   :  { %6370 = vrot.lane.b32.xlu0 %v5980_v48, %s13887_s24  ;;  %v5982_v32 = vpop.f32.mrb[53].mxu0 }
 0x953   :  { %v5984_v39 = vpop.f32.mrb[54].mxu0 }
 0x954   :  { %6372 = vrot.lane.b32.xlu1 %v5984_v39, %s13887_s24  ;;  %v5986_v49 = vpop.f32.mrb[55].mxu0  ;;  %v8890_v39 = vld [vmem:[#allocation6 + $0x3e8] ss:$16 sps:$4 sm:$0xff]  }
 0x956   :  { %7171 = vmatmul.mubr.bf16.gmra.mrb[96].mxu0 %v8863_v62  ;;  %6374 = vrot.lane.b32.xlu0 %v5982_v32, %s13887_s24 }
 0x957   :  { %7180 = vmatprep.mubr.bf16.mxu0 %v8864_v16 }
 0x958   :  { %6376 = vrot.lane.b32.xlu1 %v5986_v49, %s13887_s24 }
 0x959   :  { %v5990_v9 = vpop.f32.mrb[56].mxu0 }
 0x95a   :  { %6402 = vrot.lane.b32.xlu0 %v5990_v9, %s13888_s25  ;;  %v5992_v40 = vpop.f32.mrb[57].mxu0 }
 0x95b   :  { %v5994_v29 = vpop.f32.mrb[58].mxu0 }
 0x95c   :  { %6404 = vrot.lane.b32.xlu1 %v5994_v29, %s13888_s25  ;;  %v5996_v23 = vpop.f32.mrb[59].mxu0 }
 0x95e   :  { %7181 = vmatmul.mubr.bf16.gmra.mrb[100].mxu0 %v8866_v24  ;;  %6406 = vrot.lane.b32.xlu0 %v5992_v40, %s13888_s25 }
 0x95f   :  { %7190 = vmatprep.mubr.bf16.mxu0 %v8867_v60 }
 0x960   :  { %6408 = vrot.lane.b32.xlu1 %v5996_v23, %s13888_s25 }
 0x961   :  { %v6000_v12 = vpop.f32.mrb[60].mxu0 }
 0x962   :  { %6434 = vrot.lane.b32.xlu0 %v6000_v12, %s13889_s26  ;;  %v6002_v45 = vpop.f32.mrb[61].mxu0 }
 0x963   :  { %v6004_v53 = vpop.f32.mrb[62].mxu0 }
 0x964   :  { %6436 = vrot.lane.b32.xlu1 %v6004_v53, %s13889_s26  ;;  %v6006_v10 = vpop.f32.mrb[63].mxu0  ;;  %v6029_v53 = vld [vmem:[#allocation9] ss:$8 sm:$0x3] }
 0x966   :  { %7191 = vmatmul.mubr.bf16.gmra.mrb[104].mxu0 %v8869_v13  ;;  %6438 = vrot.lane.b32.xlu0 %v6002_v45, %s13889_s26  ;;  %v6253_v13 = vld [vmem:[#allocation9 + $0x7] ss:$8 sm:$0x3] }
 0x967   :  { %7200 = vmatprep.mubr.bf16.mxu0 %v8870_v41  ;;  %v6061_v41 = vld [vmem:[#allocation9 + $0x1] ss:$8 sm:$0x3] }
 0x968   :  { %6440 = vrot.lane.b32.xlu1 %v6006_v10, %s13889_s26  ;;  %v6157_v10 = vld [vmem:[#allocation9 + $0x4] ss:$8 sm:$0x3] }
 0x969   :  { %v6010_v19 = vpop.f32.mrb[64].mxu0 }
 0x96a   :  { %6466 = vrot.lane.b32.xlu0 %v6010_v19, %s13890_s9  ;;  %v6012_v0 = vpop.f32.mrb[65].mxu0  ;;  %v6093_v19 = vld [vmem:[#allocation9 + $0x2] ss:$8 sm:$0x3] }
 0x96b   :  { %v6014_v3 = vpop.f32.mrb[66].mxu0 }
 0x96c   :  { %v12649_v46 = vpop.permute.xlu0 %6030  ;;  %6468 = vrot.lane.b32.xlu1 %v6014_v3, %s13890_s9  ;;  %v6016_v15 = vpop.f32.mrb[67].mxu0  ;;  %v6046_v3 = vrot.slane %v6029_v53, %v13753_v43 }
 0x96e   :  { %7201 = vmatmul.mubr.bf16.gmra.mrb[108].mxu0 %v8872_v57  ;;  %v12652_v54 = vpop.permute.xlu1 %6032  ;;  %6470 = vrot.lane.b32.xlu0 %v6012_v0, %s13890_s9  ;;  %v12717_v0 = vrot.slane %v6253_v13, %v13754_v20  ;;  %v12720_v57 = vrot.slane %v6253_v13, %v13753_v43 }
 0x96f   :  { %7210 = vmatprep.mubr.bf16.mxu0 %v8873_v55  ;;  %v6050_v55 = vrot.slane %v6029_v53, %v13754_v20 }
 0x970   :  { %v12655_v27 = vpop.permute.xlu0 %6034  ;;  %6472 = vrot.lane.b32.xlu1 %v6016_v15, %s13890_s9  ;;  %13894 = vst [vmem:[#allocation21_spill] sm:$0xff] %v12720_v57  ;;  %v6125_v15 = vld [vmem:[#allocation9 + $0x3] ss:$8 sm:$0x3] }
 0x972   :  { %v12658_v38 = vpop.permute.xlu1 %6036 }
 0x974   :  { %v12660_v28 = vpop.permute.xlu0 %6062 }
 0x976   :  { %7211 = vmatmul.mubr.bf16.gmra.mrb[112].mxu0 %v8875_v31  ;;  %v12662_v6 = vpop.permute.xlu1 %6064  ;;  %v12725_v31 = vrot.slane %v6061_v41, %v13753_v43 }
 0x977   :  { %7220 = vmatprep.mubr.bf16.mxu0 %v8876_v5  ;;  %v12728_v5 = vrot.slane %v6061_v41, %v13754_v20 }
 0x978   :  { %v12664_v22 = vpop.permute.xlu0 %6066 }
 0x97a   :  { %v12666_v56 = vpop.permute.xlu1 %6068 }
 0x97c   :  { %v12668_v42 = vpop.permute.xlu0 %6094 }
 0x97e   :  { %7221 = vmatmul.mubr.bf16.gmra.mrb[116].mxu0 %v8878_v34  ;;  %v12670_v63 = vpop.permute.xlu1 %6096  ;;  %v6174_v34 = vrot.slane %v6157_v10, %v13753_v43 }
 0x97f   :  { %7230 = vmatprep.mubr.bf16.mxu0 %v8879_v59  ;;  %v6178_v59 = vrot.slane %v6157_v10, %v13754_v20 }
 0x980   :  { %v12672_v33 = vpop.permute.xlu0 %6098 }
 0x982   :  { %v12674_v36 = vpop.permute.xlu1 %6100 }
 0x984   :  { %v12676_v7 = vpop.permute.xlu0 %6126 }
 0x986   :  { %7231 = vmatmul.mubr.bf16.gmra.mrb[120].mxu0 %v8881_v4  ;;  %v12678_v50 = vpop.permute.xlu1 %6128  ;;  %v6273_v4 = vld [vmem:[#allocation9 + $0x10] ss:$8 sm:$0x3] }
 0x987   :  { %7240 = vmatprep.mubr.bf16.mxu0 %v8882_v8  ;;  %v12733_v8 = vrot.slane %v6093_v19, %v13753_v43 }
 0x988   :  { %v12680_v11 = vpop.permute.xlu0 %6130 }
 0x98a   :  { %v12682_v44 = vpop.permute.xlu1 %6132 }
 0x98c   :  { %v6159_v14 = vpop.permute.xlu0 %6158 }
 0x98e   :  { %7241 = vmatmul.mubr.bf16.gmra.mrb[124].mxu0 %v8884_v21  ;;  %v6161_v25 = vpop.permute.xlu1 %6160  ;;  %v12736_v21 = vrot.slane %v6093_v19, %v13754_v20 }
 0x98f   :  { %7250 = vmatprep.mubr.bf16.mxu0 %v8885_v2 }
 0x990   :  { %v6163_v35 = vpop.permute.xlu0 %6162 }
 0x991   :  { %v6166_v2 = vsel %vm2300_vm1, %v6159_v14, %v6163_v35 }
 0x992   :  { %v6165_v58 = vpop.permute.xlu1 %6164 }
 0x994   :  { %v6191_v47 = vpop.permute.xlu0 %6190 }
 0x996   :  { %7251 = vmatmul.mubr.bf16.gmra.mrb[128].mxu0 %v8887_v26  ;;  %v6193_v61 = vpop.permute.xlu1 %6192  ;;  %v6168_v26 = vsel %vm2300_vm1, %v6163_v35, %v6159_v14  ;;  %v6040_v14 = vsel %vm2164_vm3, %v12655_v27, %v12649_v46  ;;  %v6290_v35 = vrot.slane %v6273_v4, %v13753_v43 }
 0x997   :  { %7260 = vmatprep.mubr.bf16.mxu0 %v8888_v17  ;;  %v12743_v17 = vrot.slane %v6125_v15, %v13753_v43  ;;  %v6182_v13 = vmul.f32 %v6178_v59, %v6168_v26 }
 0x998   :  { %v6195_v37 = vpop.permute.xlu0 %6194 }
 0x999   :  { %v12686_v48 = vsel %vm2334_vm14, %v6191_v47, %v6195_v37  ;;  %v12690_v32 = vsel %vm2334_vm14, %v6195_v37, %v6191_v47  ;;  %v12746_v47 = vrot.slane %v6125_v15, %v13754_v20  ;;  %v6169_v37 = vsel %vm2300_vm1, %v6165_v58, %v6161_v25 }
 0x99a   :  { %v6197_v62 = vpop.permute.xlu1 %6196  ;;  %v6054_v15 = vmul.f32 %v6050_v55, %v6040_v14 }
 0x99b   :  { %v12694_v16 = vsel %vm2334_vm14, %v6193_v61, %v6197_v62  ;;  %v12698_v49 = vsel %vm2334_vm14, %v6197_v62, %v6193_v61  ;;  %v6167_v61 = vsel %vm2300_vm1, %v6161_v25, %v6165_v58  ;;  %v6189_v62 = vld [vmem:[#allocation9 + $0x5] ss:$8 sm:$0x3]  ;;  %v6039_v25 = vsel %vm2164_vm3, %v12652_v54, %v12658_v38 }
 0x99c   :  { %v6223_v9 = vpop.permute.xlu0 %6222  ;;  %v6041_v58 = vsel %vm2164_vm3, %v12658_v38, %v12652_v54  ;;  %v6183_v41 = vmul.f32 %v6174_v34, %v6167_v61  ;;  %v6210_v10 = vrot.slane %v6189_v62, %v13754_v20  ;;  %v6055_v57 = vmul.f32 %v6046_v3, %v6039_v25 }
 0x99d   :  { %v6056_v52 = vmul.f32 %v6050_v55, %v6041_v58  ;;  %v6221_v55 = vld [vmem:[#allocation9 + $0x6] ss:$8 sm:$0x3] }
 0x99e   :  { %7261 = vmatmul.mubr.bf16.gmra.mrb[68].mxu0 %v8890_v39  ;;  %v6225_v40 = vpop.permute.xlu1 %6224 }
 0x9a0   :  { %v6227_v24 = vpop.permute.xlu0 %6226 }
 0x9a1   :  { %v12702_v29 = vsel %vm2368_vm13, %v6223_v9, %v6227_v24  ;;  %v12706_v60 = vsel %vm2368_vm13, %v6227_v24, %v6223_v9  ;;  %v6038_v9 = vsel %vm2164_vm3, %v12649_v46, %v12655_v27  ;;  %v6305_v24 = vld [vmem:[#allocation9 + $0x11] ss:$8 sm:$0x3]  ;;  %v6184_v46 = vmul.f32 %v6178_v59, %v6169_v37 }
 0x9a2   :  { %v6229_v23 = vpop.permute.xlu1 %6228  ;;  %v6206_v27 = vrot.slane %v6189_v62, %v13753_v43  ;;  %v6053_v19 = vmul.f32 %v6046_v3, %v6038_v9  ;;  %v6322_v51 = vrot.slane %v6305_v24, %v13753_v43  ;;  %v6326_v18 = vrot.slane %v6305_v24, %v13754_v20 }
 0x9a3   :  { %v12710_v12 = vsel %vm2368_vm13, %v6225_v40, %v6229_v23  ;;  %v12714_v45 = vsel %vm2368_vm13, %v6229_v23, %v6225_v40  ;;  %v6294_v40 = vrot.slane %v6273_v4, %v13754_v20  ;;  %v6181_v23 = vmul.f32 %v6174_v34, %v6166_v2 }
 0x9a4   :  { %v6186_v59 = vadd.f32 %v6182_v13, %v6054_v15  ;;  %v6187_v37 = vadd.f32 %v6183_v41, %v6055_v57  ;;  %v6188_v62 = vadd.f32 %v6184_v46, %v6056_v52  ;;  %v6070_v57 = vsel %vm2198_vm4, %v12660_v28, %v12664_v22 }
 0x9a5   :  { %v6185_v34 = vadd.f32 %v6181_v23, %v6053_v19  ;;  %v6072_v52 = vsel %vm2198_vm4, %v12664_v22, %v12660_v28  ;;  %v6071_v23 = vsel %vm2198_vm4, %v12662_v6, %v12666_v56  ;;  %v6214_v13 = vmul.f32 %v6210_v10, %v12690_v32 }
 0x9a6   :  { %v6215_v28 = vmul.f32 %v6206_v27, %v12694_v16  ;;  %v6216_v22 = vmul.f32 %v6210_v10, %v12698_v49  ;;  %v6238_v19 = vrot.slane %v6221_v55, %v13753_v43  ;;  %v6242_v15 = vrot.slane %v6221_v55, %v13754_v20 }
 0x9a7   :  { %v6102_v16 = vsel %vm2232_vm15, %v12668_v42, %v12672_v33  ;;  %v6104_v49 = vsel %vm2232_vm15, %v12672_v33, %v12668_v42  ;;  %v6103_v55 = vsel %vm2232_vm15, %v12670_v63, %v12674_v36 }
 0x9ac   :  { %v6275_v39 = vpop.permute.xlu0 %6274 }
 0x9ae   :  { %v6277_v53 = vpop.permute.xlu1 %6276 }
 0x9b0   :  { %v6279_v4 = vpop.permute.xlu0 %6278 }
 0x9b1   :  { %v6282_v54 = vsel %vm2164_vm3, %v6275_v39, %v6279_v4  ;;  %v6284_v38 = vsel %vm2164_vm3, %v6279_v4, %v6275_v39  ;;  %v6085_v4 = vmul.f32 %v12725_v31, %v6070_v57  ;;  %v6245_v57 = vmul.f32 %v6238_v19, %v12702_v29 }
 0x9b2   :  { %v6297_v2 = vmul.f32 %v6290_v35, %v6284_v38  ;;  %v6298_v26 = vmul.f32 %v6294_v40, %v6282_v54  ;;  %v6281_v61 = vpop.permute.xlu1 %6280  ;;  %v6134_v29 = vsel %vm13895_vm0, %v12676_v7, %v12680_v11 }
 0x9b3   :  { %v6283_v9 = vsel %vm2164_vm3, %v6277_v53, %v6281_v61  ;;  %v6285_v3 = vsel %vm2164_vm3, %v6281_v61, %v6277_v53 }
 0x9b4   :  { %v12782_v14 = vadd.f32 %v6297_v2, %v6185_v34  ;;  %v12784_v24 = vadd.f32 %v6298_v26, %v6186_v59  ;;  %v6299_v25 = vmul.f32 %v6290_v35, %v6285_v3  ;;  %v6300_v39 = vmul.f32 %v6294_v40, %v6283_v9  ;;  %v6307_v58 = vpop.permute.xlu0 %6306  ;;  %v6337_v59 = vld [vmem:[#allocation9 + $0x12] ss:$8 sm:$0x3] }
 0x9b5   :  { %v6073_v35 = vsel %vm2198_vm4, %v12666_v56, %v12662_v6  ;;  %v6213_v40 = vmul.f32 %v6206_v27, %v12686_v48  ;;  %v6086_v6 = vmul.f32 %v12728_v5, %v6072_v52  ;;  %v6087_v56 = vmul.f32 %v12725_v31, %v6071_v23 }
 0x9b6   :  { %v12804_v53 = vadd.f32 %v6299_v25, %v6187_v37  ;;  %v12806_v41 = vadd.f32 %v6300_v39, %v6188_v62  ;;  %v6309_v46 = vpop.permute.xlu1 %6308  ;;  %v6088_v48 = vmul.f32 %v12728_v5, %v6073_v35  ;;  %v6105_v25 = vsel %vm2232_vm15, %v12674_v36, %v12670_v63 }
 0x9b7   :  { %v6217_v31 = vadd.f32 %v6213_v40, %v6085_v4  ;;  %v6218_v54 = vadd.f32 %v6214_v13, %v6086_v6  ;;  %v6219_v2 = vadd.f32 %v6215_v28, %v6087_v56  ;;  %v6354_v39 = vrot.slane %v6337_v59, %v13753_v43  ;;  %v6369_v4 = vld [vmem:[#allocation9 + $0x13] ss:$8 sm:$0x3] }
 0x9b8   :  { %v6311_v32 = vpop.permute.xlu0 %6310  ;;  %v6220_v26 = vadd.f32 %v6216_v22, %v6088_v48  ;;  %v6117_v35 = vmul.f32 %v12733_v8, %v6102_v16  ;;  %v6118_v40 = vmul.f32 %v12736_v21, %v6104_v49  ;;  %v6247_v13 = vmul.f32 %v6238_v19, %v12710_v12 }
 0x9b9   :  { %v6314_v27 = vsel %vm2198_vm4, %v6307_v58, %v6311_v32  ;;  %v6316_v10 = vsel %vm2198_vm4, %v6311_v32, %v6307_v58  ;;  %v6358_v58 = vrot.slane %v6337_v59, %v13754_v20  ;;  %v6248_v63 = vmul.f32 %v6242_v15, %v12714_v45 }
 0x9ba   :  { %v6329_v5 = vmul.f32 %v6322_v51, %v6316_v10  ;;  %v6330_v38 = vmul.f32 %v6326_v18, %v6314_v27  ;;  %v6313_v34 = vpop.permute.xlu1 %6312  ;;  %v6119_v36 = vmul.f32 %v12733_v8, %v6103_v55  ;;  %v6135_v12 = vsel %vm13897_vm5, %v12678_v50, %v12682_v44  ;;  %v13901_v55 = vld [vmem:[#allocation61_spill] sm:$0xff] }
 0x9bb   :  { %v6315_v61 = vsel %vm2198_vm4, %v6309_v46, %v6313_v34  ;;  %v6317_v42 = vsel %vm2198_vm4, %v6313_v34, %v6309_v46  ;;  %v6120_v46 = vmul.f32 %v12736_v21, %v6105_v25  ;;  %v6137_v45 = vsel %vm13898_vm6, %v12682_v44, %v12678_v50 }
 0x9bc   :  { %v12832_v33 = vadd.f32 %v6329_v5, %v6217_v31  ;;  %v12834_v37 = vadd.f32 %v6330_v38, %v6218_v54  ;;  %v6331_v62 = vmul.f32 %v6322_v51, %v6317_v42  ;;  %v6332_v9 = vmul.f32 %v6326_v18, %v6315_v61  ;;  %v6339_v3 = vpop.permute.xlu0 %6338  ;;  %v13899_v42 = vld [vmem:[#allocation60_spill] sm:$0xff] }
 0x9bd   :  { %v6246_v51 = vmul.f32 %v6242_v15, %v12706_v60  ;;  %v6136_v60 = vsel %vm13896_vm2, %v12680_v11, %v12676_v7  ;;  %v6249_v22 = vadd.f32 %v6245_v57, %v6117_v35  ;;  %v6251_v6 = vadd.f32 %v6247_v13, %v6119_v36  ;;  %v6401_v13 = vld [vmem:[#allocation9 + $0x14] ss:$8 sm:$0x3]  ;;  %vm13909_vm2 = vmmov %vm13895_vm0 }
 0x9be   :  { %v12848_v18 = vadd.f32 %v6331_v62, %v6219_v2  ;;  %v12850_v52 = vadd.f32 %v6332_v9, %v6220_v26  ;;  %v6341_v23 = vpop.permute.xlu1 %6340  ;;  %v6252_v56 = vadd.f32 %v6248_v63, %v6120_v46  ;;  %v6386_v10 = vrot.slane %v6369_v4, %v13753_v43  ;;  %v13900_v62 = vld [vmem:[#allocation21_spill] sm:$0xff] }
 0x9bf   :  { %v6250_v19 = vadd.f32 %v6246_v51, %v6118_v40  ;;  %v6390_v31 = vrot.slane %v6369_v4, %v13754_v20  ;;  %v6149_v54 = vmul.f32 %v12743_v17, %v6134_v29  ;;  %v6150_v5 = vmul.f32 %v12746_v47, %v6136_v60 }
 0x9c0   :  { %v6343_v28 = vpop.permute.xlu0 %6342  ;;  %v6151_v2 = vmul.f32 %v12743_v17, %v6135_v12  ;;  %v6152_v26 = vmul.f32 %v12746_v47, %v6137_v45  ;;  %v6266_v61 = vmul.f32 %v12717_v0, %v12616_v1  ;;  %v6265_v9 = vmul.f32 %v13900_v62, %v13899_v42 }
 0x9c1   :  { %v6346_v8 = vsel %vm2232_vm15, %v6339_v3, %v6343_v28  ;;  %v6348_v21 = vsel %vm2232_vm15, %v6343_v28, %v6339_v3  ;;  %v6268_v25 = vmul.f32 %v12717_v0, %v13901_v55  ;;  %v6465_v55 = vld [vmem:[#allocation9 + $0x16] ss:$8 sm:$0x3] }
 0x9c2   :  { %v6361_v7 = vmul.f32 %v6354_v39, %v6348_v21  ;;  %v6362_v11 = vmul.f32 %v6358_v58, %v6346_v8  ;;  %v6345_v15 = vpop.permute.xlu1 %6344  ;;  %v6269_v1 = vadd.f32 %v6265_v9, %v6149_v54  ;;  %v6270_v35 = vadd.f32 %v6266_v61, %v6150_v5 }
 0x9c3   :  { %v6347_v48 = vsel %vm2232_vm15, %v6341_v23, %v6345_v15  ;;  %v6349_v50 = vsel %vm2232_vm15, %v6345_v15, %v6341_v23  ;;  %v6272_v36 = vadd.f32 %v6268_v25, %v6152_v26  ;;  %v6418_v8 = vrot.slane %v6401_v13, %v13753_v43 }
 0x9c4   :  { %v12882_v44 = vadd.f32 %v6361_v7, %v6249_v22  ;;  %v12884_v32 = vadd.f32 %v6362_v11, %v6250_v19  ;;  %v6363_v16 = vmul.f32 %v6354_v39, %v6349_v50  ;;  %v6364_v49 = vmul.f32 %v6358_v58, %v6347_v48  ;;  %v6371_v27 = vpop.permute.xlu0 %6370  ;;  %v13902_v39 = vld [vmem:[#allocation19_spill] sm:$0xff] }
 0x9c5   :  { %v6267_v58 = vmul.f32 %v13900_v62, %v13902_v39  ;;  %v6422_v21 = vrot.slane %v6401_v13, %v13754_v20 }
 0x9c6   :  { %v12890_v38 = vadd.f32 %v6363_v16, %v6251_v6  ;;  %v12892_v34 = vadd.f32 %v6364_v49, %v6252_v56  ;;  %v6373_v59 = vpop.permute.xlu1 %6372  ;;  %v6433_v16 = vld [vmem:[#allocation9 + $0x15] ss:$8 sm:$0x3] }
 0x9c7   :  { %v6271_v63 = vadd.f32 %v6267_v58, %v6151_v2  ;;  %v6450_v26 = vrot.slane %v6433_v16, %v13753_v43  ;;  %v6454_v61 = vrot.slane %v6433_v16, %v13754_v20 }
 0x9c8   :  { %v6375_v3 = vpop.permute.xlu0 %6374 }
 0x9c9   :  { %v6378_v57 = vsel %vm13903_vm7, %v6371_v27, %v6375_v3  ;;  %v6380_v17 = vsel %vm13904_vm8, %v6375_v3, %v6371_v27 }
 0x9ca   :  { %v6393_v47 = vmul.f32 %v6386_v10, %v6380_v17  ;;  %v6394_v51 = vmul.f32 %v6390_v31, %v6378_v57  ;;  %v6377_v23 = vpop.permute.xlu1 %6376 }
 0x9cb   :  { %v6379_v40 = vsel %vm13905_vm9, %v6373_v59, %v6377_v23  ;;  %v6381_v0 = vsel %vm13906_vm10, %v6377_v23, %v6373_v59 }
 0x9cc   :  { %v6395_v46 = vmul.f32 %v6386_v10, %v6381_v0  ;;  %v6396_v29 = vmul.f32 %v6390_v31, %v6379_v40  ;;  %v6403_v60 = vpop.permute.xlu0 %6402  ;;  %v12912_v28 = vadd.f32 %v6393_v47, %v6269_v1  ;;  %v12914_v12 = vadd.f32 %v6394_v51, %v6270_v35 }
 0x9cd   :  { %v6482_v1 = vrot.slane %v6465_v55, %v13753_v43  ;;  %v6486_v35 = vrot.slane %v6465_v55, %v13754_v20 }
 0x9ce   :  { %v6405_v45 = vpop.permute.xlu1 %6404  ;;  %v12918_v22 = vadd.f32 %v6395_v46, %v6271_v63  ;;  %v12920_v19 = vadd.f32 %v6396_v29, %v6272_v36 }
 0x9d0   :  { %v6407_v7 = vpop.permute.xlu0 %6406 }
 0x9d1   :  { %v6410_v11 = vsel %vm2300_vm1, %v6403_v60, %v6407_v7  ;;  %v6412_v15 = vsel %vm2300_vm1, %v6407_v7, %v6403_v60 }
 0x9d2   :  { %v6425_v4 = vmul.f32 %v6418_v8, %v6412_v15  ;;  %v6426_v6 = vmul.f32 %v6422_v21, %v6410_v11  ;;  %v6409_v56 = vpop.permute.xlu1 %6408 }
 0x9d3   :  { %v6411_v48 = vsel %vm2300_vm1, %v6405_v45, %v6409_v56  ;;  %v6413_v50 = vsel %vm2300_vm1, %v6409_v56, %v6405_v45 }
 0x9d4   :  { %v12931_v49 = vadd.f32 %v6425_v4, %v12782_v14  ;;  %v12934_v27 = vadd.f32 %v6426_v6, %v12784_v24  ;;  %v6427_v10 = vmul.f32 %v6418_v8, %v6413_v50  ;;  %v6428_v31 = vmul.f32 %v6422_v21, %v6411_v48  ;;  %v6435_v54 = vpop.permute.xlu0 %6434 }
 0x9d6   :  { %v12937_v5 = vadd.f32 %v6427_v10, %v12804_v53  ;;  %v12940_v59 = vadd.f32 %v6428_v31, %v12806_v41  ;;  %v6437_v2 = vpop.permute.xlu1 %6436 }
 0x9d8   :  { %v6439_v42 = vpop.permute.xlu0 %6438 }
 0x9d9   :  { %v6442_v14 = vsel %vm2334_vm14, %v6435_v54, %v6439_v42  ;;  %v6444_v24 = vsel %vm2334_vm14, %v6439_v42, %v6435_v54 }
 0x9da   :  { %v6457_v62 = vmul.f32 %v6450_v26, %v6444_v24  ;;  %v6458_v9 = vmul.f32 %v6454_v61, %v6442_v14  ;;  %v6441_v3 = vpop.permute.xlu1 %6440 }
 0x9db   :  { %v6443_v53 = vsel %vm2334_vm14, %v6437_v2, %v6441_v3  ;;  %v6445_v41 = vsel %vm2334_vm14, %v6441_v3, %v6437_v2 }
 0x9dc   :  { %v12953_v25 = vadd.f32 %v6457_v62, %v12832_v33  ;;  %v12956_v39 = vadd.f32 %v6458_v9, %v12834_v37  ;;  %v6459_v58 = vmul.f32 %v6450_v26, %v6445_v41  ;;  %v6460_v57 = vmul.f32 %v6454_v61, %v6443_v53  ;;  %v6467_v17 = vpop.permute.xlu0 %6466 }
 0x9de   :  { %v12959_v47 = vadd.f32 %v6459_v58, %v12848_v18  ;;  %v12962_v51 = vadd.f32 %v6460_v57, %v12850_v52  ;;  %v6469_v23 = vpop.permute.xlu1 %6468 }
 0x9e0   :  { %v6471_v40 = vpop.permute.xlu0 %6470 }
 0x9e1   :  { %v6474_v33 = vsel %vm2368_vm13, %v6467_v17, %v6471_v40  ;;  %v6476_v37 = vsel %vm2368_vm13, %v6471_v40, %v6467_v17 }
 0x9e2   :  { %v6489_v0 = vmul.f32 %v6482_v1, %v6476_v37  ;;  %v6490_v13 = vmul.f32 %v6486_v35, %v6474_v33  ;;  %v6473_v63 = vpop.permute.xlu1 %6472 }
 0x9e3   :  { %v6475_v18 = vsel %vm2368_vm13, %v6469_v23, %v6473_v63  ;;  %v6477_v52 = vsel %vm2368_vm13, %v6473_v63, %v6469_v23 }
 0x9e4   :  { %v12975_v36 = vadd.f32 %v6489_v0, %v12882_v44  ;;  %v12978_v46 = vadd.f32 %v6490_v13, %v12884_v32  ;;  %v6491_v29 = vmul.f32 %v6482_v1, %v6477_v52  ;;  %v6492_v60 = vmul.f32 %v6486_v35, %v6475_v18 }
 0x9e6   :  { %v12981_v45 = vadd.f32 %v6491_v29, %v12890_v38  ;;  %v12984_v8 = vadd.f32 %v6492_v60, %v12892_v34 }
 0x9f9   :  { %v7112_v21 = vpop.f32.mrb[72].mxu0 }
 0x9fa   :  { %7272 = vrot.lane.b32.xlu0 %v7112_v21, %s9088_s27  ;;  %v7114_v7 = vpop.f32.mrb[73].mxu0 }
 0x9fb   :  { %v7116_v11 = vpop.f32.mrb[74].mxu0 }
 0x9fc   :  { %7274 = vrot.lane.b32.xlu1 %v7116_v11, %s9088_s27  ;;  %v7118_v44 = vpop.f32.mrb[75].mxu0 }
 0x9fe   :  { %7276 = vrot.lane.b32.xlu0 %v7114_v7, %s9088_s27 }
 0xa00   :  { %7278 = vrot.lane.b32.xlu1 %v7118_v44, %s9088_s27 }
 0xa01   :  { %v7122_v32 = vpop.f32.mrb[76].mxu0 }
 0xa02   :  { %7304 = vrot.lane.b32.xlu0 %v7122_v32, %s9089_s29  ;;  %v7124_v38 = vpop.f32.mrb[77].mxu0 }
 0xa03   :  { %v7126_v15 = vpop.f32.mrb[78].mxu0 }
 0xa04   :  { %7306 = vrot.lane.b32.xlu1 %v7126_v15, %s9089_s29  ;;  %v7128_v34 = vpop.f32.mrb[79].mxu0 }
 0xa06   :  { %7308 = vrot.lane.b32.xlu0 %v7124_v38, %s9089_s29 }
 0xa08   :  { %7310 = vrot.lane.b32.xlu1 %v7128_v34, %s9089_s29 }
 0xa09   :  { %v7132_v4 = vpop.f32.mrb[80].mxu0 }
 0xa0a   :  { %7336 = vrot.lane.b32.xlu0 %v7132_v4, %s13886_s23  ;;  %v7134_v6 = vpop.f32.mrb[81].mxu0 }
 0xa0b   :  { %v7136_v56 = vpop.f32.mrb[82].mxu0 }
 0xa0c   :  { %7338 = vrot.lane.b32.xlu1 %v7136_v56, %s13886_s23  ;;  %v7138_v48 = vpop.f32.mrb[83].mxu0 }
 0xa0e   :  { %7340 = vrot.lane.b32.xlu0 %v7134_v6, %s13886_s23 }
 0xa10   :  { %7342 = vrot.lane.b32.xlu1 %v7138_v48, %s13886_s23 }
 0xa11   :  { %v7142_v50 = vpop.f32.mrb[84].mxu0 }
 0xa12   :  { %7368 = vrot.lane.b32.xlu0 %v7142_v50, %s13887_s24  ;;  %v7144_v16 = vpop.f32.mrb[85].mxu0 }
 0xa13   :  { %v7146_v10 = vpop.f32.mrb[86].mxu0 }
 0xa14   :  { %7370 = vrot.lane.b32.xlu1 %v7146_v10, %s13887_s24  ;;  %v7148_v31 = vpop.f32.mrb[87].mxu0  ;;  %v7271_v10 = vld [vmem:[#allocation9 + $0x20] ss:$8 sm:$0x3] }
 0xa16   :  { %7372 = vrot.lane.b32.xlu0 %v7144_v16, %s13887_s24 }
 0xa18   :  { %7374 = vrot.lane.b32.xlu1 %v7148_v31, %s13887_s24 }
 0xa19   :  { %v7152_v54 = vpop.f32.mrb[88].mxu0 }
 0xa1a   :  { %7400 = vrot.lane.b32.xlu0 %v7152_v54, %s13888_s25  ;;  %v7154_v2 = vpop.f32.mrb[89].mxu0 }
 0xa1b   :  { %v7156_v26 = vpop.f32.mrb[90].mxu0 }
 0xa1c   :  { %7402 = vrot.lane.b32.xlu1 %v7156_v26, %s13888_s25  ;;  %v7158_v61 = vpop.f32.mrb[91].mxu0  ;;  %v7288_v26 = vrot.slane %v7271_v10, %v13753_v43 }
 0xa1e   :  { %7404 = vrot.lane.b32.xlu0 %v7154_v2, %s13888_s25 }
 0xa20   :  { %7406 = vrot.lane.b32.xlu1 %v7158_v61, %s13888_s25  ;;  %v7292_v61 = vrot.slane %v7271_v10, %v13754_v20 }
 0xa21   :  { %v7162_v42 = vpop.f32.mrb[92].mxu0 }
 0xa22   :  { %7432 = vrot.lane.b32.xlu0 %v7162_v42, %s13889_s26  ;;  %v7164_v14 = vpop.f32.mrb[93].mxu0  ;;  %v3927_v42 = vld [vmem:[%s13396_s4] sm:$0xff] }
 0xa23   :  { %v7166_v24 = vpop.f32.mrb[94].mxu0 }
 0xa24   :  { %7434 = vrot.lane.b32.xlu1 %v7166_v24, %s13889_s26  ;;  %v7168_v62 = vpop.f32.mrb[95].mxu0 }
 0xa26   :  { %7436 = vrot.lane.b32.xlu0 %v7164_v14, %s13889_s26 }
 0xa28   :  { %7438 = vrot.lane.b32.xlu1 %v7168_v62, %s13889_s26 }
 0xa29   :  { %v7172_v9 = vpop.f32.mrb[96].mxu0 }
 0xa2a   :  { %7464 = vrot.lane.b32.xlu0 %v7172_v9, %s13890_s9  ;;  %v7174_v3 = vpop.f32.mrb[97].mxu0 }
 0xa2b   :  { %v7176_v53 = vpop.f32.mrb[98].mxu0 }
 0xa2c   :  { %7466 = vrot.lane.b32.xlu1 %v7176_v53, %s13890_s9  ;;  %v7178_v41 = vpop.f32.mrb[99].mxu0 }
 0xa2e   :  { %7468 = vrot.lane.b32.xlu0 %v7174_v3, %s13890_s9  ;;  %v3928_v3 = vld [vmem:[%s13396_s4 + $0x8] sm:$0xff] }
 0xa30   :  { %7470 = vrot.lane.b32.xlu1 %v7178_v41, %s13890_s9 }
 0xa31   :  { %v13014_v55 = vpop.f32.mrb[100].mxu0 }
 0xa32   :  { %v13016_v58 = vpop.f32.mrb[101].mxu0 }
 0xa33   :  { %v13018_v57 = vpop.f32.mrb[102].mxu0 }
 0xa34   :  { %v13020_v17 = vpop.f32.mrb[103].mxu0 }
 0xa39   :  { %v7192_v23 = vpop.f32.mrb[104].mxu0 }
 0xa3a   :  { %7516 = vrot.lane.b32.xlu0 %v7192_v23, %s9088_s27  ;;  %v7194_v1 = vpop.f32.mrb[105].mxu0 }
 0xa3b   :  { %v7196_v35 = vpop.f32.mrb[106].mxu0 }
 0xa3c   :  { %7518 = vrot.lane.b32.xlu1 %v7196_v35, %s9088_s27  ;;  %v7198_v40 = vpop.f32.mrb[107].mxu0 }
 0xa3e   :  { %7520 = vrot.lane.b32.xlu0 %v7194_v1, %s9088_s27 }
 0xa40   :  { %7522 = vrot.lane.b32.xlu1 %v7198_v40, %s9088_s27 }
 0xa41   :  { %v7202_v33 = vpop.f32.mrb[108].mxu0 }
 0xa42   :  { %7548 = vrot.lane.b32.xlu0 %v7202_v33, %s9089_s29  ;;  %v7204_v37 = vpop.f32.mrb[109].mxu0 }
 0xa43   :  { %v7206_v0 = vpop.f32.mrb[110].mxu0 }
 0xa44   :  { %7550 = vrot.lane.b32.xlu1 %v7206_v0, %s9089_s29  ;;  %v7208_v13 = vpop.f32.mrb[111].mxu0 }
 0xa46   :  { %7552 = vrot.lane.b32.xlu0 %v7204_v37, %s9089_s29 }
 0xa48   :  { %7554 = vrot.lane.b32.xlu1 %v7208_v13, %s9089_s29  ;;  %v7303_v13 = vld [vmem:[#allocation9 + $0x21] ss:$8 sm:$0x3] }
 0xa49   :  { %v7212_v63 = vpop.f32.mrb[112].mxu0 }
 0xa4a   :  { %7580 = vrot.lane.b32.xlu0 %v7212_v63, %s13886_s23  ;;  %v7214_v18 = vpop.f32.mrb[113].mxu0 }
 0xa4b   :  { %v7216_v52 = vpop.f32.mrb[114].mxu0 }
 0xa4c   :  { %7582 = vrot.lane.b32.xlu1 %v7216_v52, %s13886_s23  ;;  %v7218_v29 = vpop.f32.mrb[115].mxu0 }
 0xa4e   :  { %7584 = vrot.lane.b32.xlu0 %v7214_v18, %s13886_s23 }
 0xa50   :  { %7586 = vrot.lane.b32.xlu1 %v7218_v29, %s13886_s23 }
 0xa51   :  { %v7222_v60 = vpop.f32.mrb[116].mxu0 }
 0xa52   :  { %7612 = vrot.lane.b32.xlu0 %v7222_v60, %s13887_s24  ;;  %v7224_v21 = vpop.f32.mrb[117].mxu0 }
 0xa53   :  { %v7226_v7 = vpop.f32.mrb[118].mxu0 }
 0xa54   :  { %7614 = vrot.lane.b32.xlu1 %v7226_v7, %s13887_s24  ;;  %v7228_v11 = vpop.f32.mrb[119].mxu0 }
 0xa56   :  { %7616 = vrot.lane.b32.xlu0 %v7224_v21, %s13887_s24 }
 0xa58   :  { %7618 = vrot.lane.b32.xlu1 %v7228_v11, %s13887_s24 }
 0xa59   :  { %v7232_v44 = vpop.f32.mrb[120].mxu0 }
 0xa5a   :  { %7644 = vrot.lane.b32.xlu0 %v7232_v44, %s13888_s25  ;;  %v7234_v32 = vpop.f32.mrb[121].mxu0  ;;  %v7324_v44 = vrot.slane %v7303_v13, %v13754_v20 }
 0xa5b   :  { %v7236_v38 = vpop.f32.mrb[122].mxu0 }
 0xa5c   :  { %7646 = vrot.lane.b32.xlu1 %v7236_v38, %s13888_s25  ;;  %v7238_v15 = vpop.f32.mrb[123].mxu0 }
 0xa5e   :  { %7648 = vrot.lane.b32.xlu0 %v7234_v32, %s13888_s25 }
 0xa60   :  { %7650 = vrot.lane.b32.xlu1 %v7238_v15, %s13888_s25 }
 0xa61   :  { %v7242_v34 = vpop.f32.mrb[124].mxu0 }
 0xa62   :  { %7676 = vrot.lane.b32.xlu0 %v7242_v34, %s13889_s26  ;;  %v7244_v4 = vpop.f32.mrb[125].mxu0 }
 0xa63   :  { %v7246_v6 = vpop.f32.mrb[126].mxu0 }
 0xa64   :  { %7678 = vrot.lane.b32.xlu1 %v7246_v6, %s13889_s26  ;;  %v7248_v56 = vpop.f32.mrb[127].mxu0 }
 0xa66   :  { %7680 = vrot.lane.b32.xlu0 %v7244_v4, %s13889_s26  ;;  %v7335_v4 = vld [vmem:[#allocation9 + $0x22] ss:$8 sm:$0x3] }
 0xa68   :  { %7682 = vrot.lane.b32.xlu1 %v7248_v56, %s13889_s26 }
 0xa69   :  { %v7252_v48 = vpop.f32.mrb[128].mxu0 }
 0xa6a   :  { %7708 = vrot.lane.b32.xlu0 %v7252_v48, %s13890_s9  ;;  %v7254_v50 = vpop.f32.mrb[129].mxu0 }
 0xa6b   :  { %v7256_v16 = vpop.f32.mrb[130].mxu0 }
 0xa6c   :  { %v7273_v31 = vpop.permute.xlu0 %7272  ;;  %7710 = vrot.lane.b32.xlu1 %v7256_v16, %s13890_s9  ;;  %v7258_v54 = vpop.f32.mrb[131].mxu0 }
 0xa6e   :  { %v7275_v2 = vpop.permute.xlu1 %7274  ;;  %7712 = vrot.lane.b32.xlu0 %v7254_v50, %s13890_s9 }
 0xa70   :  { %v7277_v14 = vpop.permute.xlu0 %7276  ;;  %7714 = vrot.lane.b32.xlu1 %v7258_v54, %s13890_s9 }
 0xa71   :  { %v7280_v24 = vsel %vm2164_vm3, %v7273_v31, %v7277_v14  ;;  %v7282_v62 = vsel %vm2164_vm3, %v7277_v14, %v7273_v31  ;;  %v7262_v9 = vpop.f32.mrb[68].mxu0 }
 0xa72   :  { %v7295_v53 = vmul.f32 %v7288_v26, %v7280_v24  ;;  %v7296_v41 = vmul.f32 %v7292_v61, %v7282_v62  ;;  %v13063_v23 = vadd.f32 %v7262_v9, %v12912_v28  ;;  %v7279_v1 = vpop.permute.xlu1 %7278  ;;  %3931 = vperm.xlu0 %8505, %v3927_v42   ;;  %v7264_v35 = vpop.f32.mrb[69].mxu0  ;;  %v7367_v62 = vld [vmem:[#allocation9 + $0x23] ss:$8 sm:$0x3] }
 0xa73   :  { %v7281_v40 = vsel %vm2164_vm3, %v7275_v2, %v7279_v1  ;;  %v7283_v33 = vsel %vm2164_vm3, %v7279_v1, %v7275_v2  ;;  %v13070_v37 = vadd.f32 %v7264_v35, %v12914_v12  ;;  %v7266_v0 = vpop.f32.mrb[70].mxu0  ;;  %v7352_v2 = vrot.slane %v7335_v4, %v13753_v43  ;;  %v7495_v9 = vld [vmem:[#allocation9 + $0x27] ss:$8 sm:$0x3] }
 0xa74   :  { %v13073_v63 = vadd.f32 %v7295_v53, %v12931_v49  ;;  %v13076_v28 = vadd.f32 %v7296_v41, %v12934_v27  ;;  %v7297_v18 = vmul.f32 %v7288_v26, %v7281_v40  ;;  %v7298_v52 = vmul.f32 %v7292_v61, %v7283_v33  ;;  %v7305_v29 = vpop.permute.xlu0 %7304  ;;  %3936 = vperm.xlu1 %8506, %v3928_v3   ;;  %v7268_v60 = vpop.f32.mrb[71].mxu0 }
 0xa75   :  { %v13079_v21 = vadd.f32 %v7266_v0, %v12918_v22  ;;  %v13082_v7 = vadd.f32 %v7268_v60, %v12920_v19  ;;  %v7320_v27 = vrot.slane %v7303_v13, %v13753_v43  ;;  %v7356_v26 = vrot.slane %v7335_v4, %v13754_v20 }
 0xa76   :  { %v13085_v12 = vadd.f32 %v7297_v18, %v12937_v5  ;;  %v13088_v49 = vadd.f32 %v7298_v52, %v12940_v59  ;;  %v7307_v11 = vpop.permute.xlu1 %7306  ;;  %7769 = vperm.xlu0 %8505, %v3927_v42   ;;  %v7384_v13 = vrot.slane %v7367_v62, %v13753_v43  ;;  %v7388_v18 = vrot.slane %v7367_v62, %v13754_v20 }
 0xa77   :  { %v7500_v52 = vrot.slane %v7495_v9, %v13753_v43 }
 0xa78   :  { %v7309_v32 = vpop.permute.xlu0 %7308  ;;  %7774 = vperm.xlu1 %8506, %v3928_v3  }
 0xa79   :  { %v7312_v22 = vsel %vm2198_vm4, %v7305_v29, %v7309_v32  ;;  %v7314_v19 = vsel %vm2198_vm4, %v7309_v32, %v7305_v29  ;;  %v7507_v32 = vmul.f32 %v7500_v52, %v13016_v58 }
 0xa7a   :  { %v7327_v38 = vmul.f32 %v7320_v27, %v7312_v22  ;;  %v7328_v5 = vmul.f32 %v7324_v44, %v7314_v19  ;;  %v7311_v15 = vpop.permute.xlu1 %7310 }
 0xa7b   :  { %v7313_v59 = vsel %vm2198_vm4, %v7307_v11, %v7311_v15  ;;  %v7315_v34 = vsel %vm2198_vm4, %v7311_v15, %v7307_v11 }
 0xa7c   :  { %v13101_v6 = vadd.f32 %v7327_v38, %v12953_v25  ;;  %v13104_v56 = vadd.f32 %v7328_v5, %v12956_v39  ;;  %v7329_v48 = vmul.f32 %v7320_v27, %v7313_v59  ;;  %v7330_v50 = vmul.f32 %v7324_v44, %v7315_v34  ;;  %v7337_v16 = vpop.permute.xlu0 %7336  ;;  %v7399_v27 = vld [vmem:[#allocation9 + $0x24] ss:$8 sm:$0x3] }
 0xa7d   :  { %v7420_v58 = vrot.slane %v7399_v27, %v13754_v20 }
 0xa7e   :  { %v13107_v10 = vadd.f32 %v7329_v48, %v12959_v47  ;;  %v13110_v31 = vadd.f32 %v7330_v50, %v12962_v51  ;;  %v7339_v54 = vpop.permute.xlu1 %7338  ;;  %v7509_v48 = vmul.f32 %v7500_v52, %v13020_v17 }
 0xa80   :  { %v7341_v61 = vpop.permute.xlu0 %7340 }
 0xa81   :  { %v7344_v25 = vsel %vm2232_vm15, %v7337_v16, %v7341_v61  ;;  %v7346_v39 = vsel %vm2232_vm15, %v7341_v61, %v7337_v16 }
 0xa82   :  { %v7359_v42 = vmul.f32 %v7352_v2, %v7344_v25  ;;  %v7360_v14 = vmul.f32 %v7356_v26, %v7346_v39  ;;  %v7343_v24 = vpop.permute.xlu1 %7342 }
 0xa83   :  { %v7345_v47 = vsel %vm2232_vm15, %v7339_v54, %v7343_v24  ;;  %v7347_v51 = vsel %vm2232_vm15, %v7343_v24, %v7339_v54 }
 0xa84   :  { %v13123_v3 = vadd.f32 %v7359_v42, %v12975_v36  ;;  %v13126_v53 = vadd.f32 %v7360_v14, %v12978_v46  ;;  %v7361_v41 = vmul.f32 %v7352_v2, %v7345_v47  ;;  %v7362_v1 = vmul.f32 %v7356_v26, %v7347_v51  ;;  %v7369_v35 = vpop.permute.xlu0 %7368  ;;  %v7431_v14 = vld [vmem:[#allocation9 + $0x25] ss:$8 sm:$0x3] }
 0xa85   :  { %v7504_v36 = vrot.slane %v7495_v9, %v13754_v20 }
 0xa86   :  { %v13129_v40 = vadd.f32 %v7361_v41, %v12981_v45  ;;  %v13132_v33 = vadd.f32 %v7362_v1, %v12984_v8  ;;  %v7371_v0 = vpop.permute.xlu1 %7370 }
 0xa87   :  { %v7508_v44 = vmul.f32 %v7504_v36, %v13014_v55  ;;  %v7510_v4 = vmul.f32 %v7504_v36, %v13018_v57  ;;  %v7416_v55 = vrot.slane %v7399_v27, %v13753_v43 }
 0xa88   :  { %v7373_v46 = vpop.permute.xlu0 %7372 }
 0xa89   :  { %v7376_v29 = vsel %vm13907_vm11, %v7369_v35, %v7373_v46  ;;  %v7378_v45 = vsel %vm13908_vm12, %v7373_v46, %v7369_v35 }
 0xa8a   :  { %v7391_v60 = vmul.f32 %v7384_v13, %v7376_v29  ;;  %v7392_v11 = vmul.f32 %v7388_v18, %v7378_v45  ;;  %v7375_v8 = vpop.permute.xlu1 %7374 }
 0xa8b   :  { %v7377_v22 = vsel %vm13895_vm0, %v7371_v0, %v7375_v8  ;;  %v7379_v19 = vsel %vm13909_vm2, %v7375_v8, %v7371_v0  ;;  %v7448_v0 = vrot.slane %v7431_v14, %v13753_v43 }
 0xa8c   :  { %v8180_v38 = vadd.f32 %v13063_v23, %v7391_v60  ;;  %v8184_v5 = vadd.f32 %v13070_v37, %v7392_v11  ;;  %v7393_v15 = vmul.f32 %v7384_v13, %v7377_v22  ;;  %v7394_v59 = vmul.f32 %v7388_v18, %v7379_v19  ;;  %v7401_v34 = vpop.permute.xlu0 %7400 }
 0xa8d   :  { %v7452_v13 = vrot.slane %v7431_v14, %v13754_v20  ;;  %v7643_v14 = vld [vmem:[#allocation9 + $0x34] ss:$8 sm:$0x3] }
 0xa8e   :  { %v8188_v50 = vadd.f32 %v13079_v21, %v7393_v15  ;;  %v8192_v16 = vadd.f32 %v13082_v7, %v7394_v59  ;;  %v7403_v54 = vpop.permute.xlu1 %7402  ;;  %v13156_v2 = vadd.f32 %v8180_v38, %v7507_v32  ;;  %v13158_v23 = vadd.f32 %v8184_v5, %v7508_v44 }
 0xa90   :  { %v7405_v37 = vpop.permute.xlu0 %7404  ;;  %v13160_v26 = vadd.f32 %v8188_v50, %v7509_v48  ;;  %v13162_v61 = vadd.f32 %v8192_v16, %v7510_v4  ;;  %v7463_v50 = vld [vmem:[#allocation9 + $0x26] ss:$8 sm:$0x3]  ;;  %v7515_v16 = vld [vmem:[#allocation9 + $0x30] ss:$8 sm:$0x3] }
 0xa91   :  { %v7408_v57 = vsel %vm2300_vm1, %v7401_v34, %v7405_v37  ;;  %v7410_v17 = vsel %vm2300_vm1, %v7405_v37, %v7401_v34  ;;  %v7547_v37 = vld [vmem:[#allocation9 + $0x31] ss:$8 sm:$0x3] }
 0xa92   :  { %13910 = vst [vmem:[#allocation18_spill] sm:$0xff] %v13160_v26  ;;  %13911 = vst [vmem:[#allocation22_spill] sm:$0xff] %v13162_v61  ;;  %v7423_v25 = vmul.f32 %v7416_v55, %v7408_v57  ;;  %v7424_v21 = vmul.f32 %v7420_v58, %v7410_v17  ;;  %v7407_v39 = vpop.permute.xlu1 %7406  ;;  %v7579_v57 = vld [vmem:[#allocation9 + $0x32] ss:$8 sm:$0x3] }
 0xa93   :  { %v7409_v7 = vsel %vm2300_vm1, %v7403_v54, %v7407_v39  ;;  %v7411_v42 = vsel %vm2300_vm1, %v7407_v39, %v7403_v54  ;;  %v7611_v17 = vld [vmem:[#allocation9 + $0x33] ss:$8 sm:$0x3]  ;;  %v7484_v39 = vrot.slane %v7463_v50, %v13754_v20 }
 0xa94   :  { %v13173_v24 = vadd.f32 %v7423_v25, %v13073_v63  ;;  %v13176_v47 = vadd.f32 %v7424_v21, %v13076_v28  ;;  %v7425_v51 = vmul.f32 %v7416_v55, %v7409_v7  ;;  %v7426_v62 = vmul.f32 %v7420_v58, %v7411_v42  ;;  %v7433_v9 = vpop.permute.xlu0 %7432 }
 0xa95   :  { %v7480_v21 = vrot.slane %v7463_v50, %v13753_v43  ;;  %v7532_v7 = vrot.slane %v7515_v16, %v13753_v43  ;;  %v7536_v42 = vrot.slane %v7515_v16, %v13754_v20 }
 0xa96   :  { %v13179_v41 = vadd.f32 %v7425_v51, %v13085_v12  ;;  %v13182_v1 = vadd.f32 %v7426_v62, %v13088_v49  ;;  %v7435_v35 = vpop.permute.xlu1 %7434 }
 0xa98   :  { %v7437_v18 = vpop.permute.xlu0 %7436 }
 0xa99   :  { %v7440_v63 = vsel %vm2334_vm14, %v7433_v9, %v7437_v18  ;;  %v7442_v28 = vsel %vm2334_vm14, %v7437_v18, %v7433_v9  ;;  %v7564_v9 = vrot.slane %v7547_v37, %v13753_v43  ;;  %v7600_v18 = vrot.slane %v7579_v57, %v13754_v20 }
 0xa9a   :  { %v7455_v36 = vmul.f32 %v7448_v0, %v7440_v63  ;;  %v7456_v52 = vmul.f32 %v7452_v13, %v7442_v28  ;;  %v7439_v46 = vpop.permute.xlu1 %7438  ;;  %v13235_v63 = vrot.slane %v7611_v17, %v13753_v43  ;;  %v13238_v28 = vrot.slane %v7611_v17, %v13754_v20  ;;  %v7707_v17 = vld [vmem:[#allocation9 + $0x36] ss:$8 sm:$0x3] }
 0xa9b   :  { %v7441_v12 = vsel %vm2334_vm14, %v7435_v35, %v7439_v46  ;;  %v7443_v49 = vsel %vm2334_vm14, %v7439_v46, %v7435_v35  ;;  %v7568_v35 = vrot.slane %v7547_v37, %v13754_v20 }
 0xa9c   :  { %v13195_v29 = vadd.f32 %v7455_v36, %v13101_v6  ;;  %v13198_v45 = vadd.f32 %v7456_v52, %v13104_v56  ;;  %v7457_v60 = vmul.f32 %v7448_v0, %v7441_v12  ;;  %v7458_v11 = vmul.f32 %v7452_v13, %v7443_v49  ;;  %v7465_v44 = vpop.permute.xlu0 %7464  ;;  %v7675_v36 = vld [vmem:[#allocation9 + $0x35] ss:$8 sm:$0x3] }
 0xa9d   :  { %v7596_v13 = vrot.slane %v7579_v57, %v13753_v43  ;;  %v7660_v49 = vrot.slane %v7643_v14, %v13753_v43  ;;  %v13258_v57 = vrot.slane %v7675_v36, %v13754_v20 }
 0xa9e   :  { %v13201_v8 = vadd.f32 %v7457_v60, %v13107_v10  ;;  %v13204_v27 = vadd.f32 %v7458_v11, %v13110_v31  ;;  %v7467_v32 = vpop.permute.xlu1 %7466  ;;  %v7664_v60 = vrot.slane %v7643_v14, %v13754_v20 }
 0xaa0   :  { %v7469_v22 = vpop.permute.xlu0 %7468 }
 0xaa1   :  { %v7472_v51 = vsel %vm2368_vm13, %v7465_v44, %v7469_v22  ;;  %v7474_v62 = vsel %vm2368_vm13, %v7469_v22, %v7465_v44 }
 0xaa2   :  { %v7471_v19 = vpop.permute.xlu1 %7470  ;;  %v7487_v11 = vmul.f32 %v7480_v21, %v7472_v51  ;;  %v7488_v44 = vmul.f32 %v7484_v39, %v7474_v62 }
 0xaa3   :  { %v7473_v16 = vsel %vm2368_vm13, %v7467_v32, %v7471_v19  ;;  %v7475_v37 = vsel %vm2368_vm13, %v7471_v19, %v7467_v32 }
 0xaac   :  { %v7517_v38 = vpop.permute.xlu0 %7516 }
 0xaae   :  { %v7519_v5 = vpop.permute.xlu1 %7518 }
 0xab0   :  { %v7521_v15 = vpop.permute.xlu0 %7520 }
 0xab1   :  { %v7524_v52 = vsel %vm2164_vm3, %v7517_v38, %v7521_v15  ;;  %v7526_v46 = vsel %vm2164_vm3, %v7521_v15, %v7517_v38  ;;  %v13255_v15 = vrot.slane %v7675_v36, %v13753_v43  ;;  %v13269_v36 = vadd.f32 %v7487_v11, %v13123_v3 }
 0xab2   :  { %v7523_v6 = vpop.permute.xlu1 %7522  ;;  %v7539_v14 = vmul.f32 %v7532_v7, %v7526_v46  ;;  %v7540_v51 = vmul.f32 %v7536_v42, %v7524_v52  ;;  %v13272_v52 = vadd.f32 %v7488_v44, %v13126_v53  ;;  %v13275_v46 = vrot.slane %v7707_v17, %v13753_v43 }
 0xab3   :  { %v7525_v22 = vsel %vm2164_vm3, %v7519_v5, %v7523_v6  ;;  %v7527_v50 = vsel %vm2164_vm3, %v7523_v6, %v7519_v5  ;;  %vm13914_vm3 = vmmov %vm13895_vm0 }
 0xab4   :  { %v7549_v59 = vpop.permute.xlu0 %7548  ;;  %v7541_v6 = vmul.f32 %v7532_v7, %v7527_v50  ;;  %v7542_v61 = vmul.f32 %v7536_v42, %v7525_v22  ;;  %v7490_v7 = vmul.f32 %v7484_v39, %v7475_v37 }
 0xab6   :  { %v7551_v34 = vpop.permute.xlu1 %7550  ;;  %v7545_v53 = vadd.f32 %v7541_v6, %v13179_v41  ;;  %v7546_v44 = vadd.f32 %v7542_v61, %v13182_v1 }
 0xab8   :  { %v7553_v56 = vpop.permute.xlu0 %7552 }
 0xab9   :  { %v7556_v62 = vsel %vm2198_vm4, %v7549_v59, %v7553_v56  ;;  %v7558_v5 = vsel %vm2198_vm4, %v7553_v56, %v7549_v59  ;;  %v13278_v59 = vrot.slane %v7707_v17, %v13754_v20  ;;  %v7489_v56 = vmul.f32 %v7480_v21, %v7473_v16 }
 0xaba   :  { %v7555_v4 = vpop.permute.xlu1 %7554  ;;  %v7571_v42 = vmul.f32 %v7564_v9, %v7558_v5  ;;  %v7572_v22 = vmul.f32 %v7568_v35, %v7556_v62 }
 0xabb   :  { %v7557_v32 = vsel %vm2198_vm4, %v7551_v34, %v7555_v4  ;;  %v7559_v19 = vsel %vm2198_vm4, %v7555_v4, %v7551_v34  ;;  %v7543_v34 = vadd.f32 %v7539_v14, %v13173_v24  ;;  %v7544_v4 = vadd.f32 %v7540_v51, %v13176_v47  ;;  %vm13915_vm4 = vmmov %vm13895_vm0 }
 0xabc   :  { %v13206_v48 = vpop.permute.xlu0 %7580  ;;  %v7573_v3 = vmul.f32 %v7564_v9, %v7559_v19  ;;  %v7574_v11 = vmul.f32 %v7568_v35, %v7557_v32  ;;  %v7575_v41 = vadd.f32 %v7571_v42, %v13195_v29  ;;  %v7576_v1 = vadd.f32 %v7572_v22, %v13198_v45 }
 0xabe   :  { %v13208_v55 = vpop.permute.xlu1 %7582  ;;  %v7577_v9 = vadd.f32 %v7573_v3, %v13201_v8  ;;  %v7578_v35 = vadd.f32 %v7574_v11, %v13204_v27 }
 0xac0   :  { %v13210_v10 = vpop.permute.xlu0 %7584 }
 0xac1   :  { %v7588_v24 = vsel %vm2232_vm15, %v13206_v48, %v13210_v10  ;;  %v7590_v47 = vsel %vm2232_vm15, %v13210_v10, %v13206_v48 }
 0xac2   :  { %v13212_v31 = vpop.permute.xlu1 %7586  ;;  %v7603_v37 = vmul.f32 %v7596_v13, %v7590_v47  ;;  %v7604_v17 = vmul.f32 %v7600_v18, %v7588_v24 }
 0xac3   :  { %v7589_v61 = vsel %vm2232_vm15, %v13208_v55, %v13212_v31 }
 0xac4   :  { %v13214_v58 = vpop.permute.xlu0 %7612 }
 0xac6   :  { %v13216_v54 = vpop.permute.xlu1 %7614 }
 0xac8   :  { %v13218_v25 = vpop.permute.xlu0 %7616 }
 0xaca   :  { %v13230_v0 = vpop.permute.xlu1 %7618 }
 0xacc   :  { %v7645_v12 = vpop.permute.xlu0 %7644 }
 0xace   :  { %v7647_v38 = vpop.permute.xlu1 %7646 }
 0xad0   :  { %v7649_v26 = vpop.permute.xlu0 %7648 }
 0xad1   :  { %v7652_v43 = vsel %vm2300_vm1, %v7645_v12, %v7649_v26  ;;  %v7654_v20 = vsel %vm2300_vm1, %v7649_v26, %v7645_v12  ;;  %v7591_v26 = vsel %vm2232_vm15, %v13212_v31, %v13208_v55  ;;  %v7606_v31 = vmul.f32 %v7600_v18, %v7589_v61  ;;  %vm13912_vm15 = vmmov %vm13895_vm0 }
 0xad2   :  { %v7651_v50 = vpop.permute.xlu1 %7650  ;;  %v7667_v12 = vmul.f32 %v7660_v49, %v7654_v20  ;;  %v7668_v16 = vmul.f32 %v7664_v60, %v7652_v43  ;;  %v7605_v55 = vmul.f32 %v7596_v13, %v7591_v26  ;;  %v7620_v8 = vsel %vm13912_vm15, %v13214_v58, %v13218_v25 }
 0xad3   :  { %v7653_v39 = vsel %vm2300_vm1, %v7647_v38, %v7651_v50  ;;  %v7655_v48 = vsel %vm2300_vm1, %v7651_v50, %v7647_v38  ;;  %vm13913_vm1 = vmmov %vm13895_vm0  ;;  %v7623_v50 = vsel %vm13915_vm4, %v13230_v0, %v13216_v54  ;;  %v7636_v47 = vmul.f32 %v13238_v28, %v7620_v8 }
 0xad4   :  { %v7677_v21 = vpop.permute.xlu0 %7676  ;;  %v7669_v14 = vmul.f32 %v7660_v49, %v7655_v48  ;;  %v7670_v45 = vmul.f32 %v7664_v60, %v7653_v39  ;;  %v7622_v27 = vsel %vm13913_vm1, %v13218_v25, %v13214_v58  ;;  %v7671_v60 = vadd.f32 %v7667_v12, %v7543_v34 }
 0xad5   :  { %v7672_v62 = vadd.f32 %v7668_v16, %v7544_v4  ;;  %v7621_v25 = vsel %vm13914_vm3, %v13216_v54, %v13230_v0  ;;  %v7635_v24 = vmul.f32 %v13235_v63, %v7622_v27  ;;  %v7607_v61 = vadd.f32 %v7603_v37, %v13269_v36  ;;  %v13916_v16 = vld [vmem:[#allocation18_spill] sm:$0xff]  ;;  %v8927_v27 = vld [vmem:[#allocation3 + $0x28] sm:$0xff] }
 0xad6   :  { %v7679_v10 = vpop.permute.xlu1 %7678  ;;  %v7673_v34 = vadd.f32 %v7669_v14, %v7545_v53  ;;  %v7674_v4 = vadd.f32 %v7670_v45, %v7546_v44  ;;  %v7608_v26 = vadd.f32 %v7604_v17, %v13272_v52  ;;  %v7637_v44 = vmul.f32 %v13235_v63, %v7623_v50  ;;  %v13917_v17 = vld [vmem:[#allocation22_spill] sm:$0xff] }
 0xad7   :  { %v8182_v39 = vadd.f32 %v13156_v2, %v7635_v24  ;;  %v8186_v48 = vadd.f32 %v13158_v23, %v7636_v47  ;;  %v7764_v24 = vld [vmem:[%s13395_s3 + $0x8] sm:$0xff] }
 0xad8   :  { %v7681_v29 = vpop.permute.xlu0 %7680  ;;  %v8190_v37 = vadd.f32 %v13916_v16, %v7637_v44 }
 0xad9   :  { %v7684_v51 = vsel %vm2334_vm14, %v7677_v21, %v7681_v29  ;;  %v7686_v38 = vsel %vm2334_vm14, %v7681_v29, %v7677_v21  ;;  %v7494_v21 = vadd.f32 %v7490_v7, %v13132_v33 }
 0xada   :  { %v7699_v13 = vmul.f32 %v13255_v15, %v7686_v38  ;;  %v7700_v18 = vmul.f32 %v13258_v57, %v7684_v51  ;;  %v7683_v49 = vpop.permute.xlu1 %7682 }
 0xadb   :  { %v7685_v5 = vsel %vm2334_vm14, %v7679_v10, %v7683_v49  ;;  %v7687_v6 = vsel %vm2334_vm14, %v7683_v49, %v7679_v10  ;;  %v7610_v7 = vadd.f32 %v7606_v31, %v7494_v21  ;;  %v8929_v49 = vld [vmem:[#allocation3 + $0x38] sm:$0xff]  ;;  %v13923_v21 = vmov 0.0  }
 0xadc   :  { %v7703_v32 = vadd.f32 %v7699_v13, %v7575_v41  ;;  %v7704_v19 = vadd.f32 %v7700_v18, %v7576_v1  ;;  %v7701_v42 = vmul.f32 %v13255_v15, %v7687_v6  ;;  %v7702_v22 = vmul.f32 %v13258_v57, %v7685_v5  ;;  %v7709_v58 = vpop.permute.xlu0 %7708  ;;  %v8928_v18 = vld [vmem:[#allocation3 + $0x20] sm:$0xff] }
 0xadd   :  { %v7493_v57 = vadd.f32 %v7489_v56, %v13129_v40  ;;  %v7638_v41 = vmul.f32 %v13238_v28, %v7621_v25  ;;  %v13918_v25 = vld [vmem:[#allocation34_spill] sm:$0xff] }
 0xade   :  { %v7743_v3 = vadd.f32 %v7703_v32, %v7671_v60  ;;  %v7744_v11 = vadd.f32 %v7704_v19, %v7672_v62  ;;  %v7705_v43 = vadd.f32 %v7701_v42, %v7577_v9  ;;  %v7706_v20 = vadd.f32 %v7702_v22, %v7578_v35  ;;  %v7711_v15 = vpop.permute.xlu1 %7710  ;;  %v8930_v60 = vld [vmem:[#allocation3 + $0x30] sm:$0xff] }
 0xadf   :  { %v7609_v56 = vadd.f32 %v7605_v55, %v7493_v57  ;;  %v8194_v55 = vadd.f32 %v13917_v17, %v7638_v41 }
 0xae0   :  { %v7745_v54 = vadd.f32 %v7705_v43, %v7673_v34  ;;  %v7746_v0 = vadd.f32 %v7706_v20, %v7674_v4  ;;  %v7713_v53 = vpop.permute.xlu0 %7712  ;;  %v13919_v34 = vld [vmem:[#allocation32_spill] sm:$0xff]  ;;  %v13920_v43 = vld [vmem:[#allocation37_spill] sm:$0xff] }
 0xae1   :  { %v7716_v40 = vsel %vm2368_vm13, %v7709_v58, %v7713_v53  ;;  %v7718_v33 = vsel %vm2368_vm13, %v7713_v53, %v7709_v58 }
 0xae2   :  { %v7731_v1 = vmul.f32 %v13275_v46, %v7718_v33  ;;  %v7732_v36 = vmul.f32 %v13278_v59, %v7716_v40  ;;  %v7715_v52 = vpop.permute.xlu1 %7714 }
 0xae3   :  { %v7717_v63 = vsel %vm2368_vm13, %v7711_v15, %v7715_v52  ;;  %v7719_v28 = vsel %vm2368_vm13, %v7715_v52, %v7711_v15  ;;  %v13921_v15 = vld [vmem:[#allocation35_spill] sm:$0xff]  ;;  %vm13922_vm13 = vcmask 130048  }
 0xae4   :  { %v7735_v10 = vadd.f32 %v7731_v1, %v7607_v61  ;;  %v7736_v9 = vadd.f32 %v7732_v36, %v7608_v26  ;;  %v7733_v35 = vmul.f32 %v13275_v46, %v7719_v28  ;;  %v7734_v12 = vmul.f32 %v13278_v59, %v7717_v63  ;;  %vm13924_vm14 = vmmov %vm13922_vm13 }
 0xae6   :  { %v7747_v31 = vadd.f32 %v8182_v39, %v7735_v10  ;;  %v7748_v2 = vadd.f32 %v8186_v48, %v7736_v9  ;;  %v7737_v29 = vadd.f32 %v7733_v35, %v7609_v56  ;;  %v7738_v23 = vadd.f32 %v7734_v12, %v7610_v7 }
 0xae8   :  { %v7751_v14 = vadd.f32 %v7747_v31, %v7743_v3  ;;  %v7749_v45 = vadd.f32 %v8190_v37, %v7737_v29  ;;  %v7750_v51 = vadd.f32 %v8194_v55, %v7738_v23  ;;  %v7752_v38 = vadd.f32 %v7748_v2, %v7744_v11  ;;  %v7763_v11 = vld [vmem:[%s13395_s3] sm:$0xff]  ;;  %s9019_s3 = scalar_lea.vmem %s7870_s15, 1024 }
 0xae9   :  { %p9020_p4 = scmp.ne.s32.totalorder %s7870_s15, %s9019_s3  ;;  %p9025_p6 = scmp.lt.s32.totalorder %s9019_s3, %s9019_s3 }
 0xaea   :  { %v7753_v30 = vadd.f32 %v7749_v45, %v7745_v54  ;;  %v7754_v8 = vadd.f32 %v7750_v51, %v7746_v0  ;;  %v7756_v13 = vadd.f32 %v8927_v27, %v7752_v38  ;;  %v7755_v46 = vadd.f32 %v8928_v18, %v7751_v14 }
 0xaeb   :  { %p9026_p7 = por %p9025_p6, %p9024_p5 }
 0xaec   :  { %v7758_v59 = vadd.f32 %v8929_v49, %v7754_v8  ;;  %v7757_v62 = vadd.f32 %v8930_v60, %v7753_v30  ;;  %v7760_v5 = vmax.f32 %v7756_v13, 0.0  ;;  %v7759_v32 = vmax.f32 %v7755_v46, 0.0 }
 0xaed   :  { %p9027_p8 = pnand %p9026_p7, %p9020_p4 }
 0xaee   :  { %v7762_v6 = vmax.f32 %v7758_v59, 0.0  ;;  %v7761_v19 = vmax.f32 %v7757_v62, 0.0 }
 0xaf0   :  { %v8159_v42 = vpack.c.bf16 %v7762_v6, %v7760_v5  ;;  %v8161_v22 = vpack.c.bf16 %v7761_v19, %v7759_v32 }
 0xaf1   :  { %v3932_v58 = vpop.permute.xlu0 %3931 }
 0xaf2   :  { %v4012_v50 = vadd.f32 %v13918_v25, %v3932_v58  ;;  %v4014_v4 = vadd.f32 %v13919_v34, %v3932_v58  ;;  %8160 = vmatprep.subr.bf16.mxu1 %v8159_v42 }
 0xaf3   :  { %v3937_v3 = vpop.permute.xlu1 %3936  ;;  %8162 = vmatpush1.bf16.msra.mxu1 %v8161_v22 }
 0xaf4   :  { %4022 = vst [vmem:[#allocation11] sm:$0xff] %v4012_v50  ;;  %4023 = vst [vmem:[#allocation11 + $0x8] sm:$0xff] %v4014_v4  ;;  %v4018_v20 = vadd.f32 %v13920_v43, %v3937_v3  ;;  %v4020_v57 = vadd.f32 %v13921_v15, %v3937_v3 }
 0xaf5   :  { %v7770_v47 = vpop.permute.xlu0 %7769 }
 0xaf6   :  { %4024 = vst [vmem:[#allocation11 + $0x10] sm:$0xff] %v4018_v20  ;;  %4025 = vst [vmem:[#allocation11 + $0x18] sm:$0xff] %v4020_v57  ;;  %8145 = vmatmul.mubr.msk.f32.vlgmr.msra.gmra.mrb[128].mxu1 %vm13922_vm13, %v7763_v11 }
 0xaf7   :  { %7853 = vmatprep.mubr.f32.mxu1 %v13923_v21  ;;  %v7775_v53 = vpop.permute.xlu1 %7774 }
 0xafa   :  { %8146 = vmatmul.mubr.msk.f32.gmra.mrb[130].mxu1 %vm13924_vm14, %v7764_v24 }
 0xbc9   :  { %v7849_v61 = vpop.f32.mrb[128].mxu1 }
 0xbca   :  { %v7850_v26 = vadd.f32 %v7849_v61, %v7770_v47  ;;  %v7851_v54 = vpop.f32.mrb[129].mxu1 }
 0xbcb   :  { %v7852_v0 = vadd.f32 %v7851_v54, %v7770_v47 }
 0xbcc   :  { %7860 = vst [vmem:[#allocation11 + $0x20] sm:$0xff] %v7850_v26 }
 0xbcd   :  { %7861 = vst [vmem:[#allocation11 + $0x28] sm:$0xff] %v7852_v0  ;;  %v7855_v44 = vpop.f32.mrb[130].mxu1 }
 0xbce   :  { %v7856_v41 = vadd.f32 %v7855_v44, %v7775_v53  ;;  %v7857_v40 = vpop.f32.mrb[131].mxu1 }
 0xbcf   :  { %v7858_v33 = vadd.f32 %v7857_v40, %v7775_v53 }
 0xbd0   :  { %7862 = vst [vmem:[#allocation11 + $0x30] sm:$0xff] %v7856_v41 }
 0xbd1   :  { %7863 = vst [vmem:[#allocation11 + $0x38] sm:$0xff] %v7858_v33 }
 0xbd2   :  { %9030 = shalt.err (!%p9027_p8)
}
 0xbd3   :  { %s9031_s17 = scalar_lea.hbm %s13400_s8, 1024 }
 0xbd4   :  { %p9032_p9 = scmp.ne.s32.totalorder %s13400_s8, %s9031_s17  ;;  %p9035_p10 = scmp.lt.u32.totalorder %s9031_s17, %s13400_s8 }
 0xbd6   :  { %p9037_p11 = pnand %p9035_p10, %p9032_p9 }
 0xbd8   :  { %9040 = shalt.err (!%p9037_p11)
}
 0xbd9   :  { %s13925_s6 = smov 256  }
 0xbda   :  { %7875 = dma.vmem_to_hbm [thread:$0]  %s7870_s15, 1024, %s13400_s8, [#allocation5], %s13925_s6, %s13925_s6, %s13890_s9  }
 0xbdb   :  { %9047 = dma.done.wait [#allocation5], 1024  }
 0xbdc   :  { %9048 = vsyncadd [#allocation5], 4294966272 }
 0xbdd   :  { %7879 = vsyncpa [#allocation4], 1 }
 0xbde   :  { %7880 = vsyncpa [#allocation7], 1 }
 0xbdf   :  { %7881 = vsyncpa [#allocation10], 1 }
 0xbe0   :  { %7882 = vsyncpa [#allocation5], 1 }

</bundles_post_ra>
